<compile_context>
chip_gen: v7x
topology: tpu7x:2x2x1
jax: 0.10.0
libtpu: 0.0.40
codegen_flags: <defaults>
</compile_context>

<pallas_src>
import functools

import numpy as np
import jax
import jax.numpy as jnp
from jax.experimental import pallas as pl
from jax.experimental.pallas import tpu as pltpu

_INV_SQRT2 = 0.7071067811865476
ACT_DTYPE = jnp.bfloat16          # inter-kernel activation storage dtype


def _default_vmem_limit():
    # Generation-aware scoped-VMEM limit: ~3/4 of physical, capped at 96 MiB.
    try:
        info = pltpu.get_tpu_info()
        cap = getattr(info, "vmem_capacity_bytes", None)
        if cap:
            return int(min(96 * 1024 * 1024, cap * 3 // 4))
    except Exception:
        pass
    return 32 * 1024 * 1024


VMEM_LIMIT_BYTES = _default_vmem_limit()
ATTN_BLOCK_BUDGET = max(2 * 1024 * 1024, VMEM_LIMIT_BYTES // 8)


def _cparams(*sem):
    if sem:
        return pltpu.CompilerParams(dimension_semantics=sem,
                                    vmem_limit_bytes=VMEM_LIMIT_BYTES)
    return pltpu.CompilerParams(vmem_limit_bytes=VMEM_LIMIT_BYTES)


# ----------------------------------------------------------------------------
# Fused linear kernel: [pre-LN] -> matmul(bf16, f32 acc) -> +bias -> [GELU]
#                      -> [post-LN] -> [+residual]   (output stored bf16)
# ----------------------------------------------------------------------------

def _fused_linear_kernel(*refs, pre_ln, post_ln, has_bias, has_res, activation, eps):
    idx = 0
    x = refs[idx][...].astype(jnp.float32)
    idx += 1
    if pre_ln:
        g = refs[idx][...].astype(jnp.float32)
        b = refs[idx + 1][...].astype(jnp.float32)
        idx += 2
        mu = jnp.mean(x, axis=-1, keepdims=True)
        var = jnp.mean(jnp.square(x - mu), axis=-1, keepdims=True)
        x = (x - mu) * jax.lax.rsqrt(var + eps) * g + b
    w = refs[idx][...]
    idx += 1
    y = jnp.dot(x.astype(jnp.bfloat16), w.astype(jnp.bfloat16),
                preferred_element_type=jnp.float32)
    if has_bias:
        y = y + refs[idx][...].astype(jnp.float32)
        idx += 1
    if activation == "gelu":   # exact (erf) GELU, as nn.GELU() default
        y = 0.5 * y * (1.0 + jax.lax.erf(y * _INV_SQRT2))
    if post_ln:
        g2 = refs[idx][...].astype(jnp.float32)
        b2 = refs[idx + 1][...].astype(jnp.float32)
        idx += 2
        mu = jnp.mean(y, axis=-1, keepdims=True)
        var = jnp.mean(jnp.square(y - mu), axis=-1, keepdims=True)
        y = (y - mu) * jax.lax.rsqrt(var + eps) * g2 + b2
    if has_res:
        y = y + refs[idx][...].astype(jnp.float32)
        idx += 1
    o_ref = refs[-1]
    o_ref[...] = y.astype(o_ref.dtype)


def pallas_linear(x, w, b=None, *, ln_g=None, ln_b=None,
                  post_ln_g=None, post_ln_b=None, residual=None,
                  activation="none", eps=1e-5, block_m=512, block_n=512,
                  out_dtype=ACT_DTYPE):
    M, K = x.shape
    Kw, N = w.shape
    assert Kw == K

    pre_ln = ln_g is not None
    post_ln = post_ln_g is not None
    has_bias = b is not None
    has_res = residual is not None

    bm = M if M < block_m else block_m
    # N-tiling decouples VMEM from N (weight tile (K, bn)); post-LN needs the
    # full output row, so disable tiling in that (small) case.
    bn = N if (post_ln or N <= block_n) else block_n
    grid = (pl.cdiv(M, bm), pl.cdiv(N, bn))

    inputs = [x]
    in_specs = [pl.BlockSpec((bm, K), lambda i, j: (i, 0))]
    if pre_ln:
        inputs += [ln_g.reshape(1, K).astype(jnp.float32),
                   ln_b.reshape(1, K).astype(jnp.float32)]
        in_specs += [pl.BlockSpec((1, K), lambda i, j: (0, 0)),
                     pl.BlockSpec((1, K), lambda i, j: (0, 0))]
    inputs.append(w)
    in_specs.append(pl.BlockSpec((K, bn), lambda i, j: (0, j)))
    if has_bias:
        inputs.append(b.reshape(1, N).astype(jnp.float32))
        in_specs.append(pl.BlockSpec((1, bn), lambda i, j: (0, j)))
    if post_ln:
        inputs += [post_ln_g.reshape(1, N).astype(jnp.float32),
                   post_ln_b.reshape(1, N).astype(jnp.float32)]
        in_specs += [pl.BlockSpec((1, N), lambda i, j: (0, 0)),
                     pl.BlockSpec((1, N), lambda i, j: (0, 0))]
    if has_res:
        inputs.append(residual)
        in_specs.append(pl.BlockSpec((bm, bn), lambda i, j: (i, j)))

    kernel = functools.partial(_fused_linear_kernel, pre_ln=pre_ln, post_ln=post_ln,
                               has_bias=has_bias, has_res=has_res,
                               activation=activation, eps=eps)
    return pl.pallas_call(
        kernel,
        out_shape=jax.ShapeDtypeStruct((M, N), out_dtype),
        grid=grid,
        in_specs=in_specs,
        out_specs=pl.BlockSpec((bm, bn), lambda i, j: (i, j)),
        compiler_params=_cparams("parallel", "parallel"),
    )(*inputs)


# ----------------------------------------------------------------------------
# Window attention: block of windows, all heads fused, per-head results
# written directly into the output lane slice (no concat).
# ----------------------------------------------------------------------------

def _window_attn_kernel(*refs, num_heads, scale, has_mask, mask_repeat):
    qkv_ref = refs[0]
    bias_ref = refs[1]
    mask_ref = refs[2] if has_mask else None
    o_ref = refs[-1]

    qkv = qkv_ref[...].astype(jnp.float32)            # (bw, N, 3C)
    bw, N, C3 = qkv.shape
    C = C3 // 3
    hd = C // num_heads
    bias = bias_ref[...].astype(jnp.float32)          # (nH, N, N)

    mask = None
    if has_mask:
        m = mask_ref[...].astype(jnp.float32)         # (mw, N, N)
        if mask_repeat > 1:                           # tile over whole batches
            m = jnp.broadcast_to(m[None], (mask_repeat,) + m.shape)
            m = m.reshape(bw, N, N)
        mask = m

    for h in range(num_heads):
        qh = qkv[:, :, h * hd:(h + 1) * hd] * scale
        kh = qkv[:, :, C + h * hd:C + (h + 1) * hd]
        vh = qkv[:, :, 2 * C + h * hd:2 * C + (h + 1) * hd]
        s = jax.lax.dot_general(
            qh.astype(jnp.bfloat16), kh.astype(jnp.bfloat16),
            dimension_numbers=(((2,), (2,)), ((0,), (0,))),
            preferred_element_type=jnp.float32)        # (bw, N, N)
        s = s + bias[h][None, :, :]
        if has_mask:
            s = s + mask
        s = s - jnp.max(s, axis=-1, keepdims=True)
        p = jnp.exp(s)
        p = p * pl.reciprocal(jnp.sum(p, axis=-1, keepdims=True), approx=True)
        oh = jax.lax.dot_general(
            p.astype(jnp.bfloat16), vh.astype(jnp.bfloat16),
            dimension_numbers=(((2,), (1,)), ((0,), (0,))),
            preferred_element_type=jnp.float32)        # (bw, N, hd)
        o_ref[:, :, h * hd:(h + 1) * hd] = oh.astype(o_ref.dtype)


def _choose_window_block(B_, nW, bytes_per_win, budget):
    """Pick a window-block size that is either a multiple of nW (whole batch
    elements) or a divisor of nW, so the (nW, N, N) mask can be indexed
    without tiling it across the batch."""
    B = max(1, B_ // nW)
    cap = max(1, budget // max(1, bytes_per_win))
    best = 0
    for k in range(1, B + 1):
        if B % k == 0 and k * nW <= cap:
            best = max(best, k * nW)
    if best:
        return best, True                 # multiple of nW
    for d in range(min(nW, cap), 0, -1):
        if nW % d == 0:
            return d, False                # divisor of nW
    return 1, False


def pallas_window_attention(qkv_windows, rel_bias, mask, scale, num_heads, nW):
    # qkv_windows : (B_, N, 3C) bf16   rel_bias : (nH, N, N)   mask : (nW, N, N) or None
    B_, N, C3 = qkv_windows.shape
    C = C3 // 3
    has_mask = mask is not None

    bpw = N * C3 * qkv_windows.dtype.itemsize + N * C * 2
    if has_mask:
        bpw += N * N * 4
    bw, whole_batches = _choose_window_block(B_, nW, bpw, ATTN_BLOCK_BUDGET)
    grid = (B_ // bw,)

    inputs = [qkv_windows, rel_bias.astype(jnp.float32)]
    in_specs = [pl.BlockSpec((bw, N, C3), lambda i: (i, 0, 0)),
                pl.BlockSpec((num_heads, N, N), lambda i: (0, 0, 0))]
    mask_repeat = 1
    if has_mask:
        inputs.append(mask.astype(jnp.float32))        # (nW, N, N), not batch-tiled
        if whole_batches:
            mask_repeat = bw // nW
            in_specs.append(pl.BlockSpec((nW, N, N), lambda i: (0, 0, 0)))
        else:
            nblk = nW // bw
            in_specs.append(pl.BlockSpec((bw, N, N),
                                         lambda i: (i % nblk, 0, 0)))

    return pl.pallas_call(
        functools.partial(_window_attn_kernel, num_heads=num_heads,
                          scale=scale, has_mask=has_mask, mask_repeat=mask_repeat),
        out_shape=jax.ShapeDtypeStruct((B_, N, C), ACT_DTYPE),
        grid=grid,
        in_specs=in_specs,
        out_specs=pl.BlockSpec((bw, N, C), lambda i: (i, 0, 0)),
        compiler_params=_cparams("parallel"),
    )(*inputs)


# ----------------------------------------------------------------------------
# Fused tail: final LayerNorm + AdaptiveAvgPool1d(1) + classifier head.
# ----------------------------------------------------------------------------

def _ln_pool_head_kernel(x_ref, g_ref, b_ref, w_ref, hb_ref, o_ref, *, eps):
    x = x_ref[...].astype(jnp.float32)                       # (B, L, C)
    mu = jnp.mean(x, axis=-1, keepdims=True)
    var = jnp.mean(jnp.square(x - mu), axis=-1, keepdims=True)
    y = (x - mu) * jax.lax.rsqrt(var + eps)
    y = y * g_ref[...].astype(jnp.float32) + b_ref[...].astype(jnp.float32)
    pooled = jnp.mean(y, axis=1)                             # (B, C)
    out = jnp.dot(pooled.astype(jnp.bfloat16), w_ref[...].astype(jnp.bfloat16),
                  preferred_element_type=jnp.float32)
    out = out + hb_ref[...].astype(jnp.float32)
    o_ref[...] = out.astype(o_ref.dtype)


def pallas_ln_pool_head(x, gamma, beta, head_w, head_b, eps=1e-5):
    B, L, C = x.shape
    nc = head_w.shape[1]
    vmem = pl.BlockSpec(memory_space=pltpu.MemorySpace.VMEM)
    return pl.pallas_call(
        functools.partial(_ln_pool_head_kernel, eps=eps),
        out_shape=jax.ShapeDtypeStruct((B, nc), jnp.float32),
        in_specs=[vmem, vmem, vmem, vmem, vmem],
        out_specs=vmem,
        compiler_params=_cparams(),
    )(x, gamma.reshape(1, C).astype(jnp.float32),
      beta.reshape(1, C).astype(jnp.float32),
      head_w, head_b.reshape(1, nc).astype(jnp.float32))


# ----------------------------------------------------------------------------
# Plain-JAX / numpy glue
# ----------------------------------------------------------------------------

def window_partition(x, ws):
    B, H, W, C = x.shape
    x = x.reshape(B, H // ws, ws, W // ws, ws, C)
    x = jnp.transpose(x, (0, 1, 3, 2, 4, 5))
    return x.reshape(-1, ws, ws, C)


def window_reverse(windows, ws, Hp, Wp, B):
    x = windows.reshape(B, Hp // ws, Wp // ws, ws, ws, -1)
    x = jnp.transpose(x, (0, 1, 3, 2, 4, 5))
    return x.reshape(B, Hp, Wp, -1)


def relative_position_index_np(ws):
    coords_h = np.arange(ws)
    coords_w = np.arange(ws)
    coords = np.stack(np.meshgrid(coords_h, coords_w, indexing="ij"))
    coords_flatten = coords.reshape(2, -1)
    rel = coords_flatten[:, :, None] - coords_flatten[:, None, :]
    rel = rel.transpose(1, 2, 0).copy()
    rel[..., 0] += ws - 1
    rel[..., 1] += ws - 1
    rel[..., 0] *= 2 * ws - 1
    return rel.sum(-1)                                # (N, N)


def create_attn_mask_np(H, W, ws, shift):
    Hp = int(np.ceil(H / ws)) * ws
    Wp = int(np.ceil(W / ws)) * ws
    img_mask = np.zeros((1, Hp, Wp, 1), np.float32)
    h_slices = (slice(0, -ws), slice(-ws, -shift), slice(-shift, None))
    w_slices = (slice(0, -ws), slice(-ws, -shift), slice(-shift, None))
    cnt = 0
    for h in h_slices:
        for w in w_slices:
            img_mask[:, h, w, :] = cnt
            cnt += 1
    m = img_mask.reshape(1, Hp // ws, ws, Wp // ws, ws, 1)
    m = m.transpose(0, 1, 3, 2, 4, 5).reshape(-1, ws * ws)
    attn_mask = m[:, None, :] - m[:, :, None]
    attn_mask = np.where(attn_mask != 0, -100.0, 0.0).astype(np.float32)
    return attn_mask                                  # (nW, N, N)


# ----------------------------------------------------------------------------
# Model forward
# ----------------------------------------------------------------------------

def patch_embed_forward(x, p, patch_size, embed_dim):
    B, Cin, H, W = x.shape
    pad_h = (patch_size - H % patch_size) % patch_size
    pad_w = (patch_size - W % patch_size) % patch_size
    if pad_h or pad_w:
        x = jnp.pad(x, ((0, 0), (0, 0), (0, pad_h), (0, pad_w)))
    B, Cin, H, W = x.shape
    Ho, Wo = H // patch_size, W // patch_size
    # im2col: conv with kernel==stride == matmul over flattened patches
    patches = x.reshape(B, Cin, Ho, patch_size, Wo, patch_size)
    patches = jnp.transpose(patches, (0, 2, 4, 1, 3, 5))
    patches = patches.reshape(B * Ho * Wo, Cin * patch_size * patch_size)
    y = pallas_linear(patches, p["proj_w"], p["proj_b"],
                      post_ln_g=p["norm_g"], post_ln_b=p["norm_b"])
    return y.reshape(B, Ho * Wo, embed_dim), Ho, Wo


def swin_block_forward(x, H, W, p, num_heads, ws, shift, mask_nw):
    B, L, C = x.shape
    x2d = x.reshape(B * L, C)

    # fused norm1 + qkv projection (token-wise; commutes with pad/roll/partition)
    qkv = pallas_linear(x2d, p["qkv_w"], p["qkv_b"],
                        ln_g=p["norm1_g"], ln_b=p["norm1_b"])       # (B*L, 3C) bf16
    qkv = qkv.reshape(B, H, W, 3 * C)

    pad_r = (ws - W % ws) % ws
    pad_b = (ws - H % ws) % ws
    Hp, Wp = H + pad_b, W + pad_r
    if pad_r or pad_b:
        # reference pads activations with zeros BEFORE qkv, so padded tokens see
        # qkv(0) == qkv bias; replicate by filling the pad with the bias.
        full = jnp.broadcast_to(
            p["qkv_b"].astype(qkv.dtype).reshape(1, 1, 1, 3 * C),
            (B, Hp, Wp, 3 * C))
        qkv = jax.lax.dynamic_update_slice(full, qkv, (0, 0, 0, 0))

    if shift > 0:
        qkv = jnp.roll(qkv, (-shift, -shift), axis=(1, 2))

    qkv_win = window_partition(qkv, ws).reshape(-1, ws * ws, 3 * C)  # (B_, N, 3C)
    B_ = qkv_win.shape[0]
    nW = (Hp // ws) * (Wp // ws)

    scale = float(C // num_heads) ** -0.5
    mask = mask_nw if shift > 0 else None            # skip zero mask entirely
    attn = pallas_window_attention(qkv_win, p["rel_bias"], mask, scale,
                                   num_heads, nW)                    # (B_, N, C) bf16

    proj = pallas_linear(attn.reshape(B_ * ws * ws, C), p["proj_w"], p["proj_b"])
    proj = proj.reshape(-1, ws, ws, C)

    shifted = window_reverse(proj, ws, Hp, Wp, B)
    if shift > 0:
        shifted = jnp.roll(shifted, (shift, shift), axis=(1, 2))
    if pad_r or pad_b:
        shifted = shifted[:, :H, :W, :]
    x = x + shifted.reshape(B, L, C)

    # fused norm2 + fc1 + GELU, then fc2 + residual add (drop/droppath = identity)
    x2d = x.reshape(B * L, C)
    h1 = pallas_linear(x2d, p["fc1_w"], p["fc1_b"],
                       ln_g=p["norm2_g"], ln_b=p["norm2_b"], activation="gelu")
    x2d = pallas_linear(h1, p["fc2_w"], p["fc2_b"], residual=x2d)
    return x2d.reshape(B, L, C)


def patch_merging_forward(x, H, W, p):
    # TODO(synk): the 2x2 gather could be folded into the reduction kernel via
    # a (1, bh, 2, bw, 2, C) BlockSpec; kept in XLA (bf16) for lowering safety.
    B, L, C = x.shape
    x = x.reshape(B, H, W, C)
    if H % 2 == 1 or W % 2 == 1:
        x = jnp.pad(x, ((0, 0), (0, H % 2), (0, W % 2), (0, 0)))
    x0 = x[:, 0::2, 0::2, :]
    x1 = x[:, 1::2, 0::2, :]
    x2 = x[:, 0::2, 1::2, :]
    x3 = x[:, 1::2, 1::2, :]
    x = jnp.concatenate([x0, x1, x2, x3], -1)
    M = x.shape[1] * x.shape[2]
    x = x.reshape(B * M, 4 * C)
    # fused norm + reduction (no bias)
    y = pallas_linear(x, p["red_w"], None, ln_g=p["norm_g"], ln_b=p["norm_b"])
    return y.reshape(B, M, 2 * C)


def swin_forward(x, params, cfg):
    ws = cfg["window_size"]
    shift = ws // 2

    x, H, W = patch_embed_forward(x, params["patch_embed"], cfg["patch_size"],
                                  cfg["embed_dim"])
    # pos_drop: identity at inference

    for i, layer in enumerate(params["layers"]):
        blocks = layer["blocks"]
        mask_nw = None
        if len(blocks) > 1:  # at least one shifted block -> build mask once, (nW,N,N)
            mask_nw = jnp.asarray(create_attn_mask_np(H, W, ws, shift), jnp.float32)
        for d, blk in enumerate(blocks):
            s = 0 if d % 2 == 0 else shift
            x = swin_block_forward(x, H, W, blk, cfg["num_heads"][i], ws, s, mask_nw)
        if layer["downsample"] is not None:
            x = patch_merging_forward(x, H, W, layer["downsample"])
            H, W = (H + 1) // 2, (W + 1) // 2

    # fused final LayerNorm + mean pool + head
    out = pallas_ln_pool_head(x, params["norm_g"], params["norm_b"],
                              params["head_w"], params["head_b"])
    return out


# ----------------------------------------------------------------------------
# Deterministic parameter init (synthetic — shapes follow the module __init__).
# Matmul weights stored bf16 (halved DMA, f32 accumulation in kernels).
# Relative-position bias is pre-gathered to (nH, N, N) at init (hoisted).
# ----------------------------------------------------------------------------

def _tn(key, shape, std=0.02):
    return jax.random.truncated_normal(key, -2.0, 2.0, shape, jnp.float32) * std


def init_params(key, cfg):
    keys = list(jax.random.split(key, 512))
    it = iter(keys)

    def nk():
        return next(it)

    def w_bf16(shape):
        return _tn(nk(), shape).astype(jnp.bfloat16)

    ps = cfg["patch_size"]
    ws = cfg["window_size"]
    N = ws * ws
    rel_index = relative_position_index_np(ws).reshape(-1)            # (N*N,)

    params = {
        "patch_embed": dict(
            proj_w=w_bf16((cfg["in_chans"] * ps * ps, cfg["embed_dim"])),
            proj_b=jnp.zeros((cfg["embed_dim"],), jnp.float32),
            norm_g=jnp.ones((cfg["embed_dim"],), jnp.float32),
            norm_b=jnp.zeros((cfg["embed_dim"],), jnp.float32),
        )
    }
    layers = []
    for i, depth in enumerate(cfg["depths"]):
        dim = cfg["embed_dim"] * (2 ** i)
        nh = cfg["num_heads"][i]
        hidden = int(dim * cfg["mlp_ratio"])
        tbl = (2 * ws - 1) ** 2
        blocks = []
        for _ in range(depth):
            table = _tn(nk(), (tbl, nh))
            rel_bias = table[rel_index].reshape(N, N, nh)
            rel_bias = jnp.transpose(rel_bias, (2, 0, 1)).astype(jnp.float32)
            blocks.append(dict(
                norm1_g=jnp.ones((dim,), jnp.float32),
                norm1_b=jnp.zeros((dim,), jnp.float32),
                rel_bias=rel_bias,                                    # (nH, N, N)
                qkv_w=w_bf16((dim, 3 * dim)),
                qkv_b=jnp.zeros((3 * dim,), jnp.float32),
                proj_w=w_bf16((dim, dim)),
                proj_b=jnp.zeros((dim,), jnp.float32),
                norm2_g=jnp.ones((dim,), jnp.float32),
                norm2_b=jnp.zeros((dim,), jnp.float32),
                fc1_w=w_bf16((dim, hidden)),
                fc1_b=jnp.zeros((hidden,), jnp.float32),
                fc2_w=w_bf16((hidden, dim)),
                fc2_b=jnp.zeros((dim,), jnp.float32),
            ))
        layer = {"blocks": blocks}
        if i < len(cfg["depths"]) - 1:
            layer["downsample"] = dict(
                norm_g=jnp.ones((4 * dim,), jnp.float32),
                norm_b=jnp.zeros((4 * dim,), jnp.float32),
                red_w=w_bf16((4 * dim, 2 * dim)),
            )
        else:
            layer["downsample"] = None
        layers.append(layer)
    params["layers"] = layers

    nf = cfg["embed_dim"] * (2 ** (len(cfg["depths"]) - 1))
    params["norm_g"] = jnp.ones((nf,), jnp.float32)
    params["norm_b"] = jnp.zeros((nf,), jnp.float32)
    params["head_w"] = w_bf16((nf, cfg["num_classes"]))
    params["head_b"] = jnp.zeros((cfg["num_classes"],), jnp.float32)
    return params


# ----------------------------------------------------------------------------
# Main
# ----------------------------------------------------------------------------

if __name__ == "__main__":
    cfg = dict(
        patch_size=4,
        in_chans=3,
        num_classes=8,
        embed_dim=16,
        depths=(2, 2),
        num_heads=(2, 4),
        window_size=4,
        mlp_ratio=4.0,
    )
    key = jax.random.PRNGKey(0)
    pkey, xkey = jax.random.split(key)
    params = init_params(pkey, cfg)

    # small deterministic input, NCHW like the PyTorch module
    x = jax.random.normal(xkey, (2, 3, 32, 32), jnp.float32)

    forward = jax.jit(lambda inp: swin_forward(inp, params, cfg))
    out = forward(x)
    out = jax.block_until_ready(out)
    assert out.shape == (2, cfg["num_classes"])
    assert bool(jnp.all(jnp.isfinite(out)))
    print("KERNEL_OK")
</pallas_src>

<mosaic_0001>
module attributes {stable_mosaic.version = 11 : i64} {
  func.func @_fused_linear_kernel(%arg0: i32, %arg1: i32, %arg2: memref<128x48xf32, #tpu.memory_space<vmem>>, %arg3: memref<48x16xbf16, #tpu.memory_space<vmem>>, %arg4: memref<1x16xf32, #tpu.memory_space<vmem>>, %arg5: memref<1x16xf32, #tpu.memory_space<vmem>>, %arg6: memref<1x16xf32, #tpu.memory_space<vmem>>, %arg7: memref<128x16xbf16, #tpu.memory_space<vmem>>) attributes {dimension_semantics = [#tpu.dimension_semantics<parallel>, #tpu.dimension_semantics<parallel>], iteration_bounds = array<i64: 1, 1>, scalar_prefetch = 0 : i64, scratch_operands = 0 : i64, tpu.core_type = #tpu.core_type<tc>, window_params = [{transform_indices = @transform_0, window_bounds = array<i64: 128, 48>}, {transform_indices = @transform_1, window_bounds = array<i64: 48, 16>}, {transform_indices = @transform_2, window_bounds = array<i64: 1, 16>}, {pipeline_mode = #tpu.pipeline_mode<synchronous>, transform_indices = @transform_3, window_bounds = array<i64: 1, 16>}, {pipeline_mode = #tpu.pipeline_mode<synchronous>, transform_indices = @transform_4, window_bounds = array<i64: 1, 16>}, {transform_indices = @transform_5, window_bounds = array<i64: 128, 16>}]} {
    %c0 = arith.constant 0 : index
    %c0_0 = arith.constant 0 : index
    %0 = vector.load %arg2[%c0, %c0_0] : memref<128x48xf32, #tpu.memory_space<vmem>>, vector<128x48xf32>
    %c0_1 = arith.constant 0 : index
    %c0_2 = arith.constant 0 : index
    %1 = vector.load %arg3[%c0_1, %c0_2] : memref<48x16xbf16, #tpu.memory_space<vmem>>, vector<48x16xbf16>
    %2 = arith.truncf %0 : vector<128x48xf32> to vector<128x48xbf16>
    %cst = arith.constant dense<0.000000e+00> : vector<128x16xf32>
    %3 = tpu.matmul %2, %1, %cst {dimension_numbers = #tpu.dot_dimension_numbers<[1], [0], [0], [1], [0, 0, 1, 1], [], []>} : vector<128x48xbf16>, vector<48x16xbf16>, vector<128x16xf32> -> vector<128x16xf32>
    %c0_3 = arith.constant 0 : index
    %c0_4 = arith.constant 0 : index
    %4 = vector.load %arg4[%c0_3, %c0_4] : memref<1x16xf32, #tpu.memory_space<vmem>>, vector<1x16xf32>
    %5 = vector.broadcast %4 : vector<1x16xf32> to vector<128x16xf32>
    %6 = arith.addf %3, %5 : vector<128x16xf32>
    %c0_5 = arith.constant 0 : index
    %c0_6 = arith.constant 0 : index
    %7 = vector.load %arg5[%c0_5, %c0_6] : memref<1x16xf32, #tpu.memory_space<vmem>>, vector<1x16xf32>
    %c0_7 = arith.constant 0 : index
    %c0_8 = arith.constant 0 : index
    %8 = vector.load %arg6[%c0_7, %c0_8] : memref<1x16xf32, #tpu.memory_space<vmem>>, vector<1x16xf32>
    %cst_9 = arith.constant dense<0.000000e+00> : vector<128xf32>
    %9 = vector.multi_reduction <add>, %6, %cst_9 [1] : vector<128x16xf32> to vector<128xf32>
    %10 = vector.shape_cast %9 : vector<128xf32> to vector<128x1xf32>
    %cst_10 = arith.constant 1.600000e+01 : f32
    %11 = vector.broadcast %cst_10 : f32 to vector<128x1xf32>
    %12 = arith.divf %10, %11 : vector<128x1xf32>
    %13 = vector.broadcast %12 : vector<128x1xf32> to vector<128x16xf32>
    %14 = arith.subf %6, %13 : vector<128x16xf32>
    %15 = arith.mulf %14, %14 : vector<128x16xf32>
    %cst_11 = arith.constant dense<0.000000e+00> : vector<128xf32>
    %16 = vector.multi_reduction <add>, %15, %cst_11 [1] : vector<128x16xf32> to vector<128xf32>
    %17 = vector.shape_cast %16 : vector<128xf32> to vector<128x1xf32>
    %cst_12 = arith.constant 1.600000e+01 : f32
    %18 = vector.broadcast %cst_12 : f32 to vector<128x1xf32>
    %19 = arith.divf %17, %18 : vector<128x1xf32>
    %20 = vector.broadcast %12 : vector<128x1xf32> to vector<128x16xf32>
    %21 = arith.subf %6, %20 : vector<128x16xf32>
    %cst_13 = arith.constant 9.99999974E-6 : f32
    %22 = vector.broadcast %cst_13 : f32 to vector<128x1xf32>
    %23 = arith.addf %19, %22 : vector<128x1xf32>
    %24 = math.rsqrt %23 : vector<128x1xf32>
    %25 = vector.broadcast %24 : vector<128x1xf32> to vector<128x16xf32>
    %26 = arith.mulf %21, %25 : vector<128x16xf32>
    %27 = vector.broadcast %7 : vector<1x16xf32> to vector<128x16xf32>
    %28 = arith.mulf %26, %27 : vector<128x16xf32>
    %29 = vector.broadcast %8 : vector<1x16xf32> to vector<128x16xf32>
    %30 = arith.addf %28, %29 : vector<128x16xf32>
    %31 = arith.truncf %30 : vector<128x16xf32> to vector<128x16xbf16>
    %c0_14 = arith.constant 0 : index
    %c0_15 = arith.constant 0 : index
    %32 = vector.load %arg7[%c0_14, %c0_15] : memref<128x16xbf16, #tpu.memory_space<vmem>>, vector<128x16xbf16>
    tpu.vector_store %arg7[%c0_14, %c0_15], %31 {strides = array<i32>} : memref<128x16xbf16, #tpu.memory_space<vmem>>, vector<128x16xbf16>,
    return
  }
  func.func @transform_0(%arg0: i32, %arg1: i32) -> (i32, i32) {
    %c0_i32 = arith.constant 0 : i32
    %c0_i32_0 = arith.constant 0 : i32
    return %arg0, %c0_i32 : i32, i32
  }
  func.func @transform_1(%arg0: i32, %arg1: i32) -> (i32, i32) {
    %c0_i32 = arith.constant 0 : i32
    %c0_i32_0 = arith.constant 0 : i32
    return %c0_i32, %arg1 : i32, i32
  }
  func.func @transform_2(%arg0: i32, %arg1: i32) -> (i32, i32) {
    %c0_i32 = arith.constant 0 : i32
    %c0_i32_0 = arith.constant 0 : i32
    return %c0_i32, %arg1 : i32, i32
  }
  func.func @transform_3(%arg0: i32, %arg1: i32) -> (i32, i32) {
    %c0_i32 = arith.constant 0 : i32
    %c0_i32_0 = arith.constant 0 : i32
    %c0_i32_1 = arith.constant 0 : i32
    return %c0_i32, %c0_i32_0 : i32, i32
  }
  func.func @transform_4(%arg0: i32, %arg1: i32) -> (i32, i32) {
    %c0_i32 = arith.constant 0 : i32
    %c0_i32_0 = arith.constant 0 : i32
    %c0_i32_1 = arith.constant 0 : i32
    return %c0_i32, %c0_i32_0 : i32, i32
  }
  func.func @transform_5(%arg0: i32, %arg1: i32) -> (i32, i32) {
    %c0_i32 = arith.constant 0 : i32
    return %arg0, %arg1 : i32, i32
  }
}

module attributes {stable_mosaic.version = 11 : i64} {
  func.func @_fused_linear_kernel(%arg0: i32, %arg1: i32, %arg2: memref<128x16xbf16, #tpu.memory_space<vmem>>, %arg3: memref<1x16xf32, #tpu.memory_space<vmem>>, %arg4: memref<1x16xf32, #tpu.memory_space<vmem>>, %arg5: memref<16x48xbf16, #tpu.memory_space<vmem>>, %arg6: memref<1x48xf32, #tpu.memory_space<vmem>>, %arg7: memref<128x48xbf16, #tpu.memory_space<vmem>>) attributes {dimension_semantics = [#tpu.dimension_semantics<parallel>, #tpu.dimension_semantics<parallel>], iteration_bounds = array<i64: 1, 1>, scalar_prefetch = 0 : i64, scratch_operands = 0 : i64, tpu.core_type = #tpu.core_type<tc>, window_params = [{transform_indices = @transform_0, window_bounds = array<i64: 128, 16>}, {pipeline_mode = #tpu.pipeline_mode<synchronous>, transform_indices = @transform_1, window_bounds = array<i64: 1, 16>}, {pipeline_mode = #tpu.pipeline_mode<synchronous>, transform_indices = @transform_2, window_bounds = array<i64: 1, 16>}, {transform_indices = @transform_3, window_bounds = array<i64: 16, 48>}, {transform_indices = @transform_4, window_bounds = array<i64: 1, 48>}, {transform_indices = @transform_5, window_bounds = array<i64: 128, 48>}]} {
    %c0 = arith.constant 0 : index
    %c0_0 = arith.constant 0 : index
    %0 = vector.load %arg2[%c0, %c0_0] : memref<128x16xbf16, #tpu.memory_space<vmem>>, vector<128x16xbf16>
    %1 = arith.extf %0 : vector<128x16xbf16> to vector<128x16xf32>
    %c0_1 = arith.constant 0 : index
    %c0_2 = arith.constant 0 : index
    %2 = vector.load %arg3[%c0_1, %c0_2] : memref<1x16xf32, #tpu.memory_space<vmem>>, vector<1x16xf32>
    %c0_3 = arith.constant 0 : index
    %c0_4 = arith.constant 0 : index
    %3 = vector.load %arg4[%c0_3, %c0_4] : memref<1x16xf32, #tpu.memory_space<vmem>>, vector<1x16xf32>
    %cst = arith.constant dense<0.000000e+00> : vector<128xf32>
    %4 = vector.multi_reduction <add>, %1, %cst [1] : vector<128x16xf32> to vector<128xf32>
    %5 = vector.shape_cast %4 : vector<128xf32> to vector<128x1xf32>
    %cst_5 = arith.constant 1.600000e+01 : f32
    %6 = vector.broadcast %cst_5 : f32 to vector<128x1xf32>
    %7 = arith.divf %5, %6 : vector<128x1xf32>
    %8 = vector.broadcast %7 : vector<128x1xf32> to vector<128x16xf32>
    %9 = arith.subf %1, %8 : vector<128x16xf32>
    %10 = arith.mulf %9, %9 : vector<128x16xf32>
    %cst_6 = arith.constant dense<0.000000e+00> : vector<128xf32>
    %11 = vector.multi_reduction <add>, %10, %cst_6 [1] : vector<128x16xf32> to vector<128xf32>
    %12 = vector.shape_cast %11 : vector<128xf32> to vector<128x1xf32>
    %cst_7 = arith.constant 1.600000e+01 : f32
    %13 = vector.broadcast %cst_7 : f32 to vector<128x1xf32>
    %14 = arith.divf %12, %13 : vector<128x1xf32>
    %15 = vector.broadcast %7 : vector<128x1xf32> to vector<128x16xf32>
    %16 = arith.subf %1, %15 : vector<128x16xf32>
    %cst_8 = arith.constant 9.99999974E-6 : f32
    %17 = vector.broadcast %cst_8 : f32 to vector<128x1xf32>
    %18 = arith.addf %14, %17 : vector<128x1xf32>
    %19 = math.rsqrt %18 : vector<128x1xf32>
    %20 = vector.broadcast %19 : vector<128x1xf32> to vector<128x16xf32>
    %21 = arith.mulf %16, %20 : vector<128x16xf32>
    %22 = vector.broadcast %2 : vector<1x16xf32> to vector<128x16xf32>
    %23 = arith.mulf %21, %22 : vector<128x16xf32>
    %24 = vector.broadcast %3 : vector<1x16xf32> to vector<128x16xf32>
    %25 = arith.addf %23, %24 : vector<128x16xf32>
    %c0_9 = arith.constant 0 : index
    %c0_10 = arith.constant 0 : index
    %26 = vector.load %arg5[%c0_9, %c0_10] : memref<16x48xbf16, #tpu.memory_space<vmem>>, vector<16x48xbf16>
    %27 = arith.truncf %25 : vector<128x16xf32> to vector<128x16xbf16>
    %cst_11 = arith.constant dense<0.000000e+00> : vector<128x48xf32>
    %28 = tpu.matmul %27, %26, %cst_11 {dimension_numbers = #tpu.dot_dimension_numbers<[1], [0], [0], [1], [0, 0, 1, 1], [], []>} : vector<128x16xbf16>, vector<16x48xbf16>, vector<128x48xf32> -> vector<128x48xf32>
    %c0_12 = arith.constant 0 : index
    %c0_13 = arith.constant 0 : index
    %29 = vector.load %arg6[%c0_12, %c0_13] : memref<1x48xf32, #tpu.memory_space<vmem>>, vector<1x48xf32>
    %30 = vector.broadcast %29 : vector<1x48xf32> to vector<128x48xf32>
    %31 = arith.addf %28, %30 : vector<128x48xf32>
    %32 = arith.truncf %31 : vector<128x48xf32> to vector<128x48xbf16>
    %c0_14 = arith.constant 0 : index
    %c0_15 = arith.constant 0 : index
    %33 = vector.load %arg7[%c0_14, %c0_15] : memref<128x48xbf16, #tpu.memory_space<vmem>>, vector<128x48xbf16>
    tpu.vector_store %arg7[%c0_14, %c0_15], %32 {strides = array<i32>} : memref<128x48xbf16, #tpu.memory_space<vmem>>, vector<128x48xbf16>,
    return
  }
  func.func @transform_0(%arg0: i32, %arg1: i32) -> (i32, i32) {
    %c0_i32 = arith.constant 0 : i32
    %c0_i32_0 = arith.constant 0 : i32
    return %arg0, %c0_i32 : i32, i32
  }
  func.func @transform_1(%arg0: i32, %arg1: i32) -> (i32, i32) {
    %c0_i32 = arith.constant 0 : i32
    %c0_i32_0 = arith.constant 0 : i32
    %c0_i32_1 = arith.constant 0 : i32
    return %c0_i32, %c0_i32_0 : i32, i32
  }
  func.func @transform_2(%arg0: i32, %arg1: i32) -> (i32, i32) {
    %c0_i32 = arith.constant 0 : i32
    %c0_i32_0 = arith.constant 0 : i32
    %c0_i32_1 = arith.constant 0 : i32
    return %c0_i32, %c0_i32_0 : i32, i32
  }
  func.func @transform_3(%arg0: i32, %arg1: i32) -> (i32, i32) {
    %c0_i32 = arith.constant 0 : i32
    %c0_i32_0 = arith.constant 0 : i32
    return %c0_i32, %arg1 : i32, i32
  }
  func.func @transform_4(%arg0: i32, %arg1: i32) -> (i32, i32) {
    %c0_i32 = arith.constant 0 : i32
    %c0_i32_0 = arith.constant 0 : i32
    return %c0_i32, %arg1 : i32, i32
  }
  func.func @transform_5(%arg0: i32, %arg1: i32) -> (i32, i32) {
    %c0_i32 = arith.constant 0 : i32
    return %arg0, %arg1 : i32, i32
  }
}

module attributes {stable_mosaic.version = 11 : i64} {
  func.func @_window_attn_kernel(%arg0: i32, %arg1: memref<8x16x48xbf16, #tpu.memory_space<vmem>>, %arg2: memref<2x16x16xf32, #tpu.memory_space<vmem>>, %arg3: memref<8x16x16xbf16, #tpu.memory_space<vmem>>) attributes {dimension_semantics = [#tpu.dimension_semantics<parallel>], iteration_bounds = array<i64: 1>, scalar_prefetch = 0 : i64, scratch_operands = 0 : i64, tpu.core_type = #tpu.core_type<tc>, window_params = [{transform_indices = @transform_0, window_bounds = array<i64: 8, 16, 48>}, {pipeline_mode = #tpu.pipeline_mode<synchronous>, transform_indices = @transform_1, window_bounds = array<i64: 2, 16, 16>}, {transform_indices = @transform_2, window_bounds = array<i64: 8, 16, 16>}]} {
    %c0 = arith.constant 0 : index
    %c0_0 = arith.constant 0 : index
    %c0_1 = arith.constant 0 : index
    %0 = vector.load %arg1[%c0, %c0_0, %c0_1] : memref<8x16x48xbf16, #tpu.memory_space<vmem>>, vector<8x16x48xbf16>
    %1 = arith.extf %0 : vector<8x16x48xbf16> to vector<8x16x48xf32>
    %c0_2 = arith.constant 0 : index
    %c0_3 = arith.constant 0 : index
    %c0_4 = arith.constant 0 : index
    %2 = vector.load %arg2[%c0_2, %c0_3, %c0_4] : memref<2x16x16xf32, #tpu.memory_space<vmem>>, vector<2x16x16xf32>
    %3 = vector.extract_strided_slice %1 {offsets = [0, 0, 0], sizes = [8, 16, 8], strides = [1, 1, 1]} : vector<8x16x48xf32> to vector<8x16x8xf32>
    %cst = arith.constant 0.353553385 : f32
    %4 = vector.broadcast %cst : f32 to vector<8x16x8xf32>
    %5 = arith.mulf %3, %4 : vector<8x16x8xf32>
    %6 = vector.extract_strided_slice %1 {offsets = [0, 0, 16], sizes = [8, 16, 8], strides = [1, 1, 1]} : vector<8x16x48xf32> to vector<8x16x8xf32>
    %7 = vector.extract_strided_slice %1 {offsets = [0, 0, 32], sizes = [8, 16, 8], strides = [1, 1, 1]} : vector<8x16x48xf32> to vector<8x16x8xf32>
    %8 = arith.truncf %5 : vector<8x16x8xf32> to vector<8x16x8xbf16>
    %9 = arith.truncf %6 : vector<8x16x8xf32> to vector<8x16x8xbf16>
    %cst_5 = arith.constant dense<0.000000e+00> : vector<8x16x16xf32>
    %10 = tpu.matmul %8, %9, %cst_5 {dimension_numbers = #tpu.dot_dimension_numbers<[2], [2], [1], [1], [0, 0, 0, 1, 1, 1], [0], [0]>} : vector<8x16x8xbf16>, vector<8x16x8xbf16>, vector<8x16x16xf32> -> vector<8x16x16xf32>
    %11 = vector.extract_strided_slice %2 {offsets = [0, 0, 0], sizes = [1, 16, 16], strides = [1, 1, 1]} : vector<2x16x16xf32> to vector<1x16x16xf32>
    %12 = vector.shape_cast %11 : vector<1x16x16xf32> to vector<16x16xf32>
    %13 = vector.shape_cast %12 : vector<16x16xf32> to vector<1x16x16xf32>
    %14 = vector.broadcast %13 : vector<1x16x16xf32> to vector<8x16x16xf32>
    %15 = arith.addf %10, %14 : vector<8x16x16xf32>
    %cst_6 = arith.constant dense<0xFF800000> : vector<8x16xf32>
    %16 = vector.multi_reduction <maximumf>, %15, %cst_6 [2] : vector<8x16x16xf32> to vector<8x16xf32>
    %17 = vector.shape_cast %16 : vector<8x16xf32> to vector<8x16x1xf32>
    %18 = vector.broadcast %17 : vector<8x16x1xf32> to vector<8x16x16xf32>
    %19 = arith.subf %15, %18 : vector<8x16x16xf32>
    %20 = math.exp %19 : vector<8x16x16xf32>
    %cst_7 = arith.constant dense<0.000000e+00> : vector<8x16xf32>
    %21 = vector.multi_reduction <add>, %20, %cst_7 [2] : vector<8x16x16xf32> to vector<8x16xf32>
    %22 = vector.shape_cast %21 : vector<8x16xf32> to vector<8x16x1xf32>
    %23 = tpu.reciprocal %22 {approx = true} : vector<8x16x1xf32> -> vector<8x16x1xf32>
    %24 = vector.broadcast %23 : vector<8x16x1xf32> to vector<8x16x16xf32>
    %25 = arith.mulf %20, %24 : vector<8x16x16xf32>
    %26 = arith.truncf %25 : vector<8x16x16xf32> to vector<8x16x16xbf16>
    %27 = arith.truncf %7 : vector<8x16x8xf32> to vector<8x16x8xbf16>
    %cst_8 = arith.constant dense<0.000000e+00> : vector<8x16x8xf32>
    %28 = tpu.matmul %26, %27, %cst_8 {dimension_numbers = #tpu.dot_dimension_numbers<[2], [1], [1], [2], [0, 0, 0, 1, 1, 2], [0], [0]>} : vector<8x16x16xbf16>, vector<8x16x8xbf16>, vector<8x16x8xf32> -> vector<8x16x8xf32>
    %29 = arith.truncf %28 : vector<8x16x8xf32> to vector<8x16x8xbf16>
    %c0_9 = arith.constant 0 : index
    %c0_10 = arith.constant 0 : index
    %c0_11 = arith.constant 0 : index
    %30 = vector.load %arg3[%c0_9, %c0_10, %c0_11] : memref<8x16x16xbf16, #tpu.memory_space<vmem>>, vector<8x16x8xbf16>
    tpu.vector_store %arg3[%c0_9, %c0_10, %c0_11], %29 {strides = array<i32>} : memref<8x16x16xbf16, #tpu.memory_space<vmem>>, vector<8x16x8xbf16>,
    %31 = vector.extract_strided_slice %1 {offsets = [0, 0, 8], sizes = [8, 16, 8], strides = [1, 1, 1]} : vector<8x16x48xf32> to vector<8x16x8xf32>
    %cst_12 = arith.constant 0.353553385 : f32
    %32 = vector.broadcast %cst_12 : f32 to vector<8x16x8xf32>
    %33 = arith.mulf %31, %32 : vector<8x16x8xf32>
    %34 = vector.extract_strided_slice %1 {offsets = [0, 0, 24], sizes = [8, 16, 8], strides = [1, 1, 1]} : vector<8x16x48xf32> to vector<8x16x8xf32>
    %35 = vector.extract_strided_slice %1 {offsets = [0, 0, 40], sizes = [8, 16, 8], strides = [1, 1, 1]} : vector<8x16x48xf32> to vector<8x16x8xf32>
    %36 = arith.truncf %33 : vector<8x16x8xf32> to vector<8x16x8xbf16>
    %37 = arith.truncf %34 : vector<8x16x8xf32> to vector<8x16x8xbf16>
    %cst_13 = arith.constant dense<0.000000e+00> : vector<8x16x16xf32>
    %38 = tpu.matmul %36, %37, %cst_13 {dimension_numbers = #tpu.dot_dimension_numbers<[2], [2], [1], [1], [0, 0, 0, 1, 1, 1], [0], [0]>} : vector<8x16x8xbf16>, vector<8x16x8xbf16>, vector<8x16x16xf32> -> vector<8x16x16xf32>
    %39 = vector.extract_strided_slice %2 {offsets = [1, 0, 0], sizes = [1, 16, 16], strides = [1, 1, 1]} : vector<2x16x16xf32> to vector<1x16x16xf32>
    %40 = vector.shape_cast %39 : vector<1x16x16xf32> to vector<16x16xf32>
    %41 = vector.shape_cast %40 : vector<16x16xf32> to vector<1x16x16xf32>
    %42 = vector.broadcast %41 : vector<1x16x16xf32> to vector<8x16x16xf32>
    %43 = arith.addf %38, %42 : vector<8x16x16xf32>
    %cst_14 = arith.constant dense<0xFF800000> : vector<8x16xf32>
    %44 = vector.multi_reduction <maximumf>, %43, %cst_14 [2] : vector<8x16x16xf32> to vector<8x16xf32>
    %45 = vector.shape_cast %44 : vector<8x16xf32> to vector<8x16x1xf32>
    %46 = vector.broadcast %45 : vector<8x16x1xf32> to vector<8x16x16xf32>
    %47 = arith.subf %43, %46 : vector<8x16x16xf32>
    %48 = math.exp %47 : vector<8x16x16xf32>
    %cst_15 = arith.constant dense<0.000000e+00> : vector<8x16xf32>
    %49 = vector.multi_reduction <add>, %48, %cst_15 [2] : vector<8x16x16xf32> to vector<8x16xf32>
    %50 = vector.shape_cast %49 : vector<8x16xf32> to vector<8x16x1xf32>
    %51 = tpu.reciprocal %50 {approx = true} : vector<8x16x1xf32> -> vector<8x16x1xf32>
    %52 = vector.broadcast %51 : vector<8x16x1xf32> to vector<8x16x16xf32>
    %53 = arith.mulf %48, %52 : vector<8x16x16xf32>
    %54 = arith.truncf %53 : vector<8x16x16xf32> to vector<8x16x16xbf16>
    %55 = arith.truncf %35 : vector<8x16x8xf32> to vector<8x16x8xbf16>
    %cst_16 = arith.constant dense<0.000000e+00> : vector<8x16x8xf32>
    %56 = tpu.matmul %54, %55, %cst_16 {dimension_numbers = #tpu.dot_dimension_numbers<[2], [1], [1], [2], [0, 0, 0, 1, 1, 2], [0], [0]>} : vector<8x16x16xbf16>, vector<8x16x8xbf16>, vector<8x16x8xf32> -> vector<8x16x8xf32>
    %57 = arith.truncf %56 : vector<8x16x8xf32> to vector<8x16x8xbf16>
    %c0_17 = arith.constant 0 : index
    %c0_18 = arith.constant 0 : index
    %c8 = arith.constant 8 : index
    %58 = vector.load %arg3[%c0_17, %c0_18, %c8] : memref<8x16x16xbf16, #tpu.memory_space<vmem>>, vector<8x16x8xbf16>
    tpu.vector_store %arg3[%c0_17, %c0_18, %c8], %57 {strides = array<i32>} : memref<8x16x16xbf16, #tpu.memory_space<vmem>>, vector<8x16x8xbf16>,
    return
  }
  func.func @transform_0(%arg0: i32) -> (i32, i32, i32) {
    %c0_i32 = arith.constant 0 : i32
    %c0_i32_0 = arith.constant 0 : i32
    %c0_i32_1 = arith.constant 0 : i32
    return %arg0, %c0_i32, %c0_i32_0 : i32, i32, i32
  }
  func.func @transform_1(%arg0: i32) -> (i32, i32, i32) {
    %c0_i32 = arith.constant 0 : i32
    %c0_i32_0 = arith.constant 0 : i32
    %c0_i32_1 = arith.constant 0 : i32
    %c0_i32_2 = arith.constant 0 : i32
    return %c0_i32, %c0_i32_0, %c0_i32_1 : i32, i32, i32
  }
  func.func @transform_2(%arg0: i32) -> (i32, i32, i32) {
    %c0_i32 = arith.constant 0 : i32
    %c0_i32_0 = arith.constant 0 : i32
    %c0_i32_1 = arith.constant 0 : i32
    return %arg0, %c0_i32, %c0_i32_0 : i32, i32, i32
  }
}

module attributes {stable_mosaic.version = 11 : i64} {
  func.func @_fused_linear_kernel(%arg0: i32, %arg1: i32, %arg2: memref<128x16xbf16, #tpu.memory_space<vmem>>, %arg3: memref<16x16xbf16, #tpu.memory_space<vmem>>, %arg4: memref<1x16xf32, #tpu.memory_space<vmem>>, %arg5: memref<128x16xbf16, #tpu.memory_space<vmem>>) attributes {dimension_semantics = [#tpu.dimension_semantics<parallel>, #tpu.dimension_semantics<parallel>], iteration_bounds = array<i64: 1, 1>, scalar_prefetch = 0 : i64, scratch_operands = 0 : i64, tpu.core_type = #tpu.core_type<tc>, window_params = [{transform_indices = @transform_0, window_bounds = array<i64: 128, 16>}, {transform_indices = @transform_1, window_bounds = array<i64: 16, 16>}, {transform_indices = @transform_2, window_bounds = array<i64: 1, 16>}, {transform_indices = @transform_3, window_bounds = array<i64: 128, 16>}]} {
    %c0 = arith.constant 0 : index
    %c0_0 = arith.constant 0 : index
    %0 = vector.load %arg2[%c0, %c0_0] : memref<128x16xbf16, #tpu.memory_space<vmem>>, vector<128x16xbf16>
    %1 = arith.extf %0 : vector<128x16xbf16> to vector<128x16xf32>
    %c0_1 = arith.constant 0 : index
    %c0_2 = arith.constant 0 : index
    %2 = vector.load %arg3[%c0_1, %c0_2] : memref<16x16xbf16, #tpu.memory_space<vmem>>, vector<16x16xbf16>
    %3 = arith.truncf %1 : vector<128x16xf32> to vector<128x16xbf16>
    %cst = arith.constant dense<0.000000e+00> : vector<128x16xf32>
    %4 = tpu.matmul %3, %2, %cst {dimension_numbers = #tpu.dot_dimension_numbers<[1], [0], [0], [1], [0, 0, 1, 1], [], []>} : vector<128x16xbf16>, vector<16x16xbf16>, vector<128x16xf32> -> vector<128x16xf32>
    %c0_3 = arith.constant 0 : index
    %c0_4 = arith.constant 0 : index
    %5 = vector.load %arg4[%c0_3, %c0_4] : memref<1x16xf32, #tpu.memory_space<vmem>>, vector<1x16xf32>
    %6 = vector.broadcast %5 : vector<1x16xf32> to vector<128x16xf32>
    %7 = arith.addf %4, %6 : vector<128x16xf32>
    %8 = arith.truncf %7 : vector<128x16xf32> to vector<128x16xbf16>
    %c0_5 = arith.constant 0 : index
    %c0_6 = arith.constant 0 : index
    %9 = vector.load %arg5[%c0_5, %c0_6] : memref<128x16xbf16, #tpu.memory_space<vmem>>, vector<128x16xbf16>
    tpu.vector_store %arg5[%c0_5, %c0_6], %8 {strides = array<i32>} : memref<128x16xbf16, #tpu.memory_space<vmem>>, vector<128x16xbf16>,
    return
  }
  func.func @transform_0(%arg0: i32, %arg1: i32) -> (i32, i32) {
    %c0_i32 = arith.constant 0 : i32
    %c0_i32_0 = arith.constant 0 : i32
    return %arg0, %c0_i32 : i32, i32
  }
  func.func @transform_1(%arg0: i32, %arg1: i32) -> (i32, i32) {
    %c0_i32 = arith.constant 0 : i32
    %c0_i32_0 = arith.constant 0 : i32
    return %c0_i32, %arg1 : i32, i32
  }
  func.func @transform_2(%arg0: i32, %arg1: i32) -> (i32, i32) {
    %c0_i32 = arith.constant 0 : i32
    %c0_i32_0 = arith.constant 0 : i32
    return %c0_i32, %arg1 : i32, i32
  }
  func.func @transform_3(%arg0: i32, %arg1: i32) -> (i32, i32) {
    %c0_i32 = arith.constant 0 : i32
    return %arg0, %arg1 : i32, i32
  }
}

module attributes {stable_mosaic.version = 11 : i64} {
  func.func @_fused_linear_kernel(%arg0: i32, %arg1: i32, %arg2: memref<128x16xbf16, #tpu.memory_space<vmem>>, %arg3: memref<1x16xf32, #tpu.memory_space<vmem>>, %arg4: memref<1x16xf32, #tpu.memory_space<vmem>>, %arg5: memref<16x64xbf16, #tpu.memory_space<vmem>>, %arg6: memref<1x64xf32, #tpu.memory_space<vmem>>, %arg7: memref<128x64xbf16, #tpu.memory_space<vmem>>) attributes {dimension_semantics = [#tpu.dimension_semantics<parallel>, #tpu.dimension_semantics<parallel>], iteration_bounds = array<i64: 1, 1>, scalar_prefetch = 0 : i64, scratch_operands = 0 : i64, tpu.core_type = #tpu.core_type<tc>, window_params = [{transform_indices = @transform_0, window_bounds = array<i64: 128, 16>}, {pipeline_mode = #tpu.pipeline_mode<synchronous>, transform_indices = @transform_1, window_bounds = array<i64: 1, 16>}, {pipeline_mode = #tpu.pipeline_mode<synchronous>, transform_indices = @transform_2, window_bounds = array<i64: 1, 16>}, {transform_indices = @transform_3, window_bounds = array<i64: 16, 64>}, {transform_indices = @transform_4, window_bounds = array<i64: 1, 64>}, {transform_indices = @transform_5, window_bounds = array<i64: 128, 64>}]} {
    %c0 = arith.constant 0 : index
    %c0_0 = arith.constant 0 : index
    %0 = vector.load %arg2[%c0, %c0_0] : memref<128x16xbf16, #tpu.memory_space<vmem>>, vector<128x16xbf16>
    %1 = arith.extf %0 : vector<128x16xbf16> to vector<128x16xf32>
    %c0_1 = arith.constant 0 : index
    %c0_2 = arith.constant 0 : index
    %2 = vector.load %arg3[%c0_1, %c0_2] : memref<1x16xf32, #tpu.memory_space<vmem>>, vector<1x16xf32>
    %c0_3 = arith.constant 0 : index
    %c0_4 = arith.constant 0 : index
    %3 = vector.load %arg4[%c0_3, %c0_4] : memref<1x16xf32, #tpu.memory_space<vmem>>, vector<1x16xf32>
    %cst = arith.constant dense<0.000000e+00> : vector<128xf32>
    %4 = vector.multi_reduction <add>, %1, %cst [1] : vector<128x16xf32> to vector<128xf32>
    %5 = vector.shape_cast %4 : vector<128xf32> to vector<128x1xf32>
    %cst_5 = arith.constant 1.600000e+01 : f32
    %6 = vector.broadcast %cst_5 : f32 to vector<128x1xf32>
    %7 = arith.divf %5, %6 : vector<128x1xf32>
    %8 = vector.broadcast %7 : vector<128x1xf32> to vector<128x16xf32>
    %9 = arith.subf %1, %8 : vector<128x16xf32>
    %10 = arith.mulf %9, %9 : vector<128x16xf32>
    %cst_6 = arith.constant dense<0.000000e+00> : vector<128xf32>
    %11 = vector.multi_reduction <add>, %10, %cst_6 [1] : vector<128x16xf32> to vector<128xf32>
    %12 = vector.shape_cast %11 : vector<128xf32> to vector<128x1xf32>
    %cst_7 = arith.constant 1.600000e+01 : f32
    %13 = vector.broadcast %cst_7 : f32 to vector<128x1xf32>
    %14 = arith.divf %12, %13 : vector<128x1xf32>
    %15 = vector.broadcast %7 : vector<128x1xf32> to vector<128x16xf32>
    %16 = arith.subf %1, %15 : vector<128x16xf32>
    %cst_8 = arith.constant 9.99999974E-6 : f32
    %17 = vector.broadcast %cst_8 : f32 to vector<128x1xf32>
    %18 = arith.addf %14, %17 : vector<128x1xf32>
    %19 = math.rsqrt %18 : vector<128x1xf32>
    %20 = vector.broadcast %19 : vector<128x1xf32> to vector<128x16xf32>
    %21 = arith.mulf %16, %20 : vector<128x16xf32>
    %22 = vector.broadcast %2 : vector<1x16xf32> to vector<128x16xf32>
    %23 = arith.mulf %21, %22 : vector<128x16xf32>
    %24 = vector.broadcast %3 : vector<1x16xf32> to vector<128x16xf32>
    %25 = arith.addf %23, %24 : vector<128x16xf32>
    %c0_9 = arith.constant 0 : index
    %c0_10 = arith.constant 0 : index
    %26 = vector.load %arg5[%c0_9, %c0_10] : memref<16x64xbf16, #tpu.memory_space<vmem>>, vector<16x64xbf16>
    %27 = arith.truncf %25 : vector<128x16xf32> to vector<128x16xbf16>
    %cst_11 = arith.constant dense<0.000000e+00> : vector<128x64xf32>
    %28 = tpu.matmul %27, %26, %cst_11 {dimension_numbers = #tpu.dot_dimension_numbers<[1], [0], [0], [1], [0, 0, 1, 1], [], []>} : vector<128x16xbf16>, vector<16x64xbf16>, vector<128x64xf32> -> vector<128x64xf32>
    %c0_12 = arith.constant 0 : index
    %c0_13 = arith.constant 0 : index
    %29 = vector.load %arg6[%c0_12, %c0_13] : memref<1x64xf32, #tpu.memory_space<vmem>>, vector<1x64xf32>
    %30 = vector.broadcast %29 : vector<1x64xf32> to vector<128x64xf32>
    %31 = arith.addf %28, %30 : vector<128x64xf32>
    %cst_14 = arith.constant 5.000000e-01 : f32
    %32 = vector.broadcast %cst_14 : f32 to vector<128x64xf32>
    %33 = arith.mulf %32, %31 : vector<128x64xf32>
    %cst_15 = arith.constant 0.707106769 : f32
    %34 = vector.broadcast %cst_15 : f32 to vector<128x64xf32>
    %35 = arith.mulf %31, %34 : vector<128x64xf32>
    %36 = math.erf %35 : vector<128x64xf32>
    %cst_16 = arith.constant 1.000000e+00 : f32
    %37 = vector.broadcast %cst_16 : f32 to vector<128x64xf32>
    %38 = arith.addf %37, %36 : vector<128x64xf32>
    %39 = arith.mulf %33, %38 : vector<128x64xf32>
    %40 = arith.truncf %39 : vector<128x64xf32> to vector<128x64xbf16>
    %c0_17 = arith.constant 0 : index
    %c0_18 = arith.constant 0 : index
    %41 = vector.load %arg7[%c0_17, %c0_18] : memref<128x64xbf16, #tpu.memory_space<vmem>>, vector<128x64xbf16>
    tpu.vector_store %arg7[%c0_17, %c0_18], %40 {strides = array<i32>} : memref<128x64xbf16, #tpu.memory_space<vmem>>, vector<128x64xbf16>,
    return
  }
  func.func @transform_0(%arg0: i32, %arg1: i32) -> (i32, i32) {
    %c0_i32 = arith.constant 0 : i32
    %c0_i32_0 = arith.constant 0 : i32
    return %arg0, %c0_i32 : i32, i32
  }
  func.func @transform_1(%arg0: i32, %arg1: i32) -> (i32, i32) {
    %c0_i32 = arith.constant 0 : i32
    %c0_i32_0 = arith.constant 0 : i32
    %c0_i32_1 = arith.constant 0 : i32
    return %c0_i32, %c0_i32_0 : i32, i32
  }
  func.func @transform_2(%arg0: i32, %arg1: i32) -> (i32, i32) {
    %c0_i32 = arith.constant 0 : i32
    %c0_i32_0 = arith.constant 0 : i32
    %c0_i32_1 = arith.constant 0 : i32
    return %c0_i32, %c0_i32_0 : i32, i32
  }
  func.func @transform_3(%arg0: i32, %arg1: i32) -> (i32, i32) {
    %c0_i32 = arith.constant 0 : i32
    %c0_i32_0 = arith.constant 0 : i32
    return %c0_i32, %arg1 : i32, i32
  }
  func.func @transform_4(%arg0: i32, %arg1: i32) -> (i32, i32) {
    %c0_i32 = arith.constant 0 : i32
    %c0_i32_0 = arith.constant 0 : i32
    return %c0_i32, %arg1 : i32, i32
  }
  func.func @transform_5(%arg0: i32, %arg1: i32) -> (i32, i32) {
    %c0_i32 = arith.constant 0 : i32
    return %arg0, %arg1 : i32, i32
  }
}

module attributes {stable_mosaic.version = 11 : i64} {
  func.func @_fused_linear_kernel(%arg0: i32, %arg1: i32, %arg2: memref<128x64xbf16, #tpu.memory_space<vmem>>, %arg3: memref<64x16xbf16, #tpu.memory_space<vmem>>, %arg4: memref<1x16xf32, #tpu.memory_space<vmem>>, %arg5: memref<128x16xbf16, #tpu.memory_space<vmem>>, %arg6: memref<128x16xbf16, #tpu.memory_space<vmem>>) attributes {dimension_semantics = [#tpu.dimension_semantics<parallel>, #tpu.dimension_semantics<parallel>], iteration_bounds = array<i64: 1, 1>, scalar_prefetch = 0 : i64, scratch_operands = 0 : i64, tpu.core_type = #tpu.core_type<tc>, window_params = [{transform_indices = @transform_0, window_bounds = array<i64: 128, 64>}, {transform_indices = @transform_1, window_bounds = array<i64: 64, 16>}, {transform_indices = @transform_2, window_bounds = array<i64: 1, 16>}, {transform_indices = @transform_3, window_bounds = array<i64: 128, 16>}, {transform_indices = @transform_4, window_bounds = array<i64: 128, 16>}]} {
    %c0 = arith.constant 0 : index
    %c0_0 = arith.constant 0 : index
    %0 = vector.load %arg2[%c0, %c0_0] : memref<128x64xbf16, #tpu.memory_space<vmem>>, vector<128x64xbf16>
    %1 = arith.extf %0 : vector<128x64xbf16> to vector<128x64xf32>
    %c0_1 = arith.constant 0 : index
    %c0_2 = arith.constant 0 : index
    %2 = vector.load %arg3[%c0_1, %c0_2] : memref<64x16xbf16, #tpu.memory_space<vmem>>, vector<64x16xbf16>
    %3 = arith.truncf %1 : vector<128x64xf32> to vector<128x64xbf16>
    %cst = arith.constant dense<0.000000e+00> : vector<128x16xf32>
    %4 = tpu.matmul %3, %2, %cst {dimension_numbers = #tpu.dot_dimension_numbers<[1], [0], [0], [1], [0, 0, 1, 1], [], []>} : vector<128x64xbf16>, vector<64x16xbf16>, vector<128x16xf32> -> vector<128x16xf32>
    %c0_3 = arith.constant 0 : index
    %c0_4 = arith.constant 0 : index
    %5 = vector.load %arg4[%c0_3, %c0_4] : memref<1x16xf32, #tpu.memory_space<vmem>>, vector<1x16xf32>
    %6 = vector.broadcast %5 : vector<1x16xf32> to vector<128x16xf32>
    %7 = arith.addf %4, %6 : vector<128x16xf32>
    %c0_5 = arith.constant 0 : index
    %c0_6 = arith.constant 0 : index
    %8 = vector.load %arg5[%c0_5, %c0_6] : memref<128x16xbf16, #tpu.memory_space<vmem>>, vector<128x16xbf16>
    %9 = arith.extf %8 : vector<128x16xbf16> to vector<128x16xf32>
    %10 = arith.addf %7, %9 : vector<128x16xf32>
    %11 = arith.truncf %10 : vector<128x16xf32> to vector<128x16xbf16>
    %c0_7 = arith.constant 0 : index
    %c0_8 = arith.constant 0 : index
    %12 = vector.load %arg6[%c0_7, %c0_8] : memref<128x16xbf16, #tpu.memory_space<vmem>>, vector<128x16xbf16>
    tpu.vector_store %arg6[%c0_7, %c0_8], %11 {strides = array<i32>} : memref<128x16xbf16, #tpu.memory_space<vmem>>, vector<128x16xbf16>,
    return
  }
  func.func @transform_0(%arg0: i32, %arg1: i32) -> (i32, i32) {
    %c0_i32 = arith.constant 0 : i32
    %c0_i32_0 = arith.constant 0 : i32
    return %arg0, %c0_i32 : i32, i32
  }
  func.func @transform_1(%arg0: i32, %arg1: i32) -> (i32, i32) {
    %c0_i32 = arith.constant 0 : i32
    %c0_i32_0 = arith.constant 0 : i32
    return %c0_i32, %arg1 : i32, i32
  }
  func.func @transform_2(%arg0: i32, %arg1: i32) -> (i32, i32) {
    %c0_i32 = arith.constant 0 : i32
    %c0_i32_0 = arith.constant 0 : i32
    return %c0_i32, %arg1 : i32, i32
  }
  func.func @transform_3(%arg0: i32, %arg1: i32) -> (i32, i32) {
    %c0_i32 = arith.constant 0 : i32
    return %arg0, %arg1 : i32, i32
  }
  func.func @transform_4(%arg0: i32, %arg1: i32) -> (i32, i32) {
    %c0_i32 = arith.constant 0 : i32
    return %arg0, %arg1 : i32, i32
  }
}

module attributes {stable_mosaic.version = 11 : i64} {
  func.func @_window_attn_kernel(%arg0: i32, %arg1: memref<8x16x48xbf16, #tpu.memory_space<vmem>>, %arg2: memref<2x16x16xf32, #tpu.memory_space<vmem>>, %arg3: memref<4x16x16xf32, #tpu.memory_space<vmem>>, %arg4: memref<8x16x16xbf16, #tpu.memory_space<vmem>>) attributes {dimension_semantics = [#tpu.dimension_semantics<parallel>], iteration_bounds = array<i64: 1>, scalar_prefetch = 0 : i64, scratch_operands = 0 : i64, tpu.core_type = #tpu.core_type<tc>, window_params = [{transform_indices = @transform_0, window_bounds = array<i64: 8, 16, 48>}, {pipeline_mode = #tpu.pipeline_mode<synchronous>, transform_indices = @transform_1, window_bounds = array<i64: 2, 16, 16>}, {pipeline_mode = #tpu.pipeline_mode<synchronous>, transform_indices = @transform_2, window_bounds = array<i64: 4, 16, 16>}, {transform_indices = @transform_3, window_bounds = array<i64: 8, 16, 16>}]} {
    %c0 = arith.constant 0 : index
    %c0_0 = arith.constant 0 : index
    %c0_1 = arith.constant 0 : index
    %0 = vector.load %arg1[%c0, %c0_0, %c0_1] : memref<8x16x48xbf16, #tpu.memory_space<vmem>>, vector<8x16x48xbf16>
    %1 = arith.extf %0 : vector<8x16x48xbf16> to vector<8x16x48xf32>
    %c0_2 = arith.constant 0 : index
    %c0_3 = arith.constant 0 : index
    %c0_4 = arith.constant 0 : index
    %2 = vector.load %arg2[%c0_2, %c0_3, %c0_4] : memref<2x16x16xf32, #tpu.memory_space<vmem>>, vector<2x16x16xf32>
    %c0_5 = arith.constant 0 : index
    %c0_6 = arith.constant 0 : index
    %c0_7 = arith.constant 0 : index
    %3 = vector.load %arg3[%c0_5, %c0_6, %c0_7] : memref<4x16x16xf32, #tpu.memory_space<vmem>>, vector<4x16x16xf32>
    %4 = vector.shape_cast %3 : vector<4x16x16xf32> to vector<1x4x16x16xf32>
    %5 = vector.shape_cast %4 : vector<1x4x16x16xf32> to vector<1x4x16x16xf32>
    %6 = vector.broadcast %5 : vector<1x4x16x16xf32> to vector<2x4x16x16xf32>
    %7 = vector.shape_cast %6 : vector<2x4x16x16xf32> to vector<8x16x16xf32>
    %8 = vector.extract_strided_slice %1 {offsets = [0, 0, 0], sizes = [8, 16, 8], strides = [1, 1, 1]} : vector<8x16x48xf32> to vector<8x16x8xf32>
    %cst = arith.constant 0.353553385 : f32
    %9 = vector.broadcast %cst : f32 to vector<8x16x8xf32>
    %10 = arith.mulf %8, %9 : vector<8x16x8xf32>
    %11 = vector.extract_strided_slice %1 {offsets = [0, 0, 16], sizes = [8, 16, 8], strides = [1, 1, 1]} : vector<8x16x48xf32> to vector<8x16x8xf32>
    %12 = vector.extract_strided_slice %1 {offsets = [0, 0, 32], sizes = [8, 16, 8], strides = [1, 1, 1]} : vector<8x16x48xf32> to vector<8x16x8xf32>
    %13 = arith.truncf %10 : vector<8x16x8xf32> to vector<8x16x8xbf16>
    %14 = arith.truncf %11 : vector<8x16x8xf32> to vector<8x16x8xbf16>
    %cst_8 = arith.constant dense<0.000000e+00> : vector<8x16x16xf32>
    %15 = tpu.matmul %13, %14, %cst_8 {dimension_numbers = #tpu.dot_dimension_numbers<[2], [2], [1], [1], [0, 0, 0, 1, 1, 1], [0], [0]>} : vector<8x16x8xbf16>, vector<8x16x8xbf16>, vector<8x16x16xf32> -> vector<8x16x16xf32>
    %16 = vector.extract_strided_slice %2 {offsets = [0, 0, 0], sizes = [1, 16, 16], strides = [1, 1, 1]} : vector<2x16x16xf32> to vector<1x16x16xf32>
    %17 = vector.shape_cast %16 : vector<1x16x16xf32> to vector<16x16xf32>
    %18 = vector.shape_cast %17 : vector<16x16xf32> to vector<1x16x16xf32>
    %19 = vector.broadcast %18 : vector<1x16x16xf32> to vector<8x16x16xf32>
    %20 = arith.addf %15, %19 : vector<8x16x16xf32>
    %21 = arith.addf %20, %7 : vector<8x16x16xf32>
    %cst_9 = arith.constant dense<0xFF800000> : vector<8x16xf32>
    %22 = vector.multi_reduction <maximumf>, %21, %cst_9 [2] : vector<8x16x16xf32> to vector<8x16xf32>
    %23 = vector.shape_cast %22 : vector<8x16xf32> to vector<8x16x1xf32>
    %24 = vector.broadcast %23 : vector<8x16x1xf32> to vector<8x16x16xf32>
    %25 = arith.subf %21, %24 : vector<8x16x16xf32>
    %26 = math.exp %25 : vector<8x16x16xf32>
    %cst_10 = arith.constant dense<0.000000e+00> : vector<8x16xf32>
    %27 = vector.multi_reduction <add>, %26, %cst_10 [2] : vector<8x16x16xf32> to vector<8x16xf32>
    %28 = vector.shape_cast %27 : vector<8x16xf32> to vector<8x16x1xf32>
    %29 = tpu.reciprocal %28 {approx = true} : vector<8x16x1xf32> -> vector<8x16x1xf32>
    %30 = vector.broadcast %29 : vector<8x16x1xf32> to vector<8x16x16xf32>
    %31 = arith.mulf %26, %30 : vector<8x16x16xf32>
    %32 = arith.truncf %31 : vector<8x16x16xf32> to vector<8x16x16xbf16>
    %33 = arith.truncf %12 : vector<8x16x8xf32> to vector<8x16x8xbf16>
    %cst_11 = arith.constant dense<0.000000e+00> : vector<8x16x8xf32>
    %34 = tpu.matmul %32, %33, %cst_11 {dimension_numbers = #tpu.dot_dimension_numbers<[2], [1], [1], [2], [0, 0, 0, 1, 1, 2], [0], [0]>} : vector<8x16x16xbf16>, vector<8x16x8xbf16>, vector<8x16x8xf32> -> vector<8x16x8xf32>
    %35 = arith.truncf %34 : vector<8x16x8xf32> to vector<8x16x8xbf16>
    %c0_12 = arith.constant 0 : index
    %c0_13 = arith.constant 0 : index
    %c0_14 = arith.constant 0 : index
    %36 = vector.load %arg4[%c0_12, %c0_13, %c0_14] : memref<8x16x16xbf16, #tpu.memory_space<vmem>>, vector<8x16x8xbf16>
    tpu.vector_store %arg4[%c0_12, %c0_13, %c0_14], %35 {strides = array<i32>} : memref<8x16x16xbf16, #tpu.memory_space<vmem>>, vector<8x16x8xbf16>,
    %37 = vector.extract_strided_slice %1 {offsets = [0, 0, 8], sizes = [8, 16, 8], strides = [1, 1, 1]} : vector<8x16x48xf32> to vector<8x16x8xf32>
    %cst_15 = arith.constant 0.353553385 : f32
    %38 = vector.broadcast %cst_15 : f32 to vector<8x16x8xf32>
    %39 = arith.mulf %37, %38 : vector<8x16x8xf32>
    %40 = vector.extract_strided_slice %1 {offsets = [0, 0, 24], sizes = [8, 16, 8], strides = [1, 1, 1]} : vector<8x16x48xf32> to vector<8x16x8xf32>
    %41 = vector.extract_strided_slice %1 {offsets = [0, 0, 40], sizes = [8, 16, 8], strides = [1, 1, 1]} : vector<8x16x48xf32> to vector<8x16x8xf32>
    %42 = arith.truncf %39 : vector<8x16x8xf32> to vector<8x16x8xbf16>
    %43 = arith.truncf %40 : vector<8x16x8xf32> to vector<8x16x8xbf16>
    %cst_16 = arith.constant dense<0.000000e+00> : vector<8x16x16xf32>
    %44 = tpu.matmul %42, %43, %cst_16 {dimension_numbers = #tpu.dot_dimension_numbers<[2], [2], [1], [1], [0, 0, 0, 1, 1, 1], [0], [0]>} : vector<8x16x8xbf16>, vector<8x16x8xbf16>, vector<8x16x16xf32> -> vector<8x16x16xf32>
    %45 = vector.extract_strided_slice %2 {offsets = [1, 0, 0], sizes = [1, 16, 16], strides = [1, 1, 1]} : vector<2x16x16xf32> to vector<1x16x16xf32>
    %46 = vector.shape_cast %45 : vector<1x16x16xf32> to vector<16x16xf32>
    %47 = vector.shape_cast %46 : vector<16x16xf32> to vector<1x16x16xf32>
    %48 = vector.broadcast %47 : vector<1x16x16xf32> to vector<8x16x16xf32>
    %49 = arith.addf %44, %48 : vector<8x16x16xf32>
    %50 = arith.addf %49, %7 : vector<8x16x16xf32>
    %cst_17 = arith.constant dense<0xFF800000> : vector<8x16xf32>
    %51 = vector.multi_reduction <maximumf>, %50, %cst_17 [2] : vector<8x16x16xf32> to vector<8x16xf32>
    %52 = vector.shape_cast %51 : vector<8x16xf32> to vector<8x16x1xf32>
    %53 = vector.broadcast %52 : vector<8x16x1xf32> to vector<8x16x16xf32>
    %54 = arith.subf %50, %53 : vector<8x16x16xf32>
    %55 = math.exp %54 : vector<8x16x16xf32>
    %cst_18 = arith.constant dense<0.000000e+00> : vector<8x16xf32>
    %56 = vector.multi_reduction <add>, %55, %cst_18 [2] : vector<8x16x16xf32> to vector<8x16xf32>
    %57 = vector.shape_cast %56 : vector<8x16xf32> to vector<8x16x1xf32>
    %58 = tpu.reciprocal %57 {approx = true} : vector<8x16x1xf32> -> vector<8x16x1xf32>
    %59 = vector.broadcast %58 : vector<8x16x1xf32> to vector<8x16x16xf32>
    %60 = arith.mulf %55, %59 : vector<8x16x16xf32>
    %61 = arith.truncf %60 : vector<8x16x16xf32> to vector<8x16x16xbf16>
    %62 = arith.truncf %41 : vector<8x16x8xf32> to vector<8x16x8xbf16>
    %cst_19 = arith.constant dense<0.000000e+00> : vector<8x16x8xf32>
    %63 = tpu.matmul %61, %62, %cst_19 {dimension_numbers = #tpu.dot_dimension_numbers<[2], [1], [1], [2], [0, 0, 0, 1, 1, 2], [0], [0]>} : vector<8x16x16xbf16>, vector<8x16x8xbf16>, vector<8x16x8xf32> -> vector<8x16x8xf32>
    %64 = arith.truncf %63 : vector<8x16x8xf32> to vector<8x16x8xbf16>
    %c0_20 = arith.constant 0 : index
    %c0_21 = arith.constant 0 : index
    %c8 = arith.constant 8 : index
    %65 = vector.load %arg4[%c0_20, %c0_21, %c8] : memref<8x16x16xbf16, #tpu.memory_space<vmem>>, vector<8x16x8xbf16>
    tpu.vector_store %arg4[%c0_20, %c0_21, %c8], %64 {strides = array<i32>} : memref<8x16x16xbf16, #tpu.memory_space<vmem>>, vector<8x16x8xbf16>,
    return
  }
  func.func @transform_0(%arg0: i32) -> (i32, i32, i32) {
    %c0_i32 = arith.constant 0 : i32
    %c0_i32_0 = arith.constant 0 : i32
    %c0_i32_1 = arith.constant 0 : i32
    return %arg0, %c0_i32, %c0_i32_0 : i32, i32, i32
  }
  func.func @transform_1(%arg0: i32) -> (i32, i32, i32) {
    %c0_i32 = arith.constant 0 : i32
    %c0_i32_0 = arith.constant 0 : i32
    %c0_i32_1 = arith.constant 0 : i32
    %c0_i32_2 = arith.constant 0 : i32
    return %c0_i32, %c0_i32_0, %c0_i32_1 : i32, i32, i32
  }
  func.func @transform_2(%arg0: i32) -> (i32, i32, i32) {
    %c0_i32 = arith.constant 0 : i32
    %c0_i32_0 = arith.constant 0 : i32
    %c0_i32_1 = arith.constant 0 : i32
    %c0_i32_2 = arith.constant 0 : i32
    return %c0_i32, %c0_i32_0, %c0_i32_1 : i32, i32, i32
  }
  func.func @transform_3(%arg0: i32) -> (i32, i32, i32) {
    %c0_i32 = arith.constant 0 : i32
    %c0_i32_0 = arith.constant 0 : i32
    %c0_i32_1 = arith.constant 0 : i32
    return %arg0, %c0_i32, %c0_i32_0 : i32, i32, i32
  }
}

module attributes {stable_mosaic.version = 11 : i64} {
  func.func @_fused_linear_kernel(%arg0: i32, %arg1: i32, %arg2: memref<32x64xbf16, #tpu.memory_space<vmem>>, %arg3: memref<1x64xf32, #tpu.memory_space<vmem>>, %arg4: memref<1x64xf32, #tpu.memory_space<vmem>>, %arg5: memref<64x32xbf16, #tpu.memory_space<vmem>>, %arg6: memref<32x32xbf16, #tpu.memory_space<vmem>>) attributes {dimension_semantics = [#tpu.dimension_semantics<parallel>, #tpu.dimension_semantics<parallel>], iteration_bounds = array<i64: 1, 1>, scalar_prefetch = 0 : i64, scratch_operands = 0 : i64, tpu.core_type = #tpu.core_type<tc>, window_params = [{transform_indices = @transform_0, window_bounds = array<i64: 32, 64>}, {pipeline_mode = #tpu.pipeline_mode<synchronous>, transform_indices = @transform_1, window_bounds = array<i64: 1, 64>}, {pipeline_mode = #tpu.pipeline_mode<synchronous>, transform_indices = @transform_2, window_bounds = array<i64: 1, 64>}, {transform_indices = @transform_3, window_bounds = array<i64: 64, 32>}, {transform_indices = @transform_4, window_bounds = array<i64: 32, 32>}]} {
    %c0 = arith.constant 0 : index
    %c0_0 = arith.constant 0 : index
    %0 = vector.load %arg2[%c0, %c0_0] : memref<32x64xbf16, #tpu.memory_space<vmem>>, vector<32x64xbf16>
    %1 = arith.extf %0 : vector<32x64xbf16> to vector<32x64xf32>
    %c0_1 = arith.constant 0 : index
    %c0_2 = arith.constant 0 : index
    %2 = vector.load %arg3[%c0_1, %c0_2] : memref<1x64xf32, #tpu.memory_space<vmem>>, vector<1x64xf32>
    %c0_3 = arith.constant 0 : index
    %c0_4 = arith.constant 0 : index
    %3 = vector.load %arg4[%c0_3, %c0_4] : memref<1x64xf32, #tpu.memory_space<vmem>>, vector<1x64xf32>
    %cst = arith.constant dense<0.000000e+00> : vector<32xf32>
    %4 = vector.multi_reduction <add>, %1, %cst [1] : vector<32x64xf32> to vector<32xf32>
    %5 = vector.shape_cast %4 : vector<32xf32> to vector<32x1xf32>
    %cst_5 = arith.constant 6.400000e+01 : f32
    %6 = vector.broadcast %cst_5 : f32 to vector<32x1xf32>
    %7 = arith.divf %5, %6 : vector<32x1xf32>
    %8 = vector.broadcast %7 : vector<32x1xf32> to vector<32x64xf32>
    %9 = arith.subf %1, %8 : vector<32x64xf32>
    %10 = arith.mulf %9, %9 : vector<32x64xf32>
    %cst_6 = arith.constant dense<0.000000e+00> : vector<32xf32>
    %11 = vector.multi_reduction <add>, %10, %cst_6 [1] : vector<32x64xf32> to vector<32xf32>
    %12 = vector.shape_cast %11 : vector<32xf32> to vector<32x1xf32>
    %cst_7 = arith.constant 6.400000e+01 : f32
    %13 = vector.broadcast %cst_7 : f32 to vector<32x1xf32>
    %14 = arith.divf %12, %13 : vector<32x1xf32>
    %15 = vector.broadcast %7 : vector<32x1xf32> to vector<32x64xf32>
    %16 = arith.subf %1, %15 : vector<32x64xf32>
    %cst_8 = arith.constant 9.99999974E-6 : f32
    %17 = vector.broadcast %cst_8 : f32 to vector<32x1xf32>
    %18 = arith.addf %14, %17 : vector<32x1xf32>
    %19 = math.rsqrt %18 : vector<32x1xf32>
    %20 = vector.broadcast %19 : vector<32x1xf32> to vector<32x64xf32>
    %21 = arith.mulf %16, %20 : vector<32x64xf32>
    %22 = vector.broadcast %2 : vector<1x64xf32> to vector<32x64xf32>
    %23 = arith.mulf %21, %22 : vector<32x64xf32>
    %24 = vector.broadcast %3 : vector<1x64xf32> to vector<32x64xf32>
    %25 = arith.addf %23, %24 : vector<32x64xf32>
    %c0_9 = arith.constant 0 : index
    %c0_10 = arith.constant 0 : index
    %26 = vector.load %arg5[%c0_9, %c0_10] : memref<64x32xbf16, #tpu.memory_space<vmem>>, vector<64x32xbf16>
    %27 = arith.truncf %25 : vector<32x64xf32> to vector<32x64xbf16>
    %cst_11 = arith.constant dense<0.000000e+00> : vector<32x32xf32>
    %28 = tpu.matmul %27, %26, %cst_11 {dimension_numbers = #tpu.dot_dimension_numbers<[1], [0], [0], [1], [0, 0, 1, 1], [], []>} : vector<32x64xbf16>, vector<64x32xbf16>, vector<32x32xf32> -> vector<32x32xf32>
    %29 = arith.truncf %28 : vector<32x32xf32> to vector<32x32xbf16>
    %c0_12 = arith.constant 0 : index
    %c0_13 = arith.constant 0 : index
    %30 = vector.load %arg6[%c0_12, %c0_13] : memref<32x32xbf16, #tpu.memory_space<vmem>>, vector<32x32xbf16>
    tpu.vector_store %arg6[%c0_12, %c0_13], %29 {strides = array<i32>} : memref<32x32xbf16, #tpu.memory_space<vmem>>, vector<32x32xbf16>,
    return
  }
  func.func @transform_0(%arg0: i32, %arg1: i32) -> (i32, i32) {
    %c0_i32 = arith.constant 0 : i32
    %c0_i32_0 = arith.constant 0 : i32
    return %arg0, %c0_i32 : i32, i32
  }
  func.func @transform_1(%arg0: i32, %arg1: i32) -> (i32, i32) {
    %c0_i32 = arith.constant 0 : i32
    %c0_i32_0 = arith.constant 0 : i32
    %c0_i32_1 = arith.constant 0 : i32
    return %c0_i32, %c0_i32_0 : i32, i32
  }
  func.func @transform_2(%arg0: i32, %arg1: i32) -> (i32, i32) {
    %c0_i32 = arith.constant 0 : i32
    %c0_i32_0 = arith.constant 0 : i32
    %c0_i32_1 = arith.constant 0 : i32
    return %c0_i32, %c0_i32_0 : i32, i32
  }
  func.func @transform_3(%arg0: i32, %arg1: i32) -> (i32, i32) {
    %c0_i32 = arith.constant 0 : i32
    %c0_i32_0 = arith.constant 0 : i32
    return %c0_i32, %arg1 : i32, i32
  }
  func.func @transform_4(%arg0: i32, %arg1: i32) -> (i32, i32) {
    %c0_i32 = arith.constant 0 : i32
    return %arg0, %arg1 : i32, i32
  }
}

module attributes {stable_mosaic.version = 11 : i64} {
  func.func @_fused_linear_kernel(%arg0: i32, %arg1: i32, %arg2: memref<32x32xbf16, #tpu.memory_space<vmem>>, %arg3: memref<1x32xf32, #tpu.memory_space<vmem>>, %arg4: memref<1x32xf32, #tpu.memory_space<vmem>>, %arg5: memref<32x96xbf16, #tpu.memory_space<vmem>>, %arg6: memref<1x96xf32, #tpu.memory_space<vmem>>, %arg7: memref<32x96xbf16, #tpu.memory_space<vmem>>) attributes {dimension_semantics = [#tpu.dimension_semantics<parallel>, #tpu.dimension_semantics<parallel>], iteration_bounds = array<i64: 1, 1>, scalar_prefetch = 0 : i64, scratch_operands = 0 : i64, tpu.core_type = #tpu.core_type<tc>, window_params = [{transform_indices = @transform_0, window_bounds = array<i64: 32, 32>}, {pipeline_mode = #tpu.pipeline_mode<synchronous>, transform_indices = @transform_1, window_bounds = array<i64: 1, 32>}, {pipeline_mode = #tpu.pipeline_mode<synchronous>, transform_indices = @transform_2, window_bounds = array<i64: 1, 32>}, {transform_indices = @transform_3, window_bounds = array<i64: 32, 96>}, {transform_indices = @transform_4, window_bounds = array<i64: 1, 96>}, {transform_indices = @transform_5, window_bounds = array<i64: 32, 96>}]} {
    %c0 = arith.constant 0 : index
    %c0_0 = arith.constant 0 : index
    %0 = vector.load %arg2[%c0, %c0_0] : memref<32x32xbf16, #tpu.memory_space<vmem>>, vector<32x32xbf16>
    %1 = arith.extf %0 : vector<32x32xbf16> to vector<32x32xf32>
    %c0_1 = arith.constant 0 : index
    %c0_2 = arith.constant 0 : index
    %2 = vector.load %arg3[%c0_1, %c0_2] : memref<1x32xf32, #tpu.memory_space<vmem>>, vector<1x32xf32>
    %c0_3 = arith.constant 0 : index
    %c0_4 = arith.constant 0 : index
    %3 = vector.load %arg4[%c0_3, %c0_4] : memref<1x32xf32, #tpu.memory_space<vmem>>, vector<1x32xf32>
    %cst = arith.constant dense<0.000000e+00> : vector<32xf32>
    %4 = vector.multi_reduction <add>, %1, %cst [1] : vector<32x32xf32> to vector<32xf32>
    %5 = vector.shape_cast %4 : vector<32xf32> to vector<32x1xf32>
    %cst_5 = arith.constant 3.200000e+01 : f32
    %6 = vector.broadcast %cst_5 : f32 to vector<32x1xf32>
    %7 = arith.divf %5, %6 : vector<32x1xf32>
    %8 = vector.broadcast %7 : vector<32x1xf32> to vector<32x32xf32>
    %9 = arith.subf %1, %8 : vector<32x32xf32>
    %10 = arith.mulf %9, %9 : vector<32x32xf32>
    %cst_6 = arith.constant dense<0.000000e+00> : vector<32xf32>
    %11 = vector.multi_reduction <add>, %10, %cst_6 [1] : vector<32x32xf32> to vector<32xf32>
    %12 = vector.shape_cast %11 : vector<32xf32> to vector<32x1xf32>
    %cst_7 = arith.constant 3.200000e+01 : f32
    %13 = vector.broadcast %cst_7 : f32 to vector<32x1xf32>
    %14 = arith.divf %12, %13 : vector<32x1xf32>
    %15 = vector.broadcast %7 : vector<32x1xf32> to vector<32x32xf32>
    %16 = arith.subf %1, %15 : vector<32x32xf32>
    %cst_8 = arith.constant 9.99999974E-6 : f32
    %17 = vector.broadcast %cst_8 : f32 to vector<32x1xf32>
    %18 = arith.addf %14, %17 : vector<32x1xf32>
    %19 = math.rsqrt %18 : vector<32x1xf32>
    %20 = vector.broadcast %19 : vector<32x1xf32> to vector<32x32xf32>
    %21 = arith.mulf %16, %20 : vector<32x32xf32>
    %22 = vector.broadcast %2 : vector<1x32xf32> to vector<32x32xf32>
    %23 = arith.mulf %21, %22 : vector<32x32xf32>
    %24 = vector.broadcast %3 : vector<1x32xf32> to vector<32x32xf32>
    %25 = arith.addf %23, %24 : vector<32x32xf32>
    %c0_9 = arith.constant 0 : index
    %c0_10 = arith.constant 0 : index
    %26 = vector.load %arg5[%c0_9, %c0_10] : memref<32x96xbf16, #tpu.memory_space<vmem>>, vector<32x96xbf16>
    %27 = arith.truncf %25 : vector<32x32xf32> to vector<32x32xbf16>
    %cst_11 = arith.constant dense<0.000000e+00> : vector<32x96xf32>
    %28 = tpu.matmul %27, %26, %cst_11 {dimension_numbers = #tpu.dot_dimension_numbers<[1], [0], [0], [1], [0, 0, 1, 1], [], []>} : vector<32x32xbf16>, vector<32x96xbf16>, vector<32x96xf32> -> vector<32x96xf32>
    %c0_12 = arith.constant 0 : index
    %c0_13 = arith.constant 0 : index
    %29 = vector.load %arg6[%c0_12, %c0_13] : memref<1x96xf32, #tpu.memory_space<vmem>>, vector<1x96xf32>
    %30 = vector.broadcast %29 : vector<1x96xf32> to vector<32x96xf32>
    %31 = arith.addf %28, %30 : vector<32x96xf32>
    %32 = arith.truncf %31 : vector<32x96xf32> to vector<32x96xbf16>
    %c0_14 = arith.constant 0 : index
    %c0_15 = arith.constant 0 : index
    %33 = vector.load %arg7[%c0_14, %c0_15] : memref<32x96xbf16, #tpu.memory_space<vmem>>, vector<32x96xbf16>
    tpu.vector_store %arg7[%c0_14, %c0_15], %32 {strides = array<i32>} : memref<32x96xbf16, #tpu.memory_space<vmem>>, vector<32x96xbf16>,
    return
  }
  func.func @transform_0(%arg0: i32, %arg1: i32) -> (i32, i32) {
    %c0_i32 = arith.constant 0 : i32
    %c0_i32_0 = arith.constant 0 : i32
    return %arg0, %c0_i32 : i32, i32
  }
  func.func @transform_1(%arg0: i32, %arg1: i32) -> (i32, i32) {
    %c0_i32 = arith.constant 0 : i32
    %c0_i32_0 = arith.constant 0 : i32
    %c0_i32_1 = arith.constant 0 : i32
    return %c0_i32, %c0_i32_0 : i32, i32
  }
  func.func @transform_2(%arg0: i32, %arg1: i32) -> (i32, i32) {
    %c0_i32 = arith.constant 0 : i32
    %c0_i32_0 = arith.constant 0 : i32
    %c0_i32_1 = arith.constant 0 : i32
    return %c0_i32, %c0_i32_0 : i32, i32
  }
  func.func @transform_3(%arg0: i32, %arg1: i32) -> (i32, i32) {
    %c0_i32 = arith.constant 0 : i32
    %c0_i32_0 = arith.constant 0 : i32
    return %c0_i32, %arg1 : i32, i32
  }
  func.func @transform_4(%arg0: i32, %arg1: i32) -> (i32, i32) {
    %c0_i32 = arith.constant 0 : i32
    %c0_i32_0 = arith.constant 0 : i32
    return %c0_i32, %arg1 : i32, i32
  }
  func.func @transform_5(%arg0: i32, %arg1: i32) -> (i32, i32) {
    %c0_i32 = arith.constant 0 : i32
    return %arg0, %arg1 : i32, i32
  }
}

module attributes {stable_mosaic.version = 11 : i64} {
  func.func @_window_attn_kernel(%arg0: i32, %arg1: memref<2x16x96xbf16, #tpu.memory_space<vmem>>, %arg2: memref<4x16x16xf32, #tpu.memory_space<vmem>>, %arg3: memref<2x16x32xbf16, #tpu.memory_space<vmem>>) attributes {dimension_semantics = [#tpu.dimension_semantics<parallel>], iteration_bounds = array<i64: 1>, scalar_prefetch = 0 : i64, scratch_operands = 0 : i64, tpu.core_type = #tpu.core_type<tc>, window_params = [{transform_indices = @transform_0, window_bounds = array<i64: 2, 16, 96>}, {pipeline_mode = #tpu.pipeline_mode<synchronous>, transform_indices = @transform_1, window_bounds = array<i64: 4, 16, 16>}, {transform_indices = @transform_2, window_bounds = array<i64: 2, 16, 32>}]} {
    %c0 = arith.constant 0 : index
    %c0_0 = arith.constant 0 : index
    %c0_1 = arith.constant 0 : index
    %0 = vector.load %arg1[%c0, %c0_0, %c0_1] : memref<2x16x96xbf16, #tpu.memory_space<vmem>>, vector<2x16x96xbf16>
    %1 = arith.extf %0 : vector<2x16x96xbf16> to vector<2x16x96xf32>
    %c0_2 = arith.constant 0 : index
    %c0_3 = arith.constant 0 : index
    %c0_4 = arith.constant 0 : index
    %2 = vector.load %arg2[%c0_2, %c0_3, %c0_4] : memref<4x16x16xf32, #tpu.memory_space<vmem>>, vector<4x16x16xf32>
    %3 = vector.extract_strided_slice %1 {offsets = [0, 0, 0], sizes = [2, 16, 8], strides = [1, 1, 1]} : vector<2x16x96xf32> to vector<2x16x8xf32>
    %cst = arith.constant 0.353553385 : f32
    %4 = vector.broadcast %cst : f32 to vector<2x16x8xf32>
    %5 = arith.mulf %3, %4 : vector<2x16x8xf32>
    %6 = vector.extract_strided_slice %1 {offsets = [0, 0, 32], sizes = [2, 16, 8], strides = [1, 1, 1]} : vector<2x16x96xf32> to vector<2x16x8xf32>
    %7 = vector.extract_strided_slice %1 {offsets = [0, 0, 64], sizes = [2, 16, 8], strides = [1, 1, 1]} : vector<2x16x96xf32> to vector<2x16x8xf32>
    %8 = arith.truncf %5 : vector<2x16x8xf32> to vector<2x16x8xbf16>
    %9 = arith.truncf %6 : vector<2x16x8xf32> to vector<2x16x8xbf16>
    %cst_5 = arith.constant dense<0.000000e+00> : vector<2x16x16xf32>
    %10 = tpu.matmul %8, %9, %cst_5 {dimension_numbers = #tpu.dot_dimension_numbers<[2], [2], [1], [1], [0, 0, 0, 1, 1, 1], [0], [0]>} : vector<2x16x8xbf16>, vector<2x16x8xbf16>, vector<2x16x16xf32> -> vector<2x16x16xf32>
    %11 = vector.extract_strided_slice %2 {offsets = [0, 0, 0], sizes = [1, 16, 16], strides = [1, 1, 1]} : vector<4x16x16xf32> to vector<1x16x16xf32>
    %12 = vector.shape_cast %11 : vector<1x16x16xf32> to vector<16x16xf32>
    %13 = vector.shape_cast %12 : vector<16x16xf32> to vector<1x16x16xf32>
    %14 = vector.broadcast %13 : vector<1x16x16xf32> to vector<2x16x16xf32>
    %15 = arith.addf %10, %14 : vector<2x16x16xf32>
    %cst_6 = arith.constant dense<0xFF800000> : vector<2x16xf32>
    %16 = vector.multi_reduction <maximumf>, %15, %cst_6 [2] : vector<2x16x16xf32> to vector<2x16xf32>
    %17 = vector.shape_cast %16 : vector<2x16xf32> to vector<2x16x1xf32>
    %18 = vector.broadcast %17 : vector<2x16x1xf32> to vector<2x16x16xf32>
    %19 = arith.subf %15, %18 : vector<2x16x16xf32>
    %20 = math.exp %19 : vector<2x16x16xf32>
    %cst_7 = arith.constant dense<0.000000e+00> : vector<2x16xf32>
    %21 = vector.multi_reduction <add>, %20, %cst_7 [2] : vector<2x16x16xf32> to vector<2x16xf32>
    %22 = vector.shape_cast %21 : vector<2x16xf32> to vector<2x16x1xf32>
    %23 = tpu.reciprocal %22 {approx = true} : vector<2x16x1xf32> -> vector<2x16x1xf32>
    %24 = vector.broadcast %23 : vector<2x16x1xf32> to vector<2x16x16xf32>
    %25 = arith.mulf %20, %24 : vector<2x16x16xf32>
    %26 = arith.truncf %25 : vector<2x16x16xf32> to vector<2x16x16xbf16>
    %27 = arith.truncf %7 : vector<2x16x8xf32> to vector<2x16x8xbf16>
    %cst_8 = arith.constant dense<0.000000e+00> : vector<2x16x8xf32>
    %28 = tpu.matmul %26, %27, %cst_8 {dimension_numbers = #tpu.dot_dimension_numbers<[2], [1], [1], [2], [0, 0, 0, 1, 1, 2], [0], [0]>} : vector<2x16x16xbf16>, vector<2x16x8xbf16>, vector<2x16x8xf32> -> vector<2x16x8xf32>
    %29 = arith.truncf %28 : vector<2x16x8xf32> to vector<2x16x8xbf16>
    %c0_9 = arith.constant 0 : index
    %c0_10 = arith.constant 0 : index
    %c0_11 = arith.constant 0 : index
    %30 = vector.load %arg3[%c0_9, %c0_10, %c0_11] : memref<2x16x32xbf16, #tpu.memory_space<vmem>>, vector<2x16x8xbf16>
    tpu.vector_store %arg3[%c0_9, %c0_10, %c0_11], %29 {strides = array<i32>} : memref<2x16x32xbf16, #tpu.memory_space<vmem>>, vector<2x16x8xbf16>,
    %31 = vector.extract_strided_slice %1 {offsets = [0, 0, 8], sizes = [2, 16, 8], strides = [1, 1, 1]} : vector<2x16x96xf32> to vector<2x16x8xf32>
    %cst_12 = arith.constant 0.353553385 : f32
    %32 = vector.broadcast %cst_12 : f32 to vector<2x16x8xf32>
    %33 = arith.mulf %31, %32 : vector<2x16x8xf32>
    %34 = vector.extract_strided_slice %1 {offsets = [0, 0, 40], sizes = [2, 16, 8], strides = [1, 1, 1]} : vector<2x16x96xf32> to vector<2x16x8xf32>
    %35 = vector.extract_strided_slice %1 {offsets = [0, 0, 72], sizes = [2, 16, 8], strides = [1, 1, 1]} : vector<2x16x96xf32> to vector<2x16x8xf32>
    %36 = arith.truncf %33 : vector<2x16x8xf32> to vector<2x16x8xbf16>
    %37 = arith.truncf %34 : vector<2x16x8xf32> to vector<2x16x8xbf16>
    %cst_13 = arith.constant dense<0.000000e+00> : vector<2x16x16xf32>
    %38 = tpu.matmul %36, %37, %cst_13 {dimension_numbers = #tpu.dot_dimension_numbers<[2], [2], [1], [1], [0, 0, 0, 1, 1, 1], [0], [0]>} : vector<2x16x8xbf16>, vector<2x16x8xbf16>, vector<2x16x16xf32> -> vector<2x16x16xf32>
    %39 = vector.extract_strided_slice %2 {offsets = [1, 0, 0], sizes = [1, 16, 16], strides = [1, 1, 1]} : vector<4x16x16xf32> to vector<1x16x16xf32>
    %40 = vector.shape_cast %39 : vector<1x16x16xf32> to vector<16x16xf32>
    %41 = vector.shape_cast %40 : vector<16x16xf32> to vector<1x16x16xf32>
    %42 = vector.broadcast %41 : vector<1x16x16xf32> to vector<2x16x16xf32>
    %43 = arith.addf %38, %42 : vector<2x16x16xf32>
    %cst_14 = arith.constant dense<0xFF800000> : vector<2x16xf32>
    %44 = vector.multi_reduction <maximumf>, %43, %cst_14 [2] : vector<2x16x16xf32> to vector<2x16xf32>
    %45 = vector.shape_cast %44 : vector<2x16xf32> to vector<2x16x1xf32>
    %46 = vector.broadcast %45 : vector<2x16x1xf32> to vector<2x16x16xf32>
    %47 = arith.subf %43, %46 : vector<2x16x16xf32>
    %48 = math.exp %47 : vector<2x16x16xf32>
    %cst_15 = arith.constant dense<0.000000e+00> : vector<2x16xf32>
    %49 = vector.multi_reduction <add>, %48, %cst_15 [2] : vector<2x16x16xf32> to vector<2x16xf32>
    %50 = vector.shape_cast %49 : vector<2x16xf32> to vector<2x16x1xf32>
    %51 = tpu.reciprocal %50 {approx = true} : vector<2x16x1xf32> -> vector<2x16x1xf32>
    %52 = vector.broadcast %51 : vector<2x16x1xf32> to vector<2x16x16xf32>
    %53 = arith.mulf %48, %52 : vector<2x16x16xf32>
    %54 = arith.truncf %53 : vector<2x16x16xf32> to vector<2x16x16xbf16>
    %55 = arith.truncf %35 : vector<2x16x8xf32> to vector<2x16x8xbf16>
    %cst_16 = arith.constant dense<0.000000e+00> : vector<2x16x8xf32>
    %56 = tpu.matmul %54, %55, %cst_16 {dimension_numbers = #tpu.dot_dimension_numbers<[2], [1], [1], [2], [0, 0, 0, 1, 1, 2], [0], [0]>} : vector<2x16x16xbf16>, vector<2x16x8xbf16>, vector<2x16x8xf32> -> vector<2x16x8xf32>
    %57 = arith.truncf %56 : vector<2x16x8xf32> to vector<2x16x8xbf16>
    %c0_17 = arith.constant 0 : index
    %c0_18 = arith.constant 0 : index
    %c8 = arith.constant 8 : index
    %58 = vector.load %arg3[%c0_17, %c0_18, %c8] : memref<2x16x32xbf16, #tpu.memory_space<vmem>>, vector<2x16x8xbf16>
    tpu.vector_store %arg3[%c0_17, %c0_18, %c8], %57 {strides = array<i32>} : memref<2x16x32xbf16, #tpu.memory_space<vmem>>, vector<2x16x8xbf16>,
    %59 = vector.extract_strided_slice %1 {offsets = [0, 0, 16], sizes = [2, 16, 8], strides = [1, 1, 1]} : vector<2x16x96xf32> to vector<2x16x8xf32>
    %cst_19 = arith.constant 0.353553385 : f32
    %60 = vector.broadcast %cst_19 : f32 to vector<2x16x8xf32>
    %61 = arith.mulf %59, %60 : vector<2x16x8xf32>
    %62 = vector.extract_strided_slice %1 {offsets = [0, 0, 48], sizes = [2, 16, 8], strides = [1, 1, 1]} : vector<2x16x96xf32> to vector<2x16x8xf32>
    %63 = vector.extract_strided_slice %1 {offsets = [0, 0, 80], sizes = [2, 16, 8], strides = [1, 1, 1]} : vector<2x16x96xf32> to vector<2x16x8xf32>
    %64 = arith.truncf %61 : vector<2x16x8xf32> to vector<2x16x8xbf16>
    %65 = arith.truncf %62 : vector<2x16x8xf32> to vector<2x16x8xbf16>
    %cst_20 = arith.constant dense<0.000000e+00> : vector<2x16x16xf32>
    %66 = tpu.matmul %64, %65, %cst_20 {dimension_numbers = #tpu.dot_dimension_numbers<[2], [2], [1], [1], [0, 0, 0, 1, 1, 1], [0], [0]>} : vector<2x16x8xbf16>, vector<2x16x8xbf16>, vector<2x16x16xf32> -> vector<2x16x16xf32>
    %67 = vector.extract_strided_slice %2 {offsets = [2, 0, 0], sizes = [1, 16, 16], strides = [1, 1, 1]} : vector<4x16x16xf32> to vector<1x16x16xf32>
    %68 = vector.shape_cast %67 : vector<1x16x16xf32> to vector<16x16xf32>
    %69 = vector.shape_cast %68 : vector<16x16xf32> to vector<1x16x16xf32>
    %70 = vector.broadcast %69 : vector<1x16x16xf32> to vector<2x16x16xf32>
    %71 = arith.addf %66, %70 : vector<2x16x16xf32>
    %cst_21 = arith.constant dense<0xFF800000> : vector<2x16xf32>
    %72 = vector.multi_reduction <maximumf>, %71, %cst_21 [2] : vector<2x16x16xf32> to vector<2x16xf32>
    %73 = vector.shape_cast %72 : vector<2x16xf32> to vector<2x16x1xf32>
    %74 = vector.broadcast %73 : vector<2x16x1xf32> to vector<2x16x16xf32>
    %75 = arith.subf %71, %74 : vector<2x16x16xf32>
    %76 = math.exp %75 : vector<2x16x16xf32>
    %cst_22 = arith.constant dense<0.000000e+00> : vector<2x16xf32>
    %77 = vector.multi_reduction <add>, %76, %cst_22 [2] : vector<2x16x16xf32> to vector<2x16xf32>
    %78 = vector.shape_cast %77 : vector<2x16xf32> to vector<2x16x1xf32>
    %79 = tpu.reciprocal %78 {approx = true} : vector<2x16x1xf32> -> vector<2x16x1xf32>
    %80 = vector.broadcast %79 : vector<2x16x1xf32> to vector<2x16x16xf32>
    %81 = arith.mulf %76, %80 : vector<2x16x16xf32>
    %82 = arith.truncf %81 : vector<2x16x16xf32> to vector<2x16x16xbf16>
    %83 = arith.truncf %63 : vector<2x16x8xf32> to vector<2x16x8xbf16>
    %cst_23 = arith.constant dense<0.000000e+00> : vector<2x16x8xf32>
    %84 = tpu.matmul %82, %83, %cst_23 {dimension_numbers = #tpu.dot_dimension_numbers<[2], [1], [1], [2], [0, 0, 0, 1, 1, 2], [0], [0]>} : vector<2x16x16xbf16>, vector<2x16x8xbf16>, vector<2x16x8xf32> -> vector<2x16x8xf32>
    %85 = arith.truncf %84 : vector<2x16x8xf32> to vector<2x16x8xbf16>
    %c0_24 = arith.constant 0 : index
    %c0_25 = arith.constant 0 : index
    %c16 = arith.constant 16 : index
    %86 = vector.load %arg3[%c0_24, %c0_25, %c16] : memref<2x16x32xbf16, #tpu.memory_space<vmem>>, vector<2x16x8xbf16>
    tpu.vector_store %arg3[%c0_24, %c0_25, %c16], %85 {strides = array<i32>} : memref<2x16x32xbf16, #tpu.memory_space<vmem>>, vector<2x16x8xbf16>,
    %87 = vector.extract_strided_slice %1 {offsets = [0, 0, 24], sizes = [2, 16, 8], strides = [1, 1, 1]} : vector<2x16x96xf32> to vector<2x16x8xf32>
    %cst_26 = arith.constant 0.353553385 : f32
    %88 = vector.broadcast %cst_26 : f32 to vector<2x16x8xf32>
    %89 = arith.mulf %87, %88 : vector<2x16x8xf32>
    %90 = vector.extract_strided_slice %1 {offsets = [0, 0, 56], sizes = [2, 16, 8], strides = [1, 1, 1]} : vector<2x16x96xf32> to vector<2x16x8xf32>
    %91 = vector.extract_strided_slice %1 {offsets = [0, 0, 88], sizes = [2, 16, 8], strides = [1, 1, 1]} : vector<2x16x96xf32> to vector<2x16x8xf32>
    %92 = arith.truncf %89 : vector<2x16x8xf32> to vector<2x16x8xbf16>
    %93 = arith.truncf %90 : vector<2x16x8xf32> to vector<2x16x8xbf16>
    %cst_27 = arith.constant dense<0.000000e+00> : vector<2x16x16xf32>
    %94 = tpu.matmul %92, %93, %cst_27 {dimension_numbers = #tpu.dot_dimension_numbers<[2], [2], [1], [1], [0, 0, 0, 1, 1, 1], [0], [0]>} : vector<2x16x8xbf16>, vector<2x16x8xbf16>, vector<2x16x16xf32> -> vector<2x16x16xf32>
    %95 = vector.extract_strided_slice %2 {offsets = [3, 0, 0], sizes = [1, 16, 16], strides = [1, 1, 1]} : vector<4x16x16xf32> to vector<1x16x16xf32>
    %96 = vector.shape_cast %95 : vector<1x16x16xf32> to vector<16x16xf32>
    %97 = vector.shape_cast %96 : vector<16x16xf32> to vector<1x16x16xf32>
    %98 = vector.broadcast %97 : vector<1x16x16xf32> to vector<2x16x16xf32>
    %99 = arith.addf %94, %98 : vector<2x16x16xf32>
    %cst_28 = arith.constant dense<0xFF800000> : vector<2x16xf32>
    %100 = vector.multi_reduction <maximumf>, %99, %cst_28 [2] : vector<2x16x16xf32> to vector<2x16xf32>
    %101 = vector.shape_cast %100 : vector<2x16xf32> to vector<2x16x1xf32>
    %102 = vector.broadcast %101 : vector<2x16x1xf32> to vector<2x16x16xf32>
    %103 = arith.subf %99, %102 : vector<2x16x16xf32>
    %104 = math.exp %103 : vector<2x16x16xf32>
    %cst_29 = arith.constant dense<0.000000e+00> : vector<2x16xf32>
    %105 = vector.multi_reduction <add>, %104, %cst_29 [2] : vector<2x16x16xf32> to vector<2x16xf32>
    %106 = vector.shape_cast %105 : vector<2x16xf32> to vector<2x16x1xf32>
    %107 = tpu.reciprocal %106 {approx = true} : vector<2x16x1xf32> -> vector<2x16x1xf32>
    %108 = vector.broadcast %107 : vector<2x16x1xf32> to vector<2x16x16xf32>
    %109 = arith.mulf %104, %108 : vector<2x16x16xf32>
    %110 = arith.truncf %109 : vector<2x16x16xf32> to vector<2x16x16xbf16>
    %111 = arith.truncf %91 : vector<2x16x8xf32> to vector<2x16x8xbf16>
    %cst_30 = arith.constant dense<0.000000e+00> : vector<2x16x8xf32>
    %112 = tpu.matmul %110, %111, %cst_30 {dimension_numbers = #tpu.dot_dimension_numbers<[2], [1], [1], [2], [0, 0, 0, 1, 1, 2], [0], [0]>} : vector<2x16x16xbf16>, vector<2x16x8xbf16>, vector<2x16x8xf32> -> vector<2x16x8xf32>
    %113 = arith.truncf %112 : vector<2x16x8xf32> to vector<2x16x8xbf16>
    %c0_31 = arith.constant 0 : index
    %c0_32 = arith.constant 0 : index
    %c24 = arith.constant 24 : index
    %114 = vector.load %arg3[%c0_31, %c0_32, %c24] : memref<2x16x32xbf16, #tpu.memory_space<vmem>>, vector<2x16x8xbf16>
    tpu.vector_store %arg3[%c0_31, %c0_32, %c24], %113 {strides = array<i32>} : memref<2x16x32xbf16, #tpu.memory_space<vmem>>, vector<2x16x8xbf16>,
    return
  }
  func.func @transform_0(%arg0: i32) -> (i32, i32, i32) {
    %c0_i32 = arith.constant 0 : i32
    %c0_i32_0 = arith.constant 0 : i32
    %c0_i32_1 = arith.constant 0 : i32
    return %arg0, %c0_i32, %c0_i32_0 : i32, i32, i32
  }
  func.func @transform_1(%arg0: i32) -> (i32, i32, i32) {
    %c0_i32 = arith.constant 0 : i32
    %c0_i32_0 = arith.constant 0 : i32
    %c0_i32_1 = arith.constant 0 : i32
    %c0_i32_2 = arith.constant 0 : i32
    return %c0_i32, %c0_i32_0, %c0_i32_1 : i32, i32, i32
  }
  func.func @transform_2(%arg0: i32) -> (i32, i32, i32) {
    %c0_i32 = arith.constant 0 : i32
    %c0_i32_0 = arith.constant 0 : i32
    %c0_i32_1 = arith.constant 0 : i32
    return %arg0, %c0_i32, %c0_i32_0 : i32, i32, i32
  }
}

module attributes {stable_mosaic.version = 11 : i64} {
  func.func @_fused_linear_kernel(%arg0: i32, %arg1: i32, %arg2: memref<32x32xbf16, #tpu.memory_space<vmem>>, %arg3: memref<32x32xbf16, #tpu.memory_space<vmem>>, %arg4: memref<1x32xf32, #tpu.memory_space<vmem>>, %arg5: memref<32x32xbf16, #tpu.memory_space<vmem>>) attributes {dimension_semantics = [#tpu.dimension_semantics<parallel>, #tpu.dimension_semantics<parallel>], iteration_bounds = array<i64: 1, 1>, scalar_prefetch = 0 : i64, scratch_operands = 0 : i64, tpu.core_type = #tpu.core_type<tc>, window_params = [{transform_indices = @transform_0, window_bounds = array<i64: 32, 32>}, {transform_indices = @transform_1, window_bounds = array<i64: 32, 32>}, {transform_indices = @transform_2, window_bounds = array<i64: 1, 32>}, {transform_indices = @transform_3, window_bounds = array<i64: 32, 32>}]} {
    %c0 = arith.constant 0 : index
    %c0_0 = arith.constant 0 : index
    %0 = vector.load %arg2[%c0, %c0_0] : memref<32x32xbf16, #tpu.memory_space<vmem>>, vector<32x32xbf16>
    %1 = arith.extf %0 : vector<32x32xbf16> to vector<32x32xf32>
    %c0_1 = arith.constant 0 : index
    %c0_2 = arith.constant 0 : index
    %2 = vector.load %arg3[%c0_1, %c0_2] : memref<32x32xbf16, #tpu.memory_space<vmem>>, vector<32x32xbf16>
    %3 = arith.truncf %1 : vector<32x32xf32> to vector<32x32xbf16>
    %cst = arith.constant dense<0.000000e+00> : vector<32x32xf32>
    %4 = tpu.matmul %3, %2, %cst {dimension_numbers = #tpu.dot_dimension_numbers<[1], [0], [0], [1], [0, 0, 1, 1], [], []>} : vector<32x32xbf16>, vector<32x32xbf16>, vector<32x32xf32> -> vector<32x32xf32>
    %c0_3 = arith.constant 0 : index
    %c0_4 = arith.constant 0 : index
    %5 = vector.load %arg4[%c0_3, %c0_4] : memref<1x32xf32, #tpu.memory_space<vmem>>, vector<1x32xf32>
    %6 = vector.broadcast %5 : vector<1x32xf32> to vector<32x32xf32>
    %7 = arith.addf %4, %6 : vector<32x32xf32>
    %8 = arith.truncf %7 : vector<32x32xf32> to vector<32x32xbf16>
    %c0_5 = arith.constant 0 : index
    %c0_6 = arith.constant 0 : index
    %9 = vector.load %arg5[%c0_5, %c0_6] : memref<32x32xbf16, #tpu.memory_space<vmem>>, vector<32x32xbf16>
    tpu.vector_store %arg5[%c0_5, %c0_6], %8 {strides = array<i32>} : memref<32x32xbf16, #tpu.memory_space<vmem>>, vector<32x32xbf16>,
    return
  }
  func.func @transform_0(%arg0: i32, %arg1: i32) -> (i32, i32) {
    %c0_i32 = arith.constant 0 : i32
    %c0_i32_0 = arith.constant 0 : i32
    return %arg0, %c0_i32 : i32, i32
  }
  func.func @transform_1(%arg0: i32, %arg1: i32) -> (i32, i32) {
    %c0_i32 = arith.constant 0 : i32
    %c0_i32_0 = arith.constant 0 : i32
    return %c0_i32, %arg1 : i32, i32
  }
  func.func @transform_2(%arg0: i32, %arg1: i32) -> (i32, i32) {
    %c0_i32 = arith.constant 0 : i32
    %c0_i32_0 = arith.constant 0 : i32
    return %c0_i32, %arg1 : i32, i32
  }
  func.func @transform_3(%arg0: i32, %arg1: i32) -> (i32, i32) {
    %c0_i32 = arith.constant 0 : i32
    return %arg0, %arg1 : i32, i32
  }
}

module attributes {stable_mosaic.version = 11 : i64} {
  func.func @_fused_linear_kernel(%arg0: i32, %arg1: i32, %arg2: memref<32x32xbf16, #tpu.memory_space<vmem>>, %arg3: memref<1x32xf32, #tpu.memory_space<vmem>>, %arg4: memref<1x32xf32, #tpu.memory_space<vmem>>, %arg5: memref<32x128xbf16, #tpu.memory_space<vmem>>, %arg6: memref<1x128xf32, #tpu.memory_space<vmem>>, %arg7: memref<32x128xbf16, #tpu.memory_space<vmem>>) attributes {dimension_semantics = [#tpu.dimension_semantics<parallel>, #tpu.dimension_semantics<parallel>], iteration_bounds = array<i64: 1, 1>, scalar_prefetch = 0 : i64, scratch_operands = 0 : i64, tpu.core_type = #tpu.core_type<tc>, window_params = [{transform_indices = @transform_0, window_bounds = array<i64: 32, 32>}, {pipeline_mode = #tpu.pipeline_mode<synchronous>, transform_indices = @transform_1, window_bounds = array<i64: 1, 32>}, {pipeline_mode = #tpu.pipeline_mode<synchronous>, transform_indices = @transform_2, window_bounds = array<i64: 1, 32>}, {transform_indices = @transform_3, window_bounds = array<i64: 32, 128>}, {transform_indices = @transform_4, window_bounds = array<i64: 1, 128>}, {transform_indices = @transform_5, window_bounds = array<i64: 32, 128>}]} {
    %c0 = arith.constant 0 : index
    %c0_0 = arith.constant 0 : index
    %0 = vector.load %arg2[%c0, %c0_0] : memref<32x32xbf16, #tpu.memory_space<vmem>>, vector<32x32xbf16>
    %1 = arith.extf %0 : vector<32x32xbf16> to vector<32x32xf32>
    %c0_1 = arith.constant 0 : index
    %c0_2 = arith.constant 0 : index
    %2 = vector.load %arg3[%c0_1, %c0_2] : memref<1x32xf32, #tpu.memory_space<vmem>>, vector<1x32xf32>
    %c0_3 = arith.constant 0 : index
    %c0_4 = arith.constant 0 : index
    %3 = vector.load %arg4[%c0_3, %c0_4] : memref<1x32xf32, #tpu.memory_space<vmem>>, vector<1x32xf32>
    %cst = arith.constant dense<0.000000e+00> : vector<32xf32>
    %4 = vector.multi_reduction <add>, %1, %cst [1] : vector<32x32xf32> to vector<32xf32>
    %5 = vector.shape_cast %4 : vector<32xf32> to vector<32x1xf32>
    %cst_5 = arith.constant 3.200000e+01 : f32
    %6 = vector.broadcast %cst_5 : f32 to vector<32x1xf32>
    %7 = arith.divf %5, %6 : vector<32x1xf32>
    %8 = vector.broadcast %7 : vector<32x1xf32> to vector<32x32xf32>
    %9 = arith.subf %1, %8 : vector<32x32xf32>
    %10 = arith.mulf %9, %9 : vector<32x32xf32>
    %cst_6 = arith.constant dense<0.000000e+00> : vector<32xf32>
    %11 = vector.multi_reduction <add>, %10, %cst_6 [1] : vector<32x32xf32> to vector<32xf32>
    %12 = vector.shape_cast %11 : vector<32xf32> to vector<32x1xf32>
    %cst_7 = arith.constant 3.200000e+01 : f32
    %13 = vector.broadcast %cst_7 : f32 to vector<32x1xf32>
    %14 = arith.divf %12, %13 : vector<32x1xf32>
    %15 = vector.broadcast %7 : vector<32x1xf32> to vector<32x32xf32>
    %16 = arith.subf %1, %15 : vector<32x32xf32>
    %cst_8 = arith.constant 9.99999974E-6 : f32
    %17 = vector.broadcast %cst_8 : f32 to vector<32x1xf32>
    %18 = arith.addf %14, %17 : vector<32x1xf32>
    %19 = math.rsqrt %18 : vector<32x1xf32>
    %20 = vector.broadcast %19 : vector<32x1xf32> to vector<32x32xf32>
    %21 = arith.mulf %16, %20 : vector<32x32xf32>
    %22 = vector.broadcast %2 : vector<1x32xf32> to vector<32x32xf32>
    %23 = arith.mulf %21, %22 : vector<32x32xf32>
    %24 = vector.broadcast %3 : vector<1x32xf32> to vector<32x32xf32>
    %25 = arith.addf %23, %24 : vector<32x32xf32>
    %c0_9 = arith.constant 0 : index
    %c0_10 = arith.constant 0 : index
    %26 = vector.load %arg5[%c0_9, %c0_10] : memref<32x128xbf16, #tpu.memory_space<vmem>>, vector<32x128xbf16>
    %27 = arith.truncf %25 : vector<32x32xf32> to vector<32x32xbf16>
    %cst_11 = arith.constant dense<0.000000e+00> : vector<32x128xf32>
    %28 = tpu.matmul %27, %26, %cst_11 {dimension_numbers = #tpu.dot_dimension_numbers<[1], [0], [0], [1], [0, 0, 1, 1], [], []>} : vector<32x32xbf16>, vector<32x128xbf16>, vector<32x128xf32> -> vector<32x128xf32>
    %c0_12 = arith.constant 0 : index
    %c0_13 = arith.constant 0 : index
    %29 = vector.load %arg6[%c0_12, %c0_13] : memref<1x128xf32, #tpu.memory_space<vmem>>, vector<1x128xf32>
    %30 = vector.broadcast %29 : vector<1x128xf32> to vector<32x128xf32>
    %31 = arith.addf %28, %30 : vector<32x128xf32>
    %cst_14 = arith.constant 5.000000e-01 : f32
    %32 = vector.broadcast %cst_14 : f32 to vector<32x128xf32>
    %33 = arith.mulf %32, %31 : vector<32x128xf32>
    %cst_15 = arith.constant 0.707106769 : f32
    %34 = vector.broadcast %cst_15 : f32 to vector<32x128xf32>
    %35 = arith.mulf %31, %34 : vector<32x128xf32>
    %36 = math.erf %35 : vector<32x128xf32>
    %cst_16 = arith.constant 1.000000e+00 : f32
    %37 = vector.broadcast %cst_16 : f32 to vector<32x128xf32>
    %38 = arith.addf %37, %36 : vector<32x128xf32>
    %39 = arith.mulf %33, %38 : vector<32x128xf32>
    %40 = arith.truncf %39 : vector<32x128xf32> to vector<32x128xbf16>
    %c0_17 = arith.constant 0 : index
    %c0_18 = arith.constant 0 : index
    %41 = vector.load %arg7[%c0_17, %c0_18] : memref<32x128xbf16, #tpu.memory_space<vmem>>, vector<32x128xbf16>
    tpu.vector_store %arg7[%c0_17, %c0_18], %40 {strides = array<i32>} : memref<32x128xbf16, #tpu.memory_space<vmem>>, vector<32x128xbf16>,
    return
  }
  func.func @transform_0(%arg0: i32, %arg1: i32) -> (i32, i32) {
    %c0_i32 = arith.constant 0 : i32
    %c0_i32_0 = arith.constant 0 : i32
    return %arg0, %c0_i32 : i32, i32
  }
  func.func @transform_1(%arg0: i32, %arg1: i32) -> (i32, i32) {
    %c0_i32 = arith.constant 0 : i32
    %c0_i32_0 = arith.constant 0 : i32
    %c0_i32_1 = arith.constant 0 : i32
    return %c0_i32, %c0_i32_0 : i32, i32
  }
  func.func @transform_2(%arg0: i32, %arg1: i32) -> (i32, i32) {
    %c0_i32 = arith.constant 0 : i32
    %c0_i32_0 = arith.constant 0 : i32
    %c0_i32_1 = arith.constant 0 : i32
    return %c0_i32, %c0_i32_0 : i32, i32
  }
  func.func @transform_3(%arg0: i32, %arg1: i32) -> (i32, i32) {
    %c0_i32 = arith.constant 0 : i32
    %c0_i32_0 = arith.constant 0 : i32
    return %c0_i32, %arg1 : i32, i32
  }
  func.func @transform_4(%arg0: i32, %arg1: i32) -> (i32, i32) {
    %c0_i32 = arith.constant 0 : i32
    %c0_i32_0 = arith.constant 0 : i32
    return %c0_i32, %arg1 : i32, i32
  }
  func.func @transform_5(%arg0: i32, %arg1: i32) -> (i32, i32) {
    %c0_i32 = arith.constant 0 : i32
    return %arg0, %arg1 : i32, i32
  }
}

module attributes {stable_mosaic.version = 11 : i64} {
  func.func @_fused_linear_kernel(%arg0: i32, %arg1: i32, %arg2: memref<32x128xbf16, #tpu.memory_space<vmem>>, %arg3: memref<128x32xbf16, #tpu.memory_space<vmem>>, %arg4: memref<1x32xf32, #tpu.memory_space<vmem>>, %arg5: memref<32x32xbf16, #tpu.memory_space<vmem>>, %arg6: memref<32x32xbf16, #tpu.memory_space<vmem>>) attributes {dimension_semantics = [#tpu.dimension_semantics<parallel>, #tpu.dimension_semantics<parallel>], iteration_bounds = array<i64: 1, 1>, scalar_prefetch = 0 : i64, scratch_operands = 0 : i64, tpu.core_type = #tpu.core_type<tc>, window_params = [{transform_indices = @transform_0, window_bounds = array<i64: 32, 128>}, {transform_indices = @transform_1, window_bounds = array<i64: 128, 32>}, {transform_indices = @transform_2, window_bounds = array<i64: 1, 32>}, {transform_indices = @transform_3, window_bounds = array<i64: 32, 32>}, {transform_indices = @transform_4, window_bounds = array<i64: 32, 32>}]} {
    %c0 = arith.constant 0 : index
    %c0_0 = arith.constant 0 : index
    %0 = vector.load %arg2[%c0, %c0_0] : memref<32x128xbf16, #tpu.memory_space<vmem>>, vector<32x128xbf16>
    %1 = arith.extf %0 : vector<32x128xbf16> to vector<32x128xf32>
    %c0_1 = arith.constant 0 : index
    %c0_2 = arith.constant 0 : index
    %2 = vector.load %arg3[%c0_1, %c0_2] : memref<128x32xbf16, #tpu.memory_space<vmem>>, vector<128x32xbf16>
    %3 = arith.truncf %1 : vector<32x128xf32> to vector<32x128xbf16>
    %cst = arith.constant dense<0.000000e+00> : vector<32x32xf32>
    %4 = tpu.matmul %3, %2, %cst {dimension_numbers = #tpu.dot_dimension_numbers<[1], [0], [0], [1], [0, 0, 1, 1], [], []>} : vector<32x128xbf16>, vector<128x32xbf16>, vector<32x32xf32> -> vector<32x32xf32>
    %c0_3 = arith.constant 0 : index
    %c0_4 = arith.constant 0 : index
    %5 = vector.load %arg4[%c0_3, %c0_4] : memref<1x32xf32, #tpu.memory_space<vmem>>, vector<1x32xf32>
    %6 = vector.broadcast %5 : vector<1x32xf32> to vector<32x32xf32>
    %7 = arith.addf %4, %6 : vector<32x32xf32>
    %c0_5 = arith.constant 0 : index
    %c0_6 = arith.constant 0 : index
    %8 = vector.load %arg5[%c0_5, %c0_6] : memref<32x32xbf16, #tpu.memory_space<vmem>>, vector<32x32xbf16>
    %9 = arith.extf %8 : vector<32x32xbf16> to vector<32x32xf32>
    %10 = arith.addf %7, %9 : vector<32x32xf32>
    %11 = arith.truncf %10 : vector<32x32xf32> to vector<32x32xbf16>
    %c0_7 = arith.constant 0 : index
    %c0_8 = arith.constant 0 : index
    %12 = vector.load %arg6[%c0_7, %c0_8] : memref<32x32xbf16, #tpu.memory_space<vmem>>, vector<32x32xbf16>
    tpu.vector_store %arg6[%c0_7, %c0_8], %11 {strides = array<i32>} : memref<32x32xbf16, #tpu.memory_space<vmem>>, vector<32x32xbf16>,
    return
  }
  func.func @transform_0(%arg0: i32, %arg1: i32) -> (i32, i32) {
    %c0_i32 = arith.constant 0 : i32
    %c0_i32_0 = arith.constant 0 : i32
    return %arg0, %c0_i32 : i32, i32
  }
  func.func @transform_1(%arg0: i32, %arg1: i32) -> (i32, i32) {
    %c0_i32 = arith.constant 0 : i32
    %c0_i32_0 = arith.constant 0 : i32
    return %c0_i32, %arg1 : i32, i32
  }
  func.func @transform_2(%arg0: i32, %arg1: i32) -> (i32, i32) {
    %c0_i32 = arith.constant 0 : i32
    %c0_i32_0 = arith.constant 0 : i32
    return %c0_i32, %arg1 : i32, i32
  }
  func.func @transform_3(%arg0: i32, %arg1: i32) -> (i32, i32) {
    %c0_i32 = arith.constant 0 : i32
    return %arg0, %arg1 : i32, i32
  }
  func.func @transform_4(%arg0: i32, %arg1: i32) -> (i32, i32) {
    %c0_i32 = arith.constant 0 : i32
    return %arg0, %arg1 : i32, i32
  }
}

module attributes {stable_mosaic.version = 11 : i64} {
  func.func @_window_attn_kernel(%arg0: i32, %arg1: memref<2x16x96xbf16, #tpu.memory_space<vmem>>, %arg2: memref<4x16x16xf32, #tpu.memory_space<vmem>>, %arg3: memref<1x16x16xf32, #tpu.memory_space<vmem>>, %arg4: memref<2x16x32xbf16, #tpu.memory_space<vmem>>) attributes {dimension_semantics = [#tpu.dimension_semantics<parallel>], iteration_bounds = array<i64: 1>, scalar_prefetch = 0 : i64, scratch_operands = 0 : i64, tpu.core_type = #tpu.core_type<tc>, window_params = [{transform_indices = @transform_0, window_bounds = array<i64: 2, 16, 96>}, {pipeline_mode = #tpu.pipeline_mode<synchronous>, transform_indices = @transform_1, window_bounds = array<i64: 4, 16, 16>}, {pipeline_mode = #tpu.pipeline_mode<synchronous>, transform_indices = @transform_2, window_bounds = array<i64: 1, 16, 16>}, {transform_indices = @transform_3, window_bounds = array<i64: 2, 16, 32>}]} {
    %c0 = arith.constant 0 : index
    %c0_0 = arith.constant 0 : index
    %c0_1 = arith.constant 0 : index
    %0 = vector.load %arg1[%c0, %c0_0, %c0_1] : memref<2x16x96xbf16, #tpu.memory_space<vmem>>, vector<2x16x96xbf16>
    %1 = arith.extf %0 : vector<2x16x96xbf16> to vector<2x16x96xf32>
    %c0_2 = arith.constant 0 : index
    %c0_3 = arith.constant 0 : index
    %c0_4 = arith.constant 0 : index
    %2 = vector.load %arg2[%c0_2, %c0_3, %c0_4] : memref<4x16x16xf32, #tpu.memory_space<vmem>>, vector<4x16x16xf32>
    %c0_5 = arith.constant 0 : index
    %c0_6 = arith.constant 0 : index
    %c0_7 = arith.constant 0 : index
    %3 = vector.load %arg3[%c0_5, %c0_6, %c0_7] : memref<1x16x16xf32, #tpu.memory_space<vmem>>, vector<1x16x16xf32>
    %4 = vector.shape_cast %3 : vector<1x16x16xf32> to vector<1x1x16x16xf32>
    %5 = vector.shape_cast %4 : vector<1x1x16x16xf32> to vector<1x1x16x16xf32>
    %6 = vector.broadcast %5 : vector<1x1x16x16xf32> to vector<2x1x16x16xf32>
    %7 = vector.shape_cast %6 : vector<2x1x16x16xf32> to vector<2x16x16xf32>
    %8 = vector.extract_strided_slice %1 {offsets = [0, 0, 0], sizes = [2, 16, 8], strides = [1, 1, 1]} : vector<2x16x96xf32> to vector<2x16x8xf32>
    %cst = arith.constant 0.353553385 : f32
    %9 = vector.broadcast %cst : f32 to vector<2x16x8xf32>
    %10 = arith.mulf %8, %9 : vector<2x16x8xf32>
    %11 = vector.extract_strided_slice %1 {offsets = [0, 0, 32], sizes = [2, 16, 8], strides = [1, 1, 1]} : vector<2x16x96xf32> to vector<2x16x8xf32>
    %12 = vector.extract_strided_slice %1 {offsets = [0, 0, 64], sizes = [2, 16, 8], strides = [1, 1, 1]} : vector<2x16x96xf32> to vector<2x16x8xf32>
    %13 = arith.truncf %10 : vector<2x16x8xf32> to vector<2x16x8xbf16>
    %14 = arith.truncf %11 : vector<2x16x8xf32> to vector<2x16x8xbf16>
    %cst_8 = arith.constant dense<0.000000e+00> : vector<2x16x16xf32>
    %15 = tpu.matmul %13, %14, %cst_8 {dimension_numbers = #tpu.dot_dimension_numbers<[2], [2], [1], [1], [0, 0, 0, 1, 1, 1], [0], [0]>} : vector<2x16x8xbf16>, vector<2x16x8xbf16>, vector<2x16x16xf32> -> vector<2x16x16xf32>
    %16 = vector.extract_strided_slice %2 {offsets = [0, 0, 0], sizes = [1, 16, 16], strides = [1, 1, 1]} : vector<4x16x16xf32> to vector<1x16x16xf32>
    %17 = vector.shape_cast %16 : vector<1x16x16xf32> to vector<16x16xf32>
    %18 = vector.shape_cast %17 : vector<16x16xf32> to vector<1x16x16xf32>
    %19 = vector.broadcast %18 : vector<1x16x16xf32> to vector<2x16x16xf32>
    %20 = arith.addf %15, %19 : vector<2x16x16xf32>
    %21 = arith.addf %20, %7 : vector<2x16x16xf32>
    %cst_9 = arith.constant dense<0xFF800000> : vector<2x16xf32>
    %22 = vector.multi_reduction <maximumf>, %21, %cst_9 [2] : vector<2x16x16xf32> to vector<2x16xf32>
    %23 = vector.shape_cast %22 : vector<2x16xf32> to vector<2x16x1xf32>
    %24 = vector.broadcast %23 : vector<2x16x1xf32> to vector<2x16x16xf32>
    %25 = arith.subf %21, %24 : vector<2x16x16xf32>
    %26 = math.exp %25 : vector<2x16x16xf32>
    %cst_10 = arith.constant dense<0.000000e+00> : vector<2x16xf32>
    %27 = vector.multi_reduction <add>, %26, %cst_10 [2] : vector<2x16x16xf32> to vector<2x16xf32>
    %28 = vector.shape_cast %27 : vector<2x16xf32> to vector<2x16x1xf32>
    %29 = tpu.reciprocal %28 {approx = true} : vector<2x16x1xf32> -> vector<2x16x1xf32>
    %30 = vector.broadcast %29 : vector<2x16x1xf32> to vector<2x16x16xf32>
    %31 = arith.mulf %26, %30 : vector<2x16x16xf32>
    %32 = arith.truncf %31 : vector<2x16x16xf32> to vector<2x16x16xbf16>
    %33 = arith.truncf %12 : vector<2x16x8xf32> to vector<2x16x8xbf16>
    %cst_11 = arith.constant dense<0.000000e+00> : vector<2x16x8xf32>
    %34 = tpu.matmul %32, %33, %cst_11 {dimension_numbers = #tpu.dot_dimension_numbers<[2], [1], [1], [2], [0, 0, 0, 1, 1, 2], [0], [0]>} : vector<2x16x16xbf16>, vector<2x16x8xbf16>, vector<2x16x8xf32> -> vector<2x16x8xf32>
    %35 = arith.truncf %34 : vector<2x16x8xf32> to vector<2x16x8xbf16>
    %c0_12 = arith.constant 0 : index
    %c0_13 = arith.constant 0 : index
    %c0_14 = arith.constant 0 : index
    %36 = vector.load %arg4[%c0_12, %c0_13, %c0_14] : memref<2x16x32xbf16, #tpu.memory_space<vmem>>, vector<2x16x8xbf16>
    tpu.vector_store %arg4[%c0_12, %c0_13, %c0_14], %35 {strides = array<i32>} : memref<2x16x32xbf16, #tpu.memory_space<vmem>>, vector<2x16x8xbf16>,
    %37 = vector.extract_strided_slice %1 {offsets = [0, 0, 8], sizes = [2, 16, 8], strides = [1, 1, 1]} : vector<2x16x96xf32> to vector<2x16x8xf32>
    %cst_15 = arith.constant 0.353553385 : f32
    %38 = vector.broadcast %cst_15 : f32 to vector<2x16x8xf32>
    %39 = arith.mulf %37, %38 : vector<2x16x8xf32>
    %40 = vector.extract_strided_slice %1 {offsets = [0, 0, 40], sizes = [2, 16, 8], strides = [1, 1, 1]} : vector<2x16x96xf32> to vector<2x16x8xf32>
    %41 = vector.extract_strided_slice %1 {offsets = [0, 0, 72], sizes = [2, 16, 8], strides = [1, 1, 1]} : vector<2x16x96xf32> to vector<2x16x8xf32>
    %42 = arith.truncf %39 : vector<2x16x8xf32> to vector<2x16x8xbf16>
    %43 = arith.truncf %40 : vector<2x16x8xf32> to vector<2x16x8xbf16>
    %cst_16 = arith.constant dense<0.000000e+00> : vector<2x16x16xf32>
    %44 = tpu.matmul %42, %43, %cst_16 {dimension_numbers = #tpu.dot_dimension_numbers<[2], [2], [1], [1], [0, 0, 0, 1, 1, 1], [0], [0]>} : vector<2x16x8xbf16>, vector<2x16x8xbf16>, vector<2x16x16xf32> -> vector<2x16x16xf32>
    %45 = vector.extract_strided_slice %2 {offsets = [1, 0, 0], sizes = [1, 16, 16], strides = [1, 1, 1]} : vector<4x16x16xf32> to vector<1x16x16xf32>
    %46 = vector.shape_cast %45 : vector<1x16x16xf32> to vector<16x16xf32>
    %47 = vector.shape_cast %46 : vector<16x16xf32> to vector<1x16x16xf32>
    %48 = vector.broadcast %47 : vector<1x16x16xf32> to vector<2x16x16xf32>
    %49 = arith.addf %44, %48 : vector<2x16x16xf32>
    %50 = arith.addf %49, %7 : vector<2x16x16xf32>
    %cst_17 = arith.constant dense<0xFF800000> : vector<2x16xf32>
    %51 = vector.multi_reduction <maximumf>, %50, %cst_17 [2] : vector<2x16x16xf32> to vector<2x16xf32>
    %52 = vector.shape_cast %51 : vector<2x16xf32> to vector<2x16x1xf32>
    %53 = vector.broadcast %52 : vector<2x16x1xf32> to vector<2x16x16xf32>
    %54 = arith.subf %50, %53 : vector<2x16x16xf32>
    %55 = math.exp %54 : vector<2x16x16xf32>
    %cst_18 = arith.constant dense<0.000000e+00> : vector<2x16xf32>
    %56 = vector.multi_reduction <add>, %55, %cst_18 [2] : vector<2x16x16xf32> to vector<2x16xf32>
    %57 = vector.shape_cast %56 : vector<2x16xf32> to vector<2x16x1xf32>
    %58 = tpu.reciprocal %57 {approx = true} : vector<2x16x1xf32> -> vector<2x16x1xf32>
    %59 = vector.broadcast %58 : vector<2x16x1xf32> to vector<2x16x16xf32>
    %60 = arith.mulf %55, %59 : vector<2x16x16xf32>
    %61 = arith.truncf %60 : vector<2x16x16xf32> to vector<2x16x16xbf16>
    %62 = arith.truncf %41 : vector<2x16x8xf32> to vector<2x16x8xbf16>
    %cst_19 = arith.constant dense<0.000000e+00> : vector<2x16x8xf32>
    %63 = tpu.matmul %61, %62, %cst_19 {dimension_numbers = #tpu.dot_dimension_numbers<[2], [1], [1], [2], [0, 0, 0, 1, 1, 2], [0], [0]>} : vector<2x16x16xbf16>, vector<2x16x8xbf16>, vector<2x16x8xf32> -> vector<2x16x8xf32>
    %64 = arith.truncf %63 : vector<2x16x8xf32> to vector<2x16x8xbf16>
    %c0_20 = arith.constant 0 : index
    %c0_21 = arith.constant 0 : index
    %c8 = arith.constant 8 : index
    %65 = vector.load %arg4[%c0_20, %c0_21, %c8] : memref<2x16x32xbf16, #tpu.memory_space<vmem>>, vector<2x16x8xbf16>
    tpu.vector_store %arg4[%c0_20, %c0_21, %c8], %64 {strides = array<i32>} : memref<2x16x32xbf16, #tpu.memory_space<vmem>>, vector<2x16x8xbf16>,
    %66 = vector.extract_strided_slice %1 {offsets = [0, 0, 16], sizes = [2, 16, 8], strides = [1, 1, 1]} : vector<2x16x96xf32> to vector<2x16x8xf32>
    %cst_22 = arith.constant 0.353553385 : f32
    %67 = vector.broadcast %cst_22 : f32 to vector<2x16x8xf32>
    %68 = arith.mulf %66, %67 : vector<2x16x8xf32>
    %69 = vector.extract_strided_slice %1 {offsets = [0, 0, 48], sizes = [2, 16, 8], strides = [1, 1, 1]} : vector<2x16x96xf32> to vector<2x16x8xf32>
    %70 = vector.extract_strided_slice %1 {offsets = [0, 0, 80], sizes = [2, 16, 8], strides = [1, 1, 1]} : vector<2x16x96xf32> to vector<2x16x8xf32>
    %71 = arith.truncf %68 : vector<2x16x8xf32> to vector<2x16x8xbf16>
    %72 = arith.truncf %69 : vector<2x16x8xf32> to vector<2x16x8xbf16>
    %cst_23 = arith.constant dense<0.000000e+00> : vector<2x16x16xf32>
    %73 = tpu.matmul %71, %72, %cst_23 {dimension_numbers = #tpu.dot_dimension_numbers<[2], [2], [1], [1], [0, 0, 0, 1, 1, 1], [0], [0]>} : vector<2x16x8xbf16>, vector<2x16x8xbf16>, vector<2x16x16xf32> -> vector<2x16x16xf32>
    %74 = vector.extract_strided_slice %2 {offsets = [2, 0, 0], sizes = [1, 16, 16], strides = [1, 1, 1]} : vector<4x16x16xf32> to vector<1x16x16xf32>
    %75 = vector.shape_cast %74 : vector<1x16x16xf32> to vector<16x16xf32>
    %76 = vector.shape_cast %75 : vector<16x16xf32> to vector<1x16x16xf32>
    %77 = vector.broadcast %76 : vector<1x16x16xf32> to vector<2x16x16xf32>
    %78 = arith.addf %73, %77 : vector<2x16x16xf32>
    %79 = arith.addf %78, %7 : vector<2x16x16xf32>
    %cst_24 = arith.constant dense<0xFF800000> : vector<2x16xf32>
    %80 = vector.multi_reduction <maximumf>, %79, %cst_24 [2] : vector<2x16x16xf32> to vector<2x16xf32>
    %81 = vector.shape_cast %80 : vector<2x16xf32> to vector<2x16x1xf32>
    %82 = vector.broadcast %81 : vector<2x16x1xf32> to vector<2x16x16xf32>
    %83 = arith.subf %79, %82 : vector<2x16x16xf32>
    %84 = math.exp %83 : vector<2x16x16xf32>
    %cst_25 = arith.constant dense<0.000000e+00> : vector<2x16xf32>
    %85 = vector.multi_reduction <add>, %84, %cst_25 [2] : vector<2x16x16xf32> to vector<2x16xf32>
    %86 = vector.shape_cast %85 : vector<2x16xf32> to vector<2x16x1xf32>
    %87 = tpu.reciprocal %86 {approx = true} : vector<2x16x1xf32> -> vector<2x16x1xf32>
    %88 = vector.broadcast %87 : vector<2x16x1xf32> to vector<2x16x16xf32>
    %89 = arith.mulf %84, %88 : vector<2x16x16xf32>
    %90 = arith.truncf %89 : vector<2x16x16xf32> to vector<2x16x16xbf16>
    %91 = arith.truncf %70 : vector<2x16x8xf32> to vector<2x16x8xbf16>
    %cst_26 = arith.constant dense<0.000000e+00> : vector<2x16x8xf32>
    %92 = tpu.matmul %90, %91, %cst_26 {dimension_numbers = #tpu.dot_dimension_numbers<[2], [1], [1], [2], [0, 0, 0, 1, 1, 2], [0], [0]>} : vector<2x16x16xbf16>, vector<2x16x8xbf16>, vector<2x16x8xf32> -> vector<2x16x8xf32>
    %93 = arith.truncf %92 : vector<2x16x8xf32> to vector<2x16x8xbf16>
    %c0_27 = arith.constant 0 : index
    %c0_28 = arith.constant 0 : index
    %c16 = arith.constant 16 : index
    %94 = vector.load %arg4[%c0_27, %c0_28, %c16] : memref<2x16x32xbf16, #tpu.memory_space<vmem>>, vector<2x16x8xbf16>
    tpu.vector_store %arg4[%c0_27, %c0_28, %c16], %93 {strides = array<i32>} : memref<2x16x32xbf16, #tpu.memory_space<vmem>>, vector<2x16x8xbf16>,
    %95 = vector.extract_strided_slice %1 {offsets = [0, 0, 24], sizes = [2, 16, 8], strides = [1, 1, 1]} : vector<2x16x96xf32> to vector<2x16x8xf32>
    %cst_29 = arith.constant 0.353553385 : f32
    %96 = vector.broadcast %cst_29 : f32 to vector<2x16x8xf32>
    %97 = arith.mulf %95, %96 : vector<2x16x8xf32>
    %98 = vector.extract_strided_slice %1 {offsets = [0, 0, 56], sizes = [2, 16, 8], strides = [1, 1, 1]} : vector<2x16x96xf32> to vector<2x16x8xf32>
    %99 = vector.extract_strided_slice %1 {offsets = [0, 0, 88], sizes = [2, 16, 8], strides = [1, 1, 1]} : vector<2x16x96xf32> to vector<2x16x8xf32>
    %100 = arith.truncf %97 : vector<2x16x8xf32> to vector<2x16x8xbf16>
    %101 = arith.truncf %98 : vector<2x16x8xf32> to vector<2x16x8xbf16>
    %cst_30 = arith.constant dense<0.000000e+00> : vector<2x16x16xf32>
    %102 = tpu.matmul %100, %101, %cst_30 {dimension_numbers = #tpu.dot_dimension_numbers<[2], [2], [1], [1], [0, 0, 0, 1, 1, 1], [0], [0]>} : vector<2x16x8xbf16>, vector<2x16x8xbf16>, vector<2x16x16xf32> -> vector<2x16x16xf32>
    %103 = vector.extract_strided_slice %2 {offsets = [3, 0, 0], sizes = [1, 16, 16], strides = [1, 1, 1]} : vector<4x16x16xf32> to vector<1x16x16xf32>
    %104 = vector.shape_cast %103 : vector<1x16x16xf32> to vector<16x16xf32>
    %105 = vector.shape_cast %104 : vector<16x16xf32> to vector<1x16x16xf32>
    %106 = vector.broadcast %105 : vector<1x16x16xf32> to vector<2x16x16xf32>
    %107 = arith.addf %102, %106 : vector<2x16x16xf32>
    %108 = arith.addf %107, %7 : vector<2x16x16xf32>
    %cst_31 = arith.constant dense<0xFF800000> : vector<2x16xf32>
    %109 = vector.multi_reduction <maximumf>, %108, %cst_31 [2] : vector<2x16x16xf32> to vector<2x16xf32>
    %110 = vector.shape_cast %109 : vector<2x16xf32> to vector<2x16x1xf32>
    %111 = vector.broadcast %110 : vector<2x16x1xf32> to vector<2x16x16xf32>
    %112 = arith.subf %108, %111 : vector<2x16x16xf32>
    %113 = math.exp %112 : vector<2x16x16xf32>
    %cst_32 = arith.constant dense<0.000000e+00> : vector<2x16xf32>
    %114 = vector.multi_reduction <add>, %113, %cst_32 [2] : vector<2x16x16xf32> to vector<2x16xf32>
    %115 = vector.shape_cast %114 : vector<2x16xf32> to vector<2x16x1xf32>
    %116 = tpu.reciprocal %115 {approx = true} : vector<2x16x1xf32> -> vector<2x16x1xf32>
    %117 = vector.broadcast %116 : vector<2x16x1xf32> to vector<2x16x16xf32>
    %118 = arith.mulf %113, %117 : vector<2x16x16xf32>
    %119 = arith.truncf %118 : vector<2x16x16xf32> to vector<2x16x16xbf16>
    %120 = arith.truncf %99 : vector<2x16x8xf32> to vector<2x16x8xbf16>
    %cst_33 = arith.constant dense<0.000000e+00> : vector<2x16x8xf32>
    %121 = tpu.matmul %119, %120, %cst_33 {dimension_numbers = #tpu.dot_dimension_numbers<[2], [1], [1], [2], [0, 0, 0, 1, 1, 2], [0], [0]>} : vector<2x16x16xbf16>, vector<2x16x8xbf16>, vector<2x16x8xf32> -> vector<2x16x8xf32>
    %122 = arith.truncf %121 : vector<2x16x8xf32> to vector<2x16x8xbf16>
    %c0_34 = arith.constant 0 : index
    %c0_35 = arith.constant 0 : index
    %c24 = arith.constant 24 : index
    %123 = vector.load %arg4[%c0_34, %c0_35, %c24] : memref<2x16x32xbf16, #tpu.memory_space<vmem>>, vector<2x16x8xbf16>
    tpu.vector_store %arg4[%c0_34, %c0_35, %c24], %122 {strides = array<i32>} : memref<2x16x32xbf16, #tpu.memory_space<vmem>>, vector<2x16x8xbf16>,
    return
  }
  func.func @transform_0(%arg0: i32) -> (i32, i32, i32) {
    %c0_i32 = arith.constant 0 : i32
    %c0_i32_0 = arith.constant 0 : i32
    %c0_i32_1 = arith.constant 0 : i32
    return %arg0, %c0_i32, %c0_i32_0 : i32, i32, i32
  }
  func.func @transform_1(%arg0: i32) -> (i32, i32, i32) {
    %c0_i32 = arith.constant 0 : i32
    %c0_i32_0 = arith.constant 0 : i32
    %c0_i32_1 = arith.constant 0 : i32
    %c0_i32_2 = arith.constant 0 : i32
    return %c0_i32, %c0_i32_0, %c0_i32_1 : i32, i32, i32
  }
  func.func @transform_2(%arg0: i32) -> (i32, i32, i32) {
    %c0_i32 = arith.constant 0 : i32
    %c0_i32_0 = arith.constant 0 : i32
    %c0_i32_1 = arith.constant 0 : i32
    %c0_i32_2 = arith.constant 0 : i32
    return %c0_i32, %c0_i32_0, %c0_i32_1 : i32, i32, i32
  }
  func.func @transform_3(%arg0: i32) -> (i32, i32, i32) {
    %c0_i32 = arith.constant 0 : i32
    %c0_i32_0 = arith.constant 0 : i32
    %c0_i32_1 = arith.constant 0 : i32
    return %arg0, %c0_i32, %c0_i32_0 : i32, i32, i32
  }
}

module attributes {stable_mosaic.version = 11 : i64} {
  func.func @_ln_pool_head_kernel(%arg0: memref<2x16x32xbf16, #tpu.memory_space<vmem>>, %arg1: memref<1x32xf32, #tpu.memory_space<vmem>>, %arg2: memref<1x32xf32, #tpu.memory_space<vmem>>, %arg3: memref<32x8xbf16, #tpu.memory_space<vmem>>, %arg4: memref<1x8xf32, #tpu.memory_space<vmem>>, %arg5: memref<2x8xf32, #tpu.memory_space<vmem>>) attributes {dimension_semantics = [], scalar_prefetch = 0 : i64, scratch_operands = 0 : i64, tpu.core_type = #tpu.core_type<tc>} {
    %c0 = arith.constant 0 : index
    %c0_0 = arith.constant 0 : index
    %c0_1 = arith.constant 0 : index
    %0 = vector.load %arg0[%c0, %c0_0, %c0_1] : memref<2x16x32xbf16, #tpu.memory_space<vmem>>, vector<2x16x32xbf16>
    %1 = arith.extf %0 : vector<2x16x32xbf16> to vector<2x16x32xf32>
    %cst = arith.constant dense<0.000000e+00> : vector<2x16xf32>
    %2 = vector.multi_reduction <add>, %1, %cst [2] : vector<2x16x32xf32> to vector<2x16xf32>
    %3 = vector.shape_cast %2 : vector<2x16xf32> to vector<2x16x1xf32>
    %cst_2 = arith.constant 3.200000e+01 : f32
    %4 = vector.broadcast %cst_2 : f32 to vector<2x16x1xf32>
    %5 = arith.divf %3, %4 : vector<2x16x1xf32>
    %6 = vector.broadcast %5 : vector<2x16x1xf32> to vector<2x16x32xf32>
    %7 = arith.subf %1, %6 : vector<2x16x32xf32>
    %8 = arith.mulf %7, %7 : vector<2x16x32xf32>
    %cst_3 = arith.constant dense<0.000000e+00> : vector<2x16xf32>
    %9 = vector.multi_reduction <add>, %8, %cst_3 [2] : vector<2x16x32xf32> to vector<2x16xf32>
    %10 = vector.shape_cast %9 : vector<2x16xf32> to vector<2x16x1xf32>
    %cst_4 = arith.constant 3.200000e+01 : f32
    %11 = vector.broadcast %cst_4 : f32 to vector<2x16x1xf32>
    %12 = arith.divf %10, %11 : vector<2x16x1xf32>
    %13 = vector.broadcast %5 : vector<2x16x1xf32> to vector<2x16x32xf32>
    %14 = arith.subf %1, %13 : vector<2x16x32xf32>
    %cst_5 = arith.constant 9.99999974E-6 : f32
    %15 = vector.broadcast %cst_5 : f32 to vector<2x16x1xf32>
    %16 = arith.addf %12, %15 : vector<2x16x1xf32>
    %17 = math.rsqrt %16 : vector<2x16x1xf32>
    %18 = vector.broadcast %17 : vector<2x16x1xf32> to vector<2x16x32xf32>
    %19 = arith.mulf %14, %18 : vector<2x16x32xf32>
    %c0_6 = arith.constant 0 : index
    %c0_7 = arith.constant 0 : index
    %20 = vector.load %arg1[%c0_6, %c0_7] : memref<1x32xf32, #tpu.memory_space<vmem>>, vector<1x32xf32>
    %21 = vector.shape_cast %20 : vector<1x32xf32> to vector<1x1x32xf32>
    %22 = vector.broadcast %21 : vector<1x1x32xf32> to vector<2x16x32xf32>
    %23 = arith.mulf %19, %22 : vector<2x16x32xf32>
    %c0_8 = arith.constant 0 : index
    %c0_9 = arith.constant 0 : index
    %24 = vector.load %arg2[%c0_8, %c0_9] : memref<1x32xf32, #tpu.memory_space<vmem>>, vector<1x32xf32>
    %25 = vector.shape_cast %24 : vector<1x32xf32> to vector<1x1x32xf32>
    %26 = vector.broadcast %25 : vector<1x1x32xf32> to vector<2x16x32xf32>
    %27 = arith.addf %23, %26 : vector<2x16x32xf32>
    %cst_10 = arith.constant dense<0.000000e+00> : vector<2x32xf32>
    %28 = vector.multi_reduction <add>, %27, %cst_10 [1] : vector<2x16x32xf32> to vector<2x32xf32>
    %cst_11 = arith.constant 1.600000e+01 : f32
    %29 = vector.broadcast %cst_11 : f32 to vector<2x32xf32>
    %30 = arith.divf %28, %29 : vector<2x32xf32>
    %31 = arith.truncf %30 : vector<2x32xf32> to vector<2x32xbf16>
    %c0_12 = arith.constant 0 : index
    %c0_13 = arith.constant 0 : index
    %32 = vector.load %arg3[%c0_12, %c0_13] : memref<32x8xbf16, #tpu.memory_space<vmem>>, vector<32x8xbf16>
    %cst_14 = arith.constant dense<0.000000e+00> : vector<2x8xf32>
    %33 = tpu.matmul %31, %32, %cst_14 {dimension_numbers = #tpu.dot_dimension_numbers<[1], [0], [0], [1], [0, 0, 1, 1], [], []>} : vector<2x32xbf16>, vector<32x8xbf16>, vector<2x8xf32> -> vector<2x8xf32>
    %c0_15 = arith.constant 0 : index
    %c0_16 = arith.constant 0 : index
    %34 = vector.load %arg4[%c0_15, %c0_16] : memref<1x8xf32, #tpu.memory_space<vmem>>, vector<1x8xf32>
    %35 = vector.broadcast %34 : vector<1x8xf32> to vector<2x8xf32>
    %36 = arith.addf %33, %35 : vector<2x8xf32>
    %c0_17 = arith.constant 0 : index
    %c0_18 = arith.constant 0 : index
    %37 = vector.load %arg5[%c0_17, %c0_18] : memref<2x8xf32, #tpu.memory_space<vmem>>, vector<2x8xf32>
    tpu.vector_store %arg5[%c0_17, %c0_18], %36 {strides = array<i32>} : memref<2x8xf32, #tpu.memory_space<vmem>>, vector<2x8xf32>,
    return
  }
}

</mosaic_0001>

<bundles_post_ra>
// kernel: _lambda_.23
= control target key start
LH: loop header
LB: loop body
LE: loop exit
PB: predicated region body
PF: predicated region fallthrough
CT: control target
= control target key end

     0   :  { %vm76_vm0 = vcmask 392192   ;;  %vm200_vm1 = vcmask 130048   ;;  %vm518_vm2 = vcmask 125952   ;;  %s1039_s1 = inlined_call_operand.vmem [shape: bf16[48,16], index: 1, kind: input, shape index: {}]   ;;  %s1040_s0 = inlined_call_operand.vmem [shape: f32[128,48], index: 0, kind: input, shape index: {}]   ;;  %s1041_s2 = inlined_call_operand.vmem [shape: f32[1,16], index: 2, kind: input, shape index: {}, may-alias: {2,4}]   ;;  %s1042_s3 = inlined_call_operand.vmem [shape: f32[1,16], index: 3, kind: input, shape index: {}]   ;;  %s1043_s4 = inlined_call_operand.vmem [shape: f32[1,16], index: 4, kind: input, shape index: {}, may-alias: {2,4}]   ;;  %s1044_s5 = inlined_call_operand.vmem [shape: bf16[128,16], index: 5, kind: output, shape index: {}]  }
   0x1   :  { %v624_v0 = vld [vmem:[%s1039_s1] sm:$0xff]   ;;  %v625_v1 = vld [vmem:[%s1039_s1 + $0x8] sm:$0xff]   ;;  %v626_v5 = vld [vmem:[%s1039_s1 + $0x10] sm:$0xff]  }
   0x2   :  { %596 = vmatprep.subr.bf16.mxu0 %v624_v0  ;;  %618 = vmatprep.subr.bf16.mxu1 %v624_v0  ;;  %v21_v2 = vld [vmem:[%s1040_s0] sm:$0xff]  ;;  %v22_v3 = vld [vmem:[%s1040_s0 + $0x8] sm:$0xff]  ;;  %v23_v9 = vld [vmem:[%s1040_s0 + $0x10] sm:$0xff] }
   0x3   :  { %597 = vmatpush3.bf16.msra.mxu0 %v624_v0  ;;  %621 = vmatpush3.bf16.msra.mxu1 %v624_v0  ;;  %v29_v4 = vld [vmem:[%s1040_s0 + $0x40] sm:$0xff]  ;;  %v43_v6 = vpack.c.bf16 %v22_v3, %v21_v2  ;;  %v30_v7 = vld [vmem:[%s1040_s0 + $0x48] sm:$0xff]  ;;  %v24_v10 = vld [vmem:[%s1040_s0 + $0x18] sm:$0xff] }
   0x4   :  { %598 = vmatprep.subr.bf16.mxu0 %v625_v1  ;;  %619 = vmatprep.subr.bf16.mxu1 %v625_v1  ;;  %v47_v8 = vpack.c.bf16 %v30_v7, %v29_v4  ;;  %v31_v11 = vld [vmem:[%s1040_s0 + $0x50] sm:$0xff]  ;;  %v32_v12 = vld [vmem:[%s1040_s0 + $0x58] sm:$0xff]  ;;  %v25_v13 = vld [vmem:[%s1040_s0 + $0x20] sm:$0xff]  ;;  %v44_v17 = vpack.c.bf16 %v24_v10, %v23_v9 }
   0x5   :  { %602 = vmatprep.mubr.msk.bf16.mxu0 %vm76_vm0, %v43_v6  ;;  %v26_v14 = vld [vmem:[%s1040_s0 + $0x28] sm:$0xff]  ;;  %v33_v15 = vld [vmem:[%s1040_s0 + $0x60] sm:$0xff]  ;;  %v48_v18 = vpack.c.bf16 %v32_v12, %v31_v11  ;;  %v27_v21 = vld [vmem:[%s1040_s0 + $0x30] sm:$0xff] }
   0x6   :  { %v34_v16 = vld [vmem:[%s1040_s0 + $0x68] sm:$0xff]  ;;  %610 = vmatprep.mubr.msk.bf16.mxu1 %vm76_vm0, %v47_v8  ;;  %v45_v19 = vpack.c.bf16 %v26_v14, %v25_v13  ;;  %v28_v22 = vld [vmem:[%s1040_s0 + $0x38] sm:$0xff]  ;;  %v35_v23 = vld [vmem:[%s1040_s0 + $0x70] sm:$0xff] }
   0x7   :  { %599 = vmatpush3.bf16.msra.mxu0 %v625_v1  ;;  %622 = vmatpush3.bf16.msra.mxu1 %v625_v1  ;;  %v49_v20 = vpack.c.bf16 %v34_v16, %v33_v15  ;;  %v36_v24 = vld [vmem:[%s1040_s0 + $0x78] sm:$0xff]  ;;  %v46_v25 = vpack.c.bf16 %v28_v22, %v27_v21  ;;  %v539_v27 = vld [vmem:[%s1041_s2] ss:$0 sm:$0xff] }
   0x8   :  { %600 = vmatprep.subr.bf16.mxu0 %v626_v5  ;;  %620 = vmatprep.subr.bf16.mxu1 %v626_v5  ;;  %v50_v26 = vpack.c.bf16 %v36_v24, %v35_v23 }
   0xb   :  { %601 = vmatpush3.bf16.msra.mxu0 %v626_v5  ;;  %623 = vmatpush3.bf16.msra.mxu1 %v626_v5 }
   0xe   :  { %603 = vmatmul.mubr.msk.bf16.vlgmr.msra.gmra.mrb[0].mxu0 %vm76_vm0, %v44_v17  ;;  %611 = vmatmul.mubr.msk.bf16.vlgmr.msra.gmra.mrb[0].mxu1 %vm76_vm0, %v48_v18 }
   0xf   :  { %606 = vmatprep.mubr.msk.bf16.mxu0 %vm76_vm0, %v45_v19  ;;  %614 = vmatprep.mubr.msk.bf16.mxu1 %vm76_vm0, %v49_v20 }
  0x16   :  { %607 = vmatmul.mubr.msk.bf16.gmra.mrb[4].mxu0 %vm76_vm0, %v46_v25  ;;  %615 = vmatmul.mubr.msk.bf16.gmra.mrb[4].mxu1 %vm76_vm0, %v50_v26 }
  0xe1   :  { %v604_v28 = vpop.f32.mrb[0].mxu0  ;;  %v612_v29 = vpop.f32.mrb[0].mxu1 }
  0xe2   :  { %v757_v30 = vadd.f32 %v604_v28, %v539_v27  ;;  %v759_v31 = vadd.f32 %v612_v29, %v539_v27  ;;  %v135_v32 = vpop.f32.mrb[1].mxu0  ;;  %v167_v33 = vpop.f32.mrb[1].mxu1 }
  0xe3   :  { %v605_v34 = vpop.f32.mrb[2].mxu0  ;;  %v613_v35 = vpop.f32.mrb[2].mxu1  ;;  %v761_v36 = vadd.f32 %v539_v27, %v135_v32  ;;  %v769_v42 = vadd.f32 %v539_v27, %v167_v33 }
  0xe4   :  { %v763_v37 = vadd.f32 %v605_v34, %v539_v27  ;;  %v138_v38 = vpop.f32.mrb[3].mxu0  ;;  %v170_v39 = vpop.f32.mrb[3].mxu1  ;;  %v231_v40 = vsel %vm200_vm1, %v759_v31, 0.0  ;;  %v207_v41 = vsel %vm200_vm1, %v757_v30, 0.0  ;;  %v771_v43 = vadd.f32 %v613_v35, %v539_v27 }
  0xe5   :  { %232 = vadd.xlane.f32.xlu0 %v231_v40  ;;  %208 = vadd.xlane.f32.xlu1 %v207_v41  ;;  %v201_v45 = vsel %vm200_vm1, %v761_v36, 0.0  ;;  %v777_v52 = vadd.f32 %v539_v27, %v138_v38  ;;  %v779_v53 = vadd.f32 %v539_v27, %v170_v39  ;;  %v225_v55 = vsel %vm200_vm1, %v769_v42, 0.0 }
  0xe6   :  { %v210_v44 = vsel %vm200_vm1, %v763_v37, 0.0  ;;  %v234_v54 = vsel %vm200_vm1, %v771_v43, 0.0 }
  0xe7   :  { %v228_v60 = vsel %vm200_vm1, %v779_v53, 0.0  ;;  %v204_v61 = vsel %vm200_vm1, %v777_v52, 0.0 }
  0xe9   :  { %211 = vadd.xlane.f32.xlu1 %v210_v44  ;;  %202 = vadd.xlane.f32.xlu0 %v201_v45  ;;  %v608_v46 = vpop.f32.mrb[4].mxu0  ;;  %v616_v47 = vpop.f32.mrb[4].mxu1 }
  0xea   :  { %v151_v48 = vpop.f32.mrb[5].mxu0  ;;  %v183_v49 = vpop.f32.mrb[5].mxu1  ;;  %v785_v58 = vadd.f32 %v608_v46, %v539_v27  ;;  %v813_v8 = vadd.f32 %v616_v47, %v539_v27 }
  0xeb   :  { %v609_v50 = vpop.f32.mrb[6].mxu0  ;;  %v617_v51 = vpop.f32.mrb[6].mxu1  ;;  %v797_v0 = vadd.f32 %v539_v27, %v151_v48  ;;  %v801_v2 = vadd.f32 %v539_v27, %v183_v49 }
  0xec   :  { %v154_v56 = vpop.f32.mrb[7].mxu0  ;;  %v186_v57 = vpop.f32.mrb[7].mxu1  ;;  %v787_v59 = vadd.f32 %v609_v50, %v539_v27  ;;  %v219_v63 = vsel %vm200_vm1, %v785_v58, 0.0  ;;  %v815_v9 = vadd.f32 %v617_v51, %v539_v27  ;;  %v243_v11 = vsel %vm200_vm1, %v813_v8, 0.0 }
  0xed   :  { %235 = vadd.xlane.f32.xlu1 %v234_v54  ;;  %226 = vadd.xlane.f32.xlu0 %v225_v55  ;;  %v799_v1 = vadd.f32 %v539_v27, %v154_v56  ;;  %v803_v3 = vadd.f32 %v539_v27, %v186_v57  ;;  %v213_v5 = vsel %vm200_vm1, %v797_v0, 0.0  ;;  %v237_v7 = vsel %vm200_vm1, %v801_v2, 0.0 }
  0xee   :  { %v222_v62 = vsel %vm200_vm1, %v787_v59, 0.0  ;;  %v246_v10 = vsel %vm200_vm1, %v815_v9, 0.0 }
  0xef   :  { %v216_v4 = vsel %vm200_vm1, %v799_v1, 0.0  ;;  %v240_v6 = vsel %vm200_vm1, %v803_v3, 0.0 }
  0xf1   :  { %229 = vadd.xlane.f32.xlu1 %v228_v60  ;;  %205 = vadd.xlane.f32.xlu0 %v204_v61 }
  0xf5   :  { %223 = vadd.xlane.f32.xlu1 %v222_v62  ;;  %220 = vadd.xlane.f32.xlu0 %v219_v63 }
  0xf9   :  { %217 = vadd.xlane.f32.xlu1 %v216_v4  ;;  %214 = vadd.xlane.f32.xlu0 %v213_v5 }
  0xfd   :  { %241 = vadd.xlane.f32.xlu1 %v240_v6  ;;  %238 = vadd.xlane.f32.xlu0 %v237_v7 }
 0x101   :  { %247 = vadd.xlane.f32.xlu1 %v246_v10  ;;  %244 = vadd.xlane.f32.xlu0 %v243_v11 }
 0x172   :  { %v233_v12 = vpop.xlane.xlu0 %232  ;;  %v209_v13 = vpop.xlane.xlu1 %208 }
 0x173   :  { %v260_v14 = vmul.f32 0.0625, %v233_v12  ;;  %v252_v15 = vmul.f32 0.0625, %v209_v13 }
 0x175   :  { %v822_v16 = vsub.f32 %v759_v31, %v260_v14  ;;  %v825_v17 = vsub.f32 %v757_v30, %v252_v15 }
 0x176   :  { %v212_v18 = vpop.xlane.xlu1 %211  ;;  %v203_v19 = vpop.xlane.xlu0 %202 }
 0x177   :  { %v253_v20 = vmul.f32 0.0625, %v212_v18  ;;  %v250_v21 = vmul.f32 0.0625, %v203_v19  ;;  %v284_v22 = vmul.f32 %v825_v17, %v825_v17  ;;  %v292_v26 = vmul.f32 %v822_v16, %v822_v16 }
 0x179   :  { %v830_v23 = vsub.f32 %v763_v37, %v253_v20  ;;  %v833_v24 = vsub.f32 %v761_v36, %v250_v21  ;;  %v304_v25 = vsel %vm200_vm1, %v284_v22, 0.0  ;;  %v328_v36 = vsel %vm200_vm1, %v292_v26, 0.0 }
 0x17a   :  { %v236_v27 = vpop.xlane.xlu1 %235  ;;  %305 = vadd.xlane.f32.xlu0 %v304_v25  ;;  %v227_v28 = vpop.xlane.xlu0 %226 }
 0x17b   :  { %v261_v29 = vmul.f32 0.0625, %v236_v27  ;;  %v258_v30 = vmul.f32 0.0625, %v227_v28  ;;  %v285_v31 = vmul.f32 %v830_v23, %v830_v23  ;;  %v282_v32 = vmul.f32 %v833_v24, %v833_v24 }
 0x17d   :  { %v843_v33 = vsub.f32 %v771_v43, %v261_v29  ;;  %v846_v34 = vsub.f32 %v769_v42, %v258_v30  ;;  %v307_v35 = vsel %vm200_vm1, %v285_v31, 0.0  ;;  %v298_v44 = vsel %vm200_vm1, %v282_v32, 0.0 }
 0x17e   :  { %v230_v37 = vpop.xlane.xlu1 %229  ;;  %308 = vadd.xlane.f32.xlu1 %v307_v35  ;;  %329 = vadd.xlane.f32.xlu0 %v328_v36  ;;  %v206_v38 = vpop.xlane.xlu0 %205 }
 0x17f   :  { %v259_v39 = vmul.f32 0.0625, %v230_v37  ;;  %v251_v40 = vmul.f32 0.0625, %v206_v38  ;;  %v293_v41 = vmul.f32 %v843_v33, %v843_v33  ;;  %v290_v46 = vmul.f32 %v846_v34, %v846_v34 }
 0x181   :  { %v854_v43 = vsub.f32 %v779_v53, %v259_v39  ;;  %v857_v42 = vsub.f32 %v777_v52, %v251_v40  ;;  %v331_v45 = vsel %vm200_vm1, %v293_v41, 0.0  ;;  %v322_v55 = vsel %vm200_vm1, %v290_v46, 0.0 }
 0x182   :  { %v224_v47 = vpop.xlane.xlu1 %223  ;;  %332 = vadd.xlane.f32.xlu1 %v331_v45  ;;  %299 = vadd.xlane.f32.xlu0 %v298_v44  ;;  %v221_v48 = vpop.xlane.xlu0 %220 }
 0x183   :  { %v257_v49 = vmul.f32 0.0625, %v224_v47  ;;  %v256_v50 = vmul.f32 0.0625, %v221_v48  ;;  %v283_v51 = vmul.f32 %v857_v42, %v857_v42  ;;  %v291_v53 = vmul.f32 %v854_v43, %v854_v43 }
 0x185   :  { %v867_v52 = vsub.f32 %v787_v59, %v257_v49  ;;  %v870_v54 = vsub.f32 %v785_v58, %v256_v50  ;;  %v301_v56 = vsel %vm200_vm1, %v283_v51, 0.0  ;;  %v325_v4 = vsel %vm200_vm1, %v291_v53, 0.0 }
 0x186   :  { %v218_v57 = vpop.xlane.xlu1 %217  ;;  %323 = vadd.xlane.f32.xlu0 %v322_v55  ;;  %302 = vadd.xlane.f32.xlu1 %v301_v56  ;;  %v215_v60 = vpop.xlane.xlu0 %214 }
 0x187   :  { %v255_v61 = vmul.f32 0.0625, %v218_v57  ;;  %v254_v62 = vmul.f32 0.0625, %v215_v60  ;;  %v288_v63 = vmul.f32 %v870_v54, %v870_v54  ;;  %v289_v6 = vmul.f32 %v867_v52, %v867_v52  ;;  %v920_v60 = vld [vmem:[%s1042_s3] ss:$0 sm:$0xff] }
 0x189   :  { %v878_v59 = vsub.f32 %v799_v1, %v255_v61  ;;  %v881_v58 = vsub.f32 %v797_v0, %v254_v62  ;;  %v316_v5 = vsel %vm200_vm1, %v288_v63, 0.0  ;;  %v319_v15 = vsel %vm200_vm1, %v289_v6, 0.0  ;;  %v926_v6 = vld [vmem:[%s1043_s4] ss:$0 sm:$0xff] }
 0x18a   :  { %v242_v7 = vpop.xlane.xlu1 %241  ;;  %326 = vadd.xlane.f32.xlu1 %v325_v4  ;;  %317 = vadd.xlane.f32.xlu0 %v316_v5  ;;  %v239_v10 = vpop.xlane.xlu0 %238 }
 0x18b   :  { %v263_v11 = vmul.f32 0.0625, %v242_v7  ;;  %v262_v12 = vmul.f32 0.0625, %v239_v10  ;;  %v286_v13 = vmul.f32 %v881_v58, %v881_v58  ;;  %v287_v1 = vmul.f32 %v878_v59, %v878_v59 }
 0x18d   :  { %v891_v0 = vsub.f32 %v803_v3, %v263_v11  ;;  %v894_v14 = vsub.f32 %v801_v2, %v262_v12  ;;  %v310_v18 = vsel %vm200_vm1, %v286_v13, 0.0  ;;  %v313_v26 = vsel %vm200_vm1, %v287_v1, 0.0 }
 0x18e   :  { %v248_v19 = vpop.xlane.xlu1 %247  ;;  %320 = vadd.xlane.f32.xlu1 %v319_v15  ;;  %311 = vadd.xlane.f32.xlu0 %v310_v18  ;;  %v245_v20 = vpop.xlane.xlu0 %244 }
 0x18f   :  { %v265_v21 = vmul.f32 0.0625, %v248_v19  ;;  %v264_v22 = vmul.f32 0.0625, %v245_v20  ;;  %v294_v25 = vmul.f32 %v894_v14, %v894_v14  ;;  %v295_v28 = vmul.f32 %v891_v0, %v891_v0 }
 0x191   :  { %v902_v3 = vsub.f32 %v815_v9, %v265_v21  ;;  %v905_v2 = vsub.f32 %v813_v8, %v264_v22  ;;  %v334_v27 = vsel %vm200_vm1, %v294_v25, 0.0  ;;  %v337_v30 = vsel %vm200_vm1, %v295_v28, 0.0 }
 0x192   :  { %314 = vadd.xlane.f32.xlu1 %v313_v26  ;;  %335 = vadd.xlane.f32.xlu0 %v334_v27 }
 0x193   :  { %v296_v29 = vmul.f32 %v905_v2, %v905_v2  ;;  %v297_v9 = vmul.f32 %v902_v3, %v902_v3 }
 0x195   :  { %v340_v31 = vsel %vm200_vm1, %v296_v29, 0.0  ;;  %v343_v8 = vsel %vm200_vm1, %v297_v9, 0.0 }
 0x196   :  { %338 = vadd.xlane.f32.xlu1 %v337_v30  ;;  %341 = vadd.xlane.f32.xlu0 %v340_v31 }
 0x19a   :  { %344 = vadd.xlane.f32.xlu1 %v343_v8 }
 0x207   :  { %v306_v32 = vpop.xlane.xlu0 %305 }
 0x208   :  { %v348_v35 = vmul.f32 0.0625, %v306_v32 }
 0x20a   :  { %v364_v36 = vadd.f32 1e-05, %v348_v35 }
 0x20b   :  { %v309_v37 = vpop.xlane.xlu1 %308  ;;  %v330_v38 = vpop.xlane.xlu0 %329 }
 0x20c   :  { %627 = vrsqrt.f32 %v364_v36  ;;  %v349_v39 = vmul.f32 0.0625, %v309_v37  ;;  %v356_v40 = vmul.f32 0.0625, %v330_v38 }
 0x20e   :  { %v365_v41 = vadd.f32 1e-05, %v349_v39  ;;  %v372_v44 = vadd.f32 1e-05, %v356_v40 }
 0x20f   :  { %v333_v45 = vpop.xlane.xlu1 %332  ;;  %v300_v46 = vpop.xlane.xlu0 %299 }
 0x210   :  { %629 = vrsqrt.f32 %v365_v41  ;;  %v357_v47 = vmul.f32 0.0625, %v333_v45  ;;  %v346_v48 = vmul.f32 0.0625, %v300_v46 }
 0x211   :  { %631 = vrsqrt.f32 %v372_v44 }
 0x212   :  { %v373_v49 = vadd.f32 1e-05, %v357_v47  ;;  %v362_v50 = vadd.f32 1e-05, %v346_v48 }
 0x213   :  { %v303_v51 = vpop.xlane.xlu1 %302  ;;  %v324_v53 = vpop.xlane.xlu0 %323 }
 0x214   :  { %633 = vrsqrt.f32 %v373_v49  ;;  %v347_v55 = vmul.f32 0.0625, %v303_v51  ;;  %v354_v56 = vmul.f32 0.0625, %v324_v53 }
 0x215   :  { %635 = vrsqrt.f32 %v362_v50 }
 0x216   :  { %v628_v57 = vpop.eup %627  ;;  %v363_v61 = vadd.f32 1e-05, %v347_v55  ;;  %v370_v62 = vadd.f32 1e-05, %v354_v56 }
 0x217   :  { %v396_v63 = vmul.f32 %v628_v57, %v825_v17  ;;  %v327_v4 = vpop.xlane.xlu1 %326  ;;  %v318_v5 = vpop.xlane.xlu0 %317 }
 0x218   :  { %637 = vrsqrt.f32 %v363_v61  ;;  %v355_v7 = vmul.f32 0.0625, %v327_v4  ;;  %v352_v10 = vmul.f32 0.0625, %v318_v5 }
 0x219   :  { %v418_v11 = vmul.f32 %v920_v60, %v396_v63  ;;  %639 = vrsqrt.f32 %v370_v62 }
 0x21a   :  { %v630_v12 = vpop.eup %629  ;;  %v371_v13 = vadd.f32 1e-05, %v355_v7  ;;  %v368_v1 = vadd.f32 1e-05, %v352_v10 }
 0x21b   :  { %v632_v15 = vpop.eup %631  ;;  %v440_v17 = vadd.f32 %v926_v6, %v418_v11  ;;  %v397_v18 = vmul.f32 %v630_v12, %v830_v23  ;;  %v321_v19 = vpop.xlane.xlu1 %320 }
 0x21c   :  { %v312_v20 = vpop.xlane.xlu0 %311  ;;  %v404_v21 = vmul.f32 %v632_v15, %v822_v16  ;;  %641 = vrsqrt.f32 %v371_v13  ;;  %v353_v22 = vmul.f32 0.0625, %v321_v19 }
 0x21d   :  { %v350_v25 = vmul.f32 0.0625, %v312_v20  ;;  %v571_v26 = vpack.c.bf16 %v440_v17, %v440_v17  ;;  %v419_v27 = vmul.f32 %v920_v60, %v397_v18  ;;  %643 = vrsqrt.f32 %v368_v1 }
 0x21e   :  { %v634_v28 = vpop.eup %633  ;;  %v426_v29 = vmul.f32 %v920_v60, %v404_v21  ;;  %v369_v30 = vadd.f32 1e-05, %v353_v22 }
 0x21f   :  { %v366_v31 = vadd.f32 1e-05, %v350_v25  ;;  %v636_v9 = vpop.eup %635  ;;  %521 = vst.msk [vmem:[%s1044_s5 + $0x8] sm:$0xf] %vm518_vm2, %v571_v26  ;;  %v441_v16 = vadd.f32 %v926_v6, %v419_v27  ;;  %v405_v23 = vmul.f32 %v634_v28, %v843_v33  ;;  %v315_v8 = vpop.xlane.xlu1 %314 }
 0x220   :  { %v336_v32 = vpop.xlane.xlu0 %335  ;;  %v448_v35 = vadd.f32 %v926_v6, %v426_v29  ;;  %v394_v36 = vmul.f32 %v636_v9, %v833_v24  ;;  %645 = vrsqrt.f32 %v369_v30  ;;  %v351_v37 = vmul.f32 0.0625, %v315_v8 }
 0x221   :  { %v572_v38 = vpack.c.bf16 %v441_v16, %v441_v16  ;;  %v427_v39 = vmul.f32 %v920_v60, %v405_v23  ;;  %647 = vrsqrt.f32 %v366_v31  ;;  %v358_v40 = vmul.f32 0.0625, %v336_v32 }
 0x222   :  { %v638_v41 = vpop.eup %637  ;;  %v579_v44 = vpack.c.bf16 %v448_v35, %v448_v35  ;;  %v416_v45 = vmul.f32 %v920_v60, %v394_v36  ;;  %v367_v46 = vadd.f32 1e-05, %v351_v37 }
 0x223   :  { %v640_v47 = vpop.eup %639  ;;  %522 = vst.msk [vmem:[%s1044_s5 + $0xc] sm:$0xf] %vm518_vm2, %v572_v38  ;;  %v449_v24 = vadd.f32 %v926_v6, %v427_v39  ;;  %v395_v33 = vmul.f32 %v638_v41, %v857_v42  ;;  %v374_v48 = vadd.f32 1e-05, %v358_v40  ;;  %v339_v49 = vpop.xlane.xlu1 %338 }
 0x224   :  { %v342_v50 = vpop.xlane.xlu0 %341  ;;  %529 = vst.msk [vmem:[%s1044_s5 + $0x28] sm:$0xf] %vm518_vm2, %v579_v44  ;;  %v438_v51 = vadd.f32 %v926_v6, %v416_v45  ;;  %v402_v53 = vmul.f32 %v640_v47, %v846_v34  ;;  %649 = vrsqrt.f32 %v367_v46  ;;  %v359_v55 = vmul.f32 0.0625, %v339_v49 }
 0x225   :  { %v580_v56 = vpack.c.bf16 %v449_v24, %v449_v24  ;;  %v417_v57 = vmul.f32 %v920_v60, %v395_v33  ;;  %651 = vrsqrt.f32 %v374_v48  ;;  %v360_v61 = vmul.f32 0.0625, %v342_v50 }
 0x226   :  { %v642_v42 = vpop.eup %641  ;;  %v569_v62 = vpack.c.bf16 %v438_v51, %v438_v51  ;;  %v424_v63 = vmul.f32 %v920_v60, %v402_v53  ;;  %v375_v4 = vadd.f32 1e-05, %v359_v55 }
 0x227   :  { %v644_v5 = vpop.eup %643  ;;  %530 = vst.msk [vmem:[%s1044_s5 + $0x2c] sm:$0xf] %vm518_vm2, %v580_v56  ;;  %v439_v34 = vadd.f32 %v926_v6, %v417_v57  ;;  %v403_v7 = vmul.f32 %v642_v42, %v854_v43  ;;  %v376_v10 = vadd.f32 1e-05, %v360_v61  ;;  %v345_v11 = vpop.xlane.xlu1 %344 }
 0x228   :  { %519 = vst.msk [vmem:[%s1044_s5] sm:$0xf] %vm518_vm2, %v569_v62  ;;  %v446_v12 = vadd.f32 %v926_v6, %v424_v63  ;;  %v400_v13 = vmul.f32 %v644_v5, %v870_v54  ;;  %653 = vrsqrt.f32 %v375_v4  ;;  %v361_v1 = vmul.f32 0.0625, %v345_v11 }
 0x229   :  { %v570_v15 = vpack.c.bf16 %v439_v34, %v439_v34  ;;  %v425_v17 = vmul.f32 %v920_v60, %v403_v7  ;;  %655 = vrsqrt.f32 %v376_v10 }
 0x22a   :  { %v646_v18 = vpop.eup %645  ;;  %v577_v19 = vpack.c.bf16 %v446_v12, %v446_v12  ;;  %v422_v43 = vmul.f32 %v920_v60, %v400_v13  ;;  %v377_v20 = vadd.f32 1e-05, %v361_v1 }
 0x22b   :  { %v648_v21 = vpop.eup %647  ;;  %520 = vst.msk [vmem:[%s1044_s5 + $0x4] sm:$0xf] %vm518_vm2, %v570_v15  ;;  %v447_v22 = vadd.f32 %v926_v6, %v425_v17  ;;  %v401_v54 = vmul.f32 %v646_v18, %v867_v52 }
 0x22c   :  { %527 = vst.msk [vmem:[%s1044_s5 + $0x20] sm:$0xf] %vm518_vm2, %v577_v19  ;;  %v444_v25 = vadd.f32 %v926_v6, %v422_v43  ;;  %v398_v26 = vmul.f32 %v648_v21, %v881_v58  ;;  %657 = vrsqrt.f32 %v377_v20 }
 0x22d   :  { %v578_v27 = vpack.c.bf16 %v447_v22, %v447_v22  ;;  %v423_v28 = vmul.f32 %v920_v60, %v401_v54 }
 0x22e   :  { %v650_v29 = vpop.eup %649  ;;  %v575_v30 = vpack.c.bf16 %v444_v25, %v444_v25  ;;  %v420_v31 = vmul.f32 %v920_v60, %v398_v26 }
 0x22f   :  { %v652_v9 = vpop.eup %651  ;;  %528 = vst.msk [vmem:[%s1044_s5 + $0x24] sm:$0xf] %vm518_vm2, %v578_v27  ;;  %v445_v52 = vadd.f32 %v926_v6, %v423_v28  ;;  %v399_v16 = vmul.f32 %v650_v29, %v878_v59 }
 0x230   :  { %525 = vst.msk [vmem:[%s1044_s5 + $0x18] sm:$0xf] %vm518_vm2, %v575_v30  ;;  %v442_v58 = vadd.f32 %v926_v6, %v420_v31  ;;  %v406_v23 = vmul.f32 %v652_v9, %v894_v14 }
 0x231   :  { %v576_v8 = vpack.c.bf16 %v445_v52, %v445_v52  ;;  %v421_v32 = vmul.f32 %v920_v60, %v399_v16 }
 0x232   :  { %v654_v35 = vpop.eup %653  ;;  %v573_v36 = vpack.c.bf16 %v442_v58, %v442_v58  ;;  %v428_v37 = vmul.f32 %v920_v60, %v406_v23 }
 0x233   :  { %v656_v38 = vpop.eup %655  ;;  %526 = vst.msk [vmem:[%s1044_s5 + $0x1c] sm:$0xf] %vm518_vm2, %v576_v8  ;;  %v443_v59 = vadd.f32 %v926_v6, %v421_v32  ;;  %v407_v39 = vmul.f32 %v654_v35, %v891_v0 }
 0x234   :  { %523 = vst.msk [vmem:[%s1044_s5 + $0x10] sm:$0xf] %vm518_vm2, %v573_v36  ;;  %v450_v14 = vadd.f32 %v926_v6, %v428_v37  ;;  %v408_v40 = vmul.f32 %v656_v38, %v905_v2 }
 0x235   :  { %v574_v41 = vpack.c.bf16 %v443_v59, %v443_v59  ;;  %v429_v44 = vmul.f32 %v920_v60, %v407_v39 }
 0x236   :  { %v658_v45 = vpop.eup %657  ;;  %v581_v46 = vpack.c.bf16 %v450_v14, %v450_v14  ;;  %v430_v47 = vmul.f32 %v920_v60, %v408_v40 }
 0x237   :  { %524 = vst.msk [vmem:[%s1044_s5 + $0x14] sm:$0xf] %vm518_vm2, %v574_v41  ;;  %v451_v0 = vadd.f32 %v926_v6, %v429_v44  ;;  %v409_v24 = vmul.f32 %v658_v45, %v902_v3 }
 0x238   :  { %531 = vst.msk [vmem:[%s1044_s5 + $0x30] sm:$0xf] %vm518_vm2, %v581_v46  ;;  %v452_v2 = vadd.f32 %v926_v6, %v430_v47 }
 0x239   :  { %v582_v33 = vpack.c.bf16 %v451_v0, %v451_v0  ;;  %v431_v48 = vmul.f32 %v920_v60, %v409_v24 }
 0x23a   :  { %v583_v49 = vpack.c.bf16 %v452_v2, %v452_v2 }
 0x23b   :  { %532 = vst.msk [vmem:[%s1044_s5 + $0x34] sm:$0xf] %vm518_vm2, %v582_v33  ;;  %v453_v50 = vadd.f32 %v926_v6, %v431_v48 }
 0x23c   :  { %533 = vst.msk [vmem:[%s1044_s5 + $0x38] sm:$0xf] %vm518_vm2, %v583_v49 }
 0x23d   :  { %v584_v3 = vpack.c.bf16 %v453_v50, %v453_v50 }
 0x23f   :  { %534 = vst.msk [vmem:[%s1044_s5 + $0x3c] sm:$0xf] %vm518_vm2, %v584_v3 }

// kernel: _lambda_.24
= control target key start
LH: loop header
LB: loop body
LE: loop exit
PB: predicated region body
PF: predicated region fallthrough
CT: control target
= control target key end

     0   :  { %vm55_vm0 = vcmask 130048   ;;  %vm517_vm1 = vcmask 388096   ;;  %s1057_s0 = inlined_call_operand.vmem [shape: bf16[128,16], index: 0, kind: input, shape index: {}]   ;;  %s1058_s3 = inlined_call_operand.vmem [shape: bf16[16,48], index: 3, kind: input, shape index: {}]   ;;  %s1059_s1 = inlined_call_operand.vmem [shape: f32[1,16], index: 1, kind: input, shape index: {}]   ;;  %s1060_s2 = inlined_call_operand.vmem [shape: f32[1,16], index: 2, kind: input, shape index: {}]   ;;  %s1061_s4 = inlined_call_operand.vmem [shape: f32[1,48], index: 4, kind: input, shape index: {}]   ;;  %s1062_s5 = inlined_call_operand.vmem [shape: bf16[128,48], index: 5, kind: output, shape index: {}]  }
   0x1   :  { %v716_v0 = vld [vmem:[%s1057_s0] sm:$0xff]   ;;  %v730_v6 = vld [vmem:[%s1057_s0 + $0x8] sm:$0xff]   ;;  %v758_v18 = vld [vmem:[%s1057_s0 + $0x10] sm:$0xff]  }
   0x2   :  { %v721_v1 = vld [vmem:[%s1057_s0 + $0x20] sm:$0xff]   ;;  %v584_v2 = vunpack.c.l.bf16 %v716_v0  ;;  %v585_v4 = vunpack.c.h.bf16 %v716_v0  ;;  %v588_v11 = vunpack.c.l.bf16 %v730_v6  ;;  %v589_v12 = vunpack.c.h.bf16 %v730_v6  ;;  %v745_v13 = vld [vmem:[%s1057_s0 + $0x28] sm:$0xff]   ;;  %v771_v23 = vld [vmem:[%s1057_s0 + $0x30] sm:$0xff]  }
   0x3   :  { %v600_v3 = vunpack.c.l.bf16 %v721_v1  ;;  %v601_v5 = vunpack.c.h.bf16 %v721_v1  ;;  %v604_v16 = vunpack.c.l.bf16 %v745_v13  ;;  %v605_v17 = vunpack.c.h.bf16 %v745_v13  ;;  %v784_v28 = vld [vmem:[%s1057_s0 + $0x18] sm:$0xff]  }
   0x4   :  { %v56_v7 = vsel %vm55_vm0, %v584_v2, 0.0  ;;  %v59_v9 = vsel %vm55_vm0, %v585_v4, 0.0  ;;  %v62_v14 = vsel %vm55_vm0, %v588_v11, 0.0  ;;  %v65_v15 = vsel %vm55_vm0, %v589_v12, 0.0  ;;  %v797_v33 = vld [vmem:[%s1057_s0 + $0x38] sm:$0xff]  }
   0x5   :  { %v80_v8 = vsel %vm55_vm0, %v600_v3, 0.0  ;;  %57 = vadd.xlane.f32.xlu0 %v56_v7  ;;  %v83_v10 = vsel %vm55_vm0, %v601_v5, 0.0  ;;  %v86_v19 = vsel %vm55_vm0, %v604_v16, 0.0  ;;  %v89_v20 = vsel %vm55_vm0, %v605_v17, 0.0 }
   0x6   :  { %81 = vadd.xlane.f32.xlu1 %v80_v8  ;;  %v592_v21 = vunpack.c.l.bf16 %v758_v18  ;;  %v593_v22 = vunpack.c.h.bf16 %v758_v18  ;;  %v608_v26 = vunpack.c.l.bf16 %v771_v23  ;;  %v609_v27 = vunpack.c.h.bf16 %v771_v23 }
   0x7   :  { %v596_v31 = vunpack.c.l.bf16 %v784_v28  ;;  %v597_v32 = vunpack.c.h.bf16 %v784_v28  ;;  %v612_v36 = vunpack.c.l.bf16 %v797_v33  ;;  %v613_v37 = vunpack.c.h.bf16 %v797_v33 }
   0x8   :  { %v68_v24 = vsel %vm55_vm0, %v592_v21, 0.0  ;;  %v71_v25 = vsel %vm55_vm0, %v593_v22, 0.0  ;;  %v92_v29 = vsel %vm55_vm0, %v608_v26, 0.0  ;;  %v95_v30 = vsel %vm55_vm0, %v609_v27, 0.0 }
   0x9   :  { %60 = vadd.xlane.f32.xlu0 %v59_v9  ;;  %v74_v34 = vsel %vm55_vm0, %v596_v31, 0.0  ;;  %v77_v35 = vsel %vm55_vm0, %v597_v32, 0.0  ;;  %v98_v38 = vsel %vm55_vm0, %v612_v36, 0.0  ;;  %v101_v39 = vsel %vm55_vm0, %v613_v37, 0.0 }
   0xa   :  { %84 = vadd.xlane.f32.xlu1 %v83_v10 }
   0xd   :  { %63 = vadd.xlane.f32.xlu0 %v62_v14 }
   0xe   :  { %66 = vadd.xlane.f32.xlu1 %v65_v15 }
  0x11   :  { %87 = vadd.xlane.f32.xlu0 %v86_v19 }
  0x12   :  { %90 = vadd.xlane.f32.xlu1 %v89_v20 }
  0x15   :  { %69 = vadd.xlane.f32.xlu0 %v68_v24 }
  0x16   :  { %72 = vadd.xlane.f32.xlu1 %v71_v25 }
  0x19   :  { %93 = vadd.xlane.f32.xlu0 %v92_v29 }
  0x1a   :  { %96 = vadd.xlane.f32.xlu1 %v95_v30 }
  0x1d   :  { %75 = vadd.xlane.f32.xlu0 %v74_v34 }
  0x1e   :  { %78 = vadd.xlane.f32.xlu1 %v77_v35 }
  0x21   :  { %99 = vadd.xlane.f32.xlu0 %v98_v38 }
  0x22   :  { %102 = vadd.xlane.f32.xlu1 %v101_v39 }
  0x92   :  { %v58_v40 = vpop.xlane.xlu0 %57 }
  0x93   :  { %v82_v41 = vpop.xlane.xlu1 %81  ;;  %v105_v42 = vmul.f32 0.0625, %v58_v40 }
  0x94   :  { %v113_v43 = vmul.f32 0.0625, %v82_v41 }
  0x95   :  { %v813_v44 = vsub.f32 %v584_v2, %v105_v42 }
  0x96   :  { %v815_v45 = vsub.f32 %v600_v3, %v113_v43  ;;  %v61_v46 = vpop.xlane.xlu0 %60 }
  0x97   :  { %v85_v47 = vpop.xlane.xlu1 %84  ;;  %v106_v48 = vmul.f32 0.0625, %v61_v46  ;;  %v137_v50 = vmul.f32 %v813_v44, %v813_v44 }
  0x98   :  { %v114_v49 = vmul.f32 0.0625, %v85_v47  ;;  %v145_v51 = vmul.f32 %v815_v45, %v815_v45 }
  0x99   :  { %v823_v52 = vsub.f32 %v585_v4, %v106_v48  ;;  %v153_v54 = vsel %vm55_vm0, %v137_v50, 0.0 }
  0x9a   :  { %v827_v53 = vsub.f32 %v601_v5, %v114_v49  ;;  %154 = vadd.xlane.f32.xlu0 %v153_v54  ;;  %v64_v55 = vpop.xlane.xlu0 %63  ;;  %v177_v57 = vsel %vm55_vm0, %v145_v51, 0.0 }
  0x9b   :  { %v67_v56 = vpop.xlane.xlu1 %66  ;;  %v107_v58 = vmul.f32 0.0625, %v64_v55  ;;  %v138_v60 = vmul.f32 %v823_v52, %v823_v52 }
  0x9c   :  { %v108_v59 = vmul.f32 0.0625, %v67_v56  ;;  %v146_v61 = vmul.f32 %v827_v53, %v827_v53 }
  0x9d   :  { %v837_v62 = vsub.f32 %v588_v11, %v107_v58  ;;  %v156_v0 = vsel %vm55_vm0, %v138_v60, 0.0 }
  0x9e   :  { %v841_v63 = vsub.f32 %v589_v12, %v108_v59  ;;  %178 = vadd.xlane.f32.xlu0 %v177_v57  ;;  %157 = vadd.xlane.f32.xlu1 %v156_v0  ;;  %v88_v1 = vpop.xlane.xlu0 %87  ;;  %v180_v3 = vsel %vm55_vm0, %v146_v61, 0.0 }
  0x9f   :  { %v91_v2 = vpop.xlane.xlu1 %90  ;;  %v115_v4 = vmul.f32 0.0625, %v88_v1  ;;  %v139_v7 = vmul.f32 %v837_v62, %v837_v62 }
  0xa0   :  { %v116_v5 = vmul.f32 0.0625, %v91_v2  ;;  %v140_v8 = vmul.f32 %v841_v63, %v841_v63 }
  0xa1   :  { %v851_v6 = vsub.f32 %v604_v16, %v115_v4  ;;  %v159_v10 = vsel %vm55_vm0, %v139_v7, 0.0 }
  0xa2   :  { %v855_v9 = vsub.f32 %v605_v17, %v116_v5  ;;  %181 = vadd.xlane.f32.xlu1 %v180_v3  ;;  %160 = vadd.xlane.f32.xlu0 %v159_v10  ;;  %v70_v11 = vpop.xlane.xlu0 %69  ;;  %v162_v14 = vsel %vm55_vm0, %v140_v8, 0.0 }
  0xa3   :  { %v73_v12 = vpop.xlane.xlu1 %72  ;;  %v109_v15 = vmul.f32 0.0625, %v70_v11  ;;  %v147_v20 = vmul.f32 %v851_v6, %v851_v6 }
  0xa4   :  { %v110_v19 = vmul.f32 0.0625, %v73_v12  ;;  %v148_v16 = vmul.f32 %v855_v9, %v855_v9 }
  0xa5   :  { %v865_v13 = vsub.f32 %v592_v21, %v109_v15  ;;  %v183_v24 = vsel %vm55_vm0, %v147_v20, 0.0 }
  0xa6   :  { %v869_v17 = vsub.f32 %v593_v22, %v110_v19  ;;  %163 = vadd.xlane.f32.xlu1 %v162_v14  ;;  %184 = vadd.xlane.f32.xlu0 %v183_v24  ;;  %v94_v25 = vpop.xlane.xlu0 %93  ;;  %v186_v30 = vsel %vm55_vm0, %v148_v16, 0.0 }
  0xa7   :  { %v97_v29 = vpop.xlane.xlu1 %96  ;;  %v117_v34 = vmul.f32 0.0625, %v94_v25  ;;  %v141_v38 = vmul.f32 %v865_v13, %v865_v13 }
  0xa8   :  { %v118_v35 = vmul.f32 0.0625, %v97_v29  ;;  %v142_v21 = vmul.f32 %v869_v17, %v869_v17 }
  0xa9   :  { %v879_v18 = vsub.f32 %v608_v26, %v117_v34  ;;  %v165_v39 = vsel %vm55_vm0, %v141_v38, 0.0 }
  0xaa   :  { %v883_v22 = vsub.f32 %v609_v27, %v118_v35  ;;  %187 = vadd.xlane.f32.xlu1 %v186_v30  ;;  %166 = vadd.xlane.f32.xlu0 %v165_v39  ;;  %v76_v40 = vpop.xlane.xlu0 %75  ;;  %v168_v42 = vsel %vm55_vm0, %v142_v21, 0.0 }
  0xab   :  { %v79_v41 = vpop.xlane.xlu1 %78  ;;  %v111_v43 = vmul.f32 0.0625, %v76_v40  ;;  %v149_v47 = vmul.f32 %v879_v18, %v879_v18 }
  0xac   :  { %v112_v46 = vmul.f32 0.0625, %v79_v41  ;;  %v150_v26 = vmul.f32 %v883_v22, %v883_v22  ;;  %v928_v41 = vld [vmem:[%s1059_s1] ss:$0 sm:$0xff] }
  0xad   :  { %v893_v23 = vsub.f32 %v596_v31, %v111_v43  ;;  %v189_v48 = vsel %vm55_vm0, %v149_v47, 0.0 }
  0xae   :  { %v897_v27 = vsub.f32 %v597_v32, %v112_v46  ;;  %169 = vadd.xlane.f32.xlu1 %v168_v42  ;;  %190 = vadd.xlane.f32.xlu0 %v189_v48  ;;  %v100_v49 = vpop.xlane.xlu0 %99  ;;  %v192_v51 = vsel %vm55_vm0, %v150_v26, 0.0 }
  0xaf   :  { %v103_v50 = vpop.xlane.xlu1 %102  ;;  %v119_v54 = vmul.f32 0.0625, %v100_v49  ;;  %v143_v56 = vmul.f32 %v893_v23, %v893_v23 }
  0xb0   :  { %v120_v55 = vmul.f32 0.0625, %v103_v50  ;;  %v144_v31 = vmul.f32 %v897_v27, %v897_v27 }
  0xb1   :  { %v907_v28 = vsub.f32 %v612_v36, %v119_v54  ;;  %v171_v57 = vsel %vm55_vm0, %v143_v56, 0.0  ;;  %v650_v36 = vld [vmem:[%s1058_s3] sm:$0xff]  }
  0xb2   :  { %v911_v32 = vsub.f32 %v613_v37, %v120_v55  ;;  %193 = vadd.xlane.f32.xlu1 %v192_v51  ;;  %172 = vadd.xlane.f32.xlu0 %v171_v57  ;;  %v174_v58 = vsel %vm55_vm0, %v144_v31, 0.0  ;;  %v935_v54 = vld [vmem:[%s1060_s2] ss:$0 sm:$0xff] }
  0xb3   :  { %v151_v59 = vmul.f32 %v907_v28, %v907_v28  ;;  %630 = vmatprep.subr.bf16.mxu0 %v650_v36  ;;  %648 = vmatprep.subr.bf16.mxu1 %v650_v36 }
  0xb4   :  { %v152_v60 = vmul.f32 %v911_v32, %v911_v32  ;;  %631 = vmatpush3.bf16.msra.mxu0 %v650_v36  ;;  %649 = vmatpush3.bf16.msra.mxu1 %v650_v36 }
  0xb5   :  { %v195_v61 = vsel %vm55_vm0, %v151_v59, 0.0 }
  0xb6   :  { %175 = vadd.xlane.f32.xlu1 %v174_v58  ;;  %196 = vadd.xlane.f32.xlu0 %v195_v61  ;;  %v198_v33 = vsel %vm55_vm0, %v152_v60, 0.0 }
  0xba   :  { %199 = vadd.xlane.f32.xlu1 %v198_v33 }
 0x127   :  { %v155_v37 = vpop.xlane.xlu0 %154 }
 0x128   :  { %v201_v0 = vmul.f32 0.0625, %v155_v37 }
 0x12a   :  { %v217_v1 = vadd.f32 1e-05, %v201_v0 }
 0x12b   :  { %v158_v2 = vpop.xlane.xlu1 %157  ;;  %v179_v3 = vpop.xlane.xlu0 %178 }
 0x12c   :  { %651 = vrsqrt.f32 %v217_v1  ;;  %v202_v4 = vmul.f32 0.0625, %v158_v2  ;;  %v209_v5 = vmul.f32 0.0625, %v179_v3 }
 0x12e   :  { %v218_v7 = vadd.f32 1e-05, %v202_v4  ;;  %v225_v8 = vadd.f32 1e-05, %v209_v5 }
 0x12f   :  { %v182_v10 = vpop.xlane.xlu1 %181  ;;  %v161_v11 = vpop.xlane.xlu0 %160 }
 0x130   :  { %653 = vrsqrt.f32 %v218_v7  ;;  %v210_v12 = vmul.f32 0.0625, %v182_v10  ;;  %v203_v14 = vmul.f32 0.0625, %v161_v11 }
 0x131   :  { %655 = vrsqrt.f32 %v225_v8 }
 0x132   :  { %v226_v15 = vadd.f32 1e-05, %v210_v12  ;;  %v219_v19 = vadd.f32 1e-05, %v203_v14 }
 0x133   :  { %v164_v20 = vpop.xlane.xlu1 %163  ;;  %v185_v16 = vpop.xlane.xlu0 %184 }
 0x134   :  { %657 = vrsqrt.f32 %v226_v15  ;;  %v204_v24 = vmul.f32 0.0625, %v164_v20  ;;  %v211_v25 = vmul.f32 0.0625, %v185_v16 }
 0x135   :  { %659 = vrsqrt.f32 %v219_v19 }
 0x136   :  { %v652_v29 = vpop.eup %651  ;;  %v220_v30 = vadd.f32 1e-05, %v204_v24  ;;  %v227_v34 = vadd.f32 1e-05, %v211_v25 }
 0x137   :  { %v188_v35 = vpop.xlane.xlu1 %187  ;;  %v167_v38 = vpop.xlane.xlu0 %166  ;;  %v249_v21 = vmul.f32 %v652_v29, %v813_v44 }
 0x138   :  { %661 = vrsqrt.f32 %v220_v30  ;;  %v212_v39 = vmul.f32 0.0625, %v188_v35  ;;  %v205_v40 = vmul.f32 0.0625, %v167_v38 }
 0x139   :  { %663 = vrsqrt.f32 %v227_v34  ;;  %v271_v50 = vmul.f32 %v928_v41, %v249_v21 }
 0x13a   :  { %v654_v42 = vpop.eup %653  ;;  %v228_v43 = vadd.f32 1e-05, %v212_v39  ;;  %v221_v46 = vadd.f32 1e-05, %v205_v40 }
 0x13b   :  { %v656_v47 = vpop.eup %655  ;;  %v170_v26 = vpop.xlane.xlu1 %169  ;;  %v250_v49 = vmul.f32 %v654_v42, %v823_v52  ;;  %v293_v61 = vadd.f32 %v935_v54, %v271_v50 }
 0x13c   :  { %v191_v48 = vpop.xlane.xlu0 %190  ;;  %665 = vrsqrt.f32 %v228_v43  ;;  %v206_v44 = vmul.f32 0.0625, %v170_v26  ;;  %v257_v55 = vmul.f32 %v656_v47, %v815_v45 }
 0x13d   :  { %v213_v51 = vmul.f32 0.0625, %v191_v48  ;;  %667 = vrsqrt.f32 %v221_v46  ;;  %v272_v56 = vmul.f32 %v928_v41, %v250_v49 }
 0x13e   :  { %v658_v31 = vpop.eup %657  ;;  %v222_v57 = vadd.f32 1e-05, %v206_v44  ;;  %v279_v37 = vmul.f32 %v928_v41, %v257_v55 }
 0x13f   :  { %v229_v58 = vadd.f32 1e-05, %v213_v51  ;;  %v660_v59 = vpop.eup %659  ;;  %v194_v52 = vpop.xlane.xlu1 %193  ;;  %v294_v33 = vadd.f32 %v935_v54, %v272_v56  ;;  %v258_v36 = vmul.f32 %v658_v31, %v827_v53 }
 0x140   :  { %v173_v60 = vpop.xlane.xlu0 %172  ;;  %v251_v0 = vmul.f32 %v660_v59, %v837_v62  ;;  %669 = vrsqrt.f32 %v222_v57  ;;  %v214_v45 = vmul.f32 0.0625, %v194_v52  ;;  %v301_v12 = vadd.f32 %v935_v54, %v279_v37 }
 0x141   :  { %v207_v1 = vmul.f32 0.0625, %v173_v60  ;;  %671 = vrsqrt.f32 %v229_v58  ;;  %v311_v2 = vpack.c.bf16 %v294_v33, %v293_v61  ;;  %v280_v3 = vmul.f32 %v928_v41, %v258_v36 }
 0x142   :  { %v662_v4 = vpop.eup %661  ;;  %v230_v5 = vadd.f32 1e-05, %v214_v45  ;;  %v273_v14 = vmul.f32 %v928_v41, %v251_v0 }
 0x143   :  { %v223_v7 = vadd.f32 1e-05, %v207_v1  ;;  %v664_v8 = vpop.eup %663  ;;  %v252_v10 = vmul.f32 %v662_v4, %v841_v63  ;;  %v176_v11 = vpop.xlane.xlu1 %175  ;;  %632 = vmatprep.mubr.msk.bf16.mxu0 %vm55_vm0, %v311_v2  ;;  %v302_v62 = vadd.f32 %v935_v54, %v280_v3 }
 0x144   :  { %v197_v53 = vpop.xlane.xlu0 %196  ;;  %v259_v15 = vmul.f32 %v664_v8, %v851_v6  ;;  %673 = vrsqrt.f32 %v230_v5  ;;  %v208_v19 = vmul.f32 0.0625, %v176_v11  ;;  %v295_v38 = vadd.f32 %v935_v54, %v273_v14 }
 0x145   :  { %v215_v20 = vmul.f32 0.0625, %v197_v53  ;;  %675 = vrsqrt.f32 %v223_v7  ;;  %v315_v16 = vpack.c.bf16 %v302_v62, %v301_v12  ;;  %v274_v24 = vmul.f32 %v928_v41, %v252_v10 }
 0x146   :  { %v666_v63 = vpop.eup %665  ;;  %v224_v25 = vadd.f32 1e-05, %v208_v19  ;;  %v281_v21 = vmul.f32 %v928_v41, %v259_v15 }
 0x147   :  { %v231_v29 = vadd.f32 1e-05, %v215_v20  ;;  %v668_v30 = vpop.eup %667  ;;  %v260_v34 = vmul.f32 %v666_v63, %v855_v9  ;;  %v200_v35 = vpop.xlane.xlu1 %199  ;;  %640 = vmatprep.mubr.msk.bf16.mxu1 %vm55_vm0, %v315_v16  ;;  %v296_v6 = vadd.f32 %v935_v54, %v274_v24 }
 0x148   :  { %v253_v39 = vmul.f32 %v668_v30, %v865_v13  ;;  %677 = vrsqrt.f32 %v224_v25  ;;  %v216_v40 = vmul.f32 0.0625, %v200_v35  ;;  %v303_v48 = vadd.f32 %v935_v54, %v281_v21 }
 0x149   :  { %679 = vrsqrt.f32 %v231_v29  ;;  %v312_v42 = vpack.c.bf16 %v296_v6, %v295_v38  ;;  %v282_v43 = vmul.f32 %v928_v41, %v260_v34 }
 0x14a   :  { %v670_v46 = vpop.eup %669  ;;  %v232_v47 = vadd.f32 1e-05, %v216_v40  ;;  %v275_v50 = vmul.f32 %v928_v41, %v253_v39 }
 0x14b   :  { %v672_v9 = vpop.eup %671  ;;  %v254_v26 = vmul.f32 %v670_v46, %v869_v17  ;;  %633 = vmatmul.mubr.msk.bf16.vlgmr.msra.gmra.mrb[0].mxu0 %vm55_vm0, %v312_v42  ;;  %v304_v49 = vadd.f32 %v935_v54, %v282_v43 }
 0x14c   :  { %v261_v13 = vmul.f32 %v672_v9, %v879_v18  ;;  %681 = vrsqrt.f32 %v232_v47  ;;  %v297_v17 = vadd.f32 %v935_v54, %v275_v50 }
 0x14d   :  { %v316_v44 = vpack.c.bf16 %v304_v49, %v303_v48  ;;  %v276_v51 = vmul.f32 %v928_v41, %v254_v26 }
 0x14e   :  { %v674_v55 = vpop.eup %673  ;;  %v283_v58 = vmul.f32 %v928_v41, %v261_v13 }
 0x14f   :  { %v676_v56 = vpop.eup %675  ;;  %v262_v31 = vmul.f32 %v674_v55, %v883_v22  ;;  %641 = vmatmul.mubr.msk.bf16.vlgmr.msra.gmra.mrb[0].mxu1 %vm55_vm0, %v316_v44  ;;  %v298_v57 = vadd.f32 %v935_v54, %v276_v51 }
 0x150   :  { %v255_v59 = vmul.f32 %v676_v56, %v893_v23  ;;  %v305_v22 = vadd.f32 %v935_v54, %v283_v58 }
 0x151   :  { %v313_v52 = vpack.c.bf16 %v298_v57, %v297_v17  ;;  %v284_v18 = vmul.f32 %v928_v41, %v262_v31 }
 0x152   :  { %v678_v60 = vpop.eup %677  ;;  %v277_v37 = vmul.f32 %v928_v41, %v255_v59 }
 0x153   :  { %v680_v61 = vpop.eup %679  ;;  %v256_v33 = vmul.f32 %v678_v60, %v897_v27  ;;  %636 = vmatprep.mubr.msk.bf16.mxu0 %vm55_vm0, %v313_v52  ;;  %v306_v36 = vadd.f32 %v935_v54, %v284_v18 }
 0x154   :  { %v263_v0 = vmul.f32 %v680_v61, %v907_v28  ;;  %v299_v27 = vadd.f32 %v935_v54, %v277_v37 }
 0x155   :  { %v317_v45 = vpack.c.bf16 %v306_v36, %v305_v22  ;;  %v278_v23 = vmul.f32 %v928_v41, %v256_v33 }
 0x156   :  { %v682_v1 = vpop.eup %681  ;;  %v285_v4 = vmul.f32 %v928_v41, %v263_v0 }
 0x157   :  { %v264_v2 = vmul.f32 %v682_v1, %v911_v32  ;;  %644 = vmatprep.mubr.msk.bf16.mxu1 %vm55_vm0, %v317_v45  ;;  %v300_v3 = vadd.f32 %v935_v54, %v278_v23  ;;  %v540_v32 = vld [vmem:[%s1061_s4] ss:$0 sm:$0xff] }
 0x158   :  { %v307_v28 = vadd.f32 %v935_v54, %v285_v4 }
 0x159   :  { %v314_v5 = vpack.c.bf16 %v300_v3, %v299_v27  ;;  %v286_v7 = vmul.f32 %v928_v41, %v264_v2 }
 0x15b   :  { %637 = vmatmul.mubr.msk.bf16.gmra.mrb[4].mxu0 %vm55_vm0, %v314_v5  ;;  %v308_v8 = vadd.f32 %v935_v54, %v286_v7 }
 0x15d   :  { %v318_v10 = vpack.c.bf16 %v308_v8, %v307_v28 }
 0x15f   :  { %645 = vmatmul.mubr.msk.bf16.gmra.mrb[4].mxu1 %vm55_vm0, %v318_v10 }
 0x21e   :  { %v634_v11 = vpop.f32.mrb[0].mxu0 }
 0x21f   :  { %v399_v53 = vadd.f32 %v634_v11, %v540_v32  ;;  %v390_v12 = vpop.f32.mrb[1].mxu0 }
 0x220   :  { %v391_v62 = vadd.f32 %v540_v32, %v390_v12  ;;  %v635_v14 = vpop.f32.mrb[2].mxu0 }
 0x221   :  { %v568_v41 = vpack.c.bf16 %v399_v53, %v399_v53  ;;  %v402_v15 = vadd.f32 %v635_v14, %v540_v32  ;;  %v393_v19 = vpop.f32.mrb[3].mxu0 }
 0x222   :  { %v566_v20 = vpack.c.bf16 %v391_v62, %v391_v62  ;;  %v394_v16 = vadd.f32 %v540_v32, %v393_v19  ;;  %v642_v24 = vpop.f32.mrb[0].mxu1 }
 0x223   :  { %520 = vst.msk [vmem:[%s1062_s5 + $0x8] sm:$0xf] %vm517_vm1, %v568_v41  ;;  %v569_v54 = vpack.c.bf16 %v402_v15, %v402_v15  ;;  %v431_v63 = vadd.f32 %v642_v24, %v540_v32  ;;  %v422_v25 = vpop.f32.mrb[1].mxu1 }
 0x224   :  { %518 = vst.msk [vmem:[%s1062_s5] sm:$0xf] %vm517_vm1, %v566_v20  ;;  %v567_v29 = vpack.c.bf16 %v394_v16, %v394_v16  ;;  %v423_v30 = vadd.f32 %v540_v32, %v422_v25  ;;  %v643_v34 = vpop.f32.mrb[2].mxu1 }
 0x225   :  { %521 = vst.msk [vmem:[%s1062_s5 + $0xc] sm:$0xf] %vm517_vm1, %v569_v54  ;;  %v576_v35 = vpack.c.bf16 %v431_v63, %v431_v63  ;;  %v434_v38 = vadd.f32 %v643_v34, %v540_v32  ;;  %v425_v6 = vpop.f32.mrb[3].mxu1 }
 0x226   :  { %519 = vst.msk [vmem:[%s1062_s5 + $0x4] sm:$0xf] %vm517_vm1, %v567_v29  ;;  %v574_v21 = vpack.c.bf16 %v423_v30, %v423_v30  ;;  %v426_v39 = vadd.f32 %v540_v32, %v425_v6 }
 0x227   :  { %528 = vst.msk [vmem:[%s1062_s5 + $0x28] sm:$0xf] %vm517_vm1, %v576_v35  ;;  %v577_v40 = vpack.c.bf16 %v434_v38, %v434_v38 }
 0x228   :  { %526 = vst.msk [vmem:[%s1062_s5 + $0x20] sm:$0xf] %vm517_vm1, %v574_v21  ;;  %v575_v42 = vpack.c.bf16 %v426_v39, %v426_v39 }
 0x229   :  { %529 = vst.msk [vmem:[%s1062_s5 + $0x2c] sm:$0xf] %vm517_vm1, %v577_v40 }
 0x22a   :  { %527 = vst.msk [vmem:[%s1062_s5 + $0x24] sm:$0xf] %vm517_vm1, %v575_v42 }
 0x22e   :  { %v638_v43 = vpop.f32.mrb[4].mxu0 }
 0x22f   :  { %v415_v46 = vadd.f32 %v638_v43, %v540_v32  ;;  %v406_v47 = vpop.f32.mrb[5].mxu0 }
 0x230   :  { %v407_v9 = vadd.f32 %v540_v32, %v406_v47  ;;  %v639_v26 = vpop.f32.mrb[6].mxu0 }
 0x231   :  { %v572_v48 = vpack.c.bf16 %v415_v46, %v415_v46  ;;  %v418_v49 = vadd.f32 %v639_v26, %v540_v32  ;;  %v409_v50 = vpop.f32.mrb[7].mxu0 }
 0x232   :  { %v570_v13 = vpack.c.bf16 %v407_v9, %v407_v9  ;;  %v410_v44 = vadd.f32 %v540_v32, %v409_v50  ;;  %v646_v51 = vpop.f32.mrb[4].mxu1 }
 0x233   :  { %524 = vst.msk [vmem:[%s1062_s5 + $0x18] sm:$0xf] %vm517_vm1, %v572_v48  ;;  %v573_v55 = vpack.c.bf16 %v418_v49, %v418_v49  ;;  %v447_v56 = vadd.f32 %v646_v51, %v540_v32  ;;  %v438_v31 = vpop.f32.mrb[5].mxu1 }
 0x234   :  { %522 = vst.msk [vmem:[%s1062_s5 + $0x10] sm:$0xf] %vm517_vm1, %v570_v13  ;;  %v571_v17 = vpack.c.bf16 %v410_v44, %v410_v44  ;;  %v439_v57 = vadd.f32 %v540_v32, %v438_v31  ;;  %v647_v58 = vpop.f32.mrb[6].mxu1 }
 0x235   :  { %525 = vst.msk [vmem:[%s1062_s5 + $0x1c] sm:$0xf] %vm517_vm1, %v573_v55  ;;  %v580_v59 = vpack.c.bf16 %v447_v56, %v447_v56  ;;  %v450_v52 = vadd.f32 %v647_v58, %v540_v32  ;;  %v441_v18 = vpop.f32.mrb[7].mxu1 }
 0x236   :  { %523 = vst.msk [vmem:[%s1062_s5 + $0x14] sm:$0xf] %vm517_vm1, %v571_v17  ;;  %v578_v60 = vpack.c.bf16 %v439_v57, %v439_v57  ;;  %v442_v61 = vadd.f32 %v540_v32, %v441_v18 }
 0x237   :  { %532 = vst.msk [vmem:[%s1062_s5 + $0x38] sm:$0xf] %vm517_vm1, %v580_v59  ;;  %v581_v33 = vpack.c.bf16 %v450_v52, %v450_v52 }
 0x238   :  { %530 = vst.msk [vmem:[%s1062_s5 + $0x30] sm:$0xf] %vm517_vm1, %v578_v60  ;;  %v579_v22 = vpack.c.bf16 %v442_v61, %v442_v61 }
 0x239   :  { %533 = vst.msk [vmem:[%s1062_s5 + $0x3c] sm:$0xf] %vm517_vm1, %v581_v33 }
 0x23a   :  { %531 = vst.msk [vmem:[%s1062_s5 + $0x34] sm:$0xf] %vm517_vm1, %v579_v22 }

// kernel: _lambda_.26
= control target key start
LH: loop header
LB: loop body
LE: loop exit
PB: predicated region body
PF: predicated region fallthrough
CT: control target
= control target key end

     0   :  { %vm86_vm0 = vcmask 130048   ;;  %vm272_vm1 = vcmask 125952   ;;  %s503_s1 = inlined_call_operand.vmem [shape: bf16[16,16], index: 1, kind: input, shape index: {}]   ;;  %s504_s0 = inlined_call_operand.vmem [shape: bf16[128,16], index: 0, kind: input, shape index: {}]   ;;  %s505_s2 = inlined_call_operand.vmem [shape: f32[1,16], index: 2, kind: input, shape index: {}]   ;;  %s506_s3 = inlined_call_operand.vmem [shape: bf16[128,16], index: 3, kind: output, shape index: {}]  }
   0x1   :  { %v372_v0 = vld [vmem:[%s503_s1] sm:$0xff]   ;;  %v375_v3 = vld [vmem:[%s504_s0 + $0x8] sm:$0xff]   ;;  %v377_v5 = vld [vmem:[%s504_s0 + $0x10] sm:$0xff]  }
   0x2   :  { %v373_v1 = vld [vmem:[%s504_s0] sm:$0xff]   ;;  %352 = vmatprep.subr.bf16.mxu0 %v372_v0  ;;  %370 = vmatprep.subr.bf16.mxu1 %v372_v0  ;;  %v376_v4 = vld [vmem:[%s504_s0 + $0x28] sm:$0xff]   ;;  %v378_v6 = vld [vmem:[%s504_s0 + $0x30] sm:$0xff]  }
   0x3   :  { %v374_v2 = vld [vmem:[%s504_s0 + $0x20] sm:$0xff]   ;;  %353 = vmatpush3.bf16.msra.mxu0 %v372_v0  ;;  %371 = vmatpush3.bf16.msra.mxu1 %v372_v0  ;;  %v379_v7 = vld [vmem:[%s504_s0 + $0x18] sm:$0xff]  }
   0x4   :  { %354 = vmatprep.mubr.msk.bf16.mxu0 %vm86_vm0, %v373_v1  ;;  %362 = vmatprep.mubr.msk.bf16.mxu1 %vm86_vm0, %v374_v2  ;;  %v380_v8 = vld [vmem:[%s504_s0 + $0x38] sm:$0xff]   ;;  %v293_v9 = vld [vmem:[%s505_s2] ss:$0 sm:$0xff] }
   0x6   :  { %355 = vmatmul.mubr.msk.bf16.vlgmr.msra.gmra.mrb[0].mxu0 %vm86_vm0, %v375_v3  ;;  %363 = vmatmul.mubr.msk.bf16.vlgmr.msra.gmra.mrb[0].mxu1 %vm86_vm0, %v376_v4 }
   0x7   :  { %358 = vmatprep.mubr.msk.bf16.mxu0 %vm86_vm0, %v377_v5  ;;  %366 = vmatprep.mubr.msk.bf16.mxu1 %vm86_vm0, %v378_v6 }
   0xe   :  { %359 = vmatmul.mubr.msk.bf16.gmra.mrb[4].mxu0 %vm86_vm0, %v379_v7  ;;  %367 = vmatmul.mubr.msk.bf16.gmra.mrb[4].mxu1 %vm86_vm0, %v380_v8 }
  0xd9   :  { %v356_v10 = vpop.f32.mrb[0].mxu0  ;;  %v364_v11 = vpop.f32.mrb[0].mxu1 }
  0xda   :  { %v154_v12 = vadd.f32 %v356_v10, %v293_v9  ;;  %v186_v13 = vadd.f32 %v364_v11, %v293_v9  ;;  %v145_v14 = vpop.f32.mrb[1].mxu0  ;;  %v177_v15 = vpop.f32.mrb[1].mxu1 }
  0xdb   :  { %v146_v16 = vadd.f32 %v293_v9, %v145_v14  ;;  %v178_v17 = vadd.f32 %v293_v9, %v177_v15  ;;  %v357_v18 = vpop.f32.mrb[2].mxu0  ;;  %v365_v19 = vpop.f32.mrb[2].mxu1 }
  0xdc   :  { %v329_v20 = vpack.c.bf16 %v154_v12, %v154_v12  ;;  %v337_v21 = vpack.c.bf16 %v186_v13, %v186_v13  ;;  %v157_v22 = vadd.f32 %v357_v18, %v293_v9  ;;  %v189_v23 = vadd.f32 %v365_v19, %v293_v9  ;;  %v148_v24 = vpop.f32.mrb[3].mxu0  ;;  %v180_v25 = vpop.f32.mrb[3].mxu1 }
  0xdd   :  { %v327_v26 = vpack.c.bf16 %v146_v16, %v146_v16  ;;  %v335_v27 = vpack.c.bf16 %v178_v17, %v178_v17  ;;  %v149_v28 = vadd.f32 %v293_v9, %v148_v24  ;;  %v181_v29 = vadd.f32 %v293_v9, %v180_v25 }
  0xde   :  { %275 = vst.msk [vmem:[%s506_s3 + $0x8] sm:$0xf] %vm272_vm1, %v329_v20  ;;  %283 = vst.msk [vmem:[%s506_s3 + $0x28] sm:$0xf] %vm272_vm1, %v337_v21  ;;  %v330_v30 = vpack.c.bf16 %v157_v22, %v157_v22  ;;  %v338_v31 = vpack.c.bf16 %v189_v23, %v189_v23 }
  0xdf   :  { %273 = vst.msk [vmem:[%s506_s3] sm:$0xf] %vm272_vm1, %v327_v26  ;;  %281 = vst.msk [vmem:[%s506_s3 + $0x20] sm:$0xf] %vm272_vm1, %v335_v27  ;;  %v328_v32 = vpack.c.bf16 %v149_v28, %v149_v28  ;;  %v336_v33 = vpack.c.bf16 %v181_v29, %v181_v29 }
  0xe0   :  { %276 = vst.msk [vmem:[%s506_s3 + $0xc] sm:$0xf] %vm272_vm1, %v330_v30  ;;  %284 = vst.msk [vmem:[%s506_s3 + $0x2c] sm:$0xf] %vm272_vm1, %v338_v31 }
  0xe1   :  { %274 = vst.msk [vmem:[%s506_s3 + $0x4] sm:$0xf] %vm272_vm1, %v328_v32  ;;  %282 = vst.msk [vmem:[%s506_s3 + $0x24] sm:$0xf] %vm272_vm1, %v336_v33  ;;  %v360_v34 = vpop.f32.mrb[4].mxu0  ;;  %v368_v35 = vpop.f32.mrb[4].mxu1 }
  0xe2   :  { %v170_v36 = vadd.f32 %v360_v34, %v293_v9  ;;  %v202_v37 = vadd.f32 %v368_v35, %v293_v9  ;;  %v161_v38 = vpop.f32.mrb[5].mxu0  ;;  %v193_v39 = vpop.f32.mrb[5].mxu1 }
  0xe3   :  { %v162_v40 = vadd.f32 %v293_v9, %v161_v38  ;;  %v194_v41 = vadd.f32 %v293_v9, %v193_v39  ;;  %v361_v42 = vpop.f32.mrb[6].mxu0  ;;  %v369_v43 = vpop.f32.mrb[6].mxu1 }
  0xe4   :  { %v333_v44 = vpack.c.bf16 %v170_v36, %v170_v36  ;;  %v341_v45 = vpack.c.bf16 %v202_v37, %v202_v37  ;;  %v173_v46 = vadd.f32 %v361_v42, %v293_v9  ;;  %v205_v47 = vadd.f32 %v369_v43, %v293_v9  ;;  %v164_v48 = vpop.f32.mrb[7].mxu0  ;;  %v196_v49 = vpop.f32.mrb[7].mxu1 }
  0xe5   :  { %v331_v50 = vpack.c.bf16 %v162_v40, %v162_v40  ;;  %v339_v51 = vpack.c.bf16 %v194_v41, %v194_v41  ;;  %v165_v52 = vadd.f32 %v293_v9, %v164_v48  ;;  %v197_v53 = vadd.f32 %v293_v9, %v196_v49 }
  0xe6   :  { %279 = vst.msk [vmem:[%s506_s3 + $0x18] sm:$0xf] %vm272_vm1, %v333_v44  ;;  %287 = vst.msk [vmem:[%s506_s3 + $0x38] sm:$0xf] %vm272_vm1, %v341_v45  ;;  %v334_v54 = vpack.c.bf16 %v173_v46, %v173_v46  ;;  %v342_v55 = vpack.c.bf16 %v205_v47, %v205_v47 }
  0xe7   :  { %277 = vst.msk [vmem:[%s506_s3 + $0x10] sm:$0xf] %vm272_vm1, %v331_v50  ;;  %285 = vst.msk [vmem:[%s506_s3 + $0x30] sm:$0xf] %vm272_vm1, %v339_v51  ;;  %v332_v56 = vpack.c.bf16 %v165_v52, %v165_v52  ;;  %v340_v57 = vpack.c.bf16 %v197_v53, %v197_v53 }
  0xe8   :  { %280 = vst.msk [vmem:[%s506_s3 + $0x1c] sm:$0xf] %vm272_vm1, %v334_v54  ;;  %288 = vst.msk [vmem:[%s506_s3 + $0x3c] sm:$0xf] %vm272_vm1, %v342_v55 }
  0xe9   :  { %278 = vst.msk [vmem:[%s506_s3 + $0x14] sm:$0xf] %vm272_vm1, %v332_v56  ;;  %286 = vst.msk [vmem:[%s506_s3 + $0x34] sm:$0xf] %vm272_vm1, %v340_v57 }

// kernel: _lambda_.25
= control target key start
LH: loop header
LB: loop body
LE: loop exit
PB: predicated region body
PF: predicated region fallthrough
CT: control target
= control target key end

     0   :  { %v2728_v3 = vmov 0.0   ;;  %vm2729_vm0 = vmmov 0   ;;  %s2730_s17 = smov 112   ;;  %s2731_s26 = smov 96   ;;  %vm83_vm1 = vcmask 64512   ;;  %vm481_vm2 = vcmask 130048   ;;  %s3559_s0 = inlined_call_operand.vmem [shape: bf16[8,16,48], index: 0, kind: input, shape index: {}]   ;;  %s3560_s1 = inlined_call_operand.vmem [shape: f32[2,16,16], index: 1, kind: input, shape index: {}]   ;;  %s3561_s2 = inlined_call_operand.vmem [shape: bf16[8,16,16], index: 2, kind: output, shape index: {}]  }
   0x1   :  { %v2754_v0 = vld [vmem:[%s3559_s0] sm:$0xff]   ;;  %v2759_v1 = vld [vmem:[%s3559_s0 + $0x8] sm:$0xff]   ;;  %v2764_v2 = vld [vmem:[%s3559_s0 + $0x10] sm:$0xff]   ;;  %2384 = vmatprep.subr.bf16.mxu0 %v2728_v3  ;;  %2390 = vmatprep.subr.bf16.mxu1 %v2728_v3  ;;  %s2732_s30 = smov 104   ;;  %s2733_s3 = smov 120   ;;  %vm1106_vm3 = vcmask 60416  }
   0x2   :  { %v2771_v4 = vld [vmem:[%s3559_s0 + $0x18] sm:$0xff]   ;;  %2386 = vmatprep.mubr.msk.bf16.mxu0 %vm2729_vm0, %v2728_v3  ;;  %2392 = vmatprep.mubr.msk.bf16.mxu1 %vm2729_vm0, %v2728_v3  ;;  %v2782_v5 = vld [vmem:[%s3559_s0 + $0x20] sm:$0xff]   ;;  %v2787_v6 = vld [vmem:[%s3559_s0 + $0x28] sm:$0xff]   ;;  %v29_v9 = vunpack.c.h.bf16 %v2754_v0  ;;  %v28_v10 = vunpack.c.l.bf16 %v2754_v0  ;;  %v30_v11 = vunpack.c.l.bf16 %v2759_v1  ;;  %v31_v13 = vunpack.c.h.bf16 %v2759_v1  ;;  %s2734_s4 = smov 88  }
   0x3   :  { %81 = vrot.lane.b32.xlu0 %v2754_v0, %s2730_s17  ;;  %182 = vrot.lane.b32.xlu1 %v2764_v2, %s2730_s17  ;;  %v2794_v7 = vld [vmem:[%s3559_s0 + $0x30] sm:$0xff]   ;;  %v2799_v8 = vld [vmem:[%s3559_s0 + $0x38] sm:$0xff]   ;;  %v33_v18 = vunpack.c.h.bf16 %v2764_v2  ;;  %v32_v19 = vunpack.c.l.bf16 %v2764_v2  ;;  %v34_v26 = vunpack.c.l.bf16 %v2771_v4  ;;  %v35_v30 = vunpack.c.h.bf16 %v2771_v4 }
   0x4   :  { %v48_v15 = vmul.f32 0.35355338, %v28_v10  ;;  %v49_v16 = vmul.f32 0.35355338, %v29_v9  ;;  %v50_v23 = vmul.f32 0.35355338, %v30_v11  ;;  %v36_v33 = vunpack.c.l.bf16 %v2782_v5 }
   0x5   :  { %v51_v24 = vmul.f32 0.35355338, %v31_v13  ;;  %v53_v28 = vmul.f32 0.35355338, %v33_v18  ;;  %v52_v29 = vmul.f32 0.35355338, %v32_v19  ;;  %v37_v37 = vunpack.c.h.bf16 %v2782_v5 }
   0x6   :  { %v2816_v22 = vpack.c.bf16 %v49_v16, %v48_v15  ;;  %v54_v35 = vmul.f32 0.35355338, %v34_v26  ;;  %v55_v36 = vmul.f32 0.35355338, %v35_v30  ;;  %v38_v40 = vunpack.c.l.bf16 %v2787_v6  ;;  %v2891_v11 = vld [vmem:[%s3560_s1] sm:$0xff]  ;;  %v2896_v13 = vld [vmem:[%s3560_s1 + $0x8] sm:$0xff] }
   0x7   :  { %132 = vrot.lane.b32.xlu0 %v2759_v1, %s2730_s17  ;;  %232 = vrot.lane.b32.xlu1 %v2771_v4, %s2730_s17  ;;  %v2824_v31 = vpack.c.bf16 %v51_v24, %v50_v23  ;;  %v2834_v38 = vpack.c.bf16 %v53_v28, %v52_v29  ;;  %v56_v42 = vmul.f32 0.35355338, %v36_v33  ;;  %v57_v43 = vmul.f32 0.35355338, %v37_v37 }
   0x8   :  { %v39_v44 = vunpack.c.h.bf16 %v2787_v6  ;;  %v2844_v45 = vpack.c.bf16 %v55_v36, %v54_v35  ;;  %v58_v47 = vmul.f32 0.35355338, %v38_v40  ;;  %v40_v50 = vunpack.c.l.bf16 %v2794_v7 }
   0x9   :  { %v41_v51 = vunpack.c.h.bf16 %v2794_v7  ;;  %v2854_v52 = vpack.c.bf16 %v57_v43, %v56_v42  ;;  %v42_v54 = vunpack.c.l.bf16 %v2799_v8  ;;  %v43_v58 = vunpack.c.h.bf16 %v2799_v8 }
   0xa   :  { %v59_v49 = vmul.f32 0.35355338, %v39_v44  ;;  %v60_v56 = vmul.f32 0.35355338, %v40_v50  ;;  %vm2195_vm4 = vcmask 126016  }
   0xb   :  { %282 = vrot.lane.b32.xlu0 %v2782_v5, %s2730_s17  ;;  %332 = vrot.lane.b32.xlu1 %v2787_v6, %s2730_s17  ;;  %v61_v57 = vmul.f32 0.35355338, %v41_v51  ;;  %v62_v61 = vmul.f32 0.35355338, %v42_v54  ;;  %v63_v62 = vmul.f32 0.35355338, %v43_v58 }
   0xc   :  { %v2864_v59 = vpack.c.bf16 %v59_v49, %v58_v47 }
   0xd   :  { %v2872_v63 = vpack.c.bf16 %v61_v57, %v60_v56  ;;  %v2879_v9 = vpack.c.bf16 %v63_v62, %v62_v61 }
   0xf   :  { %382 = vrot.lane.b32.xlu0 %v2794_v7, %s2730_s17  ;;  %432 = vrot.lane.b32.xlu1 %v2799_v8, %s2730_s17 }
  0x13   :  { %666 = vrot.lane.b32.xlu1 %v2754_v0, %s2731_s26 }
  0x75   :  { %v82_v12 = vpop.permute.xlu0 %81  ;;  %v183_v17 = vpop.permute.xlu1 %182 }
  0x76   :  { %v88_v14 = vsel %vm83_vm1, %v82_v12, 0  ;;  %v188_v25 = vsel %vm83_vm1, %v183_v17, 0 }
  0x77   :  { %2385 = vmatpush3.bf16.xpose.msra.mxu0 %v88_v14 }
  0x78   :  { %2396 = vmatprep.subr.bf16.mxu0 %v2728_v3 }
  0x79   :  { %v133_v20 = vpop.permute.xlu0 %132  ;;  %v233_v27 = vpop.permute.xlu1 %232 }
  0x7a   :  { %v138_v21 = vsel %vm83_vm1, %v133_v20, 0  ;;  %v238_v32 = vsel %vm83_vm1, %v233_v27, 0 }
  0x7b   :  { %2391 = vmatpush3.bf16.xpose.msra.mxu1 %v138_v21 }
  0x7c   :  { %2402 = vmatprep.subr.bf16.mxu1 %v2728_v3 }
  0x7d   :  { %v283_v34 = vpop.permute.xlu0 %282  ;;  %v333_v41 = vpop.permute.xlu1 %332 }
  0x7e   :  { %2387 = vmatmul.mubr.msk.bf16.vlgmr.msra.gmra.mrb[0].mxu0 %vm83_vm1, %v2816_v22  ;;  %v288_v39 = vsel %vm83_vm1, %v283_v34, 0  ;;  %v338_v46 = vsel %vm83_vm1, %v333_v41, 0 }
  0x7f   :  { %2397 = vmatpush3.bf16.xpose.msra.mxu0 %v188_v25  ;;  %2398 = vmatprep.mubr.msk.bf16.mxu0 %vm2729_vm0, %v2728_v3 }
  0x80   :  { %2408 = vmatprep.subr.bf16.mxu0 %v2728_v3 }
  0x81   :  { %v383_v48 = vpop.permute.xlu0 %382  ;;  %v433_v55 = vpop.permute.xlu1 %432 }
  0x82   :  { %2393 = vmatmul.mubr.msk.bf16.vlgmr.msra.gmra.mrb[0].mxu1 %vm83_vm1, %v2824_v31  ;;  %v388_v53 = vsel %vm83_vm1, %v383_v48, 0  ;;  %v438_v60 = vsel %vm83_vm1, %v433_v55, 0 }
  0x83   :  { %2403 = vmatpush3.bf16.xpose.msra.mxu1 %v238_v32  ;;  %2404 = vmatprep.mubr.msk.bf16.mxu1 %vm2729_vm0, %v2728_v3 }
  0x84   :  { %2414 = vmatprep.subr.bf16.mxu1 %v2728_v3 }
  0x85   :  { %v667_v10 = vpop.permute.xlu1 %666 }
  0x86   :  { %2399 = vmatmul.mubr.msk.bf16.vlgmr.msra.gmra.mrb[4].mxu0 %vm83_vm1, %v2834_v38 }
  0x87   :  { %2409 = vmatpush3.bf16.xpose.msra.mxu0 %v288_v39  ;;  %2410 = vmatprep.mubr.msk.bf16.mxu0 %vm2729_vm0, %v2728_v3 }
  0x88   :  { %2420 = vmatprep.subr.bf16.mxu0 %v2728_v3 }
  0x8a   :  { %2405 = vmatmul.mubr.msk.bf16.vlgmr.msra.gmra.mrb[4].mxu1 %vm83_vm1, %v2844_v45 }
  0x8b   :  { %2415 = vmatpush3.bf16.xpose.msra.mxu1 %v338_v46  ;;  %2416 = vmatprep.mubr.msk.bf16.mxu1 %vm2729_vm0, %v2728_v3 }
  0x8c   :  { %2426 = vmatprep.subr.bf16.mxu1 %v2728_v3 }
  0x8e   :  { %2411 = vmatmul.mubr.msk.bf16.vlgmr.msra.gmra.mrb[8].mxu0 %vm83_vm1, %v2854_v52 }
  0x8f   :  { %2421 = vmatpush3.bf16.xpose.msra.mxu0 %v388_v53  ;;  %2422 = vmatprep.mubr.msk.bf16.mxu0 %vm2729_vm0, %v2728_v3 }
  0x90   :  { %2432 = vmatprep.subr.bf16.mxu0 %v2728_v3 }
  0x92   :  { %2417 = vmatmul.mubr.msk.bf16.vlgmr.msra.gmra.mrb[8].mxu1 %vm83_vm1, %v2864_v59 }
  0x93   :  { %2427 = vmatpush3.bf16.xpose.msra.mxu1 %v438_v60  ;;  %2428 = vmatprep.mubr.msk.bf16.mxu1 %vm2729_vm0, %v2728_v3 }
  0x94   :  { %2438 = vmatprep.subr.bf16.mxu1 %v2728_v3 }
  0x96   :  { %2423 = vmatmul.mubr.msk.bf16.vlgmr.msra.gmra.mrb[12].mxu0 %vm83_vm1, %v2872_v63 }
  0x97   :  { %2434 = vmatprep.mubr.msk.bf16.mxu0 %vm2729_vm0, %v2728_v3  ;;  %2433 = vmatpush3.bf16.msra.mxu0 %v667_v10 }
  0x98   :  { %2444 = vmatprep.subr.bf16.mxu0 %v2728_v3 }
  0x9a   :  { %2429 = vmatmul.mubr.msk.bf16.vlgmr.msra.gmra.mrb[12].mxu1 %vm83_vm1, %v2879_v9 }
  0x9b   :  { %2440 = vmatprep.mubr.msk.bf16.mxu1 %vm2729_vm0, %v2728_v3 }
 0x151   :  { %v124_v12 = vpop.f32.mrb[0].mxu0 }
 0x152   :  { %v2899_v14 = vadd.f32 %v124_v12, %v2891_v11  ;;  %v2388_v15 = vpop.f32.mrb[1].mxu0 }
 0x153   :  { %v127_v16 = vpop.f32.mrb[2].mxu0 }
 0x154   :  { %v2902_v17 = vadd.f32 %v127_v16, %v2896_v13  ;;  %v2389_v18 = vpop.f32.mrb[3].mxu0  ;;  %v482_v19 = vsel %vm481_vm2, %v2899_v14, -inf }
 0x155   :  { %v174_v20 = vpop.f32.mrb[0].mxu1  ;;  %483 = vmax.xlane.f32.xlu0 %v482_v19 }
 0x156   :  { %v2907_v21 = vadd.f32 %v174_v20, %v2891_v11  ;;  %v2394_v23 = vpop.f32.mrb[1].mxu1  ;;  %v485_v24 = vsel %vm481_vm2, %v2902_v17, -inf }
 0x157   :  { %v177_v25 = vpop.f32.mrb[2].mxu1  ;;  %486 = vmax.xlane.f32.xlu1 %v485_v24 }
 0x158   :  { %v2912_v26 = vadd.f32 %v177_v25, %v2896_v13  ;;  %v2395_v27 = vpop.f32.mrb[3].mxu1  ;;  %v488_v28 = vsel %vm481_vm2, %v2907_v21, -inf }
 0x159   :  { %489 = vmax.xlane.f32.xlu0 %v488_v28  ;;  %v224_v29 = vpop.f32.mrb[4].mxu0 }
 0x15a   :  { %v2917_v30 = vadd.f32 %v224_v29, %v2891_v11  ;;  %v2400_v32 = vpop.f32.mrb[5].mxu0  ;;  %v491_v36 = vsel %vm481_vm2, %v2912_v26, -inf }
 0x15b   :  { %v227_v33 = vpop.f32.mrb[6].mxu0 }
 0x15c   :  { %v2920_v34 = vadd.f32 %v227_v33, %v2896_v13  ;;  %v2401_v35 = vpop.f32.mrb[7].mxu0  ;;  %v494_v37 = vsel %vm481_vm2, %v2917_v30, -inf }
 0x15d   :  { %v274_v39 = vpop.f32.mrb[4].mxu1  ;;  %492 = vmax.xlane.f32.xlu0 %v491_v36  ;;  %495 = vmax.xlane.f32.xlu1 %v494_v37 }
 0x15e   :  { %v2927_v40 = vadd.f32 %v274_v39, %v2891_v11  ;;  %v2406_v41 = vpop.f32.mrb[5].mxu1  ;;  %v497_v47 = vsel %vm481_vm2, %v2920_v34, -inf }
 0x15f   :  { %v277_v42 = vpop.f32.mrb[6].mxu1 }
 0x160   :  { %v2930_v43 = vadd.f32 %v277_v42, %v2896_v13  ;;  %v2407_v44 = vpop.f32.mrb[7].mxu1  ;;  %v500_v46 = vsel %vm481_vm2, %v2927_v40, -inf }
 0x161   :  { %501 = vmax.xlane.f32.xlu1 %v500_v46  ;;  %498 = vmax.xlane.f32.xlu0 %v497_v47  ;;  %v324_v48 = vpop.f32.mrb[8].mxu0 }
 0x162   :  { %v2937_v49 = vadd.f32 %v324_v48, %v2891_v11  ;;  %v2412_v50 = vpop.f32.mrb[9].mxu0  ;;  %v503_v55 = vsel %vm481_vm2, %v2930_v43, -inf }
 0x163   :  { %v327_v51 = vpop.f32.mrb[10].mxu0 }
 0x164   :  { %v2940_v53 = vadd.f32 %v327_v51, %v2896_v13  ;;  %v2413_v54 = vpop.f32.mrb[11].mxu0  ;;  %v506_v56 = vsel %vm481_vm2, %v2937_v49, -inf }
 0x165   :  { %v374_v57 = vpop.f32.mrb[8].mxu1  ;;  %504 = vmax.xlane.f32.xlu0 %v503_v55  ;;  %507 = vmax.xlane.f32.xlu1 %v506_v56 }
 0x166   :  { %v2947_v58 = vadd.f32 %v374_v57, %v2891_v11  ;;  %v2418_v60 = vpop.f32.mrb[9].mxu1  ;;  %v509_v15 = vsel %vm481_vm2, %v2940_v53, -inf }
 0x167   :  { %v377_v61 = vpop.f32.mrb[10].mxu1 }
 0x168   :  { %v2950_v62 = vadd.f32 %v377_v61, %v2896_v13  ;;  %v2419_v10 = vpop.f32.mrb[11].mxu1  ;;  %v512_v12 = vsel %vm481_vm2, %v2947_v58, -inf }
 0x169   :  { %513 = vmax.xlane.f32.xlu1 %v512_v12  ;;  %510 = vmax.xlane.f32.xlu0 %v509_v15  ;;  %v424_v16 = vpop.f32.mrb[12].mxu0 }
 0x16a   :  { %v2957_v18 = vadd.f32 %v424_v16, %v2891_v11  ;;  %v2424_v19 = vpop.f32.mrb[13].mxu0  ;;  %v515_v25 = vsel %vm481_vm2, %v2950_v62, -inf }
 0x16b   :  { %v427_v20 = vpop.f32.mrb[14].mxu0 }
 0x16c   :  { %v2960_v23 = vadd.f32 %v427_v20, %v2896_v13  ;;  %v2425_v24 = vpop.f32.mrb[15].mxu0  ;;  %v518_v27 = vsel %vm481_vm2, %v2957_v18, -inf }
 0x16d   :  { %v474_v28 = vpop.f32.mrb[12].mxu1  ;;  %516 = vmax.xlane.f32.xlu0 %v515_v25  ;;  %519 = vmax.xlane.f32.xlu1 %v518_v27 }
 0x16e   :  { %v2967_v29 = vadd.f32 %v474_v28, %v2891_v11  ;;  %v2430_v32 = vpop.f32.mrb[13].mxu1  ;;  %v521_v39 = vsel %vm481_vm2, %v2960_v23, -inf }
 0x16f   :  { %v477_v33 = vpop.f32.mrb[14].mxu1 }
 0x170   :  { %v2970_v35 = vadd.f32 %v477_v33, %v2896_v13  ;;  %v2431_v36 = vpop.f32.mrb[15].mxu1  ;;  %v524_v37 = vsel %vm481_vm2, %v2967_v29, -inf }
 0x171   :  { %525 = vmax.xlane.f32.xlu1 %v524_v37  ;;  %522 = vmax.xlane.f32.xlu0 %v521_v39 }
 0x172   :  { %v527_v41 = vsel %vm481_vm2, %v2970_v35, -inf }
 0x175   :  { %528 = vmax.xlane.f32.xlu0 %v527_v41 }
 0x182   :  { %760 = vrot.lane.b32.xlu1 %v2764_v2, %s2731_s26 }
 0x186   :  { %807 = vrot.lane.b32.xlu1 %v2771_v4, %s2731_s26 }
 0x18a   :  { %901 = vrot.lane.b32.xlu1 %v2787_v6, %s2731_s26 }
 0x18b   :  { %713 = vrot.lane.b32.xlu0 %v2759_v1, %s2731_s26 }
 0x18e   :  { %995 = vrot.lane.b32.xlu1 %v2799_v8, %s2731_s26 }
 0x18f   :  { %854 = vrot.lane.b32.xlu0 %v2782_v5, %s2731_s26 }
 0x193   :  { %948 = vrot.lane.b32.xlu0 %v2794_v7, %s2731_s26 }
 0x1e2   :  { %v484_v11 = vpop.xlane.xlu0 %483 }
 0x1e3   :  { %v530_v13 = vsub.f32 %v2899_v14, %v484_v11 }
 0x1e4   :  { %v487_v42 = vpop.xlane.xlu1 %486 }
 0x1e5   :  { %v546_v44 = vmul.f32 1.442695, %v530_v13  ;;  %v531_v46 = vsub.f32 %v2902_v17, %v487_v42 }
 0x1e6   :  { %v490_v47 = vpop.xlane.xlu0 %489 }
 0x1e7   :  { %2600 = vpow2.f32 %v546_v44  ;;  %v548_v48 = vmul.f32 1.442695, %v531_v46  ;;  %v532_v50 = vsub.f32 %v2907_v21, %v490_v47 }
 0x1e9   :  { %2602 = vpow2.f32 %v548_v48  ;;  %v550_v51 = vmul.f32 1.442695, %v532_v50 }
 0x1ea   :  { %v493_v54 = vpop.xlane.xlu0 %492  ;;  %v496_v55 = vpop.xlane.xlu1 %495 }
 0x1eb   :  { %2604 = vpow2.f32 %v550_v51  ;;  %v533_v56 = vsub.f32 %v2912_v26, %v493_v54  ;;  %v534_v57 = vsub.f32 %v2917_v30, %v496_v55 }
 0x1ed   :  { %v552_v60 = vmul.f32 1.442695, %v533_v56  ;;  %v554_v14 = vmul.f32 1.442695, %v534_v57 }
 0x1ee   :  { %v502_v61 = vpop.xlane.xlu1 %501  ;;  %v499_v10 = vpop.xlane.xlu0 %498 }
 0x1ef   :  { %2606 = vpow2.f32 %v552_v60  ;;  %v536_v17 = vsub.f32 %v2927_v40, %v502_v61  ;;  %v535_v12 = vsub.f32 %v2920_v34, %v499_v10 }
 0x1f0   :  { %2608 = vpow2.f32 %v554_v14 }
 0x1f1   :  { %v2999_v21 = vpop.eup %2600  ;;  %v558_v15 = vmul.f32 1.442695, %v536_v17  ;;  %v556_v16 = vmul.f32 1.442695, %v535_v12 }
 0x1f2   :  { %v505_v19 = vpop.xlane.xlu0 %504  ;;  %v508_v20 = vpop.xlane.xlu1 %507  ;;  %v578_v26 = vsel %vm481_vm2, %v2999_v21, 0.0 }
 0x1f3   :  { %v3003_v30 = vpop.eup %2602  ;;  %2610 = vpow2.f32 %v558_v15  ;;  %v537_v24 = vsub.f32 %v2930_v43, %v505_v19  ;;  %v538_v25 = vsub.f32 %v2937_v49, %v508_v20  ;;  %579 = vadd.xlane.f32.xlu1 %v578_v26 }
 0x1f4   :  { %2612 = vpow2.f32 %v556_v16  ;;  %v581_v34 = vsel %vm481_vm2, %v3003_v30, 0.0 }
 0x1f5   :  { %v3009_v40 = vpop.eup %2604  ;;  %v560_v27 = vmul.f32 1.442695, %v537_v24  ;;  %v562_v28 = vmul.f32 1.442695, %v538_v25  ;;  %582 = vadd.xlane.f32.xlu0 %v581_v34 }
 0x1f6   :  { %v514_v32 = vpop.xlane.xlu1 %513  ;;  %v511_v33 = vpop.xlane.xlu0 %510  ;;  %v584_v36 = vsel %vm481_vm2, %v3009_v40, 0.0 }
 0x1f7   :  { %2614 = vpow2.f32 %v560_v27  ;;  %v540_v43 = vsub.f32 %v2947_v58, %v514_v32  ;;  %v539_v49 = vsub.f32 %v2940_v53, %v511_v33  ;;  %585 = vadd.xlane.f32.xlu1 %v584_v36 }
 0x1f8   :  { %2616 = vpow2.f32 %v562_v28 }
 0x1f9   :  { %v3015_v37 = vpop.eup %2606  ;;  %v566_v39 = vmul.f32 1.442695, %v540_v43  ;;  %v564_v41 = vmul.f32 1.442695, %v539_v49 }
 0x1fa   :  { %v3017_v11 = vpop.eup %2608  ;;  %v517_v13 = vpop.xlane.xlu0 %516  ;;  %v587_v44 = vsel %vm481_vm2, %v3015_v37, 0.0 }
 0x1fb   :  { %v520_v42 = vpop.xlane.xlu1 %519  ;;  %2618 = vpow2.f32 %v566_v39  ;;  %v541_v46 = vsub.f32 %v2950_v62, %v517_v13  ;;  %v590_v53 = vsel %vm481_vm2, %v3017_v11, 0.0  ;;  %588 = vadd.xlane.f32.xlu0 %v587_v44 }
 0x1fc   :  { %v542_v58 = vsub.f32 %v2957_v18, %v520_v42  ;;  %2620 = vpow2.f32 %v564_v41  ;;  %591 = vadd.xlane.f32.xlu1 %v590_v53 }
 0x1fd   :  { %v3025_v47 = vpop.eup %2610  ;;  %v568_v48 = vmul.f32 1.442695, %v541_v46 }
 0x1fe   :  { %v570_v50 = vmul.f32 1.442695, %v542_v58  ;;  %v3027_v51 = vpop.eup %2612  ;;  %v523_v55 = vpop.xlane.xlu0 %522  ;;  %v596_v56 = vsel %vm481_vm2, %v3025_v47, 0.0 }
 0x1ff   :  { %v526_v54 = vpop.xlane.xlu1 %525  ;;  %2622 = vpow2.f32 %v568_v48  ;;  %v543_v18 = vsub.f32 %v2960_v23, %v523_v55  ;;  %v593_v57 = vsel %vm481_vm2, %v3027_v51, 0.0 }
 0x200   :  { %v544_v62 = vsub.f32 %v2967_v29, %v526_v54  ;;  %2624 = vpow2.f32 %v570_v50  ;;  %597 = vadd.xlane.f32.xlu1 %v596_v56  ;;  %594 = vadd.xlane.f32.xlu0 %v593_v57 }
 0x201   :  { %v3035_v60 = vpop.eup %2614  ;;  %v572_v61 = vmul.f32 1.442695, %v543_v18 }
 0x202   :  { %v574_v14 = vmul.f32 1.442695, %v544_v62  ;;  %v3037_v10 = vpop.eup %2616  ;;  %v529_v17 = vpop.xlane.xlu0 %528  ;;  %v599_v12 = vsel %vm481_vm2, %v3035_v60, 0.0 }
 0x203   :  { %v545_v29 = vsub.f32 %v2970_v35, %v529_v17  ;;  %v602_v23 = vsel %vm481_vm2, %v3037_v10, 0.0 }
 0x204   :  { %2626 = vpow2.f32 %v574_v14  ;;  %603 = vadd.xlane.f32.xlu1 %v602_v23  ;;  %600 = vadd.xlane.f32.xlu0 %v599_v12 }
 0x205   :  { %2628 = vpow2.f32 %v572_v61  ;;  %v3044_v15 = vpop.eup %2618  ;;  %v576_v16 = vmul.f32 1.442695, %v545_v29 }
 0x206   :  { %v3046_v19 = vpop.eup %2620  ;;  %v608_v20 = vsel %vm481_vm2, %v3044_v15, 0.0  ;;  %v714_v26 = vpop.permute.xlu0 %713 }
 0x207   :  { %2630 = vpow2.f32 %v576_v16  ;;  %v605_v24 = vsel %vm481_vm2, %v3046_v19, 0.0  ;;  %2439 = vmatpush3.bf16.msra.mxu1 %v714_v26 }
 0x208   :  { %609 = vadd.xlane.f32.xlu1 %v608_v20  ;;  %606 = vadd.xlane.f32.xlu0 %v605_v24 }
 0x209   :  { %v3052_v35 = vpop.eup %2622  ;;  %2450 = vmatprep.subr.bf16.mxu1 %v2728_v3 }
 0x20a   :  { %v3055_v25 = vpop.eup %2624  ;;  %v611_v34 = vsel %vm481_vm2, %v3052_v35, 0.0  ;;  %v855_v39 = vpop.permute.xlu0 %854 }
 0x20b   :  { %v614_v27 = vsel %vm481_vm2, %v3055_v25, 0.0 }
 0x20c   :  { %615 = vadd.xlane.f32.xlu1 %v614_v27  ;;  %612 = vadd.xlane.f32.xlu0 %v611_v34 }
 0x20e   :  { %v3061_v28 = vpop.eup %2626 }
 0x20f   :  { %v3063_v32 = vpop.eup %2628  ;;  %v620_v33 = vsel %vm481_vm2, %v3061_v28, 0.0 }
 0x210   :  { %v617_v36 = vsel %vm481_vm2, %v3063_v32, 0.0  ;;  %621 = vadd.xlane.f32.xlu1 %v620_v33 }
 0x211   :  { %618 = vadd.xlane.f32.xlu0 %v617_v36  ;;  %v3069_v43 = vpop.eup %2630 }
 0x212   :  { %v623_v49 = vsel %vm481_vm2, %v3069_v43, 0.0 }
 0x215   :  { %624 = vadd.xlane.f32.xlu0 %v623_v49 }
 0x221   :  { %1178 = vrot.lane.b32.xlu1 %v2759_v1, %s2732_s30 }
 0x225   :  { %1176 = vrot.lane.b32.xlu1 %v2824_v31, %s2733_s3 }
 0x229   :  { %1282 = vrot.lane.b32.xlu1 %v2771_v4, %s2732_s30 }
 0x22b   :  { %1126 = vrot.lane.b32.xlu0 %v2754_v0, %s2732_s30 }
 0x22d   :  { %1280 = vrot.lane.b32.xlu1 %v2844_v45, %s2733_s3 }
 0x22f   :  { %1124 = vrot.lane.b32.xlu0 %v2816_v22, %s2733_s3  ;;  %v761_v22 = vpop.permute.xlu1 %760 }
 0x231   :  { %1386 = vrot.lane.b32.xlu1 %v2787_v6, %s2732_s30 }
 0x233   :  { %1230 = vrot.lane.b32.xlu0 %v2764_v2, %s2732_s30  ;;  %v808_v31 = vpop.permute.xlu1 %807 }
 0x235   :  { %1384 = vrot.lane.b32.xlu1 %v2864_v59, %s2733_s3 }
 0x237   :  { %1228 = vrot.lane.b32.xlu0 %v2834_v38, %s2733_s3  ;;  %v3089_v45 = vpop.permute.xlu1 %901  ;;  %v3093_v38 = vpop.permute.xlu0 %948 }
 0x239   :  { %1490 = vrot.lane.b32.xlu1 %v2799_v8, %s2732_s30 }
 0x23b   :  { %1334 = vrot.lane.b32.xlu0 %v2782_v5, %s2732_s30  ;;  %v3091_v59 = vpop.permute.xlu1 %995 }
 0x23d   :  { %1488 = vrot.lane.b32.xlu1 %v2879_v9, %s2733_s3 }
 0x23f   :  { %1332 = vrot.lane.b32.xlu0 %v2854_v52, %s2733_s3 }
 0x241   :  { %1723 = vrot.lane.b32.xlu1 %v2754_v0, %s2734_s4 }
 0x243   :  { %1438 = vrot.lane.b32.xlu0 %v2794_v7, %s2732_s30 }
 0x247   :  { %1436 = vrot.lane.b32.xlu0 %v2872_v63, %s2733_s3 }
 0x280   :  { %v580_v41 = vpop.xlane.xlu1 %579 }
 0x281   :  { %2632 = vrcp.f32 %v580_v41 }
 0x282   :  { %v583_v13 = vpop.xlane.xlu0 %582 }
 0x283   :  { %2634 = vrcp.f32 %v583_v13 }
 0x284   :  { %v586_v9 = vpop.xlane.xlu1 %585 }
 0x285   :  { %2636 = vrcp.f32 %v586_v9 }
 0x288   :  { %v589_v52 = vpop.xlane.xlu0 %588 }
 0x289   :  { %v592_v42 = vpop.xlane.xlu1 %591  ;;  %2638 = vrcp.f32 %v589_v52 }
 0x28a   :  { %2640 = vrcp.f32 %v592_v42 }
 0x28b   :  { %v2633_v44 = vpop.eup %2632 }
 0x28c   :  { %v642_v53 = vmul.f32 %v2633_v44, %v2999_v21 }
 0x28d   :  { %v2635_v63 = vpop.eup %2634  ;;  %v598_v46 = vpop.xlane.xlu1 %597 }
 0x28e   :  { %v595_v58 = vpop.xlane.xlu0 %594  ;;  %v643_v48 = vmul.f32 %v2635_v63, %v3003_v30 }
 0x28f   :  { %2642 = vrcp.f32 %v595_v58  ;;  %v2637_v54 = vpop.eup %2636 }
 0x290   :  { %v658_v50 = vpack.c.bf16 %v643_v48, %v642_v53  ;;  %2644 = vrcp.f32 %v598_v46  ;;  %v644_v18 = vmul.f32 %v2637_v54, %v3009_v40 }
 0x291   :  { %v604_v55 = vpop.xlane.xlu1 %603 }
 0x292   :  { %v601_v56 = vpop.xlane.xlu0 %600  ;;  %2435 = vmatmul.mubr.msk.bf16.vlgmr.msra.gmra.mrb[16].mxu0 %vm481_vm2, %v658_v50 }
 0x293   :  { %v2639_v62 = vpop.eup %2638  ;;  %2646 = vrcp.f32 %v601_v56  ;;  %2445 = vmatpush3.bf16.msra.mxu0 %v761_v22  ;;  %2446 = vmatprep.mubr.msk.bf16.mxu0 %vm2729_vm0, %v2728_v3 }
 0x294   :  { %v645_v21 = vmul.f32 %v2639_v62, %v3015_v37  ;;  %2456 = vmatprep.subr.bf16.mxu0 %v2728_v3  ;;  %2648 = vrcp.f32 %v604_v55  ;;  %v2641_v61 = vpop.eup %2640 }
 0x295   :  { %v610_v30 = vpop.xlane.xlu1 %609  ;;  %v646_v40 = vmul.f32 %v2641_v61, %v3017_v11 }
 0x296   :  { %v607_v57 = vpop.xlane.xlu0 %606  ;;  %v659_v14 = vpack.c.bf16 %v645_v21, %v644_v18 }
 0x297   :  { %2650 = vrcp.f32 %v607_v57 }
 0x298   :  { %2441 = vmatmul.mubr.msk.bf16.vlgmr.msra.gmra.mrb[16].mxu1 %vm481_vm2, %v659_v14  ;;  %2652 = vrcp.f32 %v610_v30 }
 0x299   :  { %v2643_v17 = vpop.eup %2642  ;;  %v616_v12 = vpop.xlane.xlu1 %615  ;;  %2451 = vmatpush3.bf16.msra.mxu1 %v808_v31  ;;  %2452 = vmatprep.mubr.msk.bf16.mxu1 %vm2729_vm0, %v2728_v3 }
 0x29a   :  { %v613_v29 = vpop.xlane.xlu0 %612  ;;  %v647_v37 = vmul.f32 %v2643_v17, %v3027_v51  ;;  %2462 = vmatprep.subr.bf16.mxu1 %v2728_v3  ;;  %v2645_v23 = vpop.eup %2644 }
 0x29b   :  { %2654 = vrcp.f32 %v613_v29  ;;  %v648_v34 = vmul.f32 %v2645_v23, %v3025_v47 }
 0x29c   :  { %v660_v16 = vpack.c.bf16 %v647_v37, %v646_v40  ;;  %2656 = vrcp.f32 %v616_v12 }
 0x29d   :  { %v2647_v20 = vpop.eup %2646  ;;  %v622_v26 = vpop.xlane.xlu1 %621 }
 0x29e   :  { %v619_v24 = vpop.xlane.xlu0 %618  ;;  %v649_v27 = vmul.f32 %v2647_v20, %v3035_v60  ;;  %2447 = vmatmul.mubr.msk.bf16.vlgmr.msra.gmra.mrb[20].mxu0 %vm481_vm2, %v660_v16  ;;  %v2649_v33 = vpop.eup %2648 }
 0x29f   :  { %2457 = vmatpush3.bf16.msra.mxu0 %v855_v39  ;;  %2658 = vrcp.f32 %v619_v24  ;;  %2458 = vmatprep.mubr.msk.bf16.mxu0 %vm2729_vm0, %v2728_v3  ;;  %v650_v49 = vmul.f32 %v2649_v33, %v3037_v10 }
 0x2a0   :  { %2660 = vrcp.f32 %v622_v26  ;;  %v661_v11 = vpack.c.bf16 %v649_v27, %v648_v34  ;;  %2468 = vmatprep.subr.bf16.mxu0 %v2728_v3 }
 0x2a1   :  { %v2651_v51 = vpop.eup %2650  ;;  %v1179_v60 = vpop.permute.xlu1 %1178 }
 0x2a2   :  { %v625_v36 = vpop.xlane.xlu0 %624  ;;  %v651_v47 = vmul.f32 %v2651_v51, %v3046_v19  ;;  %2453 = vmatmul.mubr.msk.bf16.vlgmr.msra.gmra.mrb[20].mxu1 %vm481_vm2, %v661_v11  ;;  %v2653_v22 = vpop.eup %2652 }
 0x2a3   :  { %2662 = vrcp.f32 %v625_v36  ;;  %2463 = vmatpush3.bf16.msra.mxu1 %v3089_v45  ;;  %2464 = vmatprep.mubr.msk.bf16.mxu1 %vm2729_vm0, %v2728_v3  ;;  %v652_v13 = vmul.f32 %v2653_v22, %v3044_v15 }
 0x2a4   :  { %v662_v31 = vpack.c.bf16 %v651_v47, %v650_v49  ;;  %2474 = vmatprep.subr.bf16.mxu1 %v2728_v3 }
 0x2a5   :  { %v2655_v39 = vpop.eup %2654  ;;  %v1177_v9 = vpop.permute.xlu1 %1176 }
 0x2a6   :  { %v1127_v41 = vpop.permute.xlu0 %1126  ;;  %v653_v10 = vmul.f32 %v2655_v39, %v3052_v35  ;;  %2459 = vmatmul.mubr.msk.bf16.vlgmr.msra.gmra.mrb[24].mxu0 %vm481_vm2, %v662_v31  ;;  %v2657_v19 = vpop.eup %2656 }
 0x2a7   :  { %2469 = vmatpush3.bf16.msra.mxu0 %v3093_v38  ;;  %2470 = vmatprep.mubr.msk.bf16.mxu0 %vm2729_vm0, %v2728_v3  ;;  %v654_v63 = vmul.f32 %v2657_v19, %v3055_v25  ;;  %v1132_v53 = vsel %vm83_vm1, %v1127_v41, 0 }
 0x2a8   :  { %v663_v45 = vpack.c.bf16 %v653_v10, %v652_v13  ;;  %2480 = vmatprep.subr.bf16.mxu0 %v2728_v3 }
 0x2a9   :  { %v2659_v52 = vpop.eup %2658 }
 0x2aa   :  { %v1125_v42 = vpop.permute.xlu0 %1124  ;;  %v2661_v44 = vpop.eup %2660  ;;  %v655_v15 = vmul.f32 %v2659_v52, %v3063_v32  ;;  %2465 = vmatmul.mubr.msk.bf16.vlgmr.msra.gmra.mrb[24].mxu1 %vm481_vm2, %v663_v45 }
 0x2ab   :  { %2475 = vmatpush3.bf16.msra.mxu1 %v3091_v59  ;;  %2476 = vmatprep.mubr.msk.bf16.mxu1 %vm2729_vm0, %v2728_v3  ;;  %v656_v46 = vmul.f32 %v2661_v44, %v3061_v28  ;;  %v1283_v32 = vpop.permute.xlu1 %1282  ;;  %v1184_v59 = vsel %vm83_vm1, %v1179_v60, 0 }
 0x2ac   :  { %v664_v38 = vpack.c.bf16 %v655_v15, %v654_v63  ;;  %2486 = vmatprep.subr.bf16.mxu1 %v2728_v3  ;;  %v1288_v55 = vsel %vm83_vm1, %v1283_v32, 0 }
 0x2ad   :  { %v2663_v35 = vpop.eup %2662 }
 0x2ae   :  { %v657_v58 = vmul.f32 %v2663_v35, %v3069_v43  ;;  %v1231_v25 = vpop.permute.xlu0 %1230  ;;  %2471 = vmatmul.mubr.msk.bf16.vlgmr.msra.gmra.mrb[28].mxu0 %vm481_vm2, %v664_v38 }
 0x2af   :  { %2482 = vmatprep.mubr.msk.bf16.mxu0 %vm2729_vm0, %v2728_v3  ;;  %v1281_v28 = vpop.permute.xlu1 %1280  ;;  %v1236_v43 = vsel %vm83_vm1, %v1231_v25, 0 }
 0x2b0   :  { %v665_v48 = vpack.c.bf16 %v657_v58, %v656_v46  ;;  %2481 = vmatpush3.bf16.xpose.msra.mxu0 %v1132_v53 }
 0x2b1   :  { %2492 = vmatprep.subr.bf16.mxu0 %v2728_v3 }
 0x2b2   :  { %v1229_v50 = vpop.permute.xlu0 %1228  ;;  %2477 = vmatmul.mubr.msk.bf16.vlgmr.msra.gmra.mrb[28].mxu1 %vm481_vm2, %v665_v48 }
 0x2b3   :  { %2488 = vmatprep.mubr.msk.bf16.mxu1 %vm2729_vm0, %v2728_v3  ;;  %v1387_v56 = vpop.permute.xlu1 %1386 }
 0x2b4   :  { %2487 = vmatpush3.bf16.xpose.msra.mxu1 %v1184_v59  ;;  %v1392_v30 = vsel %vm83_vm1, %v1387_v56, 0 }
 0x2b5   :  { %2498 = vmatprep.subr.bf16.mxu1 %v2728_v3 }
 0x2b6   :  { %v1335_v54 = vpop.permute.xlu0 %1334 }
 0x2b7   :  { %2483 = vmatmul.mubr.msk.bf16.vlgmr.msra.gmra.mrb[32].mxu0 %vm83_vm1, %v1125_v42  ;;  %v1340_v18 = vsel %vm83_vm1, %v1335_v54, 0  ;;  %v1385_v21 = vpop.permute.xlu1 %1384 }
 0x2b8   :  { %2493 = vmatpush3.bf16.xpose.msra.mxu0 %v1236_v43  ;;  %2494 = vmatprep.mubr.msk.bf16.mxu0 %vm2729_vm0, %v2728_v3 }
 0x2b9   :  { %2504 = vmatprep.subr.bf16.mxu0 %v2728_v3 }
 0x2ba   :  { %v1333_v62 = vpop.permute.xlu0 %1332 }
 0x2bb   :  { %2489 = vmatmul.mubr.msk.bf16.vlgmr.msra.gmra.mrb[32].mxu1 %vm83_vm1, %v1177_v9  ;;  %v1491_v61 = vpop.permute.xlu1 %1490 }
 0x2bc   :  { %2499 = vmatpush3.bf16.xpose.msra.mxu1 %v1288_v55  ;;  %2500 = vmatprep.mubr.msk.bf16.mxu1 %vm2729_vm0, %v2728_v3  ;;  %v1496_v17 = vsel %vm83_vm1, %v1491_v61, 0 }
 0x2bd   :  { %2510 = vmatprep.subr.bf16.mxu1 %v2728_v3 }
 0x2be   :  { %v1439_v57 = vpop.permute.xlu0 %1438 }
 0x2bf   :  { %2495 = vmatmul.mubr.msk.bf16.vlgmr.msra.gmra.mrb[36].mxu0 %vm83_vm1, %v1229_v50  ;;  %v1444_v14 = vsel %vm83_vm1, %v1439_v57, 0  ;;  %v1489_v29 = vpop.permute.xlu1 %1488 }
 0x2c0   :  { %2505 = vmatpush3.bf16.xpose.msra.mxu0 %v1340_v18  ;;  %2506 = vmatprep.mubr.msk.bf16.mxu0 %vm2729_vm0, %v2728_v3 }
 0x2c1   :  { %2516 = vmatprep.subr.bf16.mxu0 %v2728_v3 }
 0x2c2   :  { %v1437_v12 = vpop.permute.xlu0 %1436 }
 0x2c3   :  { %2501 = vmatmul.mubr.msk.bf16.vlgmr.msra.gmra.mrb[36].mxu1 %vm83_vm1, %v1281_v28  ;;  %v1724_v40 = vpop.permute.xlu1 %1723 }
 0x2c4   :  { %2511 = vmatpush3.bf16.xpose.msra.mxu1 %v1392_v30  ;;  %2512 = vmatprep.mubr.msk.bf16.mxu1 %vm2729_vm0, %v2728_v3  ;;  %v3250_v30 = vld [vmem:[%s3560_s1 + $0x10] sm:$0xff] }
 0x2c5   :  { %2522 = vmatprep.subr.bf16.mxu1 %v2728_v3 }
 0x2c7   :  { %2507 = vmatmul.mubr.msk.bf16.vlgmr.msra.gmra.mrb[40].mxu0 %vm83_vm1, %v1333_v62 }
 0x2c8   :  { %2517 = vmatpush3.bf16.xpose.msra.mxu0 %v1444_v14  ;;  %2518 = vmatprep.mubr.msk.bf16.mxu0 %vm2729_vm0, %v2728_v3  ;;  %v3259_v14 = vld [vmem:[%s3560_s1 + $0x18] sm:$0xff]  ;;  %s2735_s1 = smov 8  }
 0x2c9   :  { %2528 = vmatprep.subr.bf16.mxu0 %v2728_v3 }
 0x2cb   :  { %2513 = vmatmul.mubr.msk.bf16.vlgmr.msra.gmra.mrb[40].mxu1 %vm83_vm1, %v1385_v21 }
 0x2cc   :  { %2523 = vmatpush3.bf16.xpose.msra.mxu1 %v1496_v17  ;;  %2524 = vmatprep.mubr.msk.bf16.mxu1 %vm2729_vm0, %v2728_v3 }
 0x2cd   :  { %2534 = vmatprep.subr.bf16.mxu1 %v2728_v3 }
 0x2cf   :  { %2519 = vmatmul.mubr.msk.bf16.vlgmr.msra.gmra.mrb[44].mxu0 %vm83_vm1, %v1437_v12 }
 0x2d0   :  { %2530 = vmatprep.mubr.msk.bf16.mxu0 %vm2729_vm0, %v2728_v3  ;;  %2529 = vmatpush3.bf16.msra.mxu0 %v1724_v40 }
 0x2d1   :  { %2540 = vmatprep.subr.bf16.mxu0 %v2728_v3 }
 0x2d3   :  { %2525 = vmatmul.mubr.msk.bf16.vlgmr.msra.gmra.mrb[44].mxu1 %vm83_vm1, %v1489_v29 }
 0x2d4   :  { %2536 = vmatprep.mubr.msk.bf16.mxu1 %vm2729_vm0, %v2728_v3 }
 0x365   :  { %v706_v37 = vpop.f32.mrb[16].mxu0 }
 0x366   :  { %v2288_v23 = vpack.c.bf16 %v706_v37, %v706_v37  ;;  %v2436_v16 = vpop.f32.mrb[17].mxu0 }
 0x367   :  { %v709_v20 = vpop.f32.mrb[18].mxu0 }
 0x368   :  { %1107 = vst.msk [vmem:[%s3561_s2] sm:$0xf] %vm1106_vm3, %v2288_v23  ;;  %v2289_v26 = vpack.c.bf16 %v709_v20, %v709_v20  ;;  %v2437_v24 = vpop.f32.mrb[19].mxu0 }
 0x36a   :  { %1108 = vst.msk [vmem:[%s3561_s2 + $0x4] sm:$0xf] %vm1106_vm3, %v2289_v26 }
 0x36b   :  { %v753_v0 = vpop.f32.mrb[16].mxu1 }
 0x36c   :  { %v2290_v34 = vpack.c.bf16 %v753_v0, %v753_v0  ;;  %v2442_v27 = vpop.f32.mrb[17].mxu1 }
 0x36d   :  { %v756_v33 = vpop.f32.mrb[18].mxu1 }
 0x36e   :  { %1109 = vst.msk [vmem:[%s3561_s2 + $0x8] sm:$0xf] %vm1106_vm3, %v2290_v34  ;;  %v2291_v11 = vpack.c.bf16 %v756_v33, %v756_v33  ;;  %v2443_v51 = vpop.f32.mrb[19].mxu1 }
 0x370   :  { %1110 = vst.msk [vmem:[%s3561_s2 + $0xc] sm:$0xf] %vm1106_vm3, %v2291_v11 }
 0x371   :  { %v800_v36 = vpop.f32.mrb[20].mxu0 }
 0x372   :  { %v2292_v49 = vpack.c.bf16 %v800_v36, %v800_v36  ;;  %v2448_v47 = vpop.f32.mrb[21].mxu0 }
 0x373   :  { %v803_v60 = vpop.f32.mrb[22].mxu0 }
 0x374   :  { %1111 = vst.msk [vmem:[%s3561_s2 + $0x10] sm:$0xf] %vm1106_vm3, %v2292_v49  ;;  %v2293_v22 = vpack.c.bf16 %v803_v60, %v803_v60  ;;  %v2449_v31 = vpop.f32.mrb[23].mxu0 }
 0x375   :  { %v847_v39 = vpop.f32.mrb[20].mxu1 }
 0x376   :  { %1112 = vst.msk [vmem:[%s3561_s2 + $0x14] sm:$0xf] %vm1106_vm3, %v2293_v22  ;;  %v2294_v41 = vpack.c.bf16 %v847_v39, %v847_v39  ;;  %v2454_v13 = vpop.f32.mrb[21].mxu1 }
 0x377   :  { %v850_v10 = vpop.f32.mrb[22].mxu1 }
 0x378   :  { %1113 = vst.msk [vmem:[%s3561_s2 + $0x18] sm:$0xf] %vm1106_vm3, %v2294_v41  ;;  %v2295_v19 = vpack.c.bf16 %v850_v10, %v850_v10  ;;  %v2455_v45 = vpop.f32.mrb[23].mxu1 }
 0x379   :  { %v894_v9 = vpop.f32.mrb[24].mxu0 }
 0x37a   :  { %1114 = vst.msk [vmem:[%s3561_s2 + $0x1c] sm:$0xf] %vm1106_vm3, %v2295_v19  ;;  %v2296_v52 = vpack.c.bf16 %v894_v9, %v894_v9  ;;  %v2460_v42 = vpop.f32.mrb[25].mxu0 }
 0x37b   :  { %v897_v44 = vpop.f32.mrb[26].mxu0 }
 0x37c   :  { %1115 = vst.msk [vmem:[%s3561_s2 + $0x20] sm:$0xf] %vm1106_vm3, %v2296_v52  ;;  %v2297_v63 = vpack.c.bf16 %v897_v44, %v897_v44  ;;  %v2461_v15 = vpop.f32.mrb[27].mxu0 }
 0x37d   :  { %v941_v35 = vpop.f32.mrb[24].mxu1 }
 0x37e   :  { %1116 = vst.msk [vmem:[%s3561_s2 + $0x24] sm:$0xf] %vm1106_vm3, %v2297_v63  ;;  %v2298_v38 = vpack.c.bf16 %v941_v35, %v941_v35  ;;  %v2466_v46 = vpop.f32.mrb[25].mxu1 }
 0x37f   :  { %v944_v58 = vpop.f32.mrb[26].mxu1 }
 0x380   :  { %1117 = vst.msk [vmem:[%s3561_s2 + $0x28] sm:$0xf] %vm1106_vm3, %v2298_v38  ;;  %v2299_v53 = vpack.c.bf16 %v944_v58, %v944_v58  ;;  %v2467_v25 = vpop.f32.mrb[27].mxu1 }
 0x381   :  { %v988_v32 = vpop.f32.mrb[28].mxu0 }
 0x382   :  { %1118 = vst.msk [vmem:[%s3561_s2 + $0x2c] sm:$0xf] %vm1106_vm3, %v2299_v53  ;;  %v2300_v48 = vpack.c.bf16 %v988_v32, %v988_v32  ;;  %v2472_v59 = vpop.f32.mrb[29].mxu0 }
 0x383   :  { %v991_v50 = vpop.f32.mrb[30].mxu0 }
 0x384   :  { %1119 = vst.msk [vmem:[%s3561_s2 + $0x30] sm:$0xf] %vm1106_vm3, %v2300_v48  ;;  %v2301_v28 = vpack.c.bf16 %v991_v50, %v991_v50  ;;  %v2473_v43 = vpop.f32.mrb[31].mxu0 }
 0x385   :  { %v1035_v54 = vpop.f32.mrb[28].mxu1 }
 0x386   :  { %1120 = vst.msk [vmem:[%s3561_s2 + $0x34] sm:$0xf] %vm1106_vm3, %v2301_v28  ;;  %v2302_v55 = vpack.c.bf16 %v1035_v54, %v1035_v54  ;;  %v2478_v56 = vpop.f32.mrb[29].mxu1 }
 0x387   :  { %v1038_v62 = vpop.f32.mrb[30].mxu1 }
 0x388   :  { %1121 = vst.msk [vmem:[%s3561_s2 + $0x38] sm:$0xf] %vm1106_vm3, %v2302_v55  ;;  %v2303_v18 = vpack.c.bf16 %v1038_v62, %v1038_v62  ;;  %v2479_v21 = vpop.f32.mrb[31].mxu1 }
 0x38a   :  { %1122 = vst.msk [vmem:[%s3561_s2 + $0x3c] sm:$0xf] %vm1106_vm3, %v2303_v18  ;;  %v1168_v57 = vpop.f32.mrb[32].mxu0 }
 0x38b   :  { %v3262_v61 = vadd.f32 %v1168_v57, %v3250_v30  ;;  %v2484_v17 = vpop.f32.mrb[33].mxu0 }
 0x38c   :  { %v1171_v12 = vpop.f32.mrb[34].mxu0 }
 0x38d   :  { %v3265_v29 = vadd.f32 %v1171_v12, %v3259_v14  ;;  %v2485_v40 = vpop.f32.mrb[35].mxu0  ;;  %v1539_v37 = vsel %vm481_vm2, %v3262_v61, -inf }
 0x38e   :  { %v1220_v23 = vpop.f32.mrb[32].mxu1  ;;  %1540 = vmax.xlane.f32.xlu0 %v1539_v37 }
 0x38f   :  { %v3270_v16 = vadd.f32 %v1220_v23, %v3250_v30  ;;  %v2490_v20 = vpop.f32.mrb[33].mxu1  ;;  %v1542_v26 = vsel %vm481_vm2, %v3265_v29, -inf }
 0x390   :  { %v1223_v24 = vpop.f32.mrb[34].mxu1  ;;  %1543 = vmax.xlane.f32.xlu1 %v1542_v26 }
 0x391   :  { %v3275_v0 = vadd.f32 %v1223_v24, %v3259_v14  ;;  %v2491_v34 = vpop.f32.mrb[35].mxu1  ;;  %v1545_v27 = vsel %vm481_vm2, %v3270_v16, -inf }
 0x392   :  { %1546 = vmax.xlane.f32.xlu0 %v1545_v27  ;;  %v1272_v33 = vpop.f32.mrb[36].mxu0 }
 0x393   :  { %v3280_v11 = vadd.f32 %v1272_v33, %v3250_v30  ;;  %v2496_v51 = vpop.f32.mrb[37].mxu0  ;;  %v1548_v60 = vsel %vm481_vm2, %v3275_v0, -inf }
 0x394   :  { %v1275_v36 = vpop.f32.mrb[38].mxu0 }
 0x395   :  { %v3283_v49 = vadd.f32 %v1275_v36, %v3259_v14  ;;  %v2497_v47 = vpop.f32.mrb[39].mxu0  ;;  %v1551_v22 = vsel %vm481_vm2, %v3280_v11, -inf }
 0x396   :  { %v1324_v31 = vpop.f32.mrb[36].mxu1  ;;  %1549 = vmax.xlane.f32.xlu0 %v1548_v60  ;;  %1552 = vmax.xlane.f32.xlu1 %v1551_v22 }
 0x397   :  { %v3290_v39 = vadd.f32 %v1324_v31, %v3250_v30  ;;  %v2502_v41 = vpop.f32.mrb[37].mxu1  ;;  %v1554_v9 = vsel %vm481_vm2, %v3283_v49, -inf }
 0x398   :  { %v1327_v13 = vpop.f32.mrb[38].mxu1 }
 0x399   :  { %v3293_v10 = vadd.f32 %v1327_v13, %v3259_v14  ;;  %v2503_v19 = vpop.f32.mrb[39].mxu1  ;;  %v1557_v45 = vsel %vm481_vm2, %v3290_v39, -inf }
 0x39a   :  { %1558 = vmax.xlane.f32.xlu1 %v1557_v45  ;;  %1555 = vmax.xlane.f32.xlu0 %v1554_v9  ;;  %v1376_v52 = vpop.f32.mrb[40].mxu0 }
 0x39b   :  { %v3300_v42 = vadd.f32 %v1376_v52, %v3250_v30  ;;  %v2508_v44 = vpop.f32.mrb[41].mxu0  ;;  %v1560_v38 = vsel %vm481_vm2, %v3293_v10, -inf }
 0x39c   :  { %v1379_v63 = vpop.f32.mrb[42].mxu0 }
 0x39d   :  { %v3303_v15 = vadd.f32 %v1379_v63, %v3259_v14  ;;  %v2509_v35 = vpop.f32.mrb[43].mxu0  ;;  %v1563_v46 = vsel %vm481_vm2, %v3300_v42, -inf }
 0x39e   :  { %v1428_v58 = vpop.f32.mrb[40].mxu1  ;;  %1561 = vmax.xlane.f32.xlu0 %v1560_v38  ;;  %1564 = vmax.xlane.f32.xlu1 %v1563_v46 }
 0x39f   :  { %v3310_v53 = vadd.f32 %v1428_v58, %v3250_v30  ;;  %v2514_v25 = vpop.f32.mrb[41].mxu1  ;;  %v1566_v28 = vsel %vm481_vm2, %v3303_v15, -inf }
 0x3a0   :  { %v1431_v32 = vpop.f32.mrb[42].mxu1 }
 0x3a1   :  { %v3313_v48 = vadd.f32 %v1431_v32, %v3259_v14  ;;  %v2515_v59 = vpop.f32.mrb[43].mxu1  ;;  %v1569_v50 = vsel %vm481_vm2, %v3310_v53, -inf }
 0x3a2   :  { %1570 = vmax.xlane.f32.xlu1 %v1569_v50  ;;  %1567 = vmax.xlane.f32.xlu0 %v1566_v28  ;;  %v1480_v43 = vpop.f32.mrb[44].mxu0 }
 0x3a3   :  { %v3320_v54 = vadd.f32 %v1480_v43, %v3250_v30  ;;  %v2520_v55 = vpop.f32.mrb[45].mxu0  ;;  %v1572_v21 = vsel %vm481_vm2, %v3313_v48, -inf }
 0x3a4   :  { %v1483_v56 = vpop.f32.mrb[46].mxu0 }
 0x3a5   :  { %v3323_v62 = vadd.f32 %v1483_v56, %v3259_v14  ;;  %v2521_v18 = vpop.f32.mrb[47].mxu0  ;;  %v1575_v57 = vsel %vm481_vm2, %v3320_v54, -inf }
 0x3a6   :  { %v1532_v17 = vpop.f32.mrb[44].mxu1  ;;  %1573 = vmax.xlane.f32.xlu0 %v1572_v21  ;;  %1576 = vmax.xlane.f32.xlu1 %v1575_v57 }
 0x3a7   :  { %v3330_v12 = vadd.f32 %v1532_v17, %v3250_v30  ;;  %v2526_v40 = vpop.f32.mrb[45].mxu1  ;;  %v1578_v24 = vsel %vm481_vm2, %v3323_v62, -inf }
 0x3a8   :  { %v1535_v37 = vpop.f32.mrb[46].mxu1 }
 0x3a9   :  { %v3333_v23 = vadd.f32 %v1535_v37, %v3259_v14  ;;  %v2527_v20 = vpop.f32.mrb[47].mxu1  ;;  %v1581_v26 = vsel %vm481_vm2, %v3330_v12, -inf }
 0x3aa   :  { %1582 = vmax.xlane.f32.xlu1 %v1581_v26  ;;  %1579 = vmax.xlane.f32.xlu0 %v1578_v24 }
 0x3ab   :  { %v1584_v34 = vsel %vm481_vm2, %v3333_v23, -inf }
 0x3ae   :  { %1585 = vmax.xlane.f32.xlu0 %v1584_v34 }
 0x3bb   :  { %1817 = vrot.lane.b32.xlu1 %v2764_v2, %s2734_s4 }
 0x3bf   :  { %1864 = vrot.lane.b32.xlu1 %v2771_v4, %s2734_s4 }
 0x3c3   :  { %1958 = vrot.lane.b32.xlu1 %v2787_v6, %s2734_s4 }
 0x3c4   :  { %1770 = vrot.lane.b32.xlu0 %v2759_v1, %s2734_s4 }
 0x3c8   :  { %1911 = vrot.lane.b32.xlu0 %v2782_v5, %s2734_s4 }
 0x41b   :  { %v1541_v30 = vpop.xlane.xlu0 %1540 }
 0x41c   :  { %v1587_v14 = vsub.f32 %v3262_v61, %v1541_v30 }
 0x41d   :  { %v1544_v27 = vpop.xlane.xlu1 %1543 }
 0x41e   :  { %v1603_v33 = vmul.f32 1.442695, %v1587_v14  ;;  %v1588_v51 = vsub.f32 %v3265_v29, %v1544_v27 }
 0x41f   :  { %v1547_v2 = vpop.xlane.xlu0 %1546 }
 0x420   :  { %2664 = vpow2.f32 %v1603_v33  ;;  %v1605_v36 = vmul.f32 1.442695, %v1588_v51  ;;  %v1589_v4 = vsub.f32 %v3270_v16, %v1547_v2 }
 0x422   :  { %2666 = vpow2.f32 %v1605_v36  ;;  %v1607_v6 = vmul.f32 1.442695, %v1589_v4 }
 0x423   :  { %v1550_v47 = vpop.xlane.xlu0 %1549  ;;  %v1553_v60 = vpop.xlane.xlu1 %1552 }
 0x424   :  { %2668 = vpow2.f32 %v1607_v6  ;;  %v1590_v1 = vsub.f32 %v3275_v0, %v1550_v47  ;;  %v1591_v5 = vsub.f32 %v3280_v11, %v1553_v60 }
 0x426   :  { %v1609_v22 = vmul.f32 1.442695, %v1590_v1  ;;  %v1611_v61 = vmul.f32 1.442695, %v1591_v5 }
 0x427   :  { %v1559_v31 = vpop.xlane.xlu1 %1558  ;;  %v1556_v41 = vpop.xlane.xlu0 %1555 }
 0x428   :  { %2670 = vpow2.f32 %v1609_v22  ;;  %v1593_v29 = vsub.f32 %v3290_v39, %v1559_v31  ;;  %v1592_v13 = vsub.f32 %v3283_v49, %v1556_v41 }
 0x429   :  { %2672 = vpow2.f32 %v1611_v61 }
 0x42a   :  { %v3358_v16 = vpop.eup %2664  ;;  %v1615_v19 = vmul.f32 1.442695, %v1593_v29  ;;  %v1613_v45 = vmul.f32 1.442695, %v1592_v13 }
 0x42b   :  { %v1562_v9 = vpop.xlane.xlu0 %1561  ;;  %v1565_v52 = vpop.xlane.xlu1 %1564  ;;  %v1635_v0 = vsel %vm481_vm2, %v3358_v16, 0.0 }
 0x42c   :  { %v3362_v11 = vpop.eup %2666  ;;  %2674 = vpow2.f32 %v1615_v19  ;;  %v1594_v44 = vsub.f32 %v3293_v10, %v1562_v9  ;;  %v1595_v63 = vsub.f32 %v3300_v42, %v1565_v52  ;;  %1636 = vadd.xlane.f32.xlu1 %v1635_v0 }
 0x42d   :  { %2676 = vpow2.f32 %v1613_v45  ;;  %v1638_v49 = vsel %vm481_vm2, %v3362_v11, 0.0 }
 0x42e   :  { %v3368_v39 = vpop.eup %2668  ;;  %v1617_v35 = vmul.f32 1.442695, %v1594_v44  ;;  %v1619_v38 = vmul.f32 1.442695, %v1595_v63  ;;  %1639 = vadd.xlane.f32.xlu0 %v1638_v49 }
 0x42f   :  { %v1571_v46 = vpop.xlane.xlu1 %1570  ;;  %v1568_v58 = vpop.xlane.xlu0 %1567  ;;  %v1641_v25 = vsel %vm481_vm2, %v3368_v39, 0.0 }
 0x430   :  { %2678 = vpow2.f32 %v1617_v35  ;;  %v1597_v10 = vsub.f32 %v3310_v53, %v1571_v46  ;;  %v1596_v42 = vsub.f32 %v3303_v15, %v1568_v58  ;;  %1642 = vadd.xlane.f32.xlu1 %v1641_v25 }
 0x431   :  { %2680 = vpow2.f32 %v1619_v38 }
 0x432   :  { %v3374_v32 = vpop.eup %2670  ;;  %v1623_v59 = vmul.f32 1.442695, %v1597_v10  ;;  %v1621_v50 = vmul.f32 1.442695, %v1596_v42 }
 0x433   :  { %v3376_v28 = vpop.eup %2672  ;;  %v1574_v43 = vpop.xlane.xlu0 %1573  ;;  %v1644_v56 = vsel %vm481_vm2, %v3374_v32, 0.0 }
 0x434   :  { %v1577_v55 = vpop.xlane.xlu1 %1576  ;;  %2682 = vpow2.f32 %v1623_v59  ;;  %v1598_v18 = vsub.f32 %v3313_v48, %v1574_v43  ;;  %v1647_v15 = vsel %vm481_vm2, %v3376_v28, 0.0  ;;  %1645 = vadd.xlane.f32.xlu0 %v1644_v56 }
 0x435   :  { %v1599_v53 = vsub.f32 %v3320_v54, %v1577_v55  ;;  %2684 = vpow2.f32 %v1621_v50  ;;  %1648 = vadd.xlane.f32.xlu1 %v1647_v15 }
 0x436   :  { %v3384_v21 = vpop.eup %2674  ;;  %v1625_v57 = vmul.f32 1.442695, %v1598_v18 }
 0x437   :  { %v1627_v17 = vmul.f32 1.442695, %v1599_v53  ;;  %v3386_v40 = vpop.eup %2676  ;;  %v1580_v20 = vpop.xlane.xlu0 %1579  ;;  %v1653_v26 = vsel %vm481_vm2, %v3384_v21, 0.0 }
 0x438   :  { %v1583_v37 = vpop.xlane.xlu1 %1582  ;;  %2686 = vpow2.f32 %v1625_v57  ;;  %v1600_v54 = vsub.f32 %v3323_v62, %v1580_v20  ;;  %v1650_v24 = vsel %vm481_vm2, %v3386_v40, 0.0 }
 0x439   :  { %v1601_v48 = vsub.f32 %v3330_v12, %v1583_v37  ;;  %2688 = vpow2.f32 %v1627_v17  ;;  %1654 = vadd.xlane.f32.xlu1 %v1653_v26  ;;  %1651 = vadd.xlane.f32.xlu0 %v1650_v24 }
 0x43a   :  { %v3394_v34 = vpop.eup %2678  ;;  %v1629_v14 = vmul.f32 1.442695, %v1600_v54 }
 0x43b   :  { %v1631_v30 = vmul.f32 1.442695, %v1601_v48  ;;  %v3396_v27 = vpop.eup %2680  ;;  %v1586_v33 = vpop.xlane.xlu0 %1585  ;;  %v1656_v51 = vsel %vm481_vm2, %v3394_v34, 0.0 }
 0x43c   :  { %v1602_v12 = vsub.f32 %v3333_v23, %v1586_v33  ;;  %v1659_v62 = vsel %vm481_vm2, %v3396_v27, 0.0  ;;  %v1818_v45 = vpop.permute.xlu1 %1817 }
 0x43d   :  { %2690 = vpow2.f32 %v1631_v30  ;;  %1660 = vadd.xlane.f32.xlu1 %v1659_v62  ;;  %1657 = vadd.xlane.f32.xlu0 %v1656_v51 }
 0x43e   :  { %2692 = vpow2.f32 %v1629_v14  ;;  %v3403_v2 = vpop.eup %2682  ;;  %v1633_v36 = vmul.f32 1.442695, %v1602_v12 }
 0x43f   :  { %v3405_v4 = vpop.eup %2684  ;;  %v1665_v6 = vsel %vm481_vm2, %v3403_v2, 0.0  ;;  %v1771_v47 = vpop.permute.xlu0 %1770 }
 0x440   :  { %2694 = vpow2.f32 %v1633_v36  ;;  %v1662_v60 = vsel %vm481_vm2, %v3405_v4, 0.0  ;;  %2535 = vmatpush3.bf16.msra.mxu1 %v1771_v47  ;;  %v1865_v9 = vpop.permute.xlu1 %1864 }
 0x441   :  { %1666 = vadd.xlane.f32.xlu1 %v1665_v6  ;;  %1663 = vadd.xlane.f32.xlu0 %v1662_v60 }
 0x442   :  { %v3411_v23 = vpop.eup %2686  ;;  %2546 = vmatprep.subr.bf16.mxu1 %v2728_v3 }
 0x443   :  { %v3414_v1 = vpop.eup %2688  ;;  %v1668_v5 = vsel %vm481_vm2, %v3411_v23, 0.0  ;;  %v1912_v0 = vpop.permute.xlu0 %1911 }
 0x444   :  { %v1671_v22 = vsel %vm481_vm2, %v3414_v1, 0.0  ;;  %v3436_v52 = vpop.permute.xlu1 %1958 }
 0x445   :  { %1672 = vadd.xlane.f32.xlu1 %v1671_v22  ;;  %1669 = vadd.xlane.f32.xlu0 %v1668_v5 }
 0x447   :  { %v3420_v61 = vpop.eup %2690 }
 0x448   :  { %v3422_v31 = vpop.eup %2692  ;;  %v1677_v41 = vsel %vm481_vm2, %v3420_v61, 0.0 }
 0x449   :  { %v1674_v29 = vsel %vm481_vm2, %v3422_v31, 0.0  ;;  %1678 = vadd.xlane.f32.xlu1 %v1677_v41 }
 0x44a   :  { %1675 = vadd.xlane.f32.xlu0 %v1674_v29  ;;  %v3428_v13 = vpop.eup %2694 }
 0x44b   :  { %v1680_v19 = vsel %vm481_vm2, %v3428_v13, 0.0 }
 0x44e   :  { %1681 = vadd.xlane.f32.xlu0 %v1680_v19 }
 0x45a   :  { %2052 = vrot.lane.b32.xlu1 %v2799_v8, %s2734_s4 }
 0x464   :  { %2005 = vrot.lane.b32.xlu0 %v2794_v7, %s2734_s4 }
 0x4b9   :  { %v1637_v44 = vpop.xlane.xlu1 %1636 }
 0x4ba   :  { %2696 = vrcp.f32 %v1637_v44 }
 0x4bb   :  { %v1640_v63 = vpop.xlane.xlu0 %1639 }
 0x4bc   :  { %2698 = vrcp.f32 %v1640_v63 }
 0x4bd   :  { %v1643_v49 = vpop.xlane.xlu1 %1642 }
 0x4be   :  { %2700 = vrcp.f32 %v1643_v49 }
 0x4c1   :  { %v1646_v35 = vpop.xlane.xlu0 %1645 }
 0x4c2   :  { %v1649_v38 = vpop.xlane.xlu1 %1648  ;;  %2702 = vrcp.f32 %v1646_v35 }
 0x4c3   :  { %2704 = vrcp.f32 %v1649_v38 }
 0x4c4   :  { %v2697_v46 = vpop.eup %2696 }
 0x4c5   :  { %v1699_v7 = vmul.f32 %v2697_v46, %v3358_v16 }
 0x4c6   :  { %v2699_v58 = vpop.eup %2698  ;;  %v1655_v8 = vpop.xlane.xlu1 %1654 }
 0x4c7   :  { %v1652_v25 = vpop.xlane.xlu0 %1651  ;;  %v1700_v10 = vmul.f32 %v2699_v58, %v3362_v11 }
 0x4c8   :  { %2706 = vrcp.f32 %v1652_v25  ;;  %v2701_v59 = vpop.eup %2700 }
 0x4c9   :  { %v1715_v42 = vpack.c.bf16 %v1700_v10, %v1699_v7  ;;  %2708 = vrcp.f32 %v1655_v8  ;;  %v1701_v56 = vmul.f32 %v2701_v59, %v3368_v39 }
 0x4ca   :  { %v1661_v50 = vpop.xlane.xlu1 %1660 }
 0x4cb   :  { %v1658_v43 = vpop.xlane.xlu0 %1657  ;;  %2531 = vmatmul.mubr.msk.bf16.vlgmr.msra.gmra.mrb[48].mxu0 %vm481_vm2, %v1715_v42 }
 0x4cc   :  { %v2703_v55 = vpop.eup %2702  ;;  %2710 = vrcp.f32 %v1658_v43  ;;  %2541 = vmatpush3.bf16.msra.mxu0 %v1818_v45  ;;  %2542 = vmatprep.mubr.msk.bf16.mxu0 %vm2729_vm0, %v2728_v3 }
 0x4cd   :  { %v1702_v16 = vmul.f32 %v2703_v55, %v3374_v32  ;;  %2552 = vmatprep.subr.bf16.mxu0 %v2728_v3  ;;  %2712 = vrcp.f32 %v1661_v50  ;;  %v2705_v15 = vpop.eup %2704 }
 0x4ce   :  { %v1667_v11 = vpop.xlane.xlu1 %1666  ;;  %v1703_v39 = vmul.f32 %v2705_v15, %v3376_v28 }
 0x4cf   :  { %v1664_v18 = vpop.xlane.xlu0 %1663  ;;  %v1716_v53 = vpack.c.bf16 %v1702_v16, %v1701_v56 }
 0x4d0   :  { %2714 = vrcp.f32 %v1664_v18 }
 0x4d1   :  { %2537 = vmatmul.mubr.msk.bf16.vlgmr.msra.gmra.mrb[48].mxu1 %vm481_vm2, %v1716_v53  ;;  %2716 = vrcp.f32 %v1667_v11 }
 0x4d2   :  { %v2707_v57 = vpop.eup %2706  ;;  %v1673_v17 = vpop.xlane.xlu1 %1672  ;;  %2547 = vmatpush3.bf16.msra.mxu1 %v1865_v9  ;;  %2548 = vmatprep.mubr.msk.bf16.mxu1 %vm2729_vm0, %v2728_v3 }
 0x4d3   :  { %v1670_v37 = vpop.xlane.xlu0 %1669  ;;  %v1704_v32 = vmul.f32 %v2707_v57, %v3386_v40  ;;  %2558 = vmatprep.subr.bf16.mxu1 %v2728_v3  ;;  %v2709_v20 = vpop.eup %2708 }
 0x4d4   :  { %2718 = vrcp.f32 %v1670_v37  ;;  %v1705_v30 = vmul.f32 %v2709_v20, %v3384_v21 }
 0x4d5   :  { %v1717_v26 = vpack.c.bf16 %v1704_v32, %v1703_v39  ;;  %2720 = vrcp.f32 %v1673_v17 }
 0x4d6   :  { %v2711_v48 = vpop.eup %2710  ;;  %v1679_v54 = vpop.xlane.xlu1 %1678 }
 0x4d7   :  { %v1676_v24 = vpop.xlane.xlu0 %1675  ;;  %v1706_v14 = vmul.f32 %v2711_v48, %v3394_v34  ;;  %2543 = vmatmul.mubr.msk.bf16.vlgmr.msra.gmra.mrb[52].mxu0 %vm481_vm2, %v1717_v26  ;;  %v2713_v33 = vpop.eup %2712 }
 0x4d8   :  { %2553 = vmatpush3.bf16.msra.mxu0 %v1912_v0  ;;  %2722 = vrcp.f32 %v1676_v24  ;;  %2554 = vmatprep.mubr.msk.bf16.mxu0 %vm2729_vm0, %v2728_v3  ;;  %v1707_v12 = vmul.f32 %v2713_v33, %v3396_v27 }
 0x4d9   :  { %2724 = vrcp.f32 %v1679_v54  ;;  %v1718_v28 = vpack.c.bf16 %v1706_v14, %v1705_v30  ;;  %2564 = vmatprep.subr.bf16.mxu0 %v2728_v3 }
 0x4da   :  { %v2715_v40 = vpop.eup %2714  ;;  %v2053_v60 = vpop.permute.xlu1 %2052 }
 0x4db   :  { %v1682_v51 = vpop.xlane.xlu0 %1681  ;;  %v1708_v21 = vmul.f32 %v2715_v40, %v3405_v4  ;;  %2549 = vmatmul.mubr.msk.bf16.vlgmr.msra.gmra.mrb[52].mxu1 %vm481_vm2, %v1718_v28  ;;  %v2717_v34 = vpop.eup %2716 }
 0x4dc   :  { %2726 = vrcp.f32 %v1682_v51  ;;  %2559 = vmatpush3.bf16.msra.mxu1 %v3436_v52  ;;  %2560 = vmatprep.mubr.msk.bf16.mxu1 %vm2729_vm0, %v2728_v3  ;;  %v1709_v47 = vmul.f32 %v2717_v34, %v3403_v2 }
 0x4dd   :  { %v1719_v62 = vpack.c.bf16 %v1708_v21, %v1707_v12  ;;  %2570 = vmatprep.subr.bf16.mxu1 %v2728_v3 }
 0x4de   :  { %v2719_v36 = vpop.eup %2718 }
 0x4df   :  { %v2006_v6 = vpop.permute.xlu0 %2005  ;;  %v1710_v27 = vmul.f32 %v2719_v36, %v3411_v23  ;;  %2555 = vmatmul.mubr.msk.bf16.vlgmr.msra.gmra.mrb[56].mxu0 %vm481_vm2, %v1719_v62  ;;  %v2721_v4 = vpop.eup %2720 }
 0x4e0   :  { %2565 = vmatpush3.bf16.msra.mxu0 %v2006_v6  ;;  %2566 = vmatprep.mubr.msk.bf16.mxu0 %vm2729_vm0, %v2728_v3  ;;  %v1711_v29 = vmul.f32 %v2721_v4, %v3414_v1 }
 0x4e1   :  { %v1720_v5 = vpack.c.bf16 %v1710_v27, %v1709_v47 }
 0x4e2   :  { %v2723_v22 = vpop.eup %2722 }
 0x4e3   :  { %v2725_v41 = vpop.eup %2724  ;;  %v1712_v19 = vmul.f32 %v2723_v22, %v3422_v31  ;;  %2561 = vmatmul.mubr.msk.bf16.vlgmr.msra.gmra.mrb[56].mxu1 %vm481_vm2, %v1720_v5 }
 0x4e4   :  { %2571 = vmatpush3.bf16.msra.mxu1 %v2053_v60  ;;  %2572 = vmatprep.mubr.msk.bf16.mxu1 %vm2729_vm0, %v2728_v3  ;;  %v1713_v45 = vmul.f32 %v2725_v41, %v3420_v61 }
 0x4e5   :  { %v1721_v23 = vpack.c.bf16 %v1712_v19, %v1711_v29 }
 0x4e6   :  { %v2727_v2 = vpop.eup %2726 }
 0x4e7   :  { %v1714_v9 = vmul.f32 %v2727_v2, %v3428_v13  ;;  %2567 = vmatmul.mubr.msk.bf16.vlgmr.msra.gmra.mrb[60].mxu0 %vm481_vm2, %v1721_v23 }
 0x4e9   :  { %v1722_v52 = vpack.c.bf16 %v1714_v9, %v1713_v45 }
 0x4eb   :  { %2573 = vmatmul.mubr.msk.bf16.vlgmr.msra.gmra.mrb[60].mxu1 %vm481_vm2, %v1722_v52 }
 0x59e   :  { %v1763_v1 = vpop.f32.mrb[48].mxu0 }
 0x59f   :  { %v2304_v0 = vpack.c.bf16 %v1763_v1, %v1763_v1  ;;  %v2532_v31 = vpop.f32.mrb[49].mxu0 }
 0x5a0   :  { %v1766_v44 = vpop.f32.mrb[50].mxu0 }
 0x5a1   :  { %v2305_v63 = vpack.c.bf16 %v1766_v44, %v1766_v44  ;;  %2147 = vrot.lane.b32.xlu0 %v2304_v0, %s2735_s1  ;;  %v2533_v3 = vpop.f32.mrb[51].mxu0 }
 0x5a3   :  { %2149 = vrot.lane.b32.xlu1 %v2305_v63, %s2735_s1 }
 0x5a4   :  { %v1810_v49 = vpop.f32.mrb[48].mxu1 }
 0x5a5   :  { %v2306_v61 = vpack.c.bf16 %v1810_v49, %v1810_v49  ;;  %v2538_v35 = vpop.f32.mrb[49].mxu1 }
 0x5a6   :  { %v1813_v13 = vpop.f32.mrb[50].mxu1 }
 0x5a7   :  { %v2307_v38 = vpack.c.bf16 %v1813_v13, %v1813_v13  ;;  %v2539_v46 = vpop.f32.mrb[51].mxu1  ;;  %2151 = vrot.lane.b32.xlu0 %v2306_v61, %s2735_s1 }
 0x5a9   :  { %2153 = vrot.lane.b32.xlu1 %v2307_v38, %s2735_s1 }
 0x5aa   :  { %v1857_v58 = vpop.f32.mrb[52].mxu0 }
 0x5ab   :  { %v2308_v8 = vpack.c.bf16 %v1857_v58, %v1857_v58  ;;  %v2544_v25 = vpop.f32.mrb[53].mxu0 }
 0x5ac   :  { %v1860_v7 = vpop.f32.mrb[54].mxu0 }
 0x5ad   :  { %v2309_v10 = vpack.c.bf16 %v1860_v7, %v1860_v7  ;;  %2155 = vrot.lane.b32.xlu0 %v2308_v8, %s2735_s1  ;;  %v2545_v42 = vpop.f32.mrb[55].mxu0 }
 0x5ae   :  { %v1904_v59 = vpop.f32.mrb[52].mxu1 }
 0x5af   :  { %v2310_v50 = vpack.c.bf16 %v1904_v59, %v1904_v59  ;;  %v2550_v43 = vpop.f32.mrb[53].mxu1  ;;  %2157 = vrot.lane.b32.xlu1 %v2309_v10, %s2735_s1 }
 0x5b0   :  { %v1907_v55 = vpop.f32.mrb[54].mxu1 }
 0x5b1   :  { %v2311_v56 = vpack.c.bf16 %v1907_v55, %v1907_v55  ;;  %v2551_v16 = vpop.f32.mrb[55].mxu1  ;;  %2159 = vrot.lane.b32.xlu0 %v2310_v50, %s2735_s1 }
 0x5b2   :  { %v1951_v11 = vpop.f32.mrb[56].mxu0 }
 0x5b3   :  { %v2312_v18 = vpack.c.bf16 %v1951_v11, %v1951_v11  ;;  %2161 = vrot.lane.b32.xlu1 %v2311_v56, %s2735_s1  ;;  %v2556_v53 = vpop.f32.mrb[57].mxu0 }
 0x5b4   :  { %v1954_v15 = vpop.f32.mrb[58].mxu0 }
 0x5b5   :  { %v2313_v57 = vpack.c.bf16 %v1954_v15, %v1954_v15  ;;  %2163 = vrot.lane.b32.xlu0 %v2312_v18, %s2735_s1  ;;  %v2557_v17 = vpop.f32.mrb[59].mxu0 }
 0x5b6   :  { %v1998_v37 = vpop.f32.mrb[56].mxu1 }
 0x5b7   :  { %v2314_v39 = vpack.c.bf16 %v1998_v37, %v1998_v37  ;;  %v2562_v32 = vpop.f32.mrb[57].mxu1  ;;  %2165 = vrot.lane.b32.xlu1 %v2313_v57, %s2735_s1 }
 0x5b8   :  { %v2001_v20 = vpop.f32.mrb[58].mxu1 }
 0x5b9   :  { %v2315_v26 = vpack.c.bf16 %v2001_v20, %v2001_v20  ;;  %v2563_v48 = vpop.f32.mrb[59].mxu1  ;;  %2167 = vrot.lane.b32.xlu0 %v2314_v39, %s2735_s1 }
 0x5ba   :  { %v2045_v54 = vpop.f32.mrb[60].mxu0 }
 0x5bb   :  { %v2316_v24 = vpack.c.bf16 %v2045_v54, %v2045_v54  ;;  %2169 = vrot.lane.b32.xlu1 %v2315_v26, %s2735_s1  ;;  %v2568_v30 = vpop.f32.mrb[61].mxu0 }
 0x5bc   :  { %v2048_v14 = vpop.f32.mrb[62].mxu0 }
 0x5bd   :  { %v2317_v33 = vpack.c.bf16 %v2048_v14, %v2048_v14  ;;  %2171 = vrot.lane.b32.xlu0 %v2316_v24, %s2735_s1  ;;  %v2569_v28 = vpop.f32.mrb[63].mxu0 }
 0x5be   :  { %v2092_v40 = vpop.f32.mrb[60].mxu1 }
 0x5bf   :  { %v2318_v51 = vpack.c.bf16 %v2092_v40, %v2092_v40  ;;  %v2574_v12 = vpop.f32.mrb[61].mxu1  ;;  %2173 = vrot.lane.b32.xlu1 %v2317_v33, %s2735_s1 }
 0x5c0   :  { %v2095_v21 = vpop.f32.mrb[62].mxu1 }
 0x5c1   :  { %v2319_v34 = vpack.c.bf16 %v2095_v21, %v2095_v21  ;;  %v2575_v62 = vpop.f32.mrb[63].mxu1  ;;  %2175 = vrot.lane.b32.xlu0 %v2318_v51, %s2735_s1 }
 0x5c3   :  { %2177 = vrot.lane.b32.xlu1 %v2319_v34, %s2735_s1 }
 0x613   :  { %v2148_v36 = vpop.permute.xlu0 %2147 }
 0x614   :  { %2196 = vst.msk [vmem:[%s3561_s2] sm:$0xf] %vm2195_vm4, %v2148_v36 }
 0x615   :  { %v2150_v6 = vpop.permute.xlu1 %2149 }
 0x616   :  { %2197 = vst.msk [vmem:[%s3561_s2 + $0x4] sm:$0xf] %vm2195_vm4, %v2150_v6 }
 0x619   :  { %v2152_v47 = vpop.permute.xlu0 %2151 }
 0x61a   :  { %2198 = vst.msk [vmem:[%s3561_s2 + $0x8] sm:$0xf] %vm2195_vm4, %v2152_v47 }
 0x61b   :  { %v2154_v27 = vpop.permute.xlu1 %2153 }
 0x61c   :  { %2199 = vst.msk [vmem:[%s3561_s2 + $0xc] sm:$0xf] %vm2195_vm4, %v2154_v27 }
 0x61f   :  { %v2156_v4 = vpop.permute.xlu0 %2155 }
 0x620   :  { %2200 = vst.msk [vmem:[%s3561_s2 + $0x10] sm:$0xf] %vm2195_vm4, %v2156_v4 }
 0x621   :  { %v2158_v60 = vpop.permute.xlu1 %2157 }
 0x622   :  { %2201 = vst.msk [vmem:[%s3561_s2 + $0x14] sm:$0xf] %vm2195_vm4, %v2158_v60 }
 0x623   :  { %v2160_v5 = vpop.permute.xlu0 %2159 }
 0x624   :  { %2202 = vst.msk [vmem:[%s3561_s2 + $0x18] sm:$0xf] %vm2195_vm4, %v2160_v5 }
 0x625   :  { %v2162_v22 = vpop.permute.xlu1 %2161 }
 0x626   :  { %2203 = vst.msk [vmem:[%s3561_s2 + $0x1c] sm:$0xf] %vm2195_vm4, %v2162_v22 }
 0x627   :  { %v2164_v41 = vpop.permute.xlu0 %2163 }
 0x628   :  { %2204 = vst.msk [vmem:[%s3561_s2 + $0x20] sm:$0xf] %vm2195_vm4, %v2164_v41 }
 0x629   :  { %v2166_v29 = vpop.permute.xlu1 %2165 }
 0x62a   :  { %2205 = vst.msk [vmem:[%s3561_s2 + $0x24] sm:$0xf] %vm2195_vm4, %v2166_v29 }
 0x62b   :  { %v2168_v19 = vpop.permute.xlu0 %2167 }
 0x62c   :  { %2206 = vst.msk [vmem:[%s3561_s2 + $0x28] sm:$0xf] %vm2195_vm4, %v2168_v19 }
 0x62d   :  { %v2170_v2 = vpop.permute.xlu1 %2169 }
 0x62e   :  { %2207 = vst.msk [vmem:[%s3561_s2 + $0x2c] sm:$0xf] %vm2195_vm4, %v2170_v2 }
 0x62f   :  { %v2172_v23 = vpop.permute.xlu0 %2171 }
 0x630   :  { %2208 = vst.msk [vmem:[%s3561_s2 + $0x30] sm:$0xf] %vm2195_vm4, %v2172_v23 }
 0x631   :  { %v2174_v45 = vpop.permute.xlu1 %2173 }
 0x632   :  { %2209 = vst.msk [vmem:[%s3561_s2 + $0x34] sm:$0xf] %vm2195_vm4, %v2174_v45 }
 0x633   :  { %v2176_v9 = vpop.permute.xlu0 %2175 }
 0x634   :  { %2210 = vst.msk [vmem:[%s3561_s2 + $0x38] sm:$0xf] %vm2195_vm4, %v2176_v9 }
 0x635   :  { %v2178_v52 = vpop.permute.xlu1 %2177 }
 0x636   :  { %2211 = vst.msk [vmem:[%s3561_s2 + $0x3c] sm:$0xf] %vm2195_vm4, %v2178_v52 }

// kernel: _lambda_.28
= control target key start
LH: loop header
LB: loop body
LE: loop exit
PB: predicated region body
PF: predicated region fallthrough
CT: control target
= control target key end

     0   :  { %vm113_vm0 = vcmask 523264   ;;  %vm347_vm1 = vcmask 125952   ;;  %s694_s1 = inlined_call_operand.vmem [shape: bf16[64,16], index: 1, kind: input, shape index: {}]   ;;  %s695_s0 = inlined_call_operand.vmem [shape: bf16[128,64], index: 0, kind: input, shape index: {}]   ;;  %s696_s3 = inlined_call_operand.vmem [shape: bf16[128,16], index: 3, kind: input, shape index: {}]   ;;  %s697_s2 = inlined_call_operand.vmem [shape: f32[1,16], index: 2, kind: input, shape index: {}]   ;;  %s698_s4 = inlined_call_operand.vmem [shape: bf16[128,16], index: 4, kind: output, shape index: {}]  }
   0x1   :  { %v504_v0 = vld [vmem:[%s694_s1] sm:$0xff]   ;;  %v505_v1 = vld [vmem:[%s694_s1 + $0x8] sm:$0xff]   ;;  %v506_v2 = vld [vmem:[%s694_s1 + $0x10] sm:$0xff]  }
   0x2   :  { %472 = vmatprep.subr.bf16.mxu0 %v504_v0  ;;  %496 = vmatprep.subr.bf16.mxu1 %v504_v0  ;;  %v508_v3 = vld [vmem:[%s695_s0] sm:$0xff]   ;;  %v507_v5 = vld [vmem:[%s694_s1 + $0x18] sm:$0xff]   ;;  %v510_v6 = vld [vmem:[%s695_s0 + $0x8] sm:$0xff]  }
   0x3   :  { %473 = vmatpush3.bf16.msra.mxu0 %v504_v0  ;;  %500 = vmatpush3.bf16.msra.mxu1 %v504_v0  ;;  %v509_v4 = vld [vmem:[%s695_s0 + $0x20] sm:$0xff]   ;;  %v511_v7 = vld [vmem:[%s695_s0 + $0x28] sm:$0xff]   ;;  %v512_v8 = vld [vmem:[%s695_s0 + $0x10] sm:$0xff]  }
   0x4   :  { %474 = vmatprep.subr.bf16.mxu0 %v505_v1  ;;  %497 = vmatprep.subr.bf16.mxu1 %v505_v1  ;;  %v513_v9 = vld [vmem:[%s695_s0 + $0x30] sm:$0xff]   ;;  %v514_v10 = vld [vmem:[%s695_s0 + $0x18] sm:$0xff]   ;;  %v453_v12 = vld [vmem:[%s696_s3 + $0x8] sm:$0xff]  }
   0x5   :  { %480 = vmatprep.mubr.msk.bf16.mxu0 %vm113_vm0, %v508_v3  ;;  %488 = vmatprep.mubr.msk.bf16.mxu1 %vm113_vm0, %v509_v4  ;;  %v515_v11 = vld [vmem:[%s695_s0 + $0x38] sm:$0xff]   ;;  %v457_v13 = vld [vmem:[%s696_s3 + $0x28] sm:$0xff]   ;;  %v422_v14 = vld [vmem:[%s696_s3] sm:$0xff]   ;;  %v427_v17 = vunpack.c.l.bf16 %v453_v12  ;;  %v428_v23 = vunpack.c.h.bf16 %v453_v12 }
   0x6   :  { %v456_v15 = vld [vmem:[%s696_s3 + $0x20] sm:$0xff]   ;;  %v443_v18 = vunpack.c.l.bf16 %v457_v13  ;;  %v423_v21 = vunpack.c.l.bf16 %v422_v14  ;;  %v444_v28 = vunpack.c.h.bf16 %v457_v13  ;;  %v424_v29 = vunpack.c.h.bf16 %v422_v14  ;;  %v455_v45 = vld [vmem:[%s696_s3 + $0x18] sm:$0xff]   ;;  %v454_v51 = vld [vmem:[%s696_s3 + $0x10] sm:$0xff]  }
   0x7   :  { %475 = vmatpush3.bf16.msra.mxu0 %v505_v1  ;;  %501 = vmatpush3.bf16.msra.mxu1 %v505_v1  ;;  %v600_v16 = vld [vmem:[%s697_s2] ss:$0 sm:$0xff]  ;;  %v439_v22 = vunpack.c.l.bf16 %v456_v15  ;;  %v440_v34 = vunpack.c.h.bf16 %v456_v15  ;;  %v459_v46 = vld [vmem:[%s696_s3 + $0x38] sm:$0xff]   ;;  %v458_v52 = vld [vmem:[%s696_s3 + $0x30] sm:$0xff]   ;;  %v435_v59 = vunpack.c.l.bf16 %v455_v45  ;;  %v431_v1 = vunpack.c.l.bf16 %v454_v51 }
   0x8   :  { %476 = vmatprep.subr.bf16.mxu0 %v506_v2  ;;  %498 = vmatprep.subr.bf16.mxu1 %v506_v2  ;;  %v451_v60 = vunpack.c.l.bf16 %v459_v46  ;;  %v432_v13 = vunpack.c.h.bf16 %v454_v51  ;;  %v448_v14 = vunpack.c.h.bf16 %v458_v52 }
   0xb   :  { %477 = vmatpush3.bf16.msra.mxu0 %v506_v2  ;;  %502 = vmatpush3.bf16.msra.mxu1 %v506_v2  ;;  %v447_v2 = vunpack.c.l.bf16 %v458_v52 }
   0xc   :  { %478 = vmatprep.subr.bf16.mxu0 %v507_v5  ;;  %499 = vmatprep.subr.bf16.mxu1 %v507_v5 }
   0xf   :  { %479 = vmatpush3.bf16.msra.mxu0 %v507_v5  ;;  %503 = vmatpush3.bf16.msra.mxu1 %v507_v5 }
  0x12   :  { %481 = vmatmul.mubr.msk.bf16.vlgmr.msra.gmra.mrb[0].mxu0 %vm113_vm0, %v510_v6  ;;  %489 = vmatmul.mubr.msk.bf16.vlgmr.msra.gmra.mrb[0].mxu1 %vm113_vm0, %v511_v7  ;;  %v436_v7 = vunpack.c.h.bf16 %v455_v45 }
  0x13   :  { %484 = vmatprep.mubr.msk.bf16.mxu0 %vm113_vm0, %v512_v8  ;;  %492 = vmatprep.mubr.msk.bf16.mxu1 %vm113_vm0, %v513_v9  ;;  %v452_v8 = vunpack.c.h.bf16 %v459_v46 }
  0x1a   :  { %485 = vmatmul.mubr.msk.bf16.gmra.mrb[4].mxu0 %vm113_vm0, %v514_v10  ;;  %493 = vmatmul.mubr.msk.bf16.gmra.mrb[4].mxu1 %vm113_vm0, %v515_v11 }
  0xe5   :  { %v482_v19 = vpop.f32.mrb[0].mxu0  ;;  %v490_v20 = vpop.f32.mrb[0].mxu1 }
  0xe6   :  { %v181_v24 = vadd.f32 %v482_v19, %v600_v16  ;;  %v213_v25 = vadd.f32 %v490_v20, %v600_v16  ;;  %v172_v26 = vpop.f32.mrb[1].mxu0  ;;  %v204_v27 = vpop.f32.mrb[1].mxu1 }
  0xe7   :  { %v173_v30 = vadd.f32 %v600_v16, %v172_v26  ;;  %v205_v31 = vadd.f32 %v600_v16, %v204_v27  ;;  %v483_v32 = vpop.f32.mrb[2].mxu0  ;;  %v491_v33 = vpop.f32.mrb[2].mxu1 }
  0xe8   :  { %v269_v35 = vadd.f32 %v427_v17, %v181_v24  ;;  %v277_v36 = vadd.f32 %v443_v18, %v213_v25  ;;  %v184_v37 = vadd.f32 %v483_v32, %v600_v16  ;;  %v216_v38 = vadd.f32 %v491_v33, %v600_v16  ;;  %v175_v39 = vpop.f32.mrb[3].mxu0  ;;  %v207_v40 = vpop.f32.mrb[3].mxu1 }
  0xe9   :  { %v267_v41 = vadd.f32 %v423_v21, %v173_v30  ;;  %v275_v42 = vadd.f32 %v439_v22, %v205_v31  ;;  %v176_v43 = vadd.f32 %v600_v16, %v175_v39  ;;  %v208_v44 = vadd.f32 %v600_v16, %v207_v40 }
  0xea   :  { %v407_v47 = vpack.c.bf16 %v269_v35, %v269_v35  ;;  %v415_v48 = vpack.c.bf16 %v277_v36, %v277_v36  ;;  %v270_v49 = vadd.f32 %v428_v23, %v184_v37  ;;  %v278_v50 = vadd.f32 %v444_v28, %v216_v38 }
  0xeb   :  { %v405_v53 = vpack.c.bf16 %v267_v41, %v267_v41  ;;  %v413_v54 = vpack.c.bf16 %v275_v42, %v275_v42  ;;  %v268_v55 = vadd.f32 %v424_v29, %v176_v43  ;;  %v276_v56 = vadd.f32 %v440_v34, %v208_v44 }
  0xec   :  { %350 = vst.msk [vmem:[%s698_s4 + $0x8] sm:$0xf] %vm347_vm1, %v407_v47  ;;  %358 = vst.msk [vmem:[%s698_s4 + $0x28] sm:$0xf] %vm347_vm1, %v415_v48  ;;  %v408_v57 = vpack.c.bf16 %v270_v49, %v270_v49  ;;  %v416_v58 = vpack.c.bf16 %v278_v50, %v278_v50 }
  0xed   :  { %348 = vst.msk [vmem:[%s698_s4] sm:$0xf] %vm347_vm1, %v405_v53  ;;  %356 = vst.msk [vmem:[%s698_s4 + $0x20] sm:$0xf] %vm347_vm1, %v413_v54  ;;  %v406_v61 = vpack.c.bf16 %v268_v55, %v268_v55  ;;  %v414_v62 = vpack.c.bf16 %v276_v56, %v276_v56  ;;  %v486_v63 = vpop.f32.mrb[4].mxu0  ;;  %v494_v0 = vpop.f32.mrb[4].mxu1 }
  0xee   :  { %351 = vst.msk [vmem:[%s698_s4 + $0xc] sm:$0xf] %vm347_vm1, %v408_v57  ;;  %359 = vst.msk [vmem:[%s698_s4 + $0x2c] sm:$0xf] %vm347_vm1, %v416_v58  ;;  %v197_v3 = vadd.f32 %v486_v63, %v600_v16  ;;  %v229_v4 = vadd.f32 %v494_v0, %v600_v16  ;;  %v188_v5 = vpop.f32.mrb[5].mxu0  ;;  %v220_v6 = vpop.f32.mrb[5].mxu1 }
  0xef   :  { %349 = vst.msk [vmem:[%s698_s4 + $0x4] sm:$0xf] %vm347_vm1, %v406_v61  ;;  %357 = vst.msk [vmem:[%s698_s4 + $0x24] sm:$0xf] %vm347_vm1, %v414_v62  ;;  %v189_v9 = vadd.f32 %v600_v16, %v188_v5  ;;  %v221_v10 = vadd.f32 %v600_v16, %v220_v6  ;;  %v487_v11 = vpop.f32.mrb[6].mxu0  ;;  %v495_v12 = vpop.f32.mrb[6].mxu1 }
  0xf0   :  { %v273_v15 = vadd.f32 %v435_v59, %v197_v3  ;;  %v281_v17 = vadd.f32 %v451_v60, %v229_v4  ;;  %v200_v18 = vadd.f32 %v487_v11, %v600_v16  ;;  %v232_v19 = vadd.f32 %v495_v12, %v600_v16  ;;  %v191_v20 = vpop.f32.mrb[7].mxu0  ;;  %v223_v21 = vpop.f32.mrb[7].mxu1 }
  0xf1   :  { %v271_v22 = vadd.f32 %v431_v1, %v189_v9  ;;  %v279_v23 = vadd.f32 %v447_v2, %v221_v10  ;;  %v192_v24 = vadd.f32 %v600_v16, %v191_v20  ;;  %v224_v25 = vadd.f32 %v600_v16, %v223_v21 }
  0xf2   :  { %v411_v26 = vpack.c.bf16 %v273_v15, %v273_v15  ;;  %v419_v27 = vpack.c.bf16 %v281_v17, %v281_v17  ;;  %v274_v28 = vadd.f32 %v436_v7, %v200_v18  ;;  %v282_v29 = vadd.f32 %v452_v8, %v232_v19 }
  0xf3   :  { %v409_v30 = vpack.c.bf16 %v271_v22, %v271_v22  ;;  %v417_v31 = vpack.c.bf16 %v279_v23, %v279_v23  ;;  %v272_v32 = vadd.f32 %v432_v13, %v192_v24  ;;  %v280_v33 = vadd.f32 %v448_v14, %v224_v25 }
  0xf4   :  { %354 = vst.msk [vmem:[%s698_s4 + $0x18] sm:$0xf] %vm347_vm1, %v411_v26  ;;  %362 = vst.msk [vmem:[%s698_s4 + $0x38] sm:$0xf] %vm347_vm1, %v419_v27  ;;  %v412_v34 = vpack.c.bf16 %v274_v28, %v274_v28  ;;  %v420_v16 = vpack.c.bf16 %v282_v29, %v282_v29 }
  0xf5   :  { %352 = vst.msk [vmem:[%s698_s4 + $0x10] sm:$0xf] %vm347_vm1, %v409_v30  ;;  %360 = vst.msk [vmem:[%s698_s4 + $0x30] sm:$0xf] %vm347_vm1, %v417_v31  ;;  %v410_v35 = vpack.c.bf16 %v272_v32, %v272_v32  ;;  %v418_v36 = vpack.c.bf16 %v280_v33, %v280_v33 }
  0xf6   :  { %355 = vst.msk [vmem:[%s698_s4 + $0x1c] sm:$0xf] %vm347_vm1, %v412_v34  ;;  %363 = vst.msk [vmem:[%s698_s4 + $0x3c] sm:$0xf] %vm347_vm1, %v420_v16 }
  0xf7   :  { %353 = vst.msk [vmem:[%s698_s4 + $0x14] sm:$0xf] %vm347_vm1, %v410_v35  ;;  %361 = vst.msk [vmem:[%s698_s4 + $0x34] sm:$0xf] %vm347_vm1, %v418_v36 }

// kernel: _lambda_.27
= control target key start
LH: loop header
LB: loop body
LE: loop exit
PB: predicated region body
PF: predicated region fallthrough
CT: control target
= control target key end

     0   :  { %vm55_vm0 = vcmask 130048   ;;  %vm597_vm1 = vcmask 519168   ;;  %s1195_s0 = inlined_call_operand.vmem [shape: bf16[128,16], index: 0, kind: input, shape index: {}]   ;;  %s1196_s3 = inlined_call_operand.vmem [shape: bf16[16,64], index: 3, kind: input, shape index: {}]   ;;  %s1197_s1 = inlined_call_operand.vmem [shape: f32[1,16], index: 1, kind: input, shape index: {}]   ;;  %s1198_s2 = inlined_call_operand.vmem [shape: f32[1,16], index: 2, kind: input, shape index: {}]   ;;  %s1199_s4 = inlined_call_operand.vmem [shape: f32[1,64], index: 4, kind: input, shape index: {}]   ;;  %s1200_s5 = inlined_call_operand.vmem [shape: bf16[128,64], index: 5, kind: output, shape index: {}]  }
   0x1   :  { %v828_v0 = vld [vmem:[%s1195_s0] sm:$0xff]   ;;  %v842_v6 = vld [vmem:[%s1195_s0 + $0x8] sm:$0xff]   ;;  %v870_v18 = vld [vmem:[%s1195_s0 + $0x10] sm:$0xff]  }
   0x2   :  { %v833_v1 = vld [vmem:[%s1195_s0 + $0x20] sm:$0xff]   ;;  %v664_v2 = vunpack.c.l.bf16 %v828_v0  ;;  %v665_v4 = vunpack.c.h.bf16 %v828_v0  ;;  %v668_v11 = vunpack.c.l.bf16 %v842_v6  ;;  %v669_v12 = vunpack.c.h.bf16 %v842_v6  ;;  %v857_v13 = vld [vmem:[%s1195_s0 + $0x28] sm:$0xff]   ;;  %v883_v23 = vld [vmem:[%s1195_s0 + $0x30] sm:$0xff]  }
   0x3   :  { %v680_v3 = vunpack.c.l.bf16 %v833_v1  ;;  %v681_v5 = vunpack.c.h.bf16 %v833_v1  ;;  %v684_v16 = vunpack.c.l.bf16 %v857_v13  ;;  %v685_v17 = vunpack.c.h.bf16 %v857_v13  ;;  %v896_v28 = vld [vmem:[%s1195_s0 + $0x18] sm:$0xff]  }
   0x4   :  { %v56_v7 = vsel %vm55_vm0, %v664_v2, 0.0  ;;  %v59_v9 = vsel %vm55_vm0, %v665_v4, 0.0  ;;  %v62_v14 = vsel %vm55_vm0, %v668_v11, 0.0  ;;  %v65_v15 = vsel %vm55_vm0, %v669_v12, 0.0  ;;  %v909_v33 = vld [vmem:[%s1195_s0 + $0x38] sm:$0xff]  }
   0x5   :  { %v80_v8 = vsel %vm55_vm0, %v680_v3, 0.0  ;;  %57 = vadd.xlane.f32.xlu0 %v56_v7  ;;  %v83_v10 = vsel %vm55_vm0, %v681_v5, 0.0  ;;  %v86_v19 = vsel %vm55_vm0, %v684_v16, 0.0  ;;  %v89_v20 = vsel %vm55_vm0, %v685_v17, 0.0 }
   0x6   :  { %81 = vadd.xlane.f32.xlu1 %v80_v8  ;;  %v672_v21 = vunpack.c.l.bf16 %v870_v18  ;;  %v673_v22 = vunpack.c.h.bf16 %v870_v18  ;;  %v688_v26 = vunpack.c.l.bf16 %v883_v23  ;;  %v689_v27 = vunpack.c.h.bf16 %v883_v23 }
   0x7   :  { %v676_v31 = vunpack.c.l.bf16 %v896_v28  ;;  %v677_v32 = vunpack.c.h.bf16 %v896_v28  ;;  %v692_v36 = vunpack.c.l.bf16 %v909_v33  ;;  %v693_v37 = vunpack.c.h.bf16 %v909_v33 }
   0x8   :  { %v68_v24 = vsel %vm55_vm0, %v672_v21, 0.0  ;;  %v71_v25 = vsel %vm55_vm0, %v673_v22, 0.0  ;;  %v92_v29 = vsel %vm55_vm0, %v688_v26, 0.0  ;;  %v95_v30 = vsel %vm55_vm0, %v689_v27, 0.0 }
   0x9   :  { %60 = vadd.xlane.f32.xlu0 %v59_v9  ;;  %v74_v34 = vsel %vm55_vm0, %v676_v31, 0.0  ;;  %v77_v35 = vsel %vm55_vm0, %v677_v32, 0.0  ;;  %v98_v38 = vsel %vm55_vm0, %v692_v36, 0.0  ;;  %v101_v39 = vsel %vm55_vm0, %v693_v37, 0.0 }
   0xa   :  { %84 = vadd.xlane.f32.xlu1 %v83_v10 }
   0xd   :  { %63 = vadd.xlane.f32.xlu0 %v62_v14 }
   0xe   :  { %66 = vadd.xlane.f32.xlu1 %v65_v15 }
  0x11   :  { %87 = vadd.xlane.f32.xlu0 %v86_v19 }
  0x12   :  { %90 = vadd.xlane.f32.xlu1 %v89_v20 }
  0x15   :  { %69 = vadd.xlane.f32.xlu0 %v68_v24 }
  0x16   :  { %72 = vadd.xlane.f32.xlu1 %v71_v25 }
  0x19   :  { %93 = vadd.xlane.f32.xlu0 %v92_v29 }
  0x1a   :  { %96 = vadd.xlane.f32.xlu1 %v95_v30 }
  0x1d   :  { %75 = vadd.xlane.f32.xlu0 %v74_v34 }
  0x1e   :  { %78 = vadd.xlane.f32.xlu1 %v77_v35 }
  0x21   :  { %99 = vadd.xlane.f32.xlu0 %v98_v38 }
  0x22   :  { %102 = vadd.xlane.f32.xlu1 %v101_v39 }
  0x92   :  { %v58_v40 = vpop.xlane.xlu0 %57 }
  0x93   :  { %v82_v41 = vpop.xlane.xlu1 %81  ;;  %v105_v42 = vmul.f32 0.0625, %v58_v40 }
  0x94   :  { %v113_v43 = vmul.f32 0.0625, %v82_v41 }
  0x95   :  { %v925_v44 = vsub.f32 %v664_v2, %v105_v42 }
  0x96   :  { %v927_v45 = vsub.f32 %v680_v3, %v113_v43  ;;  %v61_v46 = vpop.xlane.xlu0 %60 }
  0x97   :  { %v85_v47 = vpop.xlane.xlu1 %84  ;;  %v106_v48 = vmul.f32 0.0625, %v61_v46  ;;  %v137_v50 = vmul.f32 %v925_v44, %v925_v44 }
  0x98   :  { %v114_v49 = vmul.f32 0.0625, %v85_v47  ;;  %v145_v51 = vmul.f32 %v927_v45, %v927_v45 }
  0x99   :  { %v935_v52 = vsub.f32 %v665_v4, %v106_v48  ;;  %v153_v54 = vsel %vm55_vm0, %v137_v50, 0.0 }
  0x9a   :  { %v939_v53 = vsub.f32 %v681_v5, %v114_v49  ;;  %154 = vadd.xlane.f32.xlu0 %v153_v54  ;;  %v64_v55 = vpop.xlane.xlu0 %63  ;;  %v177_v57 = vsel %vm55_vm0, %v145_v51, 0.0 }
  0x9b   :  { %v67_v56 = vpop.xlane.xlu1 %66  ;;  %v107_v58 = vmul.f32 0.0625, %v64_v55  ;;  %v138_v60 = vmul.f32 %v935_v52, %v935_v52 }
  0x9c   :  { %v108_v59 = vmul.f32 0.0625, %v67_v56  ;;  %v146_v61 = vmul.f32 %v939_v53, %v939_v53 }
  0x9d   :  { %v949_v62 = vsub.f32 %v668_v11, %v107_v58  ;;  %v156_v0 = vsel %vm55_vm0, %v138_v60, 0.0 }
  0x9e   :  { %v953_v63 = vsub.f32 %v669_v12, %v108_v59  ;;  %178 = vadd.xlane.f32.xlu0 %v177_v57  ;;  %157 = vadd.xlane.f32.xlu1 %v156_v0  ;;  %v88_v1 = vpop.xlane.xlu0 %87  ;;  %v180_v3 = vsel %vm55_vm0, %v146_v61, 0.0 }
  0x9f   :  { %v91_v2 = vpop.xlane.xlu1 %90  ;;  %v115_v4 = vmul.f32 0.0625, %v88_v1  ;;  %v139_v7 = vmul.f32 %v949_v62, %v949_v62 }
  0xa0   :  { %v116_v5 = vmul.f32 0.0625, %v91_v2  ;;  %v140_v8 = vmul.f32 %v953_v63, %v953_v63 }
  0xa1   :  { %v963_v6 = vsub.f32 %v684_v16, %v115_v4  ;;  %v159_v10 = vsel %vm55_vm0, %v139_v7, 0.0 }
  0xa2   :  { %v967_v9 = vsub.f32 %v685_v17, %v116_v5  ;;  %181 = vadd.xlane.f32.xlu1 %v180_v3  ;;  %160 = vadd.xlane.f32.xlu0 %v159_v10  ;;  %v70_v11 = vpop.xlane.xlu0 %69  ;;  %v162_v14 = vsel %vm55_vm0, %v140_v8, 0.0 }
  0xa3   :  { %v73_v12 = vpop.xlane.xlu1 %72  ;;  %v109_v15 = vmul.f32 0.0625, %v70_v11  ;;  %v147_v20 = vmul.f32 %v963_v6, %v963_v6 }
  0xa4   :  { %v110_v19 = vmul.f32 0.0625, %v73_v12  ;;  %v148_v16 = vmul.f32 %v967_v9, %v967_v9 }
  0xa5   :  { %v977_v13 = vsub.f32 %v672_v21, %v109_v15  ;;  %v183_v24 = vsel %vm55_vm0, %v147_v20, 0.0 }
  0xa6   :  { %v981_v17 = vsub.f32 %v673_v22, %v110_v19  ;;  %163 = vadd.xlane.f32.xlu1 %v162_v14  ;;  %184 = vadd.xlane.f32.xlu0 %v183_v24  ;;  %v94_v25 = vpop.xlane.xlu0 %93  ;;  %v186_v30 = vsel %vm55_vm0, %v148_v16, 0.0 }
  0xa7   :  { %v97_v29 = vpop.xlane.xlu1 %96  ;;  %v117_v34 = vmul.f32 0.0625, %v94_v25  ;;  %v141_v38 = vmul.f32 %v977_v13, %v977_v13 }
  0xa8   :  { %v118_v35 = vmul.f32 0.0625, %v97_v29  ;;  %v142_v21 = vmul.f32 %v981_v17, %v981_v17 }
  0xa9   :  { %v991_v18 = vsub.f32 %v688_v26, %v117_v34  ;;  %v165_v39 = vsel %vm55_vm0, %v141_v38, 0.0 }
  0xaa   :  { %v995_v22 = vsub.f32 %v689_v27, %v118_v35  ;;  %187 = vadd.xlane.f32.xlu1 %v186_v30  ;;  %166 = vadd.xlane.f32.xlu0 %v165_v39  ;;  %v76_v40 = vpop.xlane.xlu0 %75  ;;  %v168_v42 = vsel %vm55_vm0, %v142_v21, 0.0 }
  0xab   :  { %v79_v41 = vpop.xlane.xlu1 %78  ;;  %v111_v43 = vmul.f32 0.0625, %v76_v40  ;;  %v149_v47 = vmul.f32 %v991_v18, %v991_v18 }
  0xac   :  { %v112_v46 = vmul.f32 0.0625, %v79_v41  ;;  %v150_v26 = vmul.f32 %v995_v22, %v995_v22  ;;  %v1040_v41 = vld [vmem:[%s1197_s1] ss:$0 sm:$0xff] }
  0xad   :  { %v1005_v23 = vsub.f32 %v676_v31, %v111_v43  ;;  %v189_v48 = vsel %vm55_vm0, %v149_v47, 0.0 }
  0xae   :  { %v1009_v27 = vsub.f32 %v677_v32, %v112_v46  ;;  %169 = vadd.xlane.f32.xlu1 %v168_v42  ;;  %190 = vadd.xlane.f32.xlu0 %v189_v48  ;;  %v100_v49 = vpop.xlane.xlu0 %99  ;;  %v192_v51 = vsel %vm55_vm0, %v150_v26, 0.0 }
  0xaf   :  { %v103_v50 = vpop.xlane.xlu1 %102  ;;  %v119_v54 = vmul.f32 0.0625, %v100_v49  ;;  %v143_v56 = vmul.f32 %v1005_v23, %v1005_v23 }
  0xb0   :  { %v120_v55 = vmul.f32 0.0625, %v103_v50  ;;  %v144_v31 = vmul.f32 %v1009_v27, %v1009_v27 }
  0xb1   :  { %v1019_v28 = vsub.f32 %v692_v36, %v119_v54  ;;  %v171_v57 = vsel %vm55_vm0, %v143_v56, 0.0  ;;  %v730_v36 = vld [vmem:[%s1196_s3] sm:$0xff]  }
  0xb2   :  { %v1023_v32 = vsub.f32 %v693_v37, %v120_v55  ;;  %193 = vadd.xlane.f32.xlu1 %v192_v51  ;;  %172 = vadd.xlane.f32.xlu0 %v171_v57  ;;  %v174_v58 = vsel %vm55_vm0, %v144_v31, 0.0  ;;  %v1047_v54 = vld [vmem:[%s1198_s2] ss:$0 sm:$0xff] }
  0xb3   :  { %v151_v59 = vmul.f32 %v1019_v28, %v1019_v28  ;;  %710 = vmatprep.subr.bf16.mxu0 %v730_v36  ;;  %728 = vmatprep.subr.bf16.mxu1 %v730_v36 }
  0xb4   :  { %v152_v60 = vmul.f32 %v1023_v32, %v1023_v32  ;;  %711 = vmatpush3.bf16.msra.mxu0 %v730_v36  ;;  %729 = vmatpush3.bf16.msra.mxu1 %v730_v36 }
  0xb5   :  { %v195_v61 = vsel %vm55_vm0, %v151_v59, 0.0 }
  0xb6   :  { %175 = vadd.xlane.f32.xlu1 %v174_v58  ;;  %196 = vadd.xlane.f32.xlu0 %v195_v61  ;;  %v198_v33 = vsel %vm55_vm0, %v152_v60, 0.0 }
  0xba   :  { %199 = vadd.xlane.f32.xlu1 %v198_v33 }
 0x127   :  { %v155_v37 = vpop.xlane.xlu0 %154 }
 0x128   :  { %v201_v0 = vmul.f32 0.0625, %v155_v37 }
 0x12a   :  { %v217_v1 = vadd.f32 1e-05, %v201_v0 }
 0x12b   :  { %v158_v2 = vpop.xlane.xlu1 %157  ;;  %v179_v3 = vpop.xlane.xlu0 %178 }
 0x12c   :  { %731 = vrsqrt.f32 %v217_v1  ;;  %v202_v4 = vmul.f32 0.0625, %v158_v2  ;;  %v209_v5 = vmul.f32 0.0625, %v179_v3 }
 0x12e   :  { %v218_v7 = vadd.f32 1e-05, %v202_v4  ;;  %v225_v8 = vadd.f32 1e-05, %v209_v5 }
 0x12f   :  { %v182_v10 = vpop.xlane.xlu1 %181  ;;  %v161_v11 = vpop.xlane.xlu0 %160 }
 0x130   :  { %733 = vrsqrt.f32 %v218_v7  ;;  %v210_v12 = vmul.f32 0.0625, %v182_v10  ;;  %v203_v14 = vmul.f32 0.0625, %v161_v11 }
 0x131   :  { %735 = vrsqrt.f32 %v225_v8 }
 0x132   :  { %v226_v15 = vadd.f32 1e-05, %v210_v12  ;;  %v219_v19 = vadd.f32 1e-05, %v203_v14 }
 0x133   :  { %v164_v20 = vpop.xlane.xlu1 %163  ;;  %v185_v16 = vpop.xlane.xlu0 %184 }
 0x134   :  { %737 = vrsqrt.f32 %v226_v15  ;;  %v204_v24 = vmul.f32 0.0625, %v164_v20  ;;  %v211_v25 = vmul.f32 0.0625, %v185_v16 }
 0x135   :  { %739 = vrsqrt.f32 %v219_v19 }
 0x136   :  { %v732_v29 = vpop.eup %731  ;;  %v220_v30 = vadd.f32 1e-05, %v204_v24  ;;  %v227_v34 = vadd.f32 1e-05, %v211_v25 }
 0x137   :  { %v188_v35 = vpop.xlane.xlu1 %187  ;;  %v167_v38 = vpop.xlane.xlu0 %166  ;;  %v249_v21 = vmul.f32 %v732_v29, %v925_v44 }
 0x138   :  { %741 = vrsqrt.f32 %v220_v30  ;;  %v212_v39 = vmul.f32 0.0625, %v188_v35  ;;  %v205_v40 = vmul.f32 0.0625, %v167_v38 }
 0x139   :  { %743 = vrsqrt.f32 %v227_v34  ;;  %v271_v50 = vmul.f32 %v1040_v41, %v249_v21 }
 0x13a   :  { %v734_v42 = vpop.eup %733  ;;  %v228_v43 = vadd.f32 1e-05, %v212_v39  ;;  %v221_v46 = vadd.f32 1e-05, %v205_v40 }
 0x13b   :  { %v736_v47 = vpop.eup %735  ;;  %v170_v26 = vpop.xlane.xlu1 %169  ;;  %v250_v49 = vmul.f32 %v734_v42, %v935_v52  ;;  %v293_v61 = vadd.f32 %v1047_v54, %v271_v50 }
 0x13c   :  { %v191_v48 = vpop.xlane.xlu0 %190  ;;  %745 = vrsqrt.f32 %v228_v43  ;;  %v206_v44 = vmul.f32 0.0625, %v170_v26  ;;  %v257_v55 = vmul.f32 %v736_v47, %v927_v45 }
 0x13d   :  { %v213_v51 = vmul.f32 0.0625, %v191_v48  ;;  %747 = vrsqrt.f32 %v221_v46  ;;  %v272_v56 = vmul.f32 %v1040_v41, %v250_v49 }
 0x13e   :  { %v738_v31 = vpop.eup %737  ;;  %v222_v57 = vadd.f32 1e-05, %v206_v44  ;;  %v279_v37 = vmul.f32 %v1040_v41, %v257_v55 }
 0x13f   :  { %v229_v58 = vadd.f32 1e-05, %v213_v51  ;;  %v740_v59 = vpop.eup %739  ;;  %v194_v52 = vpop.xlane.xlu1 %193  ;;  %v294_v33 = vadd.f32 %v1047_v54, %v272_v56  ;;  %v258_v36 = vmul.f32 %v738_v31, %v939_v53 }
 0x140   :  { %v173_v60 = vpop.xlane.xlu0 %172  ;;  %v251_v0 = vmul.f32 %v740_v59, %v949_v62  ;;  %749 = vrsqrt.f32 %v222_v57  ;;  %v214_v45 = vmul.f32 0.0625, %v194_v52  ;;  %v301_v12 = vadd.f32 %v1047_v54, %v279_v37 }
 0x141   :  { %v207_v1 = vmul.f32 0.0625, %v173_v60  ;;  %751 = vrsqrt.f32 %v229_v58  ;;  %v311_v2 = vpack.c.bf16 %v294_v33, %v293_v61  ;;  %v280_v3 = vmul.f32 %v1040_v41, %v258_v36 }
 0x142   :  { %v742_v4 = vpop.eup %741  ;;  %v230_v5 = vadd.f32 1e-05, %v214_v45  ;;  %v273_v14 = vmul.f32 %v1040_v41, %v251_v0 }
 0x143   :  { %v223_v7 = vadd.f32 1e-05, %v207_v1  ;;  %v744_v8 = vpop.eup %743  ;;  %v252_v10 = vmul.f32 %v742_v4, %v953_v63  ;;  %v176_v11 = vpop.xlane.xlu1 %175  ;;  %712 = vmatprep.mubr.msk.bf16.mxu0 %vm55_vm0, %v311_v2  ;;  %v302_v62 = vadd.f32 %v1047_v54, %v280_v3 }
 0x144   :  { %v197_v53 = vpop.xlane.xlu0 %196  ;;  %v259_v15 = vmul.f32 %v744_v8, %v963_v6  ;;  %753 = vrsqrt.f32 %v230_v5  ;;  %v208_v19 = vmul.f32 0.0625, %v176_v11  ;;  %v295_v38 = vadd.f32 %v1047_v54, %v273_v14 }
 0x145   :  { %v215_v20 = vmul.f32 0.0625, %v197_v53  ;;  %755 = vrsqrt.f32 %v223_v7  ;;  %v315_v16 = vpack.c.bf16 %v302_v62, %v301_v12  ;;  %v274_v24 = vmul.f32 %v1040_v41, %v252_v10 }
 0x146   :  { %v746_v63 = vpop.eup %745  ;;  %v224_v25 = vadd.f32 1e-05, %v208_v19  ;;  %v281_v21 = vmul.f32 %v1040_v41, %v259_v15 }
 0x147   :  { %v231_v29 = vadd.f32 1e-05, %v215_v20  ;;  %v748_v30 = vpop.eup %747  ;;  %v260_v34 = vmul.f32 %v746_v63, %v967_v9  ;;  %v200_v35 = vpop.xlane.xlu1 %199  ;;  %720 = vmatprep.mubr.msk.bf16.mxu1 %vm55_vm0, %v315_v16  ;;  %v296_v6 = vadd.f32 %v1047_v54, %v274_v24 }
 0x148   :  { %v253_v39 = vmul.f32 %v748_v30, %v977_v13  ;;  %757 = vrsqrt.f32 %v224_v25  ;;  %v216_v40 = vmul.f32 0.0625, %v200_v35  ;;  %v303_v48 = vadd.f32 %v1047_v54, %v281_v21 }
 0x149   :  { %759 = vrsqrt.f32 %v231_v29  ;;  %v312_v42 = vpack.c.bf16 %v296_v6, %v295_v38  ;;  %v282_v43 = vmul.f32 %v1040_v41, %v260_v34 }
 0x14a   :  { %v750_v46 = vpop.eup %749  ;;  %v232_v47 = vadd.f32 1e-05, %v216_v40  ;;  %v275_v50 = vmul.f32 %v1040_v41, %v253_v39 }
 0x14b   :  { %v752_v9 = vpop.eup %751  ;;  %v254_v26 = vmul.f32 %v750_v46, %v981_v17  ;;  %713 = vmatmul.mubr.msk.bf16.vlgmr.msra.gmra.mrb[0].mxu0 %vm55_vm0, %v312_v42  ;;  %v304_v49 = vadd.f32 %v1047_v54, %v282_v43 }
 0x14c   :  { %v261_v13 = vmul.f32 %v752_v9, %v991_v18  ;;  %761 = vrsqrt.f32 %v232_v47  ;;  %v297_v17 = vadd.f32 %v1047_v54, %v275_v50 }
 0x14d   :  { %v316_v44 = vpack.c.bf16 %v304_v49, %v303_v48  ;;  %v276_v51 = vmul.f32 %v1040_v41, %v254_v26 }
 0x14e   :  { %v754_v55 = vpop.eup %753  ;;  %v283_v58 = vmul.f32 %v1040_v41, %v261_v13 }
 0x14f   :  { %v756_v56 = vpop.eup %755  ;;  %v262_v31 = vmul.f32 %v754_v55, %v995_v22  ;;  %721 = vmatmul.mubr.msk.bf16.vlgmr.msra.gmra.mrb[0].mxu1 %vm55_vm0, %v316_v44  ;;  %v298_v57 = vadd.f32 %v1047_v54, %v276_v51 }
 0x150   :  { %v255_v59 = vmul.f32 %v756_v56, %v1005_v23  ;;  %v305_v22 = vadd.f32 %v1047_v54, %v283_v58 }
 0x151   :  { %v313_v52 = vpack.c.bf16 %v298_v57, %v297_v17  ;;  %v284_v18 = vmul.f32 %v1040_v41, %v262_v31 }
 0x152   :  { %v758_v60 = vpop.eup %757  ;;  %v277_v37 = vmul.f32 %v1040_v41, %v255_v59 }
 0x153   :  { %v760_v61 = vpop.eup %759  ;;  %v256_v33 = vmul.f32 %v758_v60, %v1009_v27  ;;  %716 = vmatprep.mubr.msk.bf16.mxu0 %vm55_vm0, %v313_v52  ;;  %v306_v36 = vadd.f32 %v1047_v54, %v284_v18 }
 0x154   :  { %v263_v0 = vmul.f32 %v760_v61, %v1019_v28  ;;  %v299_v27 = vadd.f32 %v1047_v54, %v277_v37 }
 0x155   :  { %v317_v45 = vpack.c.bf16 %v306_v36, %v305_v22  ;;  %v278_v23 = vmul.f32 %v1040_v41, %v256_v33 }
 0x156   :  { %v762_v1 = vpop.eup %761  ;;  %v285_v4 = vmul.f32 %v1040_v41, %v263_v0 }
 0x157   :  { %v264_v2 = vmul.f32 %v762_v1, %v1023_v32  ;;  %724 = vmatprep.mubr.msk.bf16.mxu1 %vm55_vm0, %v317_v45  ;;  %v300_v3 = vadd.f32 %v1047_v54, %v278_v23  ;;  %v1105_v32 = vld [vmem:[%s1199_s4] ss:$0 sm:$0xff] }
 0x158   :  { %v307_v28 = vadd.f32 %v1047_v54, %v285_v4 }
 0x159   :  { %v314_v5 = vpack.c.bf16 %v300_v3, %v299_v27  ;;  %v286_v7 = vmul.f32 %v1040_v41, %v264_v2 }
 0x15b   :  { %717 = vmatmul.mubr.msk.bf16.gmra.mrb[4].mxu0 %vm55_vm0, %v314_v5  ;;  %v308_v8 = vadd.f32 %v1047_v54, %v286_v7 }
 0x15d   :  { %v318_v10 = vpack.c.bf16 %v308_v8, %v307_v28 }
 0x15f   :  { %725 = vmatmul.mubr.msk.bf16.gmra.mrb[4].mxu1 %vm55_vm0, %v318_v10 }
 0x21e   :  { %v714_v11 = vpop.f32.mrb[0].mxu0 }
 0x21f   :  { %v399_v53 = vadd.f32 %v714_v11, %v1105_v32  ;;  %v390_v12 = vpop.f32.mrb[1].mxu0 }
 0x220   :  { %v391_v41 = vadd.f32 %v1105_v32, %v390_v12  ;;  %v715_v62 = vpop.f32.mrb[2].mxu0 }
 0x221   :  { %v471_v14 = vmul.f32 0.70710677, %v399_v53  ;;  %v402_v15 = vadd.f32 %v715_v62, %v1105_v32  ;;  %v393_v19 = vpop.f32.mrb[3].mxu0  ;;  %v455_v47 = vmul.f32 0.5, %v399_v53 }
 0x222   :  { %v469_v54 = vmul.f32 0.70710677, %v391_v41  ;;  %v394_v20 = vadd.f32 %v1105_v32, %v393_v19  ;;  %v722_v16 = vpop.f32.mrb[0].mxu1  ;;  %v453_v26 = vmul.f32 0.5, %v391_v41 }
 0x223   :  { %763 = verf.f32 %v471_v14  ;;  %v472_v24 = vmul.f32 0.70710677, %v402_v15  ;;  %v431_v63 = vadd.f32 %v722_v16, %v1105_v32  ;;  %v422_v25 = vpop.f32.mrb[1].mxu1  ;;  %v456_v48 = vmul.f32 0.5, %v402_v15 }
 0x224   :  { %765 = verf.f32 %v469_v54  ;;  %v470_v29 = vmul.f32 0.70710677, %v394_v20  ;;  %v423_v30 = vadd.f32 %v1105_v32, %v422_v25  ;;  %v723_v34 = vpop.f32.mrb[2].mxu1  ;;  %v454_v44 = vmul.f32 0.5, %v394_v20 }
 0x225   :  { %767 = verf.f32 %v472_v24  ;;  %v479_v35 = vmul.f32 0.70710677, %v431_v63  ;;  %v434_v38 = vadd.f32 %v723_v34, %v1105_v32  ;;  %v425_v6 = vpop.f32.mrb[3].mxu1  ;;  %v463_v51 = vmul.f32 0.5, %v431_v63 }
 0x226   :  { %769 = verf.f32 %v470_v29  ;;  %v477_v21 = vmul.f32 0.70710677, %v423_v30  ;;  %v426_v39 = vadd.f32 %v1105_v32, %v425_v6  ;;  %v461_v58 = vmul.f32 0.5, %v423_v30 }
 0x227   :  { %771 = verf.f32 %v479_v35  ;;  %v480_v40 = vmul.f32 0.70710677, %v434_v38  ;;  %v464_v33 = vmul.f32 0.5, %v434_v38 }
 0x228   :  { %773 = verf.f32 %v477_v21  ;;  %v478_v42 = vmul.f32 0.70710677, %v426_v39  ;;  %v462_v1 = vmul.f32 0.5, %v426_v39 }
 0x229   :  { %775 = verf.f32 %v480_v40 }
 0x22a   :  { %777 = verf.f32 %v478_v42 }
 0x22d   :  { %v764_v43 = vpop.eup %763 }
 0x22e   :  { %v766_v46 = vpop.eup %765  ;;  %v503_v9 = vadd.f32 1.0, %v764_v43  ;;  %v718_v49 = vpop.f32.mrb[4].mxu0 }
 0x22f   :  { %v768_v50 = vpop.eup %767  ;;  %v501_v13 = vadd.f32 1.0, %v766_v46  ;;  %v1116_v55 = vadd.f32 %v718_v49, %v1105_v32  ;;  %v406_v56 = vpop.f32.mrb[5].mxu0 }
 0x230   :  { %v770_v31 = vpop.eup %769  ;;  %v519_v17 = vmul.f32 %v503_v9, %v455_v47  ;;  %v504_v57 = vadd.f32 1.0, %v768_v50  ;;  %v1119_v59 = vadd.f32 %v1105_v32, %v406_v56  ;;  %v719_v52 = vpop.f32.mrb[6].mxu0 }
 0x231   :  { %v772_v18 = vpop.eup %771  ;;  %v517_v60 = vmul.f32 %v501_v13, %v453_v26  ;;  %v502_v61 = vadd.f32 1.0, %v770_v31  ;;  %v475_v22 = vmul.f32 0.70710677, %v1116_v55  ;;  %v409_v36 = vpop.f32.mrb[7].mxu0  ;;  %v418_v15 = vadd.f32 %v719_v52, %v1105_v32 }
 0x232   :  { %v774_v37 = vpop.eup %773  ;;  %v648_v0 = vpack.c.bf16 %v519_v17, %v519_v17  ;;  %v520_v45 = vmul.f32 %v504_v57, %v456_v48  ;;  %v511_v23 = vadd.f32 1.0, %v772_v18  ;;  %v726_v2 = vpop.f32.mrb[4].mxu1  ;;  %v473_v53 = vmul.f32 0.70710677, %v1119_v59 }
 0x233   :  { %v776_v27 = vpop.eup %775  ;;  %v646_v3 = vpack.c.bf16 %v517_v60, %v517_v60  ;;  %v518_v4 = vmul.f32 %v502_v61, %v454_v44  ;;  %v509_v5 = vadd.f32 1.0, %v774_v37  ;;  %779 = verf.f32 %v475_v22  ;;  %v438_v7 = vpop.f32.mrb[5].mxu1 }
 0x234   :  { %v778_v28 = vpop.eup %777  ;;  %600 = vst.msk [vmem:[%s1200_s5 + $0x8] sm:$0xf] %vm597_vm1, %v648_v0  ;;  %v649_v8 = vpack.c.bf16 %v520_v45, %v520_v45  ;;  %v527_v10 = vmul.f32 %v511_v23, %v463_v51  ;;  %v512_v11 = vadd.f32 1.0, %v776_v27  ;;  %v727_v12 = vpop.f32.mrb[6].mxu1  ;;  %781 = verf.f32 %v473_v53 }
 0x235   :  { %598 = vst.msk [vmem:[%s1200_s5] sm:$0xf] %vm597_vm1, %v646_v3  ;;  %v647_v41 = vpack.c.bf16 %v518_v4, %v518_v4  ;;  %v525_v62 = vmul.f32 %v509_v5, %v461_v58  ;;  %v510_v14 = vadd.f32 1.0, %v778_v28  ;;  %v441_v19 = vpop.f32.mrb[7].mxu1  ;;  %v410_v16 = vadd.f32 %v1105_v32, %v409_v36 }
 0x236   :  { %601 = vst.msk [vmem:[%s1200_s5 + $0xc] sm:$0xf] %vm597_vm1, %v649_v8  ;;  %v656_v54 = vpack.c.bf16 %v527_v10, %v527_v10  ;;  %v528_v20 = vmul.f32 %v512_v11, %v464_v33  ;;  %v476_v25 = vmul.f32 0.70710677, %v418_v15  ;;  %v447_v34 = vadd.f32 %v726_v2, %v1105_v32 }
 0x237   :  { %599 = vst.msk [vmem:[%s1200_s5 + $0x4] sm:$0xf] %vm597_vm1, %v647_v41  ;;  %v654_v24 = vpack.c.bf16 %v525_v62, %v525_v62  ;;  %v526_v63 = vmul.f32 %v510_v14, %v462_v1  ;;  %v474_v30 = vmul.f32 0.70710677, %v410_v16  ;;  %v439_v38 = vadd.f32 %v1105_v32, %v438_v7 }
 0x238   :  { %608 = vst.msk [vmem:[%s1200_s5 + $0x28] sm:$0xf] %vm597_vm1, %v656_v54  ;;  %v657_v29 = vpack.c.bf16 %v528_v20, %v528_v20  ;;  %783 = verf.f32 %v476_v25  ;;  %v450_v6 = vadd.f32 %v727_v12, %v1105_v32  ;;  %v483_v21 = vmul.f32 0.70710677, %v447_v34 }
 0x239   :  { %606 = vst.msk [vmem:[%s1200_s5 + $0x20] sm:$0xf] %vm597_vm1, %v654_v24  ;;  %v655_v35 = vpack.c.bf16 %v526_v63, %v526_v63  ;;  %785 = verf.f32 %v474_v30  ;;  %v442_v39 = vadd.f32 %v1105_v32, %v441_v19  ;;  %v481_v40 = vmul.f32 0.70710677, %v439_v38 }
 0x23a   :  { %609 = vst.msk [vmem:[%s1200_s5 + $0x2c] sm:$0xf] %vm597_vm1, %v657_v29  ;;  %v484_v42 = vmul.f32 0.70710677, %v450_v6  ;;  %787 = verf.f32 %v483_v21  ;;  %v459_v47 = vmul.f32 0.5, %v1116_v55  ;;  %v457_v32 = vmul.f32 0.5, %v1119_v59 }
 0x23b   :  { %607 = vst.msk [vmem:[%s1200_s5 + $0x24] sm:$0xf] %vm597_vm1, %v655_v35  ;;  %v482_v43 = vmul.f32 0.70710677, %v442_v39  ;;  %789 = verf.f32 %v481_v40  ;;  %v460_v56 = vmul.f32 0.5, %v418_v15  ;;  %v458_v17 = vmul.f32 0.5, %v410_v16 }
 0x23c   :  { %791 = verf.f32 %v484_v42  ;;  %v467_v60 = vmul.f32 0.5, %v447_v34  ;;  %v465_v36 = vmul.f32 0.5, %v439_v38  ;;  %v468_v1 = vmul.f32 0.5, %v450_v6 }
 0x23d   :  { %v780_v46 = vpop.eup %779  ;;  %793 = verf.f32 %v482_v43  ;;  %v466_v3 = vmul.f32 0.5, %v442_v39 }
 0x23e   :  { %v507_v9 = vadd.f32 1.0, %v780_v46  ;;  %v782_v26 = vpop.eup %781 }
 0x23f   :  { %v505_v49 = vadd.f32 1.0, %v782_v26 }
 0x240   :  { %v523_v48 = vmul.f32 %v507_v9, %v459_v47 }
 0x241   :  { %v521_v44 = vmul.f32 %v505_v49, %v457_v32 }
 0x242   :  { %v652_v50 = vpack.c.bf16 %v523_v48, %v523_v48  ;;  %v784_v13 = vpop.eup %783 }
 0x243   :  { %v786_v51 = vpop.eup %785  ;;  %v508_v31 = vadd.f32 1.0, %v784_v13  ;;  %v650_v55 = vpack.c.bf16 %v521_v44, %v521_v44 }
 0x244   :  { %604 = vst.msk [vmem:[%s1200_s5 + $0x18] sm:$0xf] %vm597_vm1, %v652_v50  ;;  %v506_v57 = vadd.f32 1.0, %v786_v51  ;;  %v788_v58 = vpop.eup %787 }
 0x245   :  { %v524_v52 = vmul.f32 %v508_v31, %v460_v56  ;;  %v790_v18 = vpop.eup %789  ;;  %602 = vst.msk [vmem:[%s1200_s5 + $0x10] sm:$0xf] %vm597_vm1, %v650_v55  ;;  %v515_v61 = vadd.f32 1.0, %v788_v58 }
 0x246   :  { %v522_v59 = vmul.f32 %v506_v57, %v458_v17  ;;  %v792_v33 = vpop.eup %791  ;;  %v513_v37 = vadd.f32 1.0, %v790_v18 }
 0x247   :  { %v653_v22 = vpack.c.bf16 %v524_v52, %v524_v52  ;;  %v794_v0 = vpop.eup %793  ;;  %v531_v23 = vmul.f32 %v515_v61, %v467_v60  ;;  %v516_v2 = vadd.f32 1.0, %v792_v33 }
 0x248   :  { %v651_v45 = vpack.c.bf16 %v522_v59, %v522_v59  ;;  %v529_v27 = vmul.f32 %v513_v37, %v465_v36  ;;  %v514_v4 = vadd.f32 1.0, %v794_v0 }
 0x249   :  { %605 = vst.msk [vmem:[%s1200_s5 + $0x1c] sm:$0xf] %vm597_vm1, %v653_v22  ;;  %v660_v5 = vpack.c.bf16 %v531_v23, %v531_v23  ;;  %v532_v7 = vmul.f32 %v516_v2, %v468_v1 }
 0x24a   :  { %603 = vst.msk [vmem:[%s1200_s5 + $0x14] sm:$0xf] %vm597_vm1, %v651_v45  ;;  %v658_v28 = vpack.c.bf16 %v529_v27, %v529_v27  ;;  %v530_v8 = vmul.f32 %v514_v4, %v466_v3 }
 0x24b   :  { %612 = vst.msk [vmem:[%s1200_s5 + $0x38] sm:$0xf] %vm597_vm1, %v660_v5  ;;  %v661_v10 = vpack.c.bf16 %v532_v7, %v532_v7 }
 0x24c   :  { %610 = vst.msk [vmem:[%s1200_s5 + $0x30] sm:$0xf] %vm597_vm1, %v658_v28  ;;  %v659_v11 = vpack.c.bf16 %v530_v8, %v530_v8 }
 0x24d   :  { %613 = vst.msk [vmem:[%s1200_s5 + $0x3c] sm:$0xf] %vm597_vm1, %v661_v10 }
 0x24e   :  { %611 = vst.msk [vmem:[%s1200_s5 + $0x34] sm:$0xf] %vm597_vm1, %v659_v11 }

// kernel: _lambda_.34
= control target key start
LH: loop header
LB: loop body
LE: loop exit
PB: predicated region body
PF: predicated region fallthrough
CT: control target
= control target key end

     0   :  { %vm28_vm0 = vcmask 523264   ;;  %vm207_vm1 = vcmask 257024   ;;  %s342_s0 = inlined_call_operand.vmem [shape: bf16[32,64], index: 0, kind: input, shape index: {}]   ;;  %s343_s3 = inlined_call_operand.vmem [shape: bf16[64,32], index: 3, kind: input, shape index: {}]   ;;  %s344_s1 = inlined_call_operand.vmem [shape: f32[1,64], index: 1, kind: input, shape index: {}]   ;;  %s345_s2 = inlined_call_operand.vmem [shape: f32[1,64], index: 2, kind: input, shape index: {}]   ;;  %s346_s4 = inlined_call_operand.vmem [shape: bf16[32,32], index: 4, kind: output, shape index: {}]  }
   0x1   :  { %v233_v0 = vld [vmem:[%s342_s0] sm:$0xff]   ;;  %v240_v1 = vld [vmem:[%s342_s0 + $0x8] sm:$0xff]   ;;  %v261_v32 = vld [vmem:[%s343_s3 + $0x10] sm:$0xff]  }
   0x2   :  { %v234_v2 = vunpack.c.l.bf16 %v233_v0  ;;  %v238_v3 = vunpack.c.l.bf16 %v240_v1  ;;  %v235_v4 = vunpack.c.h.bf16 %v233_v0  ;;  %v239_v5 = vunpack.c.h.bf16 %v240_v1  ;;  %v259_v30 = vld [vmem:[%s343_s3] sm:$0xff]   ;;  %v260_v31 = vld [vmem:[%s343_s3 + $0x8] sm:$0xff]   ;;  %v262_v33 = vld [vmem:[%s343_s3 + $0x18] sm:$0xff]  }
   0x3   :  { %247 = vmatprep.subr.bf16.mxu0 %v259_v30  ;;  %v216_v48 = vld [vmem:[%s344_s1] ss:$0 sm:$0xff] }
   0x4   :  { %v29_v6 = vsel %vm28_vm0, %v234_v2, 0.0  ;;  %v35_v7 = vsel %vm28_vm0, %v238_v3, 0.0  ;;  %v32_v8 = vsel %vm28_vm0, %v235_v4, 0.0  ;;  %v38_v9 = vsel %vm28_vm0, %v239_v5, 0.0  ;;  %248 = vmatpush3.bf16.msra.mxu0 %v259_v30  ;;  %v217_v54 = vld [vmem:[%s345_s2] ss:$0 sm:$0xff] }
   0x5   :  { %30 = vadd.xlane.f32.xlu0 %v29_v6  ;;  %36 = vadd.xlane.f32.xlu1 %v35_v7 }
   0x6   :  { %249 = vmatprep.subr.bf16.mxu0 %v260_v31 }
   0x8   :  { %250 = vmatpush3.bf16.msra.mxu0 %v260_v31 }
   0x9   :  { %33 = vadd.xlane.f32.xlu0 %v32_v8  ;;  %39 = vadd.xlane.f32.xlu1 %v38_v9 }
   0xa   :  { %251 = vmatprep.subr.bf16.mxu0 %v261_v32 }
   0xc   :  { %252 = vmatpush3.bf16.msra.mxu0 %v261_v32 }
   0xd   :  { %253 = vmatprep.subr.bf16.mxu0 %v262_v33 }
  0x10   :  { %254 = vmatpush3.bf16.msra.mxu0 %v262_v33 }
  0x92   :  { %v31_v10 = vpop.xlane.xlu0 %30  ;;  %v37_v11 = vpop.xlane.xlu1 %36 }
  0x93   :  { %v42_v12 = vmul.f32 0.015625, %v31_v10  ;;  %v44_v13 = vmul.f32 0.015625, %v37_v11 }
  0x95   :  { %v46_v14 = vsub.f32 %v234_v2, %v42_v12  ;;  %v48_v15 = vsub.f32 %v238_v3, %v44_v13 }
  0x96   :  { %v34_v16 = vpop.xlane.xlu0 %33  ;;  %v40_v17 = vpop.xlane.xlu1 %39 }
  0x97   :  { %v43_v18 = vmul.f32 0.015625, %v34_v16  ;;  %v45_v19 = vmul.f32 0.015625, %v40_v17  ;;  %v50_v20 = vmul.f32 %v46_v14, %v46_v14  ;;  %v52_v21 = vmul.f32 %v48_v15, %v48_v15 }
  0x99   :  { %v47_v22 = vsub.f32 %v235_v4, %v43_v18  ;;  %v49_v23 = vsub.f32 %v239_v5, %v45_v19  ;;  %v54_v24 = vsel %vm28_vm0, %v50_v20, 0.0  ;;  %v60_v25 = vsel %vm28_vm0, %v52_v21, 0.0 }
  0x9a   :  { %55 = vadd.xlane.f32.xlu0 %v54_v24 }
  0x9b   :  { %v51_v26 = vmul.f32 %v47_v22, %v47_v22  ;;  %v53_v27 = vmul.f32 %v49_v23, %v49_v23 }
  0x9d   :  { %v57_v28 = vsel %vm28_vm0, %v51_v26, 0.0  ;;  %v63_v29 = vsel %vm28_vm0, %v53_v27, 0.0 }
  0x9e   :  { %61 = vadd.xlane.f32.xlu0 %v60_v25  ;;  %58 = vadd.xlane.f32.xlu1 %v57_v28 }
  0xa2   :  { %64 = vadd.xlane.f32.xlu1 %v63_v29 }
 0x127   :  { %v56_v34 = vpop.xlane.xlu0 %55 }
 0x128   :  { %v66_v35 = vmul.f32 0.015625, %v56_v34 }
 0x12a   :  { %v70_v36 = vadd.f32 1e-05, %v66_v35 }
 0x12b   :  { %v59_v37 = vpop.xlane.xlu1 %58  ;;  %v62_v38 = vpop.xlane.xlu0 %61 }
 0x12c   :  { %263 = vrsqrt.f32 %v70_v36  ;;  %v67_v39 = vmul.f32 0.015625, %v59_v37  ;;  %v68_v40 = vmul.f32 0.015625, %v62_v38 }
 0x12e   :  { %v71_v41 = vadd.f32 1e-05, %v67_v39  ;;  %v72_v42 = vadd.f32 1e-05, %v68_v40 }
 0x12f   :  { %v65_v43 = vpop.xlane.xlu1 %64 }
 0x130   :  { %265 = vrsqrt.f32 %v71_v41  ;;  %v69_v44 = vmul.f32 0.015625, %v65_v43 }
 0x131   :  { %267 = vrsqrt.f32 %v72_v42 }
 0x132   :  { %v73_v45 = vadd.f32 1e-05, %v69_v44 }
 0x134   :  { %269 = vrsqrt.f32 %v73_v45 }
 0x136   :  { %v264_v46 = vpop.eup %263 }
 0x137   :  { %v78_v47 = vmul.f32 %v264_v46, %v46_v14 }
 0x139   :  { %v88_v52 = vmul.f32 %v216_v48, %v78_v47 }
 0x13a   :  { %v266_v49 = vpop.eup %265 }
 0x13b   :  { %v268_v50 = vpop.eup %267  ;;  %v79_v51 = vmul.f32 %v266_v49, %v47_v22  ;;  %v98_v58 = vadd.f32 %v217_v54, %v88_v52 }
 0x13c   :  { %v80_v53 = vmul.f32 %v268_v50, %v48_v15 }
 0x13d   :  { %v89_v55 = vmul.f32 %v216_v48, %v79_v51 }
 0x13e   :  { %v270_v56 = vpop.eup %269  ;;  %v90_v60 = vmul.f32 %v216_v48, %v80_v53 }
 0x13f   :  { %v81_v57 = vmul.f32 %v270_v56, %v49_v23  ;;  %v99_v59 = vadd.f32 %v217_v54, %v89_v55 }
 0x140   :  { %v100_v63 = vadd.f32 %v217_v54, %v90_v60 }
 0x141   :  { %v110_v61 = vpack.c.bf16 %v99_v59, %v98_v58  ;;  %v91_v62 = vmul.f32 %v216_v48, %v81_v57 }
 0x143   :  { %255 = vmatprep.mubr.msk.bf16.mxu0 %vm28_vm0, %v110_v61  ;;  %v101_v0 = vadd.f32 %v217_v54, %v91_v62 }
 0x145   :  { %v111_v1 = vpack.c.bf16 %v101_v0, %v100_v63 }
 0x147   :  { %256 = vmatmul.mubr.msk.bf16.vlgmr.msra.gmra.mrb[0].mxu0 %vm28_vm0, %v111_v1 }
 0x21a   :  { %v257_v2 = vpop.f32.mrb[0].mxu0 }
 0x21b   :  { %v230_v3 = vpack.c.bf16 %v257_v2, %v257_v2  ;;  %v176_v4 = vpop.f32.mrb[1].mxu0 }
 0x21c   :  { %v228_v5 = vpack.c.bf16 %v176_v4, %v176_v4  ;;  %v258_v6 = vpop.f32.mrb[2].mxu0 }
 0x21d   :  { %210 = vst.msk [vmem:[%s346_s4 + $0x8] sm:$0xf] %vm207_vm1, %v230_v3  ;;  %v231_v7 = vpack.c.bf16 %v258_v6, %v258_v6  ;;  %v179_v8 = vpop.f32.mrb[3].mxu0 }
 0x21e   :  { %208 = vst.msk [vmem:[%s346_s4] sm:$0xf] %vm207_vm1, %v228_v5  ;;  %v229_v9 = vpack.c.bf16 %v179_v8, %v179_v8 }
 0x21f   :  { %211 = vst.msk [vmem:[%s346_s4 + $0xc] sm:$0xf] %vm207_vm1, %v231_v7 }
 0x220   :  { %209 = vst.msk [vmem:[%s346_s4 + $0x4] sm:$0xf] %vm207_vm1, %v229_v9 }

// kernel: _lambda_.35
= control target key start
LH: loop header
LB: loop body
LE: loop exit
PB: predicated region body
PF: predicated region fallthrough
CT: control target
= control target key end

     0   :  { %vm31_vm0 = vcmask 261120   ;;  %vm201_vm1 = vcmask 781312   ;;  %s329_s0 = inlined_call_operand.vmem [shape: bf16[32,32], index: 0, kind: input, shape index: {}]   ;;  %s330_s3 = inlined_call_operand.vmem [shape: bf16[32,96], index: 3, kind: input, shape index: {}]   ;;  %s331_s1 = inlined_call_operand.vmem [shape: f32[1,32], index: 1, kind: input, shape index: {}]   ;;  %s332_s2 = inlined_call_operand.vmem [shape: f32[1,32], index: 2, kind: input, shape index: {}]   ;;  %s333_s4 = inlined_call_operand.vmem [shape: f32[1,96], index: 4, kind: input, shape index: {}]   ;;  %s334_s5 = inlined_call_operand.vmem [shape: bf16[32,96], index: 5, kind: output, shape index: {}]  }
   0x1   :  { %v226_v0 = vld [vmem:[%s329_s0] sm:$0xff]   ;;  %v233_v1 = vld [vmem:[%s329_s0 + $0x8] sm:$0xff]  }
   0x2   :  { %v227_v2 = vunpack.c.l.bf16 %v226_v0  ;;  %v231_v3 = vunpack.c.l.bf16 %v233_v1  ;;  %v228_v4 = vunpack.c.h.bf16 %v226_v0  ;;  %v232_v5 = vunpack.c.h.bf16 %v233_v1  ;;  %v246_v30 = vld [vmem:[%s330_s3] sm:$0xff]   ;;  %v247_v31 = vld [vmem:[%s330_s3 + $0x8] sm:$0xff]  }
   0x3   :  { %238 = vmatprep.subr.bf16.mxu0 %v246_v30  ;;  %v210_v46 = vld [vmem:[%s331_s1] ss:$0 sm:$0xff] }
   0x4   :  { %v32_v6 = vsel %vm31_vm0, %v227_v2, 0.0  ;;  %v38_v7 = vsel %vm31_vm0, %v231_v3, 0.0  ;;  %v35_v8 = vsel %vm31_vm0, %v228_v4, 0.0  ;;  %v41_v9 = vsel %vm31_vm0, %v232_v5, 0.0  ;;  %239 = vmatpush3.bf16.msra.mxu0 %v246_v30  ;;  %v211_v52 = vld [vmem:[%s332_s2] ss:$0 sm:$0xff] }
   0x5   :  { %33 = vadd.xlane.f32.xlu0 %v32_v6  ;;  %39 = vadd.xlane.f32.xlu1 %v38_v7  ;;  %v212_v0 = vld [vmem:[%s333_s4] ss:$0 sm:$0xff] }
   0x6   :  { %240 = vmatprep.subr.bf16.mxu0 %v247_v31 }
   0x8   :  { %241 = vmatpush3.bf16.msra.mxu0 %v247_v31 }
   0x9   :  { %36 = vadd.xlane.f32.xlu0 %v35_v8  ;;  %42 = vadd.xlane.f32.xlu1 %v41_v9 }
  0x92   :  { %v34_v10 = vpop.xlane.xlu0 %33  ;;  %v40_v11 = vpop.xlane.xlu1 %39 }
  0x93   :  { %v45_v12 = vmul.f32 0.03125, %v34_v10  ;;  %v47_v13 = vmul.f32 0.03125, %v40_v11 }
  0x95   :  { %v49_v14 = vsub.f32 %v227_v2, %v45_v12  ;;  %v51_v15 = vsub.f32 %v231_v3, %v47_v13 }
  0x96   :  { %v37_v16 = vpop.xlane.xlu0 %36  ;;  %v43_v17 = vpop.xlane.xlu1 %42 }
  0x97   :  { %v46_v18 = vmul.f32 0.03125, %v37_v16  ;;  %v48_v19 = vmul.f32 0.03125, %v43_v17  ;;  %v53_v20 = vmul.f32 %v49_v14, %v49_v14  ;;  %v55_v21 = vmul.f32 %v51_v15, %v51_v15 }
  0x99   :  { %v50_v22 = vsub.f32 %v228_v4, %v46_v18  ;;  %v52_v23 = vsub.f32 %v232_v5, %v48_v19  ;;  %v57_v24 = vsel %vm31_vm0, %v53_v20, 0.0  ;;  %v63_v25 = vsel %vm31_vm0, %v55_v21, 0.0 }
  0x9a   :  { %58 = vadd.xlane.f32.xlu0 %v57_v24 }
  0x9b   :  { %v54_v26 = vmul.f32 %v50_v22, %v50_v22  ;;  %v56_v27 = vmul.f32 %v52_v23, %v52_v23 }
  0x9d   :  { %v60_v28 = vsel %vm31_vm0, %v54_v26, 0.0  ;;  %v66_v29 = vsel %vm31_vm0, %v56_v27, 0.0 }
  0x9e   :  { %64 = vadd.xlane.f32.xlu0 %v63_v25  ;;  %61 = vadd.xlane.f32.xlu1 %v60_v28 }
  0xa2   :  { %67 = vadd.xlane.f32.xlu1 %v66_v29 }
 0x127   :  { %v59_v32 = vpop.xlane.xlu0 %58 }
 0x128   :  { %v69_v33 = vmul.f32 0.03125, %v59_v32 }
 0x12a   :  { %v73_v34 = vadd.f32 1e-05, %v69_v33 }
 0x12b   :  { %v62_v35 = vpop.xlane.xlu1 %61  ;;  %v65_v36 = vpop.xlane.xlu0 %64 }
 0x12c   :  { %248 = vrsqrt.f32 %v73_v34  ;;  %v70_v37 = vmul.f32 0.03125, %v62_v35  ;;  %v71_v38 = vmul.f32 0.03125, %v65_v36 }
 0x12e   :  { %v74_v39 = vadd.f32 1e-05, %v70_v37  ;;  %v75_v40 = vadd.f32 1e-05, %v71_v38 }
 0x12f   :  { %v68_v41 = vpop.xlane.xlu1 %67 }
 0x130   :  { %250 = vrsqrt.f32 %v74_v39  ;;  %v72_v42 = vmul.f32 0.03125, %v68_v41 }
 0x131   :  { %252 = vrsqrt.f32 %v75_v40 }
 0x132   :  { %v76_v43 = vadd.f32 1e-05, %v72_v42 }
 0x134   :  { %254 = vrsqrt.f32 %v76_v43 }
 0x136   :  { %v249_v44 = vpop.eup %248 }
 0x137   :  { %v81_v45 = vmul.f32 %v249_v44, %v49_v14 }
 0x139   :  { %v91_v50 = vmul.f32 %v210_v46, %v81_v45 }
 0x13a   :  { %v251_v47 = vpop.eup %250 }
 0x13b   :  { %v253_v48 = vpop.eup %252  ;;  %v82_v49 = vmul.f32 %v251_v47, %v50_v22  ;;  %v101_v56 = vadd.f32 %v211_v52, %v91_v50 }
 0x13c   :  { %v83_v51 = vmul.f32 %v253_v48, %v51_v15 }
 0x13d   :  { %v92_v53 = vmul.f32 %v210_v46, %v82_v49 }
 0x13e   :  { %v255_v54 = vpop.eup %254  ;;  %v93_v58 = vmul.f32 %v210_v46, %v83_v51 }
 0x13f   :  { %v84_v55 = vmul.f32 %v255_v54, %v52_v23  ;;  %v102_v57 = vadd.f32 %v211_v52, %v92_v53 }
 0x140   :  { %v103_v61 = vadd.f32 %v211_v52, %v93_v58 }
 0x141   :  { %v109_v59 = vpack.c.bf16 %v102_v57, %v101_v56  ;;  %v94_v60 = vmul.f32 %v210_v46, %v84_v55 }
 0x143   :  { %242 = vmatprep.mubr.msk.bf16.mxu0 %vm31_vm0, %v109_v59  ;;  %v104_v62 = vadd.f32 %v211_v52, %v94_v60 }
 0x145   :  { %v110_v63 = vpack.c.bf16 %v104_v62, %v103_v61 }
 0x147   :  { %243 = vmatmul.mubr.msk.bf16.vlgmr.msra.gmra.mrb[0].mxu0 %vm31_vm0, %v110_v63 }
 0x21a   :  { %v244_v1 = vpop.f32.mrb[0].mxu0 }
 0x21b   :  { %v179_v2 = vadd.f32 %v244_v1, %v212_v0  ;;  %v170_v3 = vpop.f32.mrb[1].mxu0 }
 0x21c   :  { %v171_v4 = vadd.f32 %v212_v0, %v170_v3  ;;  %v245_v5 = vpop.f32.mrb[2].mxu0 }
 0x21d   :  { %v223_v6 = vpack.c.bf16 %v179_v2, %v179_v2  ;;  %v182_v7 = vadd.f32 %v245_v5, %v212_v0  ;;  %v173_v8 = vpop.f32.mrb[3].mxu0 }
 0x21e   :  { %v221_v9 = vpack.c.bf16 %v171_v4, %v171_v4  ;;  %v174_v10 = vadd.f32 %v212_v0, %v173_v8 }
 0x21f   :  { %204 = vst.msk [vmem:[%s334_s5 + $0x8] sm:$0xf] %vm201_vm1, %v223_v6  ;;  %v224_v11 = vpack.c.bf16 %v182_v7, %v182_v7 }
 0x220   :  { %202 = vst.msk [vmem:[%s334_s5] sm:$0xf] %vm201_vm1, %v221_v9  ;;  %v222_v12 = vpack.c.bf16 %v174_v10, %v174_v10 }
 0x221   :  { %205 = vst.msk [vmem:[%s334_s5 + $0xc] sm:$0xf] %vm201_vm1, %v224_v11 }
 0x222   :  { %203 = vst.msk [vmem:[%s334_s5 + $0x4] sm:$0xf] %vm201_vm1, %v222_v12 }

// kernel: _lambda_.30
= control target key start
LH: loop header
LB: loop body
LE: loop exit
PB: predicated region body
PF: predicated region fallthrough
CT: control target
= control target key end

     0   :  { %v2779_v3 = vmov 0.0   ;;  %vm2780_vm0 = vmmov 0   ;;  %s2781_s20 = smov 112   ;;  %s2782_s29 = smov 96   ;;  %vm94_vm1 = vcmask 64512   ;;  %vm508_vm2 = vcmask 130048   ;;  %s3703_s0 = inlined_call_operand.vmem [shape: bf16[8,16,48], index: 0, kind: input, shape index: {}]   ;;  %s3704_s1 = inlined_call_operand.vmem [shape: f32[2,16,16], index: 1, kind: input, shape index: {}]   ;;  %s3705_s2 = inlined_call_operand.vmem [shape: f32[4,16,16], index: 2, kind: input, shape index: {}]   ;;  %s3706_s3 = inlined_call_operand.vmem [shape: bf16[8,16,16], index: 3, kind: output, shape index: {}]  }
   0x1   :  { %v2810_v0 = vld [vmem:[%s3703_s0] sm:$0xff]   ;;  %v2815_v1 = vld [vmem:[%s3703_s0 + $0x8] sm:$0xff]   ;;  %v2820_v2 = vld [vmem:[%s3703_s0 + $0x10] sm:$0xff]   ;;  %2427 = vmatprep.subr.bf16.mxu0 %v2779_v3  ;;  %2433 = vmatprep.subr.bf16.mxu1 %v2779_v3  ;;  %s2783_s22 = smov 104   ;;  %s2784_s23 = smov 120   ;;  %vm1133_vm3 = vcmask 60416  }
   0x2   :  { %v2827_v4 = vld [vmem:[%s3703_s0 + $0x18] sm:$0xff]   ;;  %2429 = vmatprep.mubr.msk.bf16.mxu0 %vm2780_vm0, %v2779_v3  ;;  %2435 = vmatprep.mubr.msk.bf16.mxu1 %vm2780_vm0, %v2779_v3  ;;  %v2838_v5 = vld [vmem:[%s3703_s0 + $0x20] sm:$0xff]   ;;  %v2843_v6 = vld [vmem:[%s3703_s0 + $0x28] sm:$0xff]   ;;  %v32_v9 = vunpack.c.h.bf16 %v2810_v0  ;;  %v31_v10 = vunpack.c.l.bf16 %v2810_v0  ;;  %v33_v11 = vunpack.c.l.bf16 %v2815_v1  ;;  %v34_v13 = vunpack.c.h.bf16 %v2815_v1  ;;  %s2785_s24 = smov 88  }
   0x3   :  { %92 = vrot.lane.b32.xlu0 %v2810_v0, %s2781_s20  ;;  %193 = vrot.lane.b32.xlu1 %v2820_v2, %s2781_s20  ;;  %v2850_v7 = vld [vmem:[%s3703_s0 + $0x30] sm:$0xff]   ;;  %v2855_v8 = vld [vmem:[%s3703_s0 + $0x38] sm:$0xff]   ;;  %v36_v18 = vunpack.c.h.bf16 %v2820_v2  ;;  %v35_v19 = vunpack.c.l.bf16 %v2820_v2  ;;  %v37_v26 = vunpack.c.l.bf16 %v2827_v4  ;;  %v38_v30 = vunpack.c.h.bf16 %v2827_v4 }
   0x4   :  { %v59_v15 = vmul.f32 0.35355338, %v31_v10  ;;  %v60_v16 = vmul.f32 0.35355338, %v32_v9  ;;  %v61_v23 = vmul.f32 0.35355338, %v33_v11  ;;  %v39_v33 = vunpack.c.l.bf16 %v2838_v5 }
   0x5   :  { %v62_v24 = vmul.f32 0.35355338, %v34_v13  ;;  %v64_v28 = vmul.f32 0.35355338, %v36_v18  ;;  %v63_v29 = vmul.f32 0.35355338, %v35_v19  ;;  %v40_v37 = vunpack.c.h.bf16 %v2838_v5 }
   0x6   :  { %v2872_v22 = vpack.c.bf16 %v60_v16, %v59_v15  ;;  %v65_v35 = vmul.f32 0.35355338, %v37_v26  ;;  %v66_v36 = vmul.f32 0.35355338, %v38_v30  ;;  %v41_v40 = vunpack.c.l.bf16 %v2843_v6  ;;  %v2947_v11 = vld [vmem:[%s3704_s1] sm:$0xff]  ;;  %v2952_v13 = vld [vmem:[%s3704_s1 + $0x8] sm:$0xff] }
   0x7   :  { %143 = vrot.lane.b32.xlu0 %v2815_v1, %s2781_s20  ;;  %243 = vrot.lane.b32.xlu1 %v2827_v4, %s2781_s20  ;;  %v2880_v31 = vpack.c.bf16 %v62_v24, %v61_v23  ;;  %v2890_v38 = vpack.c.bf16 %v64_v28, %v63_v29  ;;  %v67_v42 = vmul.f32 0.35355338, %v39_v33  ;;  %v68_v43 = vmul.f32 0.35355338, %v40_v37  ;;  %v2963_v18 = vld [vmem:[%s3705_s2 + $0x8] sm:$0xff]  ;;  %v2972_v24 = vld [vmem:[%s3705_s2 + $0x10] sm:$0xff] }
   0x8   :  { %v42_v44 = vunpack.c.h.bf16 %v2843_v6  ;;  %v2900_v45 = vpack.c.bf16 %v66_v36, %v65_v35  ;;  %v69_v47 = vmul.f32 0.35355338, %v41_v40  ;;  %v43_v50 = vunpack.c.l.bf16 %v2850_v7  ;;  %v2983_v30 = vld [vmem:[%s3705_s2 + $0x18] sm:$0xff]  ;;  %v2994_v37 = vld [vmem:[%s3705_s2 + $0x20] sm:$0xff] }
   0x9   :  { %v44_v51 = vunpack.c.h.bf16 %v2850_v7  ;;  %v2910_v52 = vpack.c.bf16 %v68_v43, %v67_v42  ;;  %v45_v54 = vunpack.c.l.bf16 %v2855_v8  ;;  %v46_v58 = vunpack.c.h.bf16 %v2855_v8 }
   0xa   :  { %v70_v49 = vmul.f32 0.35355338, %v42_v44  ;;  %v71_v56 = vmul.f32 0.35355338, %v43_v50  ;;  %v3005_v44 = vld [vmem:[%s3705_s2 + $0x28] sm:$0xff]  ;;  %v3014_v50 = vld [vmem:[%s3705_s2 + $0x30] sm:$0xff] }
   0xb   :  { %293 = vrot.lane.b32.xlu0 %v2838_v5, %s2781_s20  ;;  %343 = vrot.lane.b32.xlu1 %v2843_v6, %s2781_s20  ;;  %v72_v57 = vmul.f32 0.35355338, %v44_v51  ;;  %v73_v61 = vmul.f32 0.35355338, %v45_v54  ;;  %v74_v62 = vmul.f32 0.35355338, %v46_v58 }
   0xc   :  { %v2920_v59 = vpack.c.bf16 %v70_v49, %v69_v47  ;;  %v3027_v58 = vld [vmem:[%s3705_s2 + $0x38] sm:$0xff]  ;;  %vm2238_vm4 = vcmask 126016  }
   0xd   :  { %v2928_v63 = vpack.c.bf16 %v72_v57, %v71_v56  ;;  %v2935_v9 = vpack.c.bf16 %v74_v62, %v73_v61 }
   0xf   :  { %393 = vrot.lane.b32.xlu0 %v2850_v7, %s2781_s20  ;;  %443 = vrot.lane.b32.xlu1 %v2855_v8, %s2781_s20 }
  0x13   :  { %693 = vrot.lane.b32.xlu1 %v2810_v0, %s2782_s29 }
  0x75   :  { %v93_v12 = vpop.permute.xlu0 %92  ;;  %v194_v17 = vpop.permute.xlu1 %193 }
  0x76   :  { %v99_v14 = vsel %vm94_vm1, %v93_v12, 0  ;;  %v199_v25 = vsel %vm94_vm1, %v194_v17, 0 }
  0x77   :  { %2428 = vmatpush3.bf16.xpose.msra.mxu0 %v99_v14  ;;  %v2957_v14 = vld [vmem:[%s3705_s2] sm:$0xff] }
  0x78   :  { %2439 = vmatprep.subr.bf16.mxu0 %v2779_v3 }
  0x79   :  { %v144_v20 = vpop.permute.xlu0 %143  ;;  %v244_v27 = vpop.permute.xlu1 %243 }
  0x7a   :  { %v149_v21 = vsel %vm94_vm1, %v144_v20, 0  ;;  %v249_v32 = vsel %vm94_vm1, %v244_v27, 0 }
  0x7b   :  { %2434 = vmatpush3.bf16.xpose.msra.mxu1 %v149_v21 }
  0x7c   :  { %2445 = vmatprep.subr.bf16.mxu1 %v2779_v3 }
  0x7d   :  { %v294_v34 = vpop.permute.xlu0 %293  ;;  %v344_v41 = vpop.permute.xlu1 %343 }
  0x7e   :  { %2430 = vmatmul.mubr.msk.bf16.vlgmr.msra.gmra.mrb[0].mxu0 %vm94_vm1, %v2872_v22  ;;  %v299_v39 = vsel %vm94_vm1, %v294_v34, 0  ;;  %v349_v46 = vsel %vm94_vm1, %v344_v41, 0 }
  0x7f   :  { %2440 = vmatpush3.bf16.xpose.msra.mxu0 %v199_v25  ;;  %2441 = vmatprep.mubr.msk.bf16.mxu0 %vm2780_vm0, %v2779_v3 }
  0x80   :  { %2451 = vmatprep.subr.bf16.mxu0 %v2779_v3 }
  0x81   :  { %v394_v48 = vpop.permute.xlu0 %393  ;;  %v444_v55 = vpop.permute.xlu1 %443 }
  0x82   :  { %2436 = vmatmul.mubr.msk.bf16.vlgmr.msra.gmra.mrb[0].mxu1 %vm94_vm1, %v2880_v31  ;;  %v399_v53 = vsel %vm94_vm1, %v394_v48, 0  ;;  %v449_v60 = vsel %vm94_vm1, %v444_v55, 0 }
  0x83   :  { %2446 = vmatpush3.bf16.xpose.msra.mxu1 %v249_v32  ;;  %2447 = vmatprep.mubr.msk.bf16.mxu1 %vm2780_vm0, %v2779_v3 }
  0x84   :  { %2457 = vmatprep.subr.bf16.mxu1 %v2779_v3 }
  0x85   :  { %v694_v10 = vpop.permute.xlu1 %693 }
  0x86   :  { %2442 = vmatmul.mubr.msk.bf16.vlgmr.msra.gmra.mrb[4].mxu0 %vm94_vm1, %v2890_v38 }
  0x87   :  { %2452 = vmatpush3.bf16.xpose.msra.mxu0 %v299_v39  ;;  %2453 = vmatprep.mubr.msk.bf16.mxu0 %vm2780_vm0, %v2779_v3 }
  0x88   :  { %2463 = vmatprep.subr.bf16.mxu0 %v2779_v3 }
  0x8a   :  { %2448 = vmatmul.mubr.msk.bf16.vlgmr.msra.gmra.mrb[4].mxu1 %vm94_vm1, %v2900_v45 }
  0x8b   :  { %2458 = vmatpush3.bf16.xpose.msra.mxu1 %v349_v46  ;;  %2459 = vmatprep.mubr.msk.bf16.mxu1 %vm2780_vm0, %v2779_v3 }
  0x8c   :  { %2469 = vmatprep.subr.bf16.mxu1 %v2779_v3 }
  0x8e   :  { %2454 = vmatmul.mubr.msk.bf16.vlgmr.msra.gmra.mrb[8].mxu0 %vm94_vm1, %v2910_v52 }
  0x8f   :  { %2464 = vmatpush3.bf16.xpose.msra.mxu0 %v399_v53  ;;  %2465 = vmatprep.mubr.msk.bf16.mxu0 %vm2780_vm0, %v2779_v3 }
  0x90   :  { %2475 = vmatprep.subr.bf16.mxu0 %v2779_v3 }
  0x92   :  { %2460 = vmatmul.mubr.msk.bf16.vlgmr.msra.gmra.mrb[8].mxu1 %vm94_vm1, %v2920_v59 }
  0x93   :  { %2470 = vmatpush3.bf16.xpose.msra.mxu1 %v449_v60  ;;  %2471 = vmatprep.mubr.msk.bf16.mxu1 %vm2780_vm0, %v2779_v3 }
  0x94   :  { %2481 = vmatprep.subr.bf16.mxu1 %v2779_v3 }
  0x96   :  { %2466 = vmatmul.mubr.msk.bf16.vlgmr.msra.gmra.mrb[12].mxu0 %vm94_vm1, %v2928_v63 }
  0x97   :  { %2477 = vmatprep.mubr.msk.bf16.mxu0 %vm2780_vm0, %v2779_v3  ;;  %2476 = vmatpush3.bf16.msra.mxu0 %v694_v10 }
  0x98   :  { %2487 = vmatprep.subr.bf16.mxu0 %v2779_v3 }
  0x9a   :  { %2472 = vmatmul.mubr.msk.bf16.vlgmr.msra.gmra.mrb[12].mxu1 %vm94_vm1, %v2935_v9 }
  0x9b   :  { %2483 = vmatprep.mubr.msk.bf16.mxu1 %vm2780_vm0, %v2779_v3 }
 0x151   :  { %v135_v12 = vpop.f32.mrb[0].mxu0 }
 0x152   :  { %v136_v15 = vadd.f32 %v135_v12, %v2947_v11  ;;  %v2431_v16 = vpop.f32.mrb[1].mxu0 }
 0x153   :  { %v138_v17 = vpop.f32.mrb[2].mxu0 }
 0x154   :  { %v139_v19 = vadd.f32 %v138_v17, %v2952_v13  ;;  %v2432_v20 = vpop.f32.mrb[3].mxu0  ;;  %v2967_v21 = vadd.f32 %v136_v15, %v2957_v14 }
 0x155   :  { %v185_v23 = vpop.f32.mrb[0].mxu1 }
 0x156   :  { %v186_v25 = vadd.f32 %v185_v23, %v2947_v11  ;;  %v2437_v26 = vpop.f32.mrb[1].mxu1  ;;  %v509_v27 = vsel %vm508_vm2, %v2967_v21, -inf  ;;  %v2978_v28 = vadd.f32 %v139_v19, %v2963_v18 }
 0x157   :  { %v188_v29 = vpop.f32.mrb[2].mxu1  ;;  %510 = vmax.xlane.f32.xlu0 %v509_v27 }
 0x158   :  { %v189_v32 = vadd.f32 %v188_v29, %v2952_v13  ;;  %v2438_v33 = vpop.f32.mrb[3].mxu1  ;;  %v512_v34 = vsel %vm508_vm2, %v2978_v28, -inf  ;;  %v2989_v35 = vadd.f32 %v186_v25, %v2972_v24 }
 0x159   :  { %513 = vmax.xlane.f32.xlu1 %v512_v34  ;;  %v235_v36 = vpop.f32.mrb[4].mxu0 }
 0x15a   :  { %v236_v39 = vadd.f32 %v235_v36, %v2947_v11  ;;  %v2443_v40 = vpop.f32.mrb[5].mxu0  ;;  %v515_v41 = vsel %vm508_vm2, %v2989_v35, -inf  ;;  %v3000_v42 = vadd.f32 %v189_v32, %v2983_v30 }
 0x15b   :  { %516 = vmax.xlane.f32.xlu0 %v515_v41  ;;  %v238_v43 = vpop.f32.mrb[6].mxu0 }
 0x15c   :  { %v239_v46 = vadd.f32 %v238_v43, %v2952_v13  ;;  %v2444_v47 = vpop.f32.mrb[7].mxu0  ;;  %v3009_v48 = vadd.f32 %v236_v39, %v2994_v37  ;;  %v518_v54 = vsel %vm508_vm2, %v3000_v42, -inf }
 0x15d   :  { %v285_v49 = vpop.f32.mrb[4].mxu1 }
 0x15e   :  { %v286_v51 = vadd.f32 %v285_v49, %v2947_v11  ;;  %v2449_v53 = vpop.f32.mrb[5].mxu1  ;;  %v521_v55 = vsel %vm508_vm2, %v3009_v48, -inf  ;;  %v3022_v56 = vadd.f32 %v239_v46, %v3005_v44 }
 0x15f   :  { %v288_v57 = vpop.f32.mrb[6].mxu1  ;;  %519 = vmax.xlane.f32.xlu0 %v518_v54  ;;  %522 = vmax.xlane.f32.xlu1 %v521_v55 }
 0x160   :  { %v289_v60 = vadd.f32 %v288_v57, %v2952_v13  ;;  %v2450_v61 = vpop.f32.mrb[7].mxu1  ;;  %v3031_v62 = vadd.f32 %v286_v51, %v3014_v50  ;;  %v524_v17 = vsel %vm508_vm2, %v3022_v56, -inf }
 0x161   :  { %v335_v10 = vpop.f32.mrb[8].mxu0 }
 0x162   :  { %v336_v12 = vadd.f32 %v335_v10, %v2947_v11  ;;  %v2455_v15 = vpop.f32.mrb[9].mxu0  ;;  %v527_v16 = vsel %vm508_vm2, %v3031_v62, -inf  ;;  %v3039_v19 = vadd.f32 %v289_v60, %v3027_v58 }
 0x163   :  { %528 = vmax.xlane.f32.xlu1 %v527_v16  ;;  %525 = vmax.xlane.f32.xlu0 %v524_v17  ;;  %v338_v20 = vpop.f32.mrb[10].mxu0 }
 0x164   :  { %v339_v23 = vadd.f32 %v338_v20, %v2952_v13  ;;  %v2456_v25 = vpop.f32.mrb[11].mxu0  ;;  %v3043_v26 = vadd.f32 %v336_v12, %v2957_v14  ;;  %v530_v33 = vsel %vm508_vm2, %v3039_v19, -inf }
 0x165   :  { %v385_v27 = vpop.f32.mrb[8].mxu1 }
 0x166   :  { %v386_v29 = vadd.f32 %v385_v27, %v2947_v11  ;;  %v2461_v32 = vpop.f32.mrb[9].mxu1  ;;  %v533_v34 = vsel %vm508_vm2, %v3043_v26, -inf  ;;  %v3051_v36 = vadd.f32 %v339_v23, %v2963_v18 }
 0x167   :  { %v388_v39 = vpop.f32.mrb[10].mxu1  ;;  %531 = vmax.xlane.f32.xlu0 %v530_v33  ;;  %534 = vmax.xlane.f32.xlu1 %v533_v34 }
 0x168   :  { %v389_v40 = vadd.f32 %v388_v39, %v2952_v13  ;;  %v2462_v41 = vpop.f32.mrb[11].mxu1  ;;  %v3055_v43 = vadd.f32 %v386_v29, %v2972_v24  ;;  %v536_v53 = vsel %vm508_vm2, %v3051_v36, -inf }
 0x169   :  { %v435_v46 = vpop.f32.mrb[12].mxu0 }
 0x16a   :  { %v436_v47 = vadd.f32 %v435_v46, %v2947_v11  ;;  %v2467_v49 = vpop.f32.mrb[13].mxu0  ;;  %v539_v51 = vsel %vm508_vm2, %v3055_v43, -inf  ;;  %v3063_v54 = vadd.f32 %v389_v40, %v2983_v30 }
 0x16b   :  { %540 = vmax.xlane.f32.xlu1 %v539_v51  ;;  %537 = vmax.xlane.f32.xlu0 %v536_v53  ;;  %v438_v55 = vpop.f32.mrb[14].mxu0 }
 0x16c   :  { %v439_v57 = vadd.f32 %v438_v55, %v2952_v13  ;;  %v2468_v60 = vpop.f32.mrb[15].mxu0  ;;  %v3067_v61 = vadd.f32 %v436_v47, %v2994_v37  ;;  %v542_v16 = vsel %vm508_vm2, %v3063_v54, -inf }
 0x16d   :  { %v485_v10 = vpop.f32.mrb[12].mxu1 }
 0x16e   :  { %v486_v12 = vadd.f32 %v485_v10, %v2947_v11  ;;  %v2473_v15 = vpop.f32.mrb[13].mxu1  ;;  %v545_v17 = vsel %vm508_vm2, %v3067_v61, -inf  ;;  %v3075_v20 = vadd.f32 %v439_v57, %v3005_v44 }
 0x16f   :  { %v488_v23 = vpop.f32.mrb[14].mxu1  ;;  %543 = vmax.xlane.f32.xlu0 %v542_v16  ;;  %546 = vmax.xlane.f32.xlu1 %v545_v17 }
 0x170   :  { %v489_v25 = vadd.f32 %v488_v23, %v2952_v13  ;;  %v2474_v27 = vpop.f32.mrb[15].mxu1  ;;  %v3079_v29 = vadd.f32 %v486_v12, %v3014_v50  ;;  %v548_v32 = vsel %vm508_vm2, %v3075_v20, -inf }
 0x172   :  { %v551_v11 = vsel %vm508_vm2, %v3079_v29, -inf  ;;  %v3086_v33 = vadd.f32 %v489_v25, %v3027_v58 }
 0x173   :  { %552 = vmax.xlane.f32.xlu1 %v551_v11  ;;  %549 = vmax.xlane.f32.xlu0 %v548_v32 }
 0x174   :  { %v554_v34 = vsel %vm508_vm2, %v3086_v33, -inf }
 0x177   :  { %555 = vmax.xlane.f32.xlu0 %v554_v34 }
 0x184   :  { %787 = vrot.lane.b32.xlu1 %v2820_v2, %s2782_s29 }
 0x188   :  { %834 = vrot.lane.b32.xlu1 %v2827_v4, %s2782_s29 }
 0x18c   :  { %928 = vrot.lane.b32.xlu1 %v2843_v6, %s2782_s29 }
 0x18d   :  { %740 = vrot.lane.b32.xlu0 %v2815_v1, %s2782_s29 }
 0x190   :  { %1022 = vrot.lane.b32.xlu1 %v2855_v8, %s2782_s29 }
 0x191   :  { %881 = vrot.lane.b32.xlu0 %v2838_v5, %s2782_s29 }
 0x195   :  { %975 = vrot.lane.b32.xlu0 %v2850_v7, %s2782_s29 }
 0x1e4   :  { %v511_v13 = vpop.xlane.xlu0 %510 }
 0x1e5   :  { %v557_v39 = vsub.f32 %v2967_v21, %v511_v13 }
 0x1e6   :  { %v514_v40 = vpop.xlane.xlu1 %513 }
 0x1e7   :  { %v573_v41 = vmul.f32 1.442695, %v557_v39  ;;  %v558_v46 = vsub.f32 %v2978_v28, %v514_v40 }
 0x1e8   :  { %v517_v47 = vpop.xlane.xlu0 %516 }
 0x1e9   :  { %2643 = vpow2.f32 %v573_v41  ;;  %v575_v49 = vmul.f32 1.442695, %v558_v46  ;;  %v559_v51 = vsub.f32 %v2989_v35, %v517_v47 }
 0x1eb   :  { %2645 = vpow2.f32 %v575_v49  ;;  %v577_v53 = vmul.f32 1.442695, %v559_v51 }
 0x1ec   :  { %v520_v55 = vpop.xlane.xlu0 %519  ;;  %v523_v57 = vpop.xlane.xlu1 %522 }
 0x1ed   :  { %2647 = vpow2.f32 %v577_v53  ;;  %v560_v60 = vsub.f32 %v3000_v42, %v520_v55  ;;  %v561_v10 = vsub.f32 %v3009_v48, %v523_v57 }
 0x1ef   :  { %v579_v12 = vmul.f32 1.442695, %v560_v60  ;;  %v581_v21 = vmul.f32 1.442695, %v561_v10 }
 0x1f0   :  { %v529_v15 = vpop.xlane.xlu1 %528  ;;  %v526_v16 = vpop.xlane.xlu0 %525 }
 0x1f1   :  { %2649 = vpow2.f32 %v579_v12  ;;  %v563_v28 = vsub.f32 %v3031_v62, %v529_v15  ;;  %v562_v17 = vsub.f32 %v3022_v56, %v526_v16 }
 0x1f2   :  { %2651 = vpow2.f32 %v581_v21 }
 0x1f3   :  { %v3111_v35 = vpop.eup %2643  ;;  %v585_v23 = vmul.f32 1.442695, %v563_v28  ;;  %v583_v25 = vmul.f32 1.442695, %v562_v17 }
 0x1f4   :  { %v532_v27 = vpop.xlane.xlu0 %531  ;;  %v535_v11 = vpop.xlane.xlu1 %534  ;;  %v605_v42 = vsel %vm508_vm2, %v3111_v35, 0.0 }
 0x1f5   :  { %v3115_v48 = vpop.eup %2645  ;;  %2653 = vpow2.f32 %v585_v23  ;;  %v564_v32 = vsub.f32 %v3039_v19, %v532_v27  ;;  %v565_v34 = vsub.f32 %v3043_v26, %v535_v11  ;;  %606 = vadd.xlane.f32.xlu1 %v605_v42 }
 0x1f6   :  { %2655 = vpow2.f32 %v583_v25  ;;  %v608_v56 = vsel %vm508_vm2, %v3115_v48, 0.0 }
 0x1f7   :  { %v3121_v62 = vpop.eup %2647  ;;  %v587_v13 = vmul.f32 1.442695, %v564_v32  ;;  %v589_v39 = vmul.f32 1.442695, %v565_v34  ;;  %609 = vadd.xlane.f32.xlu0 %v608_v56 }
 0x1f8   :  { %v541_v40 = vpop.xlane.xlu1 %540  ;;  %v538_v41 = vpop.xlane.xlu0 %537  ;;  %v611_v46 = vsel %vm508_vm2, %v3121_v62, 0.0 }
 0x1f9   :  { %2657 = vpow2.f32 %v587_v13  ;;  %v567_v19 = vsub.f32 %v3055_v43, %v541_v40  ;;  %v566_v26 = vsub.f32 %v3051_v36, %v538_v41  ;;  %612 = vadd.xlane.f32.xlu1 %v611_v46 }
 0x1fa   :  { %2659 = vpow2.f32 %v589_v39 }
 0x1fb   :  { %v3127_v47 = vpop.eup %2649  ;;  %v593_v49 = vmul.f32 1.442695, %v567_v19  ;;  %v591_v51 = vmul.f32 1.442695, %v566_v26 }
 0x1fc   :  { %v3129_v53 = vpop.eup %2651  ;;  %v544_v55 = vpop.xlane.xlu0 %543  ;;  %v614_v60 = vsel %vm508_vm2, %v3127_v47, 0.0 }
 0x1fd   :  { %v547_v57 = vpop.xlane.xlu1 %546  ;;  %2661 = vpow2.f32 %v593_v49  ;;  %v568_v10 = vsub.f32 %v3063_v54, %v544_v55  ;;  %v617_v36 = vsel %vm508_vm2, %v3129_v53, 0.0  ;;  %615 = vadd.xlane.f32.xlu0 %v614_v60 }
 0x1fe   :  { %v569_v43 = vsub.f32 %v3067_v61, %v547_v57  ;;  %2663 = vpow2.f32 %v591_v51  ;;  %618 = vadd.xlane.f32.xlu1 %v617_v36 }
 0x1ff   :  { %v3137_v12 = vpop.eup %2653  ;;  %v595_v21 = vmul.f32 1.442695, %v568_v10 }
 0x200   :  { %v597_v15 = vmul.f32 1.442695, %v569_v43  ;;  %v3139_v16 = vpop.eup %2655  ;;  %v550_v17 = vpop.xlane.xlu0 %549  ;;  %v623_v23 = vsel %vm508_vm2, %v3137_v12, 0.0 }
 0x201   :  { %v553_v28 = vpop.xlane.xlu1 %552  ;;  %2665 = vpow2.f32 %v595_v21  ;;  %v570_v61 = vsub.f32 %v3075_v20, %v550_v17  ;;  %v620_v25 = vsel %vm508_vm2, %v3139_v16, 0.0 }
 0x202   :  { %v571_v54 = vsub.f32 %v3079_v29, %v553_v28  ;;  %2667 = vpow2.f32 %v597_v15  ;;  %624 = vadd.xlane.f32.xlu1 %v623_v23  ;;  %621 = vadd.xlane.f32.xlu0 %v620_v25 }
 0x203   :  { %v3147_v27 = vpop.eup %2657  ;;  %v599_v42 = vmul.f32 1.442695, %v570_v61 }
 0x204   :  { %v601_v11 = vmul.f32 1.442695, %v571_v54  ;;  %v3149_v32 = vpop.eup %2659  ;;  %v556_v34 = vpop.xlane.xlu0 %555  ;;  %v626_v56 = vsel %vm508_vm2, %v3147_v27, 0.0 }
 0x205   :  { %v572_v29 = vsub.f32 %v3086_v33, %v556_v34  ;;  %v629_v20 = vsel %vm508_vm2, %v3149_v32, 0.0 }
 0x206   :  { %2669 = vpow2.f32 %v601_v11  ;;  %630 = vadd.xlane.f32.xlu1 %v629_v20  ;;  %627 = vadd.xlane.f32.xlu0 %v626_v56 }
 0x207   :  { %2671 = vpow2.f32 %v599_v42  ;;  %v3156_v13 = vpop.eup %2661  ;;  %v603_v39 = vmul.f32 1.442695, %v572_v29 }
 0x208   :  { %v3158_v40 = vpop.eup %2663  ;;  %v635_v41 = vsel %vm508_vm2, %v3156_v13, 0.0  ;;  %v741_v46 = vpop.permute.xlu0 %740 }
 0x209   :  { %2673 = vpow2.f32 %v603_v39  ;;  %v632_v19 = vsel %vm508_vm2, %v3158_v40, 0.0  ;;  %2482 = vmatpush3.bf16.msra.mxu1 %v741_v46 }
 0x20a   :  { %636 = vadd.xlane.f32.xlu1 %v635_v41  ;;  %633 = vadd.xlane.f32.xlu0 %v632_v19 }
 0x20b   :  { %v3164_v33 = vpop.eup %2665  ;;  %2493 = vmatprep.subr.bf16.mxu1 %v2779_v3 }
 0x20c   :  { %v3167_v26 = vpop.eup %2667  ;;  %v638_v49 = vsel %vm508_vm2, %v3164_v33, 0.0  ;;  %v882_v21 = vpop.permute.xlu0 %881 }
 0x20d   :  { %v641_v51 = vsel %vm508_vm2, %v3167_v26, 0.0 }
 0x20e   :  { %642 = vadd.xlane.f32.xlu1 %v641_v51  ;;  %639 = vadd.xlane.f32.xlu0 %v638_v49 }
 0x210   :  { %v3173_v55 = vpop.eup %2669 }
 0x211   :  { %v3175_v57 = vpop.eup %2671  ;;  %v647_v60 = vsel %vm508_vm2, %v3173_v55, 0.0 }
 0x212   :  { %v644_v10 = vsel %vm508_vm2, %v3175_v57, 0.0  ;;  %648 = vadd.xlane.f32.xlu1 %v647_v60 }
 0x213   :  { %645 = vadd.xlane.f32.xlu0 %v644_v10  ;;  %v3181_v43 = vpop.eup %2673 }
 0x214   :  { %v650_v36 = vsel %vm508_vm2, %v3181_v43, 0.0 }
 0x217   :  { %651 = vadd.xlane.f32.xlu0 %v650_v36 }
 0x223   :  { %1205 = vrot.lane.b32.xlu1 %v2815_v1, %s2783_s22 }
 0x227   :  { %1203 = vrot.lane.b32.xlu1 %v2880_v31, %s2784_s23 }
 0x22b   :  { %1309 = vrot.lane.b32.xlu1 %v2827_v4, %s2783_s22 }
 0x22d   :  { %1153 = vrot.lane.b32.xlu0 %v2810_v0, %s2783_s22 }
 0x22f   :  { %1307 = vrot.lane.b32.xlu1 %v2900_v45, %s2784_s23 }
 0x231   :  { %1151 = vrot.lane.b32.xlu0 %v2872_v22, %s2784_s23  ;;  %v788_v22 = vpop.permute.xlu1 %787 }
 0x233   :  { %1413 = vrot.lane.b32.xlu1 %v2843_v6, %s2783_s22 }
 0x235   :  { %1257 = vrot.lane.b32.xlu0 %v2820_v2, %s2783_s22  ;;  %v835_v31 = vpop.permute.xlu1 %834 }
 0x237   :  { %1411 = vrot.lane.b32.xlu1 %v2920_v59, %s2784_s23 }
 0x239   :  { %1255 = vrot.lane.b32.xlu0 %v2890_v38, %s2784_s23  ;;  %v3201_v45 = vpop.permute.xlu1 %928  ;;  %v3205_v38 = vpop.permute.xlu0 %975 }
 0x23b   :  { %1517 = vrot.lane.b32.xlu1 %v2855_v8, %s2783_s22 }
 0x23d   :  { %1361 = vrot.lane.b32.xlu0 %v2838_v5, %s2783_s22  ;;  %v3203_v59 = vpop.permute.xlu1 %1022 }
 0x23f   :  { %1515 = vrot.lane.b32.xlu1 %v2935_v9, %s2784_s23 }
 0x241   :  { %1359 = vrot.lane.b32.xlu0 %v2910_v52, %s2784_s23 }
 0x243   :  { %1766 = vrot.lane.b32.xlu1 %v2810_v0, %s2785_s24 }
 0x245   :  { %1465 = vrot.lane.b32.xlu0 %v2850_v7, %s2783_s22 }
 0x249   :  { %1463 = vrot.lane.b32.xlu0 %v2928_v63, %s2784_s23 }
 0x282   :  { %v607_v15 = vpop.xlane.xlu1 %606 }
 0x283   :  { %2675 = vrcp.f32 %v607_v15 }
 0x284   :  { %v610_v28 = vpop.xlane.xlu0 %609 }
 0x285   :  { %2677 = vrcp.f32 %v610_v28 }
 0x286   :  { %v613_v9 = vpop.xlane.xlu1 %612 }
 0x287   :  { %2679 = vrcp.f32 %v613_v9 }
 0x28a   :  { %v616_v52 = vpop.xlane.xlu0 %615 }
 0x28b   :  { %v619_v17 = vpop.xlane.xlu1 %618  ;;  %2681 = vrcp.f32 %v616_v52 }
 0x28c   :  { %2683 = vrcp.f32 %v619_v17 }
 0x28d   :  { %v2676_v23 = vpop.eup %2675 }
 0x28e   :  { %v669_v25 = vmul.f32 %v2676_v23, %v3111_v35 }
 0x28f   :  { %v2678_v63 = vpop.eup %2677  ;;  %v625_v54 = vpop.xlane.xlu1 %624 }
 0x290   :  { %v622_v61 = vpop.xlane.xlu0 %621  ;;  %v670_v11 = vmul.f32 %v2678_v63, %v3115_v48 }
 0x291   :  { %2685 = vrcp.f32 %v622_v61  ;;  %v2680_v34 = vpop.eup %2679 }
 0x292   :  { %v685_v42 = vpack.c.bf16 %v670_v11, %v669_v25  ;;  %2687 = vrcp.f32 %v625_v54  ;;  %v671_v39 = vmul.f32 %v2680_v34, %v3121_v62 }
 0x293   :  { %v631_v56 = vpop.xlane.xlu1 %630 }
 0x294   :  { %v628_v29 = vpop.xlane.xlu0 %627  ;;  %2478 = vmatmul.mubr.msk.bf16.vlgmr.msra.gmra.mrb[16].mxu0 %vm508_vm2, %v685_v42 }
 0x295   :  { %v2682_v20 = vpop.eup %2681  ;;  %2689 = vrcp.f32 %v628_v29  ;;  %2488 = vmatpush3.bf16.msra.mxu0 %v788_v22  ;;  %2489 = vmatprep.mubr.msk.bf16.mxu0 %vm2780_vm0, %v2779_v3 }
 0x296   :  { %v672_v35 = vmul.f32 %v2682_v20, %v3127_v47  ;;  %2499 = vmatprep.subr.bf16.mxu0 %v2779_v3  ;;  %2691 = vrcp.f32 %v631_v56  ;;  %v2684_v19 = vpop.eup %2683 }
 0x297   :  { %v637_v48 = vpop.xlane.xlu1 %636  ;;  %v673_v62 = vmul.f32 %v2684_v19, %v3129_v53 }
 0x298   :  { %v634_v41 = vpop.xlane.xlu0 %633  ;;  %v686_v46 = vpack.c.bf16 %v672_v35, %v671_v39 }
 0x299   :  { %2693 = vrcp.f32 %v634_v41 }
 0x29a   :  { %2484 = vmatmul.mubr.msk.bf16.vlgmr.msra.gmra.mrb[16].mxu1 %vm508_vm2, %v686_v46  ;;  %2695 = vrcp.f32 %v637_v48 }
 0x29b   :  { %v2686_v49 = vpop.eup %2685  ;;  %v643_v51 = vpop.xlane.xlu1 %642  ;;  %2494 = vmatpush3.bf16.msra.mxu1 %v835_v31  ;;  %2495 = vmatprep.mubr.msk.bf16.mxu1 %vm2780_vm0, %v2779_v3 }
 0x29c   :  { %v640_v60 = vpop.xlane.xlu0 %639  ;;  %v674_v47 = vmul.f32 %v2686_v49, %v3139_v16  ;;  %2505 = vmatprep.subr.bf16.mxu1 %v2779_v3  ;;  %v2688_v10 = vpop.eup %2687 }
 0x29d   :  { %2697 = vrcp.f32 %v640_v60  ;;  %v675_v9 = vmul.f32 %v2688_v10, %v3137_v12 }
 0x29e   :  { %v687_v36 = vpack.c.bf16 %v674_v47, %v673_v62  ;;  %2699 = vrcp.f32 %v643_v51 }
 0x29f   :  { %v2690_v22 = vpop.eup %2689  ;;  %v649_v15 = vpop.xlane.xlu1 %648 }
 0x2a0   :  { %v646_v28 = vpop.xlane.xlu0 %645  ;;  %v676_v31 = vmul.f32 %v2690_v22, %v3147_v27  ;;  %2490 = vmatmul.mubr.msk.bf16.vlgmr.msra.gmra.mrb[20].mxu0 %vm508_vm2, %v687_v36  ;;  %v2692_v52 = vpop.eup %2691 }
 0x2a1   :  { %2500 = vmatpush3.bf16.msra.mxu0 %v882_v21  ;;  %2701 = vrcp.f32 %v646_v28  ;;  %2501 = vmatprep.mubr.msk.bf16.mxu0 %vm2780_vm0, %v2779_v3  ;;  %v677_v23 = vmul.f32 %v2692_v52, %v3149_v32 }
 0x2a2   :  { %2703 = vrcp.f32 %v649_v15  ;;  %v688_v53 = vpack.c.bf16 %v676_v31, %v675_v9  ;;  %2511 = vmatprep.subr.bf16.mxu0 %v2779_v3 }
 0x2a3   :  { %v2694_v16 = vpop.eup %2693  ;;  %v1206_v27 = vpop.permute.xlu1 %1205 }
 0x2a4   :  { %v652_v17 = vpop.xlane.xlu0 %651  ;;  %v678_v12 = vmul.f32 %v2694_v16, %v3158_v40  ;;  %2496 = vmatmul.mubr.msk.bf16.vlgmr.msra.gmra.mrb[20].mxu1 %vm508_vm2, %v688_v53  ;;  %v2696_v63 = vpop.eup %2695 }
 0x2a5   :  { %2705 = vrcp.f32 %v652_v17  ;;  %2506 = vmatpush3.bf16.msra.mxu1 %v3201_v45  ;;  %2507 = vmatprep.mubr.msk.bf16.mxu1 %vm2780_vm0, %v2779_v3  ;;  %v679_v25 = vmul.f32 %v2696_v63, %v3156_v13 }
 0x2a6   :  { %v689_v21 = vpack.c.bf16 %v678_v12, %v677_v23  ;;  %2517 = vmatprep.subr.bf16.mxu1 %v2779_v3 }
 0x2a7   :  { %v2698_v54 = vpop.eup %2697  ;;  %v1204_v11 = vpop.permute.xlu1 %1203 }
 0x2a8   :  { %v1154_v61 = vpop.permute.xlu0 %1153  ;;  %v680_v32 = vmul.f32 %v2698_v54, %v3164_v33  ;;  %2502 = vmatmul.mubr.msk.bf16.vlgmr.msra.gmra.mrb[24].mxu0 %vm508_vm2, %v689_v21  ;;  %v2700_v40 = vpop.eup %2699 }
 0x2a9   :  { %2512 = vmatpush3.bf16.msra.mxu0 %v3205_v38  ;;  %2513 = vmatprep.mubr.msk.bf16.mxu0 %vm2780_vm0, %v2779_v3  ;;  %v681_v29 = vmul.f32 %v2700_v40, %v3167_v26  ;;  %v1159_v35 = vsel %vm94_vm1, %v1154_v61, 0 }
 0x2aa   :  { %v690_v45 = vpack.c.bf16 %v680_v32, %v679_v25  ;;  %2523 = vmatprep.subr.bf16.mxu0 %v2779_v3 }
 0x2ab   :  { %v2702_v42 = vpop.eup %2701 }
 0x2ac   :  { %v1152_v34 = vpop.permute.xlu0 %1151  ;;  %v2704_v56 = vpop.eup %2703  ;;  %v682_v13 = vmul.f32 %v2702_v42, %v3175_v57  ;;  %2508 = vmatmul.mubr.msk.bf16.vlgmr.msra.gmra.mrb[24].mxu1 %vm508_vm2, %v690_v45 }
 0x2ad   :  { %2518 = vmatpush3.bf16.msra.mxu1 %v3203_v59  ;;  %2519 = vmatprep.mubr.msk.bf16.mxu1 %vm2780_vm0, %v2779_v3  ;;  %v683_v20 = vmul.f32 %v2704_v56, %v3173_v55  ;;  %v1310_v57 = vpop.permute.xlu1 %1309  ;;  %v1211_v59 = vsel %vm94_vm1, %v1206_v27, 0 }
 0x2ae   :  { %v691_v38 = vpack.c.bf16 %v682_v13, %v681_v29  ;;  %2529 = vmatprep.subr.bf16.mxu1 %v2779_v3  ;;  %v1315_v19 = vsel %vm94_vm1, %v1310_v57, 0 }
 0x2af   :  { %v2706_v33 = vpop.eup %2705 }
 0x2b0   :  { %v684_v39 = vmul.f32 %v2706_v33, %v3181_v43  ;;  %v1258_v26 = vpop.permute.xlu0 %1257  ;;  %2514 = vmatmul.mubr.msk.bf16.vlgmr.msra.gmra.mrb[28].mxu0 %vm508_vm2, %v691_v38 }
 0x2b1   :  { %2525 = vmatprep.mubr.msk.bf16.mxu0 %vm2780_vm0, %v2779_v3  ;;  %v1308_v55 = vpop.permute.xlu1 %1307  ;;  %v1263_v43 = vsel %vm94_vm1, %v1258_v26, 0 }
 0x2b2   :  { %v692_v48 = vpack.c.bf16 %v684_v39, %v683_v20  ;;  %2524 = vmatpush3.bf16.xpose.msra.mxu0 %v1159_v35 }
 0x2b3   :  { %2535 = vmatprep.subr.bf16.mxu0 %v2779_v3 }
 0x2b4   :  { %v1256_v41 = vpop.permute.xlu0 %1255  ;;  %2520 = vmatmul.mubr.msk.bf16.vlgmr.msra.gmra.mrb[28].mxu1 %vm508_vm2, %v692_v48 }
 0x2b5   :  { %2531 = vmatprep.mubr.msk.bf16.mxu1 %vm2780_vm0, %v2779_v3  ;;  %v1414_v49 = vpop.permute.xlu1 %1413 }
 0x2b6   :  { %2530 = vmatpush3.bf16.xpose.msra.mxu1 %v1211_v59  ;;  %v1419_v47 = vsel %vm94_vm1, %v1414_v49, 0 }
 0x2b7   :  { %2541 = vmatprep.subr.bf16.mxu1 %v2779_v3 }
 0x2b8   :  { %v1362_v46 = vpop.permute.xlu0 %1361 }
 0x2b9   :  { %2526 = vmatmul.mubr.msk.bf16.vlgmr.msra.gmra.mrb[32].mxu0 %vm94_vm1, %v1152_v34  ;;  %v1367_v60 = vsel %vm94_vm1, %v1362_v46, 0  ;;  %v1412_v62 = vpop.permute.xlu1 %1411 }
 0x2ba   :  { %2536 = vmatpush3.bf16.xpose.msra.mxu0 %v1263_v43  ;;  %2537 = vmatprep.mubr.msk.bf16.mxu0 %vm2780_vm0, %v2779_v3 }
 0x2bb   :  { %2547 = vmatprep.subr.bf16.mxu0 %v2779_v3 }
 0x2bc   :  { %v1360_v51 = vpop.permute.xlu0 %1359 }
 0x2bd   :  { %2532 = vmatmul.mubr.msk.bf16.vlgmr.msra.gmra.mrb[32].mxu1 %vm94_vm1, %v1204_v11  ;;  %v1518_v22 = vpop.permute.xlu1 %1517 }
 0x2be   :  { %2542 = vmatpush3.bf16.xpose.msra.mxu1 %v1315_v19  ;;  %2543 = vmatprep.mubr.msk.bf16.mxu1 %vm2780_vm0, %v2779_v3  ;;  %v1523_v15 = vsel %vm94_vm1, %v1518_v22, 0 }
 0x2bf   :  { %2553 = vmatprep.subr.bf16.mxu1 %v2779_v3 }
 0x2c0   :  { %v1466_v10 = vpop.permute.xlu0 %1465 }
 0x2c1   :  { %2538 = vmatmul.mubr.msk.bf16.vlgmr.msra.gmra.mrb[36].mxu0 %vm94_vm1, %v1256_v41  ;;  %v1471_v36 = vsel %vm94_vm1, %v1466_v10, 0  ;;  %v1516_v9 = vpop.permute.xlu1 %1515 }
 0x2c2   :  { %2548 = vmatpush3.bf16.xpose.msra.mxu0 %v1367_v60  ;;  %2549 = vmatprep.mubr.msk.bf16.mxu0 %vm2780_vm0, %v2779_v3 }
 0x2c3   :  { %2559 = vmatprep.subr.bf16.mxu0 %v2779_v3 }
 0x2c4   :  { %v1464_v28 = vpop.permute.xlu0 %1463 }
 0x2c5   :  { %2544 = vmatmul.mubr.msk.bf16.vlgmr.msra.gmra.mrb[36].mxu1 %vm94_vm1, %v1308_v55  ;;  %v1767_v31 = vpop.permute.xlu1 %1766 }
 0x2c6   :  { %2554 = vmatpush3.bf16.xpose.msra.mxu1 %v1419_v47  ;;  %2555 = vmatprep.mubr.msk.bf16.mxu1 %vm2780_vm0, %v2779_v3 }
 0x2c7   :  { %2565 = vmatprep.subr.bf16.mxu1 %v2779_v3 }
 0x2c9   :  { %2550 = vmatmul.mubr.msk.bf16.vlgmr.msra.gmra.mrb[40].mxu0 %vm94_vm1, %v1360_v51 }
 0x2ca   :  { %2560 = vmatpush3.bf16.xpose.msra.mxu0 %v1471_v36  ;;  %2561 = vmatprep.mubr.msk.bf16.mxu0 %vm2780_vm0, %v2779_v3 }
 0x2cb   :  { %2571 = vmatprep.subr.bf16.mxu0 %v2779_v3 }
 0x2cd   :  { %2556 = vmatmul.mubr.msk.bf16.vlgmr.msra.gmra.mrb[40].mxu1 %vm94_vm1, %v1412_v62 }
 0x2ce   :  { %2566 = vmatpush3.bf16.xpose.msra.mxu1 %v1523_v15  ;;  %2567 = vmatprep.mubr.msk.bf16.mxu1 %vm2780_vm0, %v2779_v3 }
 0x2cf   :  { %2577 = vmatprep.subr.bf16.mxu1 %v2779_v3 }
 0x2d1   :  { %2562 = vmatmul.mubr.msk.bf16.vlgmr.msra.gmra.mrb[44].mxu0 %vm94_vm1, %v1464_v28 }
 0x2d2   :  { %2573 = vmatprep.mubr.msk.bf16.mxu0 %vm2780_vm0, %v2779_v3  ;;  %2572 = vmatpush3.bf16.msra.mxu0 %v1767_v31 }
 0x2d3   :  { %2583 = vmatprep.subr.bf16.mxu0 %v2779_v3 }
 0x2d5   :  { %2568 = vmatmul.mubr.msk.bf16.vlgmr.msra.gmra.mrb[44].mxu1 %vm94_vm1, %v1516_v9 }
 0x2d6   :  { %2579 = vmatprep.mubr.msk.bf16.mxu1 %vm2780_vm0, %v2779_v3 }
 0x367   :  { %v733_v52 = vpop.f32.mrb[16].mxu0 }
 0x368   :  { %v2331_v53 = vpack.c.bf16 %v733_v52, %v733_v52  ;;  %v2479_v16 = vpop.f32.mrb[17].mxu0  ;;  %v3362_v52 = vld [vmem:[%s3704_s1 + $0x10] sm:$0xff] }
 0x369   :  { %v736_v17 = vpop.f32.mrb[18].mxu0  ;;  %v3371_v16 = vld [vmem:[%s3704_s1 + $0x18] sm:$0xff] }
 0x36a   :  { %1134 = vst.msk [vmem:[%s3706_s3] sm:$0xf] %vm1133_vm3, %v2331_v53  ;;  %v2332_v23 = vpack.c.bf16 %v736_v17, %v736_v17  ;;  %v2480_v12 = vpop.f32.mrb[19].mxu0 }
 0x36c   :  { %1135 = vst.msk [vmem:[%s3706_s3 + $0x4] sm:$0xf] %vm1133_vm3, %v2332_v23 }
 0x36d   :  { %v780_v0 = vpop.f32.mrb[16].mxu1 }
 0x36e   :  { %v2333_v27 = vpack.c.bf16 %v780_v0, %v780_v0  ;;  %v2485_v63 = vpop.f32.mrb[17].mxu1 }
 0x36f   :  { %v783_v21 = vpop.f32.mrb[18].mxu1 }
 0x370   :  { %1136 = vst.msk [vmem:[%s3706_s3 + $0x8] sm:$0xf] %vm1133_vm3, %v2333_v27  ;;  %v2334_v54 = vpack.c.bf16 %v783_v21, %v783_v21  ;;  %v2486_v61 = vpop.f32.mrb[19].mxu1 }
 0x372   :  { %1137 = vst.msk [vmem:[%s3706_s3 + $0xc] sm:$0xf] %vm1133_vm3, %v2334_v54 }
 0x373   :  { %v827_v25 = vpop.f32.mrb[20].mxu0 }
 0x374   :  { %v2335_v32 = vpack.c.bf16 %v827_v25, %v827_v25  ;;  %v2491_v40 = vpop.f32.mrb[21].mxu0 }
 0x375   :  { %v830_v45 = vpop.f32.mrb[22].mxu0 }
 0x376   :  { %1138 = vst.msk [vmem:[%s3706_s3 + $0x10] sm:$0xf] %vm1133_vm3, %v2335_v32  ;;  %v2336_v11 = vpack.c.bf16 %v830_v45, %v830_v45  ;;  %v2492_v42 = vpop.f32.mrb[23].mxu0 }
 0x377   :  { %v874_v34 = vpop.f32.mrb[20].mxu1 }
 0x378   :  { %1139 = vst.msk [vmem:[%s3706_s3 + $0x14] sm:$0xf] %vm1133_vm3, %v2336_v11  ;;  %v2337_v56 = vpack.c.bf16 %v874_v34, %v874_v34  ;;  %v2497_v29 = vpop.f32.mrb[21].mxu1 }
 0x379   :  { %v877_v13 = vpop.f32.mrb[22].mxu1 }
 0x37a   :  { %1140 = vst.msk [vmem:[%s3706_s3 + $0x18] sm:$0xf] %vm1133_vm3, %v2337_v56  ;;  %v2338_v33 = vpack.c.bf16 %v877_v13, %v877_v13  ;;  %v2498_v38 = vpop.f32.mrb[23].mxu1 }
 0x37b   :  { %v921_v20 = vpop.f32.mrb[24].mxu0 }
 0x37c   :  { %1141 = vst.msk [vmem:[%s3706_s3 + $0x1c] sm:$0xf] %vm1133_vm3, %v2338_v33  ;;  %v2339_v39 = vpack.c.bf16 %v921_v20, %v921_v20  ;;  %v2503_v35 = vpop.f32.mrb[25].mxu0 }
 0x37d   :  { %v924_v26 = vpop.f32.mrb[26].mxu0 }
 0x37e   :  { %1142 = vst.msk [vmem:[%s3706_s3 + $0x20] sm:$0xf] %vm1133_vm3, %v2339_v39  ;;  %v2340_v57 = vpack.c.bf16 %v924_v26, %v924_v26  ;;  %v2504_v48 = vpop.f32.mrb[27].mxu0 }
 0x37f   :  { %v968_v59 = vpop.f32.mrb[24].mxu1 }
 0x380   :  { %1143 = vst.msk [vmem:[%s3706_s3 + $0x24] sm:$0xf] %vm1133_vm3, %v2340_v57  ;;  %v2341_v41 = vpack.c.bf16 %v968_v59, %v968_v59  ;;  %v2509_v55 = vpop.f32.mrb[25].mxu1 }
 0x381   :  { %v971_v43 = vpop.f32.mrb[26].mxu1 }
 0x382   :  { %1144 = vst.msk [vmem:[%s3706_s3 + $0x28] sm:$0xf] %vm1133_vm3, %v2341_v41  ;;  %v2342_v46 = vpack.c.bf16 %v971_v43, %v971_v43  ;;  %v2510_v19 = vpop.f32.mrb[27].mxu1 }
 0x383   :  { %v1015_v49 = vpop.f32.mrb[28].mxu0 }
 0x384   :  { %1145 = vst.msk [vmem:[%s3706_s3 + $0x2c] sm:$0xf] %vm1133_vm3, %v2342_v46  ;;  %v2343_v51 = vpack.c.bf16 %v1015_v49, %v1015_v49  ;;  %v2515_v60 = vpop.f32.mrb[29].mxu0 }
 0x385   :  { %v1018_v62 = vpop.f32.mrb[30].mxu0 }
 0x386   :  { %1146 = vst.msk [vmem:[%s3706_s3 + $0x30] sm:$0xf] %vm1133_vm3, %v2343_v51  ;;  %v2344_v47 = vpack.c.bf16 %v1018_v62, %v1018_v62  ;;  %v2516_v10 = vpop.f32.mrb[31].mxu0 }
 0x387   :  { %v1062_v36 = vpop.f32.mrb[28].mxu1 }
 0x388   :  { %1147 = vst.msk [vmem:[%s3706_s3 + $0x34] sm:$0xf] %vm1133_vm3, %v2344_v47  ;;  %v2345_v22 = vpack.c.bf16 %v1062_v36, %v1062_v36  ;;  %v2521_v15 = vpop.f32.mrb[29].mxu1  ;;  %v2771_v47 = vld [vmem:[%s3705_s2] sm:$0xff] }
 0x389   :  { %v1065_v28 = vpop.f32.mrb[30].mxu1 }
 0x38a   :  { %1148 = vst.msk [vmem:[%s3706_s3 + $0x38] sm:$0xf] %vm1133_vm3, %v2345_v22  ;;  %v2346_v9 = vpack.c.bf16 %v1065_v28, %v1065_v28  ;;  %v2522_v31 = vpop.f32.mrb[31].mxu1 }
 0x38c   :  { %1149 = vst.msk [vmem:[%s3706_s3 + $0x3c] sm:$0xf] %vm1133_vm3, %v2346_v9  ;;  %v1195_v53 = vpop.f32.mrb[32].mxu0  ;;  %v2772_v9 = vld [vmem:[%s3705_s2 + $0x8] sm:$0xff] }
 0x38d   :  { %v1196_v17 = vadd.f32 %v1195_v53, %v3362_v52  ;;  %v2527_v23 = vpop.f32.mrb[33].mxu0 }
 0x38e   :  { %v1198_v12 = vpop.f32.mrb[34].mxu0 }
 0x38f   :  { %v1199_v0 = vadd.f32 %v1198_v12, %v3371_v16  ;;  %v2528_v27 = vpop.f32.mrb[35].mxu0  ;;  %v3376_v63 = vadd.f32 %v1196_v17, %v2957_v14  ;;  %v2773_v12 = vld [vmem:[%s3705_s2 + $0x10] sm:$0xff] }
 0x390   :  { %v1247_v21 = vpop.f32.mrb[32].mxu1 }
 0x391   :  { %v1248_v54 = vadd.f32 %v1247_v21, %v3362_v52  ;;  %v2533_v61 = vpop.f32.mrb[33].mxu1  ;;  %v1582_v25 = vsel %vm508_vm2, %v3376_v63, -inf  ;;  %v3382_v32 = vadd.f32 %v1199_v0, %v2963_v18 }
 0x392   :  { %v1250_v40 = vpop.f32.mrb[34].mxu1  ;;  %1583 = vmax.xlane.f32.xlu0 %v1582_v25 }
 0x393   :  { %v1251_v45 = vadd.f32 %v1250_v40, %v3371_v16  ;;  %v2534_v11 = vpop.f32.mrb[35].mxu1  ;;  %v1585_v42 = vsel %vm508_vm2, %v3382_v32, -inf  ;;  %v3388_v14 = vadd.f32 %v1248_v54, %v2972_v24  ;;  %v2774_v40 = vld [vmem:[%s3705_s2 + $0x18] sm:$0xff] }
 0x394   :  { %1586 = vmax.xlane.f32.xlu1 %v1585_v42  ;;  %v1299_v34 = vpop.f32.mrb[36].mxu0 }
 0x395   :  { %v1300_v56 = vadd.f32 %v1299_v34, %v3362_v52  ;;  %v2539_v29 = vpop.f32.mrb[37].mxu0  ;;  %v1588_v18 = vsel %vm508_vm2, %v3388_v14, -inf  ;;  %v3394_v13 = vadd.f32 %v1251_v45, %v2983_v30 }
 0x396   :  { %1589 = vmax.xlane.f32.xlu0 %v1588_v18  ;;  %v1302_v33 = vpop.f32.mrb[38].mxu0 }
 0x397   :  { %v1303_v38 = vadd.f32 %v1302_v33, %v3371_v16  ;;  %v2540_v20 = vpop.f32.mrb[39].mxu0  ;;  %v3398_v39 = vadd.f32 %v1300_v56, %v2994_v37  ;;  %v1591_v57 = vsel %vm508_vm2, %v3394_v13, -inf  ;;  %v2775_v56 = vld [vmem:[%s3705_s2 + $0x20] sm:$0xff] }
 0x398   :  { %v1351_v24 = vpop.f32.mrb[36].mxu1 }
 0x399   :  { %v1352_v35 = vadd.f32 %v1351_v24, %v3362_v52  ;;  %v2545_v26 = vpop.f32.mrb[37].mxu1  ;;  %v1594_v48 = vsel %vm508_vm2, %v3398_v39, -inf  ;;  %v3406_v30 = vadd.f32 %v1303_v38, %v3005_v44 }
 0x39a   :  { %v1354_v59 = vpop.f32.mrb[38].mxu1  ;;  %1592 = vmax.xlane.f32.xlu0 %v1591_v57  ;;  %1595 = vmax.xlane.f32.xlu1 %v1594_v48 }
 0x39b   :  { %v1355_v41 = vadd.f32 %v1354_v59, %v3371_v16  ;;  %v2546_v37 = vpop.f32.mrb[39].mxu1  ;;  %v3410_v55 = vadd.f32 %v1352_v35, %v3014_v50  ;;  %v1597_v44 = vsel %vm508_vm2, %v3406_v30, -inf  ;;  %v2776_v35 = vld [vmem:[%s3705_s2 + $0x28] sm:$0xff] }
 0x39c   :  { %v1403_v43 = vpop.f32.mrb[40].mxu0 }
 0x39d   :  { %v1404_v46 = vadd.f32 %v1403_v43, %v3362_v52  ;;  %v2551_v19 = vpop.f32.mrb[41].mxu0  ;;  %v1600_v49 = vsel %vm508_vm2, %v3410_v55, -inf  ;;  %v3418_v51 = vadd.f32 %v1355_v41, %v3027_v58 }
 0x39e   :  { %1601 = vmax.xlane.f32.xlu1 %v1600_v49  ;;  %1598 = vmax.xlane.f32.xlu0 %v1597_v44  ;;  %v1406_v60 = vpop.f32.mrb[42].mxu0 }
 0x39f   :  { %v1407_v62 = vadd.f32 %v1406_v60, %v3371_v16  ;;  %v2552_v50 = vpop.f32.mrb[43].mxu0  ;;  %v3424_v10 = vadd.f32 %v2771_v47, %v1404_v46  ;;  %v1603_v58 = vsel %vm508_vm2, %v3418_v51, -inf  ;;  %v2778_v46 = vld [vmem:[%s3705_s2 + $0x38] sm:$0xff] }
 0x3a0   :  { %v1455_v36 = vpop.f32.mrb[40].mxu1 }
 0x3a1   :  { %v1456_v22 = vadd.f32 %v1455_v36, %v3362_v52  ;;  %v2557_v15 = vpop.f32.mrb[41].mxu1  ;;  %v1606_v28 = vsel %vm508_vm2, %v3424_v10, -inf  ;;  %v3434_v31 = vadd.f32 %v2772_v9, %v1407_v62 }
 0x3a2   :  { %v1458_v53 = vpop.f32.mrb[42].mxu1  ;;  %1604 = vmax.xlane.f32.xlu0 %v1603_v58  ;;  %1607 = vmax.xlane.f32.xlu1 %v1606_v28 }
 0x3a3   :  { %v1459_v17 = vadd.f32 %v1458_v53, %v3371_v16  ;;  %v2558_v23 = vpop.f32.mrb[43].mxu1  ;;  %v3440_v0 = vadd.f32 %v2773_v12, %v1456_v22  ;;  %v1609_v25 = vsel %vm508_vm2, %v3434_v31, -inf }
 0x3a4   :  { %v1507_v27 = vpop.f32.mrb[44].mxu0 }
 0x3a5   :  { %v1508_v21 = vadd.f32 %v1507_v27, %v3362_v52  ;;  %v2563_v54 = vpop.f32.mrb[45].mxu0  ;;  %v1612_v61 = vsel %vm508_vm2, %v3440_v0, -inf  ;;  %v3450_v45 = vadd.f32 %v2774_v40, %v1459_v17 }
 0x3a6   :  { %1613 = vmax.xlane.f32.xlu1 %v1612_v61  ;;  %1610 = vmax.xlane.f32.xlu0 %v1609_v25  ;;  %v1510_v11 = vpop.f32.mrb[46].mxu0 }
 0x3a7   :  { %v1511_v42 = vadd.f32 %v1510_v11, %v3371_v16  ;;  %v2564_v34 = vpop.f32.mrb[47].mxu0  ;;  %v3456_v29 = vadd.f32 %v2775_v56, %v1508_v21  ;;  %v1615_v20 = vsel %vm508_vm2, %v3450_v45, -inf }
 0x3a8   :  { %v1559_v18 = vpop.f32.mrb[44].mxu1 }
 0x3a9   :  { %v1560_v33 = vadd.f32 %v1559_v18, %v3362_v52  ;;  %v2569_v38 = vpop.f32.mrb[45].mxu1  ;;  %v1618_v24 = vsel %vm508_vm2, %v3456_v29, -inf  ;;  %v3466_v26 = vadd.f32 %v2776_v35, %v1511_v42  ;;  %v2777_v52 = vld [vmem:[%s3705_s2 + $0x30] sm:$0xff]  ;;  %s2786_s2 = smov 8  }
 0x3aa   :  { %v1562_v57 = vpop.f32.mrb[46].mxu1  ;;  %1616 = vmax.xlane.f32.xlu0 %v1615_v20  ;;  %1619 = vmax.xlane.f32.xlu1 %v1618_v24 }
 0x3ab   :  { %v1563_v48 = vadd.f32 %v1562_v57, %v3371_v16  ;;  %v2570_v59 = vpop.f32.mrb[47].mxu1  ;;  %v3472_v41 = vadd.f32 %v2777_v52, %v1560_v33  ;;  %v1621_v43 = vsel %vm508_vm2, %v3466_v26, -inf }
 0x3ad   :  { %v1624_v37 = vsel %vm508_vm2, %v3472_v41, -inf  ;;  %v3481_v19 = vadd.f32 %v2778_v46, %v1563_v48 }
 0x3ae   :  { %1625 = vmax.xlane.f32.xlu1 %v1624_v37  ;;  %1622 = vmax.xlane.f32.xlu0 %v1621_v43 }
 0x3af   :  { %v1627_v16 = vsel %vm508_vm2, %v3481_v19, -inf }
 0x3b2   :  { %1628 = vmax.xlane.f32.xlu0 %v1627_v16 }
 0x3bf   :  { %1860 = vrot.lane.b32.xlu1 %v2820_v2, %s2785_s24 }
 0x3c3   :  { %1907 = vrot.lane.b32.xlu1 %v2827_v4, %s2785_s24 }
 0x3c7   :  { %2001 = vrot.lane.b32.xlu1 %v2843_v6, %s2785_s24 }
 0x3c8   :  { %1813 = vrot.lane.b32.xlu0 %v2815_v1, %s2785_s24 }
 0x3cc   :  { %1954 = vrot.lane.b32.xlu0 %v2838_v5, %s2785_s24 }
 0x41f   :  { %v1584_v49 = vpop.xlane.xlu0 %1583 }
 0x420   :  { %v1630_v44 = vsub.f32 %v3376_v63, %v1584_v49 }
 0x421   :  { %v1587_v60 = vpop.xlane.xlu1 %1586 }
 0x422   :  { %v1646_v62 = vmul.f32 1.442695, %v1630_v44  ;;  %v1631_v50 = vsub.f32 %v3382_v32, %v1587_v60 }
 0x423   :  { %v1590_v2 = vpop.xlane.xlu0 %1589 }
 0x424   :  { %2707 = vpow2.f32 %v1646_v62  ;;  %v1648_v47 = vmul.f32 1.442695, %v1631_v50  ;;  %v1632_v4 = vsub.f32 %v3388_v14, %v1590_v2 }
 0x426   :  { %2709 = vpow2.f32 %v1648_v47  ;;  %v1650_v6 = vmul.f32 1.442695, %v1632_v4 }
 0x427   :  { %v1593_v36 = vpop.xlane.xlu0 %1592  ;;  %v1596_v22 = vpop.xlane.xlu1 %1595 }
 0x428   :  { %2711 = vpow2.f32 %v1650_v6  ;;  %v1633_v1 = vsub.f32 %v3394_v13, %v1593_v36  ;;  %v1634_v5 = vsub.f32 %v3398_v39, %v1596_v22 }
 0x42a   :  { %v1652_v15 = vmul.f32 1.442695, %v1633_v1  ;;  %v1654_v63 = vmul.f32 1.442695, %v1634_v5 }
 0x42b   :  { %v1602_v58 = vpop.xlane.xlu1 %1601  ;;  %v1599_v28 = vpop.xlane.xlu0 %1598 }
 0x42c   :  { %2713 = vpow2.f32 %v1652_v15  ;;  %v1636_v32 = vsub.f32 %v3410_v55, %v1602_v58  ;;  %v1635_v9 = vsub.f32 %v3406_v30, %v1599_v28 }
 0x42d   :  { %2715 = vpow2.f32 %v1654_v63 }
 0x42e   :  { %v3502_v14 = vpop.eup %2707  ;;  %v1658_v53 = vmul.f32 1.442695, %v1636_v32  ;;  %v1656_v17 = vmul.f32 1.442695, %v1635_v9 }
 0x42f   :  { %v1605_v23 = vpop.xlane.xlu0 %1604  ;;  %v1608_v12 = vpop.xlane.xlu1 %1607  ;;  %v1678_v13 = vsel %vm508_vm2, %v3502_v14, 0.0 }
 0x430   :  { %v3506_v39 = vpop.eup %2709  ;;  %2717 = vpow2.f32 %v1658_v53  ;;  %v1637_v27 = vsub.f32 %v3418_v51, %v1605_v23  ;;  %v1638_v21 = vsub.f32 %v3424_v10, %v1608_v12  ;;  %1679 = vadd.xlane.f32.xlu1 %v1678_v13 }
 0x431   :  { %2719 = vpow2.f32 %v1656_v17  ;;  %v1681_v30 = vsel %vm508_vm2, %v3506_v39, 0.0 }
 0x432   :  { %v3512_v55 = vpop.eup %2711  ;;  %v1660_v54 = vmul.f32 1.442695, %v1637_v27  ;;  %v1662_v61 = vmul.f32 1.442695, %v1638_v21  ;;  %1682 = vadd.xlane.f32.xlu0 %v1681_v30 }
 0x433   :  { %v1614_v25 = vpop.xlane.xlu1 %1613  ;;  %v1611_v40 = vpop.xlane.xlu0 %1610  ;;  %v1684_v11 = vsel %vm508_vm2, %v3512_v55, 0.0 }
 0x434   :  { %2721 = vpow2.f32 %v1660_v54  ;;  %v1640_v51 = vsub.f32 %v3440_v0, %v1614_v25  ;;  %v1639_v10 = vsub.f32 %v3434_v31, %v1611_v40  ;;  %1685 = vadd.xlane.f32.xlu1 %v1684_v11 }
 0x435   :  { %2723 = vpow2.f32 %v1662_v61 }
 0x436   :  { %v3518_v42 = vpop.eup %2713  ;;  %v1666_v34 = vmul.f32 1.442695, %v1640_v51  ;;  %v1664_v56 = vmul.f32 1.442695, %v1639_v10 }
 0x437   :  { %v3520_v18 = vpop.eup %2715  ;;  %v1617_v33 = vpop.xlane.xlu0 %1616  ;;  %v1687_v20 = vsel %vm508_vm2, %v3518_v42, 0.0 }
 0x438   :  { %v1620_v38 = vpop.xlane.xlu1 %1619  ;;  %2725 = vpow2.f32 %v1666_v34  ;;  %v1641_v24 = vsub.f32 %v3450_v45, %v1617_v33  ;;  %v1690_v31 = vsel %vm508_vm2, %v3520_v18, 0.0  ;;  %1688 = vadd.xlane.f32.xlu0 %v1687_v20 }
 0x439   :  { %v1642_v0 = vsub.f32 %v3456_v29, %v1620_v38  ;;  %2727 = vpow2.f32 %v1664_v56  ;;  %1691 = vadd.xlane.f32.xlu1 %v1690_v31 }
 0x43a   :  { %v3528_v35 = vpop.eup %2717  ;;  %v1668_v57 = vmul.f32 1.442695, %v1641_v24 }
 0x43b   :  { %v1670_v48 = vmul.f32 1.442695, %v1642_v0  ;;  %v3530_v59 = vpop.eup %2719  ;;  %v1623_v37 = vpop.xlane.xlu0 %1622  ;;  %v1696_v43 = vsel %vm508_vm2, %v3528_v35, 0.0 }
 0x43c   :  { %v1626_v52 = vpop.xlane.xlu1 %1625  ;;  %2729 = vpow2.f32 %v1668_v57  ;;  %v1643_v29 = vsub.f32 %v3466_v26, %v1623_v37  ;;  %v1693_v46 = vsel %vm508_vm2, %v3530_v59, 0.0 }
 0x43d   :  { %v1644_v45 = vsub.f32 %v3472_v41, %v1626_v52  ;;  %2731 = vpow2.f32 %v1670_v48  ;;  %1697 = vadd.xlane.f32.xlu1 %v1696_v43  ;;  %1694 = vadd.xlane.f32.xlu0 %v1693_v46 }
 0x43e   :  { %v3538_v16 = vpop.eup %2721  ;;  %v1672_v44 = vmul.f32 1.442695, %v1643_v29 }
 0x43f   :  { %v1674_v49 = vmul.f32 1.442695, %v1644_v45  ;;  %v3540_v60 = vpop.eup %2723  ;;  %v1629_v62 = vpop.xlane.xlu0 %1628  ;;  %v1699_v50 = vsel %vm508_vm2, %v3538_v16, 0.0 }
 0x440   :  { %v1645_v41 = vsub.f32 %v3481_v19, %v1629_v62  ;;  %v1702_v26 = vsel %vm508_vm2, %v3540_v60, 0.0  ;;  %v1861_v17 = vpop.permute.xlu1 %1860 }
 0x441   :  { %2733 = vpow2.f32 %v1674_v49  ;;  %1703 = vadd.xlane.f32.xlu1 %v1702_v26  ;;  %1700 = vadd.xlane.f32.xlu0 %v1699_v50 }
 0x442   :  { %2735 = vpow2.f32 %v1672_v44  ;;  %v3547_v2 = vpop.eup %2725  ;;  %v1676_v47 = vmul.f32 1.442695, %v1645_v41 }
 0x443   :  { %v3549_v4 = vpop.eup %2727  ;;  %v1708_v6 = vsel %vm508_vm2, %v3547_v2, 0.0  ;;  %v1814_v36 = vpop.permute.xlu0 %1813 }
 0x444   :  { %2737 = vpow2.f32 %v1676_v47  ;;  %v1705_v22 = vsel %vm508_vm2, %v3549_v4, 0.0  ;;  %2578 = vmatpush3.bf16.msra.mxu1 %v1814_v36  ;;  %v1908_v23 = vpop.permute.xlu1 %1907 }
 0x445   :  { %1709 = vadd.xlane.f32.xlu1 %v1708_v6  ;;  %1706 = vadd.xlane.f32.xlu0 %v1705_v22 }
 0x446   :  { %v3555_v19 = vpop.eup %2729  ;;  %2589 = vmatprep.subr.bf16.mxu1 %v2779_v3 }
 0x447   :  { %v3558_v1 = vpop.eup %2731  ;;  %v1711_v5 = vsel %vm508_vm2, %v3555_v19, 0.0  ;;  %v1955_v13 = vpop.permute.xlu0 %1954 }
 0x448   :  { %v1714_v15 = vsel %vm508_vm2, %v3558_v1, 0.0  ;;  %v3580_v12 = vpop.permute.xlu1 %2001 }
 0x449   :  { %1715 = vadd.xlane.f32.xlu1 %v1714_v15  ;;  %1712 = vadd.xlane.f32.xlu0 %v1711_v5 }
 0x44b   :  { %v3564_v63 = vpop.eup %2733 }
 0x44c   :  { %v3566_v58 = vpop.eup %2735  ;;  %v1720_v28 = vsel %vm508_vm2, %v3564_v63, 0.0 }
 0x44d   :  { %v1717_v32 = vsel %vm508_vm2, %v3566_v58, 0.0  ;;  %1721 = vadd.xlane.f32.xlu1 %v1720_v28 }
 0x44e   :  { %1718 = vadd.xlane.f32.xlu0 %v1717_v32  ;;  %v3572_v9 = vpop.eup %2737 }
 0x44f   :  { %v1723_v53 = vsel %vm508_vm2, %v3572_v9, 0.0 }
 0x452   :  { %1724 = vadd.xlane.f32.xlu0 %v1723_v53 }
 0x45e   :  { %2095 = vrot.lane.b32.xlu1 %v2855_v8, %s2785_s24 }
 0x468   :  { %2048 = vrot.lane.b32.xlu0 %v2850_v7, %s2785_s24 }
 0x4bd   :  { %v1680_v27 = vpop.xlane.xlu1 %1679 }
 0x4be   :  { %2739 = vrcp.f32 %v1680_v27 }
 0x4bf   :  { %v1683_v21 = vpop.xlane.xlu0 %1682 }
 0x4c0   :  { %2741 = vrcp.f32 %v1683_v21 }
 0x4c1   :  { %v1686_v30 = vpop.xlane.xlu1 %1685 }
 0x4c2   :  { %2743 = vrcp.f32 %v1686_v30 }
 0x4c5   :  { %v1689_v54 = vpop.xlane.xlu0 %1688 }
 0x4c6   :  { %v1692_v61 = vpop.xlane.xlu1 %1691  ;;  %2745 = vrcp.f32 %v1689_v54 }
 0x4c7   :  { %2747 = vrcp.f32 %v1692_v61 }
 0x4c8   :  { %v2740_v25 = vpop.eup %2739 }
 0x4c9   :  { %v1742_v7 = vmul.f32 %v2740_v25, %v3502_v14 }
 0x4ca   :  { %v2742_v40 = vpop.eup %2741  ;;  %v1698_v8 = vpop.xlane.xlu1 %1697 }
 0x4cb   :  { %v1695_v11 = vpop.xlane.xlu0 %1694  ;;  %v1743_v51 = vmul.f32 %v2742_v40, %v3506_v39 }
 0x4cc   :  { %2749 = vrcp.f32 %v1695_v11  ;;  %v2744_v34 = vpop.eup %2743 }
 0x4cd   :  { %v1758_v10 = vpack.c.bf16 %v1743_v51, %v1742_v7  ;;  %2751 = vrcp.f32 %v1698_v8  ;;  %v1744_v20 = vmul.f32 %v2744_v34, %v3512_v55 }
 0x4ce   :  { %v1704_v56 = vpop.xlane.xlu1 %1703 }
 0x4cf   :  { %v1701_v33 = vpop.xlane.xlu0 %1700  ;;  %2574 = vmatmul.mubr.msk.bf16.vlgmr.msra.gmra.mrb[48].mxu0 %vm508_vm2, %v1758_v10 }
 0x4d0   :  { %v2746_v38 = vpop.eup %2745  ;;  %2753 = vrcp.f32 %v1701_v33  ;;  %2584 = vmatpush3.bf16.msra.mxu0 %v1861_v17  ;;  %2585 = vmatprep.mubr.msk.bf16.mxu0 %vm2780_vm0, %v2779_v3 }
 0x4d1   :  { %v1745_v14 = vmul.f32 %v2746_v38, %v3518_v42  ;;  %2595 = vmatprep.subr.bf16.mxu0 %v2779_v3  ;;  %2755 = vrcp.f32 %v1704_v56  ;;  %v2748_v31 = vpop.eup %2747 }
 0x4d2   :  { %v1710_v39 = vpop.xlane.xlu1 %1709  ;;  %v1746_v55 = vmul.f32 %v2748_v31, %v3520_v18 }
 0x4d3   :  { %v1707_v24 = vpop.xlane.xlu0 %1706  ;;  %v1759_v0 = vpack.c.bf16 %v1745_v14, %v1744_v20 }
 0x4d4   :  { %2757 = vrcp.f32 %v1707_v24 }
 0x4d5   :  { %2580 = vmatmul.mubr.msk.bf16.vlgmr.msra.gmra.mrb[48].mxu1 %vm508_vm2, %v1759_v0  ;;  %2759 = vrcp.f32 %v1710_v39 }
 0x4d6   :  { %v2750_v57 = vpop.eup %2749  ;;  %v1716_v48 = vpop.xlane.xlu1 %1715  ;;  %2590 = vmatpush3.bf16.msra.mxu1 %v1908_v23  ;;  %2591 = vmatprep.mubr.msk.bf16.mxu1 %vm2780_vm0, %v2779_v3 }
 0x4d7   :  { %v1713_v52 = vpop.xlane.xlu0 %1712  ;;  %v1747_v42 = vmul.f32 %v2750_v57, %v3530_v59  ;;  %2601 = vmatprep.subr.bf16.mxu1 %v2779_v3  ;;  %v2752_v37 = vpop.eup %2751 }
 0x4d8   :  { %2761 = vrcp.f32 %v1713_v52  ;;  %v1748_v49 = vmul.f32 %v2752_v37, %v3528_v35 }
 0x4d9   :  { %v1760_v43 = vpack.c.bf16 %v1747_v42, %v1746_v55  ;;  %2763 = vrcp.f32 %v1716_v48 }
 0x4da   :  { %v2754_v45 = vpop.eup %2753  ;;  %v1722_v29 = vpop.xlane.xlu1 %1721 }
 0x4db   :  { %v1719_v46 = vpop.xlane.xlu0 %1718  ;;  %v1749_v44 = vmul.f32 %v2754_v45, %v3538_v16  ;;  %2586 = vmatmul.mubr.msk.bf16.vlgmr.msra.gmra.mrb[52].mxu0 %vm508_vm2, %v1760_v43  ;;  %v2756_v62 = vpop.eup %2755 }
 0x4dc   :  { %2596 = vmatpush3.bf16.msra.mxu0 %v1955_v13  ;;  %2765 = vrcp.f32 %v1719_v46  ;;  %2597 = vmatprep.mubr.msk.bf16.mxu0 %vm2780_vm0, %v2779_v3  ;;  %v1750_v41 = vmul.f32 %v2756_v62, %v3540_v60 }
 0x4dd   :  { %2767 = vrcp.f32 %v1722_v29  ;;  %v1761_v18 = vpack.c.bf16 %v1749_v44, %v1748_v49  ;;  %2607 = vmatprep.subr.bf16.mxu0 %v2779_v3 }
 0x4de   :  { %v2758_v59 = vpop.eup %2757  ;;  %v2096_v22 = vpop.permute.xlu1 %2095 }
 0x4df   :  { %v1725_v50 = vpop.xlane.xlu0 %1724  ;;  %v1751_v35 = vmul.f32 %v2758_v59, %v3549_v4  ;;  %2592 = vmatmul.mubr.msk.bf16.vlgmr.msra.gmra.mrb[52].mxu1 %vm508_vm2, %v1761_v18  ;;  %v2760_v16 = vpop.eup %2759 }
 0x4e0   :  { %2769 = vrcp.f32 %v1725_v50  ;;  %2602 = vmatpush3.bf16.msra.mxu1 %v3580_v12  ;;  %2603 = vmatprep.mubr.msk.bf16.mxu1 %vm2780_vm0, %v2779_v3  ;;  %v1752_v36 = vmul.f32 %v2760_v16, %v3547_v2 }
 0x4e1   :  { %v1762_v26 = vpack.c.bf16 %v1751_v35, %v1750_v41  ;;  %2613 = vmatprep.subr.bf16.mxu1 %v2779_v3 }
 0x4e2   :  { %v2762_v47 = vpop.eup %2761 }
 0x4e3   :  { %v2049_v6 = vpop.permute.xlu0 %2048  ;;  %v1753_v60 = vmul.f32 %v2762_v47, %v3555_v19  ;;  %2598 = vmatmul.mubr.msk.bf16.vlgmr.msra.gmra.mrb[56].mxu0 %vm508_vm2, %v1762_v26  ;;  %v2764_v4 = vpop.eup %2763 }
 0x4e4   :  { %2608 = vmatpush3.bf16.msra.mxu0 %v2049_v6  ;;  %2609 = vmatprep.mubr.msk.bf16.mxu0 %vm2780_vm0, %v2779_v3  ;;  %v1754_v32 = vmul.f32 %v2764_v4, %v3558_v1 }
 0x4e5   :  { %v1763_v5 = vpack.c.bf16 %v1753_v60, %v1752_v36 }
 0x4e6   :  { %v2766_v15 = vpop.eup %2765 }
 0x4e7   :  { %v2768_v28 = vpop.eup %2767  ;;  %v1755_v53 = vmul.f32 %v2766_v15, %v3566_v58  ;;  %2604 = vmatmul.mubr.msk.bf16.vlgmr.msra.gmra.mrb[56].mxu1 %vm508_vm2, %v1763_v5 }
 0x4e8   :  { %2614 = vmatpush3.bf16.msra.mxu1 %v2096_v22  ;;  %2615 = vmatprep.mubr.msk.bf16.mxu1 %vm2780_vm0, %v2779_v3  ;;  %v1756_v17 = vmul.f32 %v2768_v28, %v3564_v63 }
 0x4e9   :  { %v1764_v19 = vpack.c.bf16 %v1755_v53, %v1754_v32 }
 0x4ea   :  { %v2770_v2 = vpop.eup %2769 }
 0x4eb   :  { %v1757_v23 = vmul.f32 %v2770_v2, %v3572_v9  ;;  %2610 = vmatmul.mubr.msk.bf16.vlgmr.msra.gmra.mrb[60].mxu0 %vm508_vm2, %v1764_v19 }
 0x4ed   :  { %v1765_v12 = vpack.c.bf16 %v1757_v23, %v1756_v17 }
 0x4ef   :  { %2616 = vmatmul.mubr.msk.bf16.vlgmr.msra.gmra.mrb[60].mxu1 %vm508_vm2, %v1765_v12 }
 0x5a2   :  { %v1806_v1 = vpop.f32.mrb[48].mxu0 }
 0x5a3   :  { %v2347_v13 = vpack.c.bf16 %v1806_v1, %v1806_v1  ;;  %v2575_v58 = vpop.f32.mrb[49].mxu0 }
 0x5a4   :  { %v1809_v27 = vpop.f32.mrb[50].mxu0 }
 0x5a5   :  { %v2348_v21 = vpack.c.bf16 %v1809_v27, %v1809_v27  ;;  %2190 = vrot.lane.b32.xlu0 %v2347_v13, %s2786_s2  ;;  %v2576_v3 = vpop.f32.mrb[51].mxu0 }
 0x5a7   :  { %2192 = vrot.lane.b32.xlu1 %v2348_v21, %s2786_s2 }
 0x5a8   :  { %v1853_v30 = vpop.f32.mrb[48].mxu1 }
 0x5a9   :  { %v2349_v63 = vpack.c.bf16 %v1853_v30, %v1853_v30  ;;  %v2581_v54 = vpop.f32.mrb[49].mxu1 }
 0x5aa   :  { %v1856_v9 = vpop.f32.mrb[50].mxu1 }
 0x5ab   :  { %v2350_v61 = vpack.c.bf16 %v1856_v9, %v1856_v9  ;;  %v2582_v25 = vpop.f32.mrb[51].mxu1  ;;  %2194 = vrot.lane.b32.xlu0 %v2349_v63, %s2786_s2 }
 0x5ad   :  { %2196 = vrot.lane.b32.xlu1 %v2350_v61, %s2786_s2 }
 0x5ae   :  { %v1900_v40 = vpop.f32.mrb[52].mxu0 }
 0x5af   :  { %v2351_v8 = vpack.c.bf16 %v1900_v40, %v1900_v40  ;;  %v2587_v11 = vpop.f32.mrb[53].mxu0 }
 0x5b0   :  { %v1903_v7 = vpop.f32.mrb[54].mxu0 }
 0x5b1   :  { %v2352_v51 = vpack.c.bf16 %v1903_v7, %v1903_v7  ;;  %2198 = vrot.lane.b32.xlu0 %v2351_v8, %s2786_s2  ;;  %v2588_v10 = vpop.f32.mrb[55].mxu0 }
 0x5b2   :  { %v1947_v34 = vpop.f32.mrb[52].mxu1 }
 0x5b3   :  { %v2353_v56 = vpack.c.bf16 %v1947_v34, %v1947_v34  ;;  %v2593_v33 = vpop.f32.mrb[53].mxu1  ;;  %2200 = vrot.lane.b32.xlu1 %v2352_v51, %s2786_s2 }
 0x5b4   :  { %v1950_v38 = vpop.f32.mrb[54].mxu1 }
 0x5b5   :  { %v2354_v20 = vpack.c.bf16 %v1950_v38, %v1950_v38  ;;  %v2594_v14 = vpop.f32.mrb[55].mxu1  ;;  %2202 = vrot.lane.b32.xlu0 %v2353_v56, %s2786_s2 }
 0x5b6   :  { %v1994_v39 = vpop.f32.mrb[56].mxu0 }
 0x5b7   :  { %v2355_v24 = vpack.c.bf16 %v1994_v39, %v1994_v39  ;;  %2204 = vrot.lane.b32.xlu1 %v2354_v20, %s2786_s2  ;;  %v2599_v0 = vpop.f32.mrb[57].mxu0 }
 0x5b8   :  { %v1997_v31 = vpop.f32.mrb[58].mxu0 }
 0x5b9   :  { %v2356_v57 = vpack.c.bf16 %v1997_v31, %v1997_v31  ;;  %2206 = vrot.lane.b32.xlu0 %v2355_v24, %s2786_s2  ;;  %v2600_v48 = vpop.f32.mrb[59].mxu0 }
 0x5ba   :  { %v2041_v52 = vpop.f32.mrb[56].mxu1 }
 0x5bb   :  { %v2357_v55 = vpack.c.bf16 %v2041_v52, %v2041_v52  ;;  %v2605_v42 = vpop.f32.mrb[57].mxu1  ;;  %2208 = vrot.lane.b32.xlu1 %v2356_v57, %s2786_s2 }
 0x5bc   :  { %v2044_v37 = vpop.f32.mrb[58].mxu1 }
 0x5bd   :  { %v2358_v43 = vpack.c.bf16 %v2044_v37, %v2044_v37  ;;  %v2606_v45 = vpop.f32.mrb[59].mxu1  ;;  %2210 = vrot.lane.b32.xlu0 %v2357_v55, %s2786_s2 }
 0x5be   :  { %v2088_v29 = vpop.f32.mrb[60].mxu0 }
 0x5bf   :  { %v2359_v46 = vpack.c.bf16 %v2088_v29, %v2088_v29  ;;  %2212 = vrot.lane.b32.xlu1 %v2358_v43, %s2786_s2  ;;  %v2611_v49 = vpop.f32.mrb[61].mxu0 }
 0x5c0   :  { %v2091_v44 = vpop.f32.mrb[62].mxu0 }
 0x5c1   :  { %v2360_v62 = vpack.c.bf16 %v2091_v44, %v2091_v44  ;;  %2214 = vrot.lane.b32.xlu0 %v2359_v46, %s2786_s2  ;;  %v2612_v18 = vpop.f32.mrb[63].mxu0 }
 0x5c2   :  { %v2135_v59 = vpop.f32.mrb[60].mxu1 }
 0x5c3   :  { %v2361_v50 = vpack.c.bf16 %v2135_v59, %v2135_v59  ;;  %v2617_v41 = vpop.f32.mrb[61].mxu1  ;;  %2216 = vrot.lane.b32.xlu1 %v2360_v62, %s2786_s2 }
 0x5c4   :  { %v2138_v35 = vpop.f32.mrb[62].mxu1 }
 0x5c5   :  { %v2362_v16 = vpack.c.bf16 %v2138_v35, %v2138_v35  ;;  %v2618_v26 = vpop.f32.mrb[63].mxu1  ;;  %2218 = vrot.lane.b32.xlu0 %v2361_v50, %s2786_s2 }
 0x5c7   :  { %2220 = vrot.lane.b32.xlu1 %v2362_v16, %s2786_s2 }
 0x617   :  { %v2191_v47 = vpop.permute.xlu0 %2190 }
 0x618   :  { %2239 = vst.msk [vmem:[%s3706_s3] sm:$0xf] %vm2238_vm4, %v2191_v47 }
 0x619   :  { %v2193_v6 = vpop.permute.xlu1 %2192 }
 0x61a   :  { %2240 = vst.msk [vmem:[%s3706_s3 + $0x4] sm:$0xf] %vm2238_vm4, %v2193_v6 }
 0x61d   :  { %v2195_v36 = vpop.permute.xlu0 %2194 }
 0x61e   :  { %2241 = vst.msk [vmem:[%s3706_s3 + $0x8] sm:$0xf] %vm2238_vm4, %v2195_v36 }
 0x61f   :  { %v2197_v60 = vpop.permute.xlu1 %2196 }
 0x620   :  { %2242 = vst.msk [vmem:[%s3706_s3 + $0xc] sm:$0xf] %vm2238_vm4, %v2197_v60 }
 0x623   :  { %v2199_v4 = vpop.permute.xlu0 %2198 }
 0x624   :  { %2243 = vst.msk [vmem:[%s3706_s3 + $0x10] sm:$0xf] %vm2238_vm4, %v2199_v4 }
 0x625   :  { %v2201_v22 = vpop.permute.xlu1 %2200 }
 0x626   :  { %2244 = vst.msk [vmem:[%s3706_s3 + $0x14] sm:$0xf] %vm2238_vm4, %v2201_v22 }
 0x627   :  { %v2203_v5 = vpop.permute.xlu0 %2202 }
 0x628   :  { %2245 = vst.msk [vmem:[%s3706_s3 + $0x18] sm:$0xf] %vm2238_vm4, %v2203_v5 }
 0x629   :  { %v2205_v15 = vpop.permute.xlu1 %2204 }
 0x62a   :  { %2246 = vst.msk [vmem:[%s3706_s3 + $0x1c] sm:$0xf] %vm2238_vm4, %v2205_v15 }
 0x62b   :  { %v2207_v28 = vpop.permute.xlu0 %2206 }
 0x62c   :  { %2247 = vst.msk [vmem:[%s3706_s3 + $0x20] sm:$0xf] %vm2238_vm4, %v2207_v28 }
 0x62d   :  { %v2209_v32 = vpop.permute.xlu1 %2208 }
 0x62e   :  { %2248 = vst.msk [vmem:[%s3706_s3 + $0x24] sm:$0xf] %vm2238_vm4, %v2209_v32 }
 0x62f   :  { %v2211_v53 = vpop.permute.xlu0 %2210 }
 0x630   :  { %2249 = vst.msk [vmem:[%s3706_s3 + $0x28] sm:$0xf] %vm2238_vm4, %v2211_v53 }
 0x631   :  { %v2213_v2 = vpop.permute.xlu1 %2212 }
 0x632   :  { %2250 = vst.msk [vmem:[%s3706_s3 + $0x2c] sm:$0xf] %vm2238_vm4, %v2213_v2 }
 0x633   :  { %v2215_v19 = vpop.permute.xlu0 %2214 }
 0x634   :  { %2251 = vst.msk [vmem:[%s3706_s3 + $0x30] sm:$0xf] %vm2238_vm4, %v2215_v19 }
 0x635   :  { %v2217_v17 = vpop.permute.xlu1 %2216 }
 0x636   :  { %2252 = vst.msk [vmem:[%s3706_s3 + $0x34] sm:$0xf] %vm2238_vm4, %v2217_v17 }
 0x637   :  { %v2219_v23 = vpop.permute.xlu0 %2218 }
 0x638   :  { %2253 = vst.msk [vmem:[%s3706_s3 + $0x38] sm:$0xf] %vm2238_vm4, %v2219_v23 }
 0x639   :  { %v2221_v12 = vpop.permute.xlu1 %2220 }
 0x63a   :  { %2254 = vst.msk [vmem:[%s3706_s3 + $0x3c] sm:$0xf] %vm2238_vm4, %v2221_v12 }

// kernel: _lambda_.37
= control target key start
LH: loop header
LB: loop body
LE: loop exit
PB: predicated region body
PF: predicated region fallthrough
CT: control target
= control target key end

     0   :  { %vm52_vm0 = vcmask 261120   ;;  %vm124_vm1 = vcmask 257024   ;;  %s211_s1 = inlined_call_operand.vmem [shape: bf16[32,32], index: 1, kind: input, shape index: {}]   ;;  %s212_s0 = inlined_call_operand.vmem [shape: bf16[32,32], index: 0, kind: input, shape index: {}]   ;;  %s213_s2 = inlined_call_operand.vmem [shape: f32[1,32], index: 2, kind: input, shape index: {}]   ;;  %s214_s3 = inlined_call_operand.vmem [shape: bf16[32,32], index: 3, kind: output, shape index: {}]  }
   0x1   :  { %v160_v0 = vld [vmem:[%s211_s1] sm:$0xff]   ;;  %v161_v1 = vld [vmem:[%s211_s1 + $0x8] sm:$0xff]  }
   0x2   :  { %152 = vmatprep.subr.bf16.mxu0 %v160_v0  ;;  %v162_v2 = vld [vmem:[%s212_s0] sm:$0xff]   ;;  %v163_v3 = vld [vmem:[%s212_s0 + $0x8] sm:$0xff]  }
   0x3   :  { %153 = vmatpush3.bf16.msra.mxu0 %v160_v0  ;;  %156 = vmatprep.mubr.msk.bf16.mxu0 %vm52_vm0, %v162_v2  ;;  %v133_v4 = vld [vmem:[%s213_s2] ss:$0 sm:$0xff] }
   0x4   :  { %154 = vmatprep.subr.bf16.mxu0 %v161_v1 }
   0x7   :  { %155 = vmatpush3.bf16.msra.mxu0 %v161_v1 }
   0xa   :  { %157 = vmatmul.mubr.msk.bf16.vlgmr.msra.gmra.mrb[0].mxu0 %vm52_vm0, %v163_v3 }
  0xdd   :  { %v158_v5 = vpop.f32.mrb[0].mxu0 }
  0xde   :  { %v102_v6 = vadd.f32 %v158_v5, %v133_v4  ;;  %v93_v7 = vpop.f32.mrb[1].mxu0 }
  0xdf   :  { %v94_v8 = vadd.f32 %v133_v4, %v93_v7  ;;  %v159_v9 = vpop.f32.mrb[2].mxu0 }
  0xe0   :  { %v146_v10 = vpack.c.bf16 %v102_v6, %v102_v6  ;;  %v105_v11 = vadd.f32 %v159_v9, %v133_v4  ;;  %v96_v12 = vpop.f32.mrb[3].mxu0 }
  0xe1   :  { %v144_v13 = vpack.c.bf16 %v94_v8, %v94_v8  ;;  %v97_v14 = vadd.f32 %v133_v4, %v96_v12 }
  0xe2   :  { %127 = vst.msk [vmem:[%s214_s3 + $0x8] sm:$0xf] %vm124_vm1, %v146_v10  ;;  %v147_v15 = vpack.c.bf16 %v105_v11, %v105_v11 }
  0xe3   :  { %125 = vst.msk [vmem:[%s214_s3] sm:$0xf] %vm124_vm1, %v144_v13  ;;  %v145_v16 = vpack.c.bf16 %v97_v14, %v97_v14 }
  0xe4   :  { %128 = vst.msk [vmem:[%s214_s3 + $0xc] sm:$0xf] %vm124_vm1, %v147_v15 }
  0xe5   :  { %126 = vst.msk [vmem:[%s214_s3 + $0x4] sm:$0xf] %vm124_vm1, %v145_v16 }

// kernel: _lambda_.38
= control target key start
LH: loop header
LB: loop body
LE: loop exit
PB: predicated region body
PF: predicated region fallthrough
CT: control target
= control target key end

     0   :  { %vm31_vm0 = vcmask 261120   ;;  %s361_s0 = inlined_call_operand.vmem [shape: bf16[32,32], index: 0, kind: input, shape index: {}]   ;;  %s362_s3 = inlined_call_operand.vmem [shape: bf16[32,128], index: 3, kind: input, shape index: {}]   ;;  %s363_s1 = inlined_call_operand.vmem [shape: f32[1,32], index: 1, kind: input, shape index: {}]   ;;  %s364_s2 = inlined_call_operand.vmem [shape: f32[1,32], index: 2, kind: input, shape index: {}]   ;;  %s365_s4 = inlined_call_operand.vmem [shape: f32[1,128], index: 4, kind: input, shape index: {}]   ;;  %s366_s5 = inlined_call_operand.vmem [shape: bf16[32,128], index: 5, kind: output, shape index: {}]  }
   0x1   :  { %v245_v0 = vld [vmem:[%s361_s0] sm:$0xff]   ;;  %v262_v1 = vld [vmem:[%s361_s0 + $0x8] sm:$0xff]  }
   0x2   :  { %v246_v2 = vunpack.c.l.bf16 %v245_v0  ;;  %v250_v3 = vunpack.c.l.bf16 %v262_v1  ;;  %v247_v4 = vunpack.c.h.bf16 %v245_v0  ;;  %v251_v5 = vunpack.c.h.bf16 %v262_v1  ;;  %v276_v30 = vld [vmem:[%s362_s3] sm:$0xff]   ;;  %v277_v31 = vld [vmem:[%s362_s3 + $0x8] sm:$0xff]  }
   0x3   :  { %268 = vmatprep.subr.bf16.mxu0 %v276_v30  ;;  %v229_v46 = vld [vmem:[%s363_s1] ss:$0 sm:$0xff] }
   0x4   :  { %v32_v6 = vsel %vm31_vm0, %v246_v2, 0.0  ;;  %v38_v7 = vsel %vm31_vm0, %v250_v3, 0.0  ;;  %v35_v8 = vsel %vm31_vm0, %v247_v4, 0.0  ;;  %v41_v9 = vsel %vm31_vm0, %v251_v5, 0.0  ;;  %269 = vmatpush3.bf16.msra.mxu0 %v276_v30  ;;  %v230_v52 = vld [vmem:[%s364_s2] ss:$0 sm:$0xff] }
   0x5   :  { %33 = vadd.xlane.f32.xlu0 %v32_v6  ;;  %39 = vadd.xlane.f32.xlu1 %v38_v7  ;;  %v231_v0 = vld [vmem:[%s365_s4] ss:$0 sm:$0xff] }
   0x6   :  { %270 = vmatprep.subr.bf16.mxu0 %v277_v31 }
   0x8   :  { %271 = vmatpush3.bf16.msra.mxu0 %v277_v31 }
   0x9   :  { %36 = vadd.xlane.f32.xlu0 %v35_v8  ;;  %42 = vadd.xlane.f32.xlu1 %v41_v9 }
  0x92   :  { %v34_v10 = vpop.xlane.xlu0 %33  ;;  %v40_v11 = vpop.xlane.xlu1 %39 }
  0x93   :  { %v45_v12 = vmul.f32 0.03125, %v34_v10  ;;  %v47_v13 = vmul.f32 0.03125, %v40_v11 }
  0x95   :  { %v49_v14 = vsub.f32 %v246_v2, %v45_v12  ;;  %v51_v15 = vsub.f32 %v250_v3, %v47_v13 }
  0x96   :  { %v37_v16 = vpop.xlane.xlu0 %36  ;;  %v43_v17 = vpop.xlane.xlu1 %42 }
  0x97   :  { %v46_v18 = vmul.f32 0.03125, %v37_v16  ;;  %v48_v19 = vmul.f32 0.03125, %v43_v17  ;;  %v53_v20 = vmul.f32 %v49_v14, %v49_v14  ;;  %v55_v21 = vmul.f32 %v51_v15, %v51_v15 }
  0x99   :  { %v50_v22 = vsub.f32 %v247_v4, %v46_v18  ;;  %v52_v23 = vsub.f32 %v251_v5, %v48_v19  ;;  %v57_v24 = vsel %vm31_vm0, %v53_v20, 0.0  ;;  %v63_v25 = vsel %vm31_vm0, %v55_v21, 0.0 }
  0x9a   :  { %58 = vadd.xlane.f32.xlu0 %v57_v24 }
  0x9b   :  { %v54_v26 = vmul.f32 %v50_v22, %v50_v22  ;;  %v56_v27 = vmul.f32 %v52_v23, %v52_v23 }
  0x9d   :  { %v60_v28 = vsel %vm31_vm0, %v54_v26, 0.0  ;;  %v66_v29 = vsel %vm31_vm0, %v56_v27, 0.0 }
  0x9e   :  { %64 = vadd.xlane.f32.xlu0 %v63_v25  ;;  %61 = vadd.xlane.f32.xlu1 %v60_v28 }
  0xa2   :  { %67 = vadd.xlane.f32.xlu1 %v66_v29 }
 0x127   :  { %v59_v32 = vpop.xlane.xlu0 %58 }
 0x128   :  { %v69_v33 = vmul.f32 0.03125, %v59_v32 }
 0x12a   :  { %v73_v34 = vadd.f32 1e-05, %v69_v33 }
 0x12b   :  { %v62_v35 = vpop.xlane.xlu1 %61  ;;  %v65_v36 = vpop.xlane.xlu0 %64 }
 0x12c   :  { %278 = vrsqrt.f32 %v73_v34  ;;  %v70_v37 = vmul.f32 0.03125, %v62_v35  ;;  %v71_v38 = vmul.f32 0.03125, %v65_v36 }
 0x12e   :  { %v74_v39 = vadd.f32 1e-05, %v70_v37  ;;  %v75_v40 = vadd.f32 1e-05, %v71_v38 }
 0x12f   :  { %v68_v41 = vpop.xlane.xlu1 %67 }
 0x130   :  { %280 = vrsqrt.f32 %v74_v39  ;;  %v72_v42 = vmul.f32 0.03125, %v68_v41 }
 0x131   :  { %282 = vrsqrt.f32 %v75_v40 }
 0x132   :  { %v76_v43 = vadd.f32 1e-05, %v72_v42 }
 0x134   :  { %284 = vrsqrt.f32 %v76_v43 }
 0x136   :  { %v279_v44 = vpop.eup %278 }
 0x137   :  { %v81_v45 = vmul.f32 %v279_v44, %v49_v14 }
 0x139   :  { %v91_v50 = vmul.f32 %v229_v46, %v81_v45 }
 0x13a   :  { %v281_v47 = vpop.eup %280 }
 0x13b   :  { %v283_v48 = vpop.eup %282  ;;  %v82_v49 = vmul.f32 %v281_v47, %v50_v22  ;;  %v101_v56 = vadd.f32 %v230_v52, %v91_v50 }
 0x13c   :  { %v83_v51 = vmul.f32 %v283_v48, %v51_v15 }
 0x13d   :  { %v92_v53 = vmul.f32 %v229_v46, %v82_v49 }
 0x13e   :  { %v285_v54 = vpop.eup %284  ;;  %v93_v58 = vmul.f32 %v229_v46, %v83_v51 }
 0x13f   :  { %v84_v55 = vmul.f32 %v285_v54, %v52_v23  ;;  %v102_v57 = vadd.f32 %v230_v52, %v92_v53 }
 0x140   :  { %v103_v61 = vadd.f32 %v230_v52, %v93_v58 }
 0x141   :  { %v109_v59 = vpack.c.bf16 %v102_v57, %v101_v56  ;;  %v94_v60 = vmul.f32 %v229_v46, %v84_v55 }
 0x143   :  { %272 = vmatprep.mubr.msk.bf16.mxu0 %vm31_vm0, %v109_v59  ;;  %v104_v62 = vadd.f32 %v230_v52, %v94_v60 }
 0x145   :  { %v110_v63 = vpack.c.bf16 %v104_v62, %v103_v61 }
 0x147   :  { %273 = vmatmul.mubr.msk.bf16.vlgmr.msra.gmra.mrb[0].mxu0 %vm31_vm0, %v110_v63 }
 0x21a   :  { %v274_v1 = vpop.f32.mrb[0].mxu0 }
 0x21b   :  { %v179_v2 = vadd.f32 %v274_v1, %v231_v0  ;;  %v170_v3 = vpop.f32.mrb[1].mxu0 }
 0x21c   :  { %v171_v4 = vadd.f32 %v231_v0, %v170_v3  ;;  %v275_v5 = vpop.f32.mrb[2].mxu0 }
 0x21d   :  { %v191_v6 = vmul.f32 0.70710677, %v179_v2  ;;  %v182_v7 = vadd.f32 %v275_v5, %v231_v0  ;;  %v173_v8 = vpop.f32.mrb[3].mxu0  ;;  %v187_v19 = vmul.f32 0.5, %v179_v2 }
 0x21e   :  { %v189_v9 = vmul.f32 0.70710677, %v171_v4  ;;  %v174_v10 = vadd.f32 %v231_v0, %v173_v8  ;;  %v185_v22 = vmul.f32 0.5, %v171_v4 }
 0x21f   :  { %286 = verf.f32 %v191_v6  ;;  %v192_v11 = vmul.f32 0.70710677, %v182_v7  ;;  %v188_v20 = vmul.f32 0.5, %v182_v7 }
 0x220   :  { %288 = verf.f32 %v189_v9  ;;  %v190_v12 = vmul.f32 0.70710677, %v174_v10  ;;  %v186_v23 = vmul.f32 0.5, %v174_v10 }
 0x221   :  { %290 = verf.f32 %v192_v11 }
 0x222   :  { %292 = verf.f32 %v190_v12 }
 0x229   :  { %v287_v13 = vpop.eup %286 }
 0x22a   :  { %v289_v14 = vpop.eup %288  ;;  %v199_v15 = vadd.f32 1.0, %v287_v13 }
 0x22b   :  { %v291_v16 = vpop.eup %290  ;;  %v197_v17 = vadd.f32 1.0, %v289_v14 }
 0x22c   :  { %v293_v18 = vpop.eup %292  ;;  %v200_v21 = vadd.f32 1.0, %v291_v16  ;;  %v203_v25 = vmul.f32 %v199_v15, %v187_v19 }
 0x22d   :  { %v198_v24 = vadd.f32 1.0, %v293_v18  ;;  %v201_v27 = vmul.f32 %v197_v17, %v185_v22 }
 0x22e   :  { %v204_v26 = vmul.f32 %v200_v21, %v188_v20 }
 0x22f   :  { %v202_v28 = vmul.f32 %v198_v24, %v186_v23 }
 0x230   :  { %v260_v29 = vpack.c.bf16 %v204_v26, %v203_v25 }
 0x231   :  { %v255_v30 = vpack.c.bf16 %v202_v28, %v201_v27 }
 0x232   :  { %263 = vst [vmem:[%s366_s5 + $0x8] sm:$0xff] %v260_v29  }
 0x233   :  { %256 = vst [vmem:[%s366_s5] sm:$0xff] %v255_v30  }

// kernel: _lambda_.36
= control target key start
LH: loop header
LB: loop body
LE: loop exit
PB: predicated region body
PF: predicated region fallthrough
CT: control target
= control target key end

     0   :  { %v1380_v2 = vmov 0.0   ;;  %vm1381_vm0 = vmmov 0   ;;  %s1382_s13 = smov 96   ;;  %vm39_vm1 = vcmask 64512   ;;  %vm137_vm2 = vcmask 130048   ;;  %s1383_s17 = smov 64   ;;  %s1673_s0 = inlined_call_operand.vmem [shape: bf16[2,16,96], index: 0, kind: input, shape index: {}]   ;;  %s1674_s1 = inlined_call_operand.vmem [shape: f32[4,16,16], index: 1, kind: input, shape index: {}]   ;;  %s1675_s2 = inlined_call_operand.vmem [shape: bf16[2,16,32], index: 2, kind: output, shape index: {}]  }
   0x1   :  { %v1414_v0 = vld [vmem:[%s1673_s0] sm:$0xff]   ;;  %v1419_v1 = vld [vmem:[%s1673_s0 + $0x8] sm:$0xff]   ;;  %1200 = vmatprep.subr.bf16.mxu0 %v1380_v2  ;;  %1206 = vmatprep.subr.bf16.mxu1 %v1380_v2  ;;  %s1384_s18 = smov 88   ;;  %s1385_s19 = smov 120   ;;  %vm294_vm3 = vcmask 60416   ;;  %vm567_vm4 = vcmask 126016  }
   0x2   :  { %1202 = vmatprep.mubr.msk.bf16.mxu0 %vm1381_vm0, %v1380_v2  ;;  %1208 = vmatprep.mubr.msk.bf16.mxu1 %vm1381_vm0, %v1380_v2  ;;  %v16_v3 = vunpack.c.l.bf16 %v1414_v0  ;;  %v17_v4 = vunpack.c.h.bf16 %v1414_v0  ;;  %v18_v6 = vunpack.c.l.bf16 %v1419_v1  ;;  %v19_v10 = vunpack.c.h.bf16 %v1419_v1  ;;  %v20_v17 = vld [vmem:[%s1674_s1] sm:$0xff]  ;;  %v21_v19 = vld [vmem:[%s1674_s1 + $0x8] sm:$0xff]  ;;  %s1386_s4 = smov 56   ;;  %s1387_s5 = smov 80  }
   0x3   :  { %37 = vrot.lane.b32.xlu0 %v1414_v0, %s1382_s13  ;;  %s1388_s6 = smov 112   ;;  %s1389_s11 = smov 48   ;;  %vm838_vm5 = vcmask 191616   ;;  %vm1109_vm6 = vcmask 257216  }
   0x4   :  { %v28_v8 = vmul.f32 0.35355338, %v16_v3  ;;  %v29_v9 = vmul.f32 0.35355338, %v17_v4  ;;  %v30_v14 = vmul.f32 0.35355338, %v18_v6 }
   0x5   :  { %v31_v15 = vmul.f32 0.35355338, %v19_v10  ;;  %s1390_s12 = smov 72   ;;  %s1395_s7 = smov 24  }
   0x6   :  { %v1436_v13 = vpack.c.bf16 %v29_v9, %v28_v8 }
   0x7   :  { %88 = vrot.lane.b32.xlu0 %v1419_v1, %s1382_s13  ;;  %v1441_v16 = vpack.c.bf16 %v31_v15, %v30_v14  ;;  %s1391_s13 = smov 104  }
  0x75   :  { %v38_v5 = vpop.permute.xlu0 %37 }
  0x76   :  { %v44_v7 = vsel %vm39_vm1, %v38_v5, 0 }
  0x77   :  { %1201 = vmatpush3.bf16.xpose.msra.mxu0 %v44_v7 }
  0x78   :  { %1212 = vmatprep.subr.bf16.mxu0 %v1380_v2 }
  0x79   :  { %v89_v11 = vpop.permute.xlu0 %88 }
  0x7a   :  { %v94_v12 = vsel %vm39_vm1, %v89_v11, 0 }
  0x7b   :  { %1207 = vmatpush3.bf16.xpose.msra.mxu1 %v94_v12 }
  0x7c   :  { %1218 = vmatprep.subr.bf16.mxu1 %v1380_v2 }
  0x7e   :  { %1203 = vmatmul.mubr.msk.bf16.vlgmr.msra.gmra.mrb[0].mxu0 %vm39_vm1, %v1436_v13 }
  0x7f   :  { %1214 = vmatprep.mubr.msk.bf16.mxu0 %vm1381_vm0, %v1380_v2 }
  0x82   :  { %1209 = vmatmul.mubr.msk.bf16.vlgmr.msra.gmra.mrb[0].mxu1 %vm39_vm1, %v1441_v16 }
  0x83   :  { %1220 = vmatprep.mubr.msk.bf16.mxu1 %vm1381_vm0, %v1380_v2 }
 0x151   :  { %v80_v18 = vpop.f32.mrb[0].mxu0 }
 0x152   :  { %v81_v20 = vadd.f32 %v80_v18, %v20_v17  ;;  %v1204_v21 = vpop.f32.mrb[1].mxu0 }
 0x153   :  { %v83_v22 = vpop.f32.mrb[2].mxu0 }
 0x154   :  { %v84_v23 = vadd.f32 %v83_v22, %v21_v19  ;;  %v1205_v24 = vpop.f32.mrb[3].mxu0  ;;  %v138_v25 = vsel %vm137_vm2, %v81_v20, -inf }
 0x155   :  { %v130_v26 = vpop.f32.mrb[0].mxu1  ;;  %139 = vmax.xlane.f32.xlu1 %v138_v25 }
 0x156   :  { %v131_v27 = vadd.f32 %v130_v26, %v20_v17  ;;  %v1210_v28 = vpop.f32.mrb[1].mxu1  ;;  %v141_v33 = vsel %vm137_vm2, %v84_v23, -inf }
 0x157   :  { %v133_v29 = vpop.f32.mrb[2].mxu1  ;;  %v22_v28 = vld [vmem:[%s1674_s1 + $0x10] sm:$0xff] }
 0x158   :  { %v134_v30 = vadd.f32 %v133_v29, %v21_v19  ;;  %v1211_v31 = vpop.f32.mrb[3].mxu1  ;;  %v144_v32 = vsel %vm137_vm2, %v131_v27, -inf }
 0x159   :  { %145 = vmax.xlane.f32.xlu0 %v144_v32  ;;  %142 = vmax.xlane.f32.xlu1 %v141_v33  ;;  %v23_v32 = vld [vmem:[%s1674_s1 + $0x18] sm:$0xff] }
 0x15a   :  { %v147_v34 = vsel %vm137_vm2, %v134_v30, -inf }
 0x15d   :  { %148 = vmax.xlane.f32.xlu1 %v147_v34 }
 0x16e   :  { %184 = vrot.lane.b32.xlu1 %v1414_v0, %s1383_s17 }
 0x16f   :  { %231 = vrot.lane.b32.xlu0 %v1419_v1, %s1383_s17  ;;  %s1393_s17 = smov 8  }
 0x172   :  { %302 = vrot.lane.b32.xlu1 %v1414_v0, %s1384_s18 }
 0x176   :  { %354 = vrot.lane.b32.xlu1 %v1419_v1, %s1384_s18  ;;  %s1394_s18 = smov 16  }
 0x1e2   :  { %v140_v35 = vpop.xlane.xlu1 %139 }
 0x1e3   :  { %v150_v36 = vsub.f32 %v81_v20, %v140_v35 }
 0x1e5   :  { %v154_v37 = vmul.f32 1.442695, %v150_v36 }
 0x1e6   :  { %v146_v38 = vpop.xlane.xlu0 %145  ;;  %v143_v39 = vpop.xlane.xlu1 %142 }
 0x1e7   :  { %1316 = vpow2.f32 %v154_v37  ;;  %v152_v40 = vsub.f32 %v131_v27, %v146_v38  ;;  %v151_v41 = vsub.f32 %v84_v23, %v143_v39 }
 0x1e9   :  { %v158_v42 = vmul.f32 1.442695, %v152_v40  ;;  %v156_v43 = vmul.f32 1.442695, %v151_v41 }
 0x1ea   :  { %v149_v44 = vpop.xlane.xlu1 %148  ;;  %v232_v56 = vpop.permute.xlu0 %231 }
 0x1eb   :  { %1318 = vpow2.f32 %v158_v42  ;;  %v153_v45 = vsub.f32 %v134_v30, %v149_v44  ;;  %1219 = vmatpush3.bf16.msra.mxu1 %v232_v56 }
 0x1ec   :  { %1320 = vpow2.f32 %v156_v43  ;;  %1230 = vmatprep.subr.bf16.mxu1 %v1380_v2 }
 0x1ed   :  { %v160_v46 = vmul.f32 1.442695, %v153_v45 }
 0x1ee   :  { %v185_v47 = vpop.permute.xlu1 %184 }
 0x1ef   :  { %1213 = vmatpush3.bf16.msra.mxu0 %v185_v47  ;;  %1322 = vpow2.f32 %v160_v46 }
 0x1f0   :  { %1224 = vmatprep.subr.bf16.mxu0 %v1380_v2 }
 0x1f1   :  { %v1317_v48 = vpop.eup %1316 }
 0x1f2   :  { %v162_v49 = vsel %vm137_vm2, %v1317_v48, 0.0  ;;  %v303_v57 = vpop.permute.xlu1 %302 }
 0x1f3   :  { %163 = vadd.xlane.f32.xlu1 %v162_v49  ;;  %v308_v9 = vsel %vm39_vm1, %v303_v57, 0 }
 0x1f5   :  { %v1319_v50 = vpop.eup %1318 }
 0x1f6   :  { %v168_v51 = vsel %vm137_vm2, %v1319_v50, 0.0  ;;  %v1321_v52 = vpop.eup %1320  ;;  %v355_v58 = vpop.permute.xlu1 %354 }
 0x1f7   :  { %169 = vadd.xlane.f32.xlu1 %v168_v51  ;;  %v165_v53 = vsel %vm137_vm2, %v1321_v52, 0.0  ;;  %v360_v15 = vsel %vm39_vm1, %v355_v58, 0 }
 0x1f9   :  { %v1323_v54 = vpop.eup %1322 }
 0x1fa   :  { %v171_v55 = vsel %vm137_vm2, %v1323_v54, 0.0 }
 0x1fb   :  { %166 = vadd.xlane.f32.xlu1 %v165_v53 }
 0x1ff   :  { %172 = vadd.xlane.f32.xlu1 %v171_v55 }
 0x210   :  { %300 = vrot.lane.b32.xlu1 %v1436_v13, %s1385_s19 }
 0x214   :  { %352 = vrot.lane.b32.xlu1 %v1441_v16, %s1385_s19 }
 0x280   :  { %v164_v59 = vpop.xlane.xlu1 %163 }
 0x281   :  { %1324 = vrcp.f32 %v164_v59 }
 0x284   :  { %v170_v60 = vpop.xlane.xlu1 %169 }
 0x288   :  { %v167_v61 = vpop.xlane.xlu1 %166 }
 0x289   :  { %1326 = vrcp.f32 %v167_v61 }
 0x28a   :  { %1328 = vrcp.f32 %v170_v60 }
 0x28b   :  { %v1325_v63 = vpop.eup %1324 }
 0x28c   :  { %v173_v62 = vpop.xlane.xlu1 %172  ;;  %v178_v4 = vmul.f32 %v1325_v63, %v1317_v48 }
 0x28d   :  { %1330 = vrcp.f32 %v173_v62 }
 0x290   :  { %v301_v14 = vpop.permute.xlu1 %300 }
 0x293   :  { %v1327_v3 = vpop.eup %1326 }
 0x294   :  { %v179_v5 = vmul.f32 %v1327_v3, %v1321_v52  ;;  %v1329_v6 = vpop.eup %1328  ;;  %v353_v17 = vpop.permute.xlu1 %352 }
 0x295   :  { %v180_v10 = vmul.f32 %v1329_v6, %v1319_v50 }
 0x296   :  { %v182_v7 = vpack.c.bf16 %v179_v5, %v178_v4 }
 0x297   :  { %v1331_v8 = vpop.eup %1330 }
 0x298   :  { %v181_v11 = vmul.f32 %v1331_v8, %v1323_v54  ;;  %1215 = vmatmul.mubr.msk.bf16.vlgmr.msra.gmra.mrb[4].mxu0 %vm137_vm2, %v182_v7 }
 0x299   :  { %1225 = vmatpush3.bf16.xpose.msra.mxu0 %v308_v9  ;;  %1226 = vmatprep.mubr.msk.bf16.mxu0 %vm1381_vm0, %v1380_v2 }
 0x29a   :  { %v183_v12 = vpack.c.bf16 %v181_v11, %v180_v10  ;;  %1236 = vmatprep.subr.bf16.mxu0 %v1380_v2 }
 0x29c   :  { %1221 = vmatmul.mubr.msk.bf16.vlgmr.msra.gmra.mrb[4].mxu1 %vm137_vm2, %v183_v12 }
 0x29d   :  { %1231 = vmatpush3.bf16.xpose.msra.mxu1 %v360_v15  ;;  %1232 = vmatprep.mubr.msk.bf16.mxu1 %vm1381_vm0, %v1380_v2 }
 0x29e   :  { %1242 = vmatprep.subr.bf16.mxu1 %v1380_v2 }
 0x2a0   :  { %1227 = vmatmul.mubr.msk.bf16.vlgmr.msra.gmra.mrb[8].mxu0 %vm39_vm1, %v301_v14 }
 0x2a1   :  { %1238 = vmatprep.mubr.msk.bf16.mxu0 %vm1381_vm0, %v1380_v2 }
 0x2a4   :  { %1233 = vmatmul.mubr.msk.bf16.vlgmr.msra.gmra.mrb[8].mxu1 %vm39_vm1, %v353_v17 }
 0x2a5   :  { %1244 = vmatprep.mubr.msk.bf16.mxu1 %vm1381_vm0, %v1380_v2 }
 0x36b   :  { %v224_v18 = vpop.f32.mrb[4].mxu0 }
 0x36c   :  { %v1152_v19 = vpack.c.bf16 %v224_v18, %v224_v18  ;;  %v1216_v20 = vpop.f32.mrb[5].mxu0 }
 0x36d   :  { %v227_v21 = vpop.f32.mrb[6].mxu0 }
 0x36e   :  { %295 = vst.msk [vmem:[%s1675_s2] sm:$0xf] %vm294_vm3, %v1152_v19  ;;  %v1153_v22 = vpack.c.bf16 %v227_v21, %v227_v21  ;;  %v1217_v23 = vpop.f32.mrb[7].mxu0 }
 0x36f   :  { %v271_v24 = vpop.f32.mrb[4].mxu1 }
 0x370   :  { %296 = vst.msk [vmem:[%s1675_s2 + $0x4] sm:$0xf] %vm294_vm3, %v1153_v22  ;;  %v1154_v25 = vpack.c.bf16 %v271_v24, %v271_v24  ;;  %v1222_v26 = vpop.f32.mrb[5].mxu1 }
 0x371   :  { %v274_v27 = vpop.f32.mrb[6].mxu1 }
 0x372   :  { %297 = vst.msk [vmem:[%s1675_s2 + $0x8] sm:$0xf] %vm294_vm3, %v1154_v25  ;;  %v1155_v29 = vpack.c.bf16 %v274_v27, %v274_v27  ;;  %v1223_v30 = vpop.f32.mrb[7].mxu1 }
 0x373   :  { %v344_v31 = vpop.f32.mrb[8].mxu0 }
 0x374   :  { %298 = vst.msk [vmem:[%s1675_s2 + $0xc] sm:$0xf] %vm294_vm3, %v1155_v29  ;;  %v345_v33 = vadd.f32 %v344_v31, %v22_v28  ;;  %v1228_v34 = vpop.f32.mrb[9].mxu0 }
 0x375   :  { %v347_v35 = vpop.f32.mrb[10].mxu0 }
 0x376   :  { %v348_v36 = vadd.f32 %v347_v35, %v23_v32  ;;  %v1229_v37 = vpop.f32.mrb[11].mxu0  ;;  %v403_v38 = vsel %vm137_vm2, %v345_v33, -inf }
 0x377   :  { %v396_v39 = vpop.f32.mrb[8].mxu1  ;;  %404 = vmax.xlane.f32.xlu0 %v403_v38 }
 0x378   :  { %v397_v40 = vadd.f32 %v396_v39, %v22_v28  ;;  %v1234_v41 = vpop.f32.mrb[9].mxu1  ;;  %v406_v42 = vsel %vm137_vm2, %v348_v36, -inf }
 0x379   :  { %v399_v43 = vpop.f32.mrb[10].mxu1  ;;  %407 = vmax.xlane.f32.xlu1 %v406_v42 }
 0x37a   :  { %v400_v44 = vadd.f32 %v399_v43, %v23_v32  ;;  %v1235_v45 = vpop.f32.mrb[11].mxu1  ;;  %v409_v46 = vsel %vm137_vm2, %v397_v40, -inf }
 0x37b   :  { %410 = vmax.xlane.f32.xlu0 %v409_v46 }
 0x37c   :  { %v412_v47 = vsel %vm137_vm2, %v400_v44, -inf }
 0x37f   :  { %413 = vmax.xlane.f32.xlu0 %v412_v47 }
 0x38a   :  { %449 = vrot.lane.b32.xlu1 %v1414_v0, %s1386_s4 }
 0x404   :  { %v405_v48 = vpop.xlane.xlu0 %404 }
 0x405   :  { %v415_v49 = vsub.f32 %v345_v33, %v405_v48 }
 0x406   :  { %v408_v50 = vpop.xlane.xlu1 %407 }
 0x407   :  { %v419_v51 = vmul.f32 1.442695, %v415_v49  ;;  %v416_v52 = vsub.f32 %v348_v36, %v408_v50  ;;  %v24_v36 = vld [vmem:[%s1674_s1 + $0x20] sm:$0xff] }
 0x408   :  { %v411_v53 = vpop.xlane.xlu0 %410 }
 0x409   :  { %1332 = vpow2.f32 %v419_v51  ;;  %v421_v54 = vmul.f32 1.442695, %v416_v52  ;;  %v417_v55 = vsub.f32 %v397_v40, %v411_v53  ;;  %v25_v40 = vld [vmem:[%s1674_s1 + $0x28] sm:$0xff] }
 0x40a   :  { %v450_v56 = vpop.permute.xlu1 %449 }
 0x40b   :  { %1334 = vpow2.f32 %v421_v54  ;;  %v423_v57 = vmul.f32 1.442695, %v417_v55  ;;  %1237 = vmatpush3.bf16.msra.mxu0 %v450_v56 }
 0x40c   :  { %v414_v58 = vpop.xlane.xlu0 %413  ;;  %1248 = vmatprep.subr.bf16.mxu0 %v1380_v2 }
 0x40d   :  { %1336 = vpow2.f32 %v423_v57  ;;  %v418_v59 = vsub.f32 %v400_v44, %v414_v58 }
 0x40f   :  { %v425_v60 = vmul.f32 1.442695, %v418_v59 }
 0x411   :  { %1338 = vpow2.f32 %v425_v60 }
 0x413   :  { %v1333_v61 = vpop.eup %1332 }
 0x414   :  { %v427_v62 = vsel %vm137_vm2, %v1333_v61, 0.0 }
 0x415   :  { %v1335_v63 = vpop.eup %1334  ;;  %428 = vadd.xlane.f32.xlu1 %v427_v62 }
 0x416   :  { %v430_v3 = vsel %vm137_vm2, %v1335_v63, 0.0 }
 0x417   :  { %v1337_v4 = vpop.eup %1336  ;;  %431 = vadd.xlane.f32.xlu0 %v430_v3 }
 0x418   :  { %v433_v5 = vsel %vm137_vm2, %v1337_v4, 0.0 }
 0x419   :  { %434 = vadd.xlane.f32.xlu1 %v433_v5 }
 0x41b   :  { %v1339_v6 = vpop.eup %1338 }
 0x41c   :  { %v436_v7 = vsel %vm137_vm2, %v1339_v6, 0.0 }
 0x41d   :  { %437 = vadd.xlane.f32.xlu0 %v436_v7 }
 0x42a   :  { %574 = vrot.lane.b32.xlu1 %v1414_v0, %s1387_s5 }
 0x42e   :  { %625 = vrot.lane.b32.xlu1 %v1419_v1, %s1387_s5 }
 0x432   :  { %623 = vrot.lane.b32.xlu1 %v1441_v16, %s1388_s6 }
 0x433   :  { %496 = vrot.lane.b32.xlu0 %v1419_v1, %s1386_s4 }
 0x437   :  { %572 = vrot.lane.b32.xlu0 %v1436_v13, %s1388_s6 }
 0x4a2   :  { %v429_v8 = vpop.xlane.xlu1 %428 }
 0x4a3   :  { %1340 = vrcp.f32 %v429_v8 }
 0x4a4   :  { %v432_v9 = vpop.xlane.xlu0 %431 }
 0x4a5   :  { %1342 = vrcp.f32 %v432_v9 }
 0x4a6   :  { %v435_v10 = vpop.xlane.xlu1 %434 }
 0x4a7   :  { %1344 = vrcp.f32 %v435_v10 }
 0x4aa   :  { %v438_v11 = vpop.xlane.xlu0 %437  ;;  %v575_v17 = vpop.permute.xlu1 %574 }
 0x4ab   :  { %1346 = vrcp.f32 %v438_v11  ;;  %v580_v20 = vsel %vm39_vm1, %v575_v17, 0 }
 0x4ad   :  { %v1341_v12 = vpop.eup %1340 }
 0x4ae   :  { %v497_v14 = vpop.permute.xlu0 %496  ;;  %v443_v18 = vmul.f32 %v1341_v12, %v1333_v61  ;;  %v626_v24 = vpop.permute.xlu1 %625 }
 0x4af   :  { %v1343_v15 = vpop.eup %1342  ;;  %1243 = vmatpush3.bf16.msra.mxu1 %v497_v14  ;;  %v631_v27 = vsel %vm39_vm1, %v626_v24, 0 }
 0x4b0   :  { %v444_v19 = vmul.f32 %v1343_v15, %v1335_v63  ;;  %1254 = vmatprep.subr.bf16.mxu1 %v1380_v2 }
 0x4b1   :  { %v1345_v22 = vpop.eup %1344 }
 0x4b2   :  { %v447_v21 = vpack.c.bf16 %v444_v19, %v443_v18  ;;  %v445_v25 = vmul.f32 %v1345_v22, %v1337_v4  ;;  %v573_v29 = vpop.permute.xlu0 %572  ;;  %v624_v30 = vpop.permute.xlu1 %623 }
 0x4b4   :  { %1239 = vmatmul.mubr.msk.bf16.vlgmr.msra.gmra.mrb[12].mxu0 %vm137_vm2, %v447_v21 }
 0x4b5   :  { %v1347_v23 = vpop.eup %1346  ;;  %1249 = vmatpush3.bf16.xpose.msra.mxu0 %v580_v20  ;;  %1250 = vmatprep.mubr.msk.bf16.mxu0 %vm1381_vm0, %v1380_v2 }
 0x4b6   :  { %v446_v26 = vmul.f32 %v1347_v23, %v1339_v6  ;;  %1260 = vmatprep.subr.bf16.mxu0 %v1380_v2 }
 0x4b8   :  { %v448_v28 = vpack.c.bf16 %v446_v26, %v445_v25 }
 0x4ba   :  { %1245 = vmatmul.mubr.msk.bf16.vlgmr.msra.gmra.mrb[12].mxu1 %vm137_vm2, %v448_v28 }
 0x4bb   :  { %1255 = vmatpush3.bf16.xpose.msra.mxu1 %v631_v27  ;;  %1256 = vmatprep.mubr.msk.bf16.mxu1 %vm1381_vm0, %v1380_v2 }
 0x4bc   :  { %1251 = vmatmul.mubr.msk.bf16.vlgmr.msra.gmra.mrb[16].mxu0 %vm39_vm1, %v573_v29  ;;  %1266 = vmatprep.subr.bf16.mxu1 %v1380_v2 }
 0x4bd   :  { %1262 = vmatprep.mubr.msk.bf16.mxu0 %vm1381_vm0, %v1380_v2 }
 0x4c2   :  { %1257 = vmatmul.mubr.msk.bf16.vlgmr.msra.gmra.mrb[16].mxu1 %vm39_vm1, %v624_v30 }
 0x4c3   :  { %1268 = vmatprep.mubr.msk.bf16.mxu1 %vm1381_vm0, %v1380_v2 }
 0x587   :  { %v1543_v31 = vpop.f32.mrb[12].mxu0 }
 0x588   :  { %v1240_v32 = vpop.f32.mrb[13].mxu0 }
 0x589   :  { %v1545_v33 = vpop.f32.mrb[14].mxu0 }
 0x58a   :  { %v1241_v34 = vpop.f32.mrb[15].mxu0 }
 0x58d   :  { %v1547_v35 = vpop.f32.mrb[12].mxu1 }
 0x58e   :  { %v1246_v37 = vpop.f32.mrb[13].mxu1 }
 0x58f   :  { %v1552_v38 = vpop.f32.mrb[14].mxu1  ;;  %v616_v39 = vpop.f32.mrb[16].mxu0 }
 0x590   :  { %v617_v41 = vadd.f32 %v616_v39, %v24_v36  ;;  %v1247_v42 = vpop.f32.mrb[15].mxu1  ;;  %v1252_v43 = vpop.f32.mrb[17].mxu0 }
 0x591   :  { %v619_v44 = vpop.f32.mrb[18].mxu0 }
 0x592   :  { %v620_v45 = vadd.f32 %v619_v44, %v25_v40  ;;  %v1253_v46 = vpop.f32.mrb[19].mxu0  ;;  %v674_v47 = vsel %vm137_vm2, %v617_v41, -inf }
 0x593   :  { %675 = vmax.xlane.f32.xlu0 %v674_v47  ;;  %v26_v46 = vld [vmem:[%s1674_s1 + $0x30] sm:$0xff] }
 0x594   :  { %v677_v48 = vsel %vm137_vm2, %v620_v45, -inf }
 0x595   :  { %v667_v49 = vpop.f32.mrb[16].mxu1  ;;  %678 = vmax.xlane.f32.xlu1 %v677_v48 }
 0x596   :  { %v668_v50 = vadd.f32 %v667_v49, %v24_v36  ;;  %v1258_v51 = vpop.f32.mrb[17].mxu1  ;;  %v27_v49 = vld [vmem:[%s1674_s1 + $0x38] sm:$0xff]  ;;  %s1392_s1 = smov 40  }
 0x597   :  { %v670_v52 = vpop.f32.mrb[18].mxu1 }
 0x598   :  { %v671_v53 = vadd.f32 %v670_v52, %v25_v40  ;;  %v1259_v54 = vpop.f32.mrb[19].mxu1  ;;  %v680_v55 = vsel %vm137_vm2, %v668_v50, -inf }
 0x599   :  { %681 = vmax.xlane.f32.xlu0 %v680_v55 }
 0x59a   :  { %v683_v56 = vsel %vm137_vm2, %v671_v53, -inf }
 0x59d   :  { %684 = vmax.xlane.f32.xlu0 %v683_v56 }
 0x5a6   :  { %720 = vrot.lane.b32.xlu1 %v1414_v0, %s1389_s11 }
 0x620   :  { %v676_v57 = vpop.xlane.xlu0 %675 }
 0x621   :  { %v686_v58 = vsub.f32 %v617_v41, %v676_v57 }
 0x622   :  { %v679_v59 = vpop.xlane.xlu1 %678 }
 0x623   :  { %v690_v60 = vmul.f32 1.442695, %v686_v58  ;;  %v687_v61 = vsub.f32 %v620_v45, %v679_v59 }
 0x625   :  { %1348 = vpow2.f32 %v690_v60  ;;  %v692_v62 = vmul.f32 1.442695, %v687_v61 }
 0x626   :  { %v682_v63 = vpop.xlane.xlu0 %681  ;;  %v721_v3 = vpop.permute.xlu1 %720 }
 0x627   :  { %1350 = vpow2.f32 %v692_v62  ;;  %v688_v4 = vsub.f32 %v668_v50, %v682_v63  ;;  %1261 = vmatpush3.bf16.msra.mxu0 %v721_v3 }
 0x628   :  { %1272 = vmatprep.subr.bf16.mxu0 %v1380_v2 }
 0x629   :  { %v694_v5 = vmul.f32 1.442695, %v688_v4 }
 0x62a   :  { %v685_v6 = vpop.xlane.xlu0 %684 }
 0x62b   :  { %1352 = vpow2.f32 %v694_v5  ;;  %v689_v7 = vsub.f32 %v671_v53, %v685_v6 }
 0x62d   :  { %v696_v8 = vmul.f32 1.442695, %v689_v7 }
 0x62f   :  { %v1349_v9 = vpop.eup %1348  ;;  %1354 = vpow2.f32 %v696_v8 }
 0x630   :  { %v698_v10 = vsel %vm137_vm2, %v1349_v9, 0.0 }
 0x631   :  { %v1351_v11 = vpop.eup %1350  ;;  %699 = vadd.xlane.f32.xlu1 %v698_v10 }
 0x632   :  { %v701_v12 = vsel %vm137_vm2, %v1351_v11, 0.0 }
 0x633   :  { %702 = vadd.xlane.f32.xlu0 %v701_v12 }
 0x635   :  { %v1353_v14 = vpop.eup %1352 }
 0x636   :  { %v704_v15 = vsel %vm137_vm2, %v1353_v14, 0.0 }
 0x637   :  { %705 = vadd.xlane.f32.xlu1 %v704_v15 }
 0x639   :  { %v1355_v17 = vpop.eup %1354 }
 0x63a   :  { %v707_v18 = vsel %vm137_vm2, %v1355_v17, 0.0 }
 0x63b   :  { %708 = vadd.xlane.f32.xlu0 %v707_v18 }
 0x648   :  { %845 = vrot.lane.b32.xlu1 %v1414_v0, %s1390_s12 }
 0x64c   :  { %896 = vrot.lane.b32.xlu1 %v1419_v1, %s1390_s12 }
 0x650   :  { %894 = vrot.lane.b32.xlu1 %v1441_v16, %s1391_s13 }
 0x651   :  { %767 = vrot.lane.b32.xlu0 %v1419_v1, %s1389_s11 }
 0x655   :  { %843 = vrot.lane.b32.xlu0 %v1436_v13, %s1391_s13 }
 0x6be   :  { %v700_v19 = vpop.xlane.xlu1 %699 }
 0x6bf   :  { %1356 = vrcp.f32 %v700_v19 }
 0x6c0   :  { %v703_v20 = vpop.xlane.xlu0 %702 }
 0x6c1   :  { %1358 = vrcp.f32 %v703_v20 }
 0x6c4   :  { %v706_v21 = vpop.xlane.xlu1 %705 }
 0x6c5   :  { %1360 = vrcp.f32 %v706_v21 }
 0x6c8   :  { %v709_v22 = vpop.xlane.xlu0 %708  ;;  %v846_v25 = vpop.permute.xlu1 %845 }
 0x6c9   :  { %v1357_v23 = vpop.eup %1356  ;;  %1362 = vrcp.f32 %v709_v22  ;;  %v851_v16 = vsel %vm39_vm1, %v846_v25, 0 }
 0x6ca   :  { %v714_v26 = vmul.f32 %v1357_v23, %v1349_v9 }
 0x6cb   :  { %v1359_v24 = vpop.eup %1358 }
 0x6cc   :  { %v715_v27 = vmul.f32 %v1359_v24, %v1351_v11  ;;  %v768_v28 = vpop.permute.xlu0 %767  ;;  %v897_v32 = vpop.permute.xlu1 %896 }
 0x6cd   :  { %1267 = vmatpush3.bf16.msra.mxu1 %v768_v28  ;;  %v902_v39 = vsel %vm39_vm1, %v897_v32, 0  ;;  %v1156_v28 = vpack.c.bf16 %v1543_v31, %v1543_v31 }
 0x6ce   :  { %v718_v29 = vpack.c.bf16 %v715_v27, %v714_v26  ;;  %1278 = vmatprep.subr.bf16.mxu1 %v1380_v2 }
 0x6cf   :  { %v1361_v13 = vpop.eup %1360 }
 0x6d0   :  { %1263 = vmatmul.mubr.msk.bf16.vlgmr.msra.gmra.mrb[20].mxu0 %vm137_vm2, %v718_v29  ;;  %v716_v34 = vmul.f32 %v1361_v13, %v1353_v14  ;;  %v844_v37 = vpop.permute.xlu0 %843  ;;  %v895_v41 = vpop.permute.xlu1 %894  ;;  %v1159_v29 = vpack.c.bf16 %v1552_v38, %v1552_v38  ;;  %v1158_v13 = vpack.c.bf16 %v1547_v35, %v1547_v35 }
 0x6d1   :  { %1273 = vmatpush3.bf16.xpose.msra.mxu0 %v851_v16  ;;  %1274 = vmatprep.mubr.msk.bf16.mxu0 %vm1381_vm0, %v1380_v2  ;;  %v1157_v16 = vpack.c.bf16 %v1545_v33, %v1545_v33 }
 0x6d2   :  { %1284 = vmatprep.subr.bf16.mxu0 %v1380_v2 }
 0x6d3   :  { %v1363_v30 = vpop.eup %1362 }
 0x6d4   :  { %v717_v36 = vmul.f32 %v1363_v30, %v1355_v17 }
 0x6d6   :  { %v719_v40 = vpack.c.bf16 %v717_v36, %v716_v34 }
 0x6d8   :  { %1269 = vmatmul.mubr.msk.bf16.vlgmr.msra.gmra.mrb[20].mxu1 %vm137_vm2, %v719_v40  ;;  %1275 = vmatmul.mubr.msk.bf16.vlgmr.msra.gmra.mrb[24].mxu0 %vm39_vm1, %v844_v37 }
 0x6d9   :  { %1279 = vmatpush3.bf16.xpose.msra.mxu1 %v902_v39  ;;  %1280 = vmatprep.mubr.msk.bf16.mxu1 %vm1381_vm0, %v1380_v2 }
 0x6da   :  { %1286 = vmatprep.mubr.msk.bf16.mxu0 %vm1381_vm0, %v1380_v2  ;;  %1290 = vmatprep.subr.bf16.mxu1 %v1380_v2 }
 0x6e0   :  { %1281 = vmatmul.mubr.msk.bf16.vlgmr.msra.gmra.mrb[24].mxu1 %vm39_vm1, %v895_v41 }
 0x6e1   :  { %1292 = vmatprep.mubr.msk.bf16.mxu1 %vm1381_vm0, %v1380_v2 }
 0x7a3   :  { %v1591_v42 = vpop.f32.mrb[20].mxu0 }
 0x7a4   :  { %v1264_v43 = vpop.f32.mrb[21].mxu0  ;;  %v1160_v31 = vpack.c.bf16 %v1591_v42, %v1591_v42 }
 0x7a5   :  { %v1593_v44 = vpop.f32.mrb[22].mxu0 }
 0x7a6   :  { %v1265_v45 = vpop.f32.mrb[23].mxu0 }
 0x7ab   :  { %v1598_v47 = vpop.f32.mrb[20].mxu1  ;;  %v887_v48 = vpop.f32.mrb[24].mxu0 }
 0x7ac   :  { %v888_v50 = vadd.f32 %v887_v48, %v26_v46  ;;  %v1270_v51 = vpop.f32.mrb[21].mxu1  ;;  %v1276_v2 = vpop.f32.mrb[25].mxu0  ;;  %v1162_v33 = vpack.c.bf16 %v1598_v47, %v1598_v47 }
 0x7ad   :  { %v1603_v52 = vpop.f32.mrb[22].mxu1  ;;  %v890_v53 = vpop.f32.mrb[26].mxu0 }
 0x7ae   :  { %v891_v54 = vadd.f32 %v890_v53, %v27_v49  ;;  %v1271_v55 = vpop.f32.mrb[23].mxu1  ;;  %v945_v56 = vsel %vm137_vm2, %v888_v50, -inf  ;;  %v1277_v57 = vpop.f32.mrb[27].mxu0 }
 0x7af   :  { %946 = vmax.xlane.f32.xlu0 %v945_v56 }
 0x7b0   :  { %v948_v58 = vsel %vm137_vm2, %v891_v54, -inf }
 0x7b1   :  { %949 = vmax.xlane.f32.xlu1 %v948_v58 }
 0x7b3   :  { %v938_v59 = vpop.f32.mrb[24].mxu1 }
 0x7b4   :  { %v939_v60 = vadd.f32 %v938_v59, %v26_v46  ;;  %v1282_v61 = vpop.f32.mrb[25].mxu1 }
 0x7b5   :  { %v941_v62 = vpop.f32.mrb[26].mxu1 }
 0x7b6   :  { %v942_v63 = vadd.f32 %v941_v62, %v27_v49  ;;  %v1283_v3 = vpop.f32.mrb[27].mxu1  ;;  %v951_v4 = vsel %vm137_vm2, %v939_v60, -inf }
 0x7b7   :  { %952 = vmax.xlane.f32.xlu0 %v951_v4 }
 0x7b8   :  { %v954_v5 = vsel %vm137_vm2, %v942_v63, -inf }
 0x7bb   :  { %955 = vmax.xlane.f32.xlu0 %v954_v5 }
 0x83c   :  { %v947_v6 = vpop.xlane.xlu0 %946 }
 0x83d   :  { %v957_v7 = vsub.f32 %v888_v50, %v947_v6 }
 0x83e   :  { %v950_v8 = vpop.xlane.xlu1 %949 }
 0x83f   :  { %v961_v9 = vmul.f32 1.442695, %v957_v7  ;;  %v958_v10 = vsub.f32 %v891_v54, %v950_v8 }
 0x841   :  { %1364 = vpow2.f32 %v961_v9  ;;  %v963_v11 = vmul.f32 1.442695, %v958_v10 }
 0x843   :  { %1366 = vpow2.f32 %v963_v11 }
 0x844   :  { %v953_v12 = vpop.xlane.xlu0 %952 }
 0x845   :  { %v959_v14 = vsub.f32 %v939_v60, %v953_v12 }
 0x847   :  { %v965_v15 = vmul.f32 1.442695, %v959_v14 }
 0x848   :  { %v956_v17 = vpop.xlane.xlu0 %955 }
 0x849   :  { %1368 = vpow2.f32 %v965_v15  ;;  %v960_v18 = vsub.f32 %v942_v63, %v956_v17 }
 0x84b   :  { %v1365_v19 = vpop.eup %1364  ;;  %v967_v20 = vmul.f32 1.442695, %v960_v18 }
 0x84c   :  { %v969_v21 = vsel %vm137_vm2, %v1365_v19, 0.0 }
 0x84d   :  { %v1367_v22 = vpop.eup %1366  ;;  %1370 = vpow2.f32 %v967_v20  ;;  %970 = vadd.xlane.f32.xlu1 %v969_v21 }
 0x84e   :  { %v972_v23 = vsel %vm137_vm2, %v1367_v22, 0.0 }
 0x84f   :  { %973 = vadd.xlane.f32.xlu0 %v972_v23 }
 0x853   :  { %v1369_v24 = vpop.eup %1368 }
 0x854   :  { %v975_v25 = vsel %vm137_vm2, %v1369_v24, 0.0 }
 0x855   :  { %976 = vadd.xlane.f32.xlu1 %v975_v25 }
 0x857   :  { %v1371_v26 = vpop.eup %1370 }
 0x858   :  { %v978_v27 = vsel %vm137_vm2, %v1371_v26, 0.0 }
 0x859   :  { %979 = vadd.xlane.f32.xlu0 %v978_v27 }
 0x866   :  { %991 = vrot.lane.b32.xlu1 %v1414_v0, %s1392_s1  ;;  %v1161_v0 = vpack.c.bf16 %v1593_v44, %v1593_v44 }
 0x86a   :  { %555 = vrot.lane.b32.xlu1 %v1156_v28, %s1393_s17 }
 0x86e   :  { %557 = vrot.lane.b32.xlu1 %v1157_v16, %s1393_s17 }
 0x86f   :  { %1038 = vrot.lane.b32.xlu0 %v1419_v1, %s1392_s1  ;;  %v1163_v1 = vpack.c.bf16 %v1603_v52, %v1603_v52 }
 0x872   :  { %561 = vrot.lane.b32.xlu1 %v1159_v29, %s1393_s17 }
 0x873   :  { %559 = vrot.lane.b32.xlu0 %v1158_v13, %s1393_s17 }
 0x876   :  { %828 = vrot.lane.b32.xlu1 %v1161_v0, %s1394_s18 }
 0x877   :  { %826 = vrot.lane.b32.xlu0 %v1160_v31, %s1394_s18 }
 0x87a   :  { %832 = vrot.lane.b32.xlu1 %v1163_v1, %s1394_s18 }
 0x87b   :  { %830 = vrot.lane.b32.xlu0 %v1162_v33, %s1394_s18 }
 0x8da   :  { %v971_v35 = vpop.xlane.xlu1 %970 }
 0x8db   :  { %1372 = vrcp.f32 %v971_v35 }
 0x8dc   :  { %v974_v38 = vpop.xlane.xlu0 %973 }
 0x8dd   :  { %1374 = vrcp.f32 %v974_v38 }
 0x8e2   :  { %v977_v30 = vpop.xlane.xlu1 %976 }
 0x8e3   :  { %1376 = vrcp.f32 %v977_v30 }
 0x8e5   :  { %v1373_v32 = vpop.eup %1372 }
 0x8e6   :  { %v980_v34 = vpop.xlane.xlu0 %979  ;;  %v992_v36 = vpop.permute.xlu1 %991  ;;  %v985_v39 = vmul.f32 %v1373_v32, %v1365_v19 }
 0x8e7   :  { %v1375_v37 = vpop.eup %1374  ;;  %1378 = vrcp.f32 %v980_v34  ;;  %1285 = vmatpush3.bf16.msra.mxu0 %v992_v36 }
 0x8e8   :  { %v986_v40 = vmul.f32 %v1375_v37, %v1367_v22 }
 0x8ea   :  { %v1039_v41 = vpop.permute.xlu0 %1038  ;;  %v556_v42 = vpop.permute.xlu1 %555  ;;  %v989_v43 = vpack.c.bf16 %v986_v40, %v985_v39 }
 0x8eb   :  { %568 = vst.msk [vmem:[%s1675_s2] sm:$0xf] %vm567_vm4, %v556_v42  ;;  %1291 = vmatpush3.bf16.msra.mxu1 %v1039_v41 }
 0x8ec   :  { %1287 = vmatmul.mubr.msk.bf16.vlgmr.msra.gmra.mrb[28].mxu0 %vm137_vm2, %v989_v43 }
 0x8ed   :  { %v1377_v46 = vpop.eup %1376 }
 0x8ee   :  { %v560_v44 = vpop.permute.xlu0 %559  ;;  %v558_v45 = vpop.permute.xlu1 %557  ;;  %v987_v48 = vmul.f32 %v1377_v46, %v1369_v24 }
 0x8ef   :  { %570 = vst.msk [vmem:[%s1675_s2 + $0x8] sm:$0xf] %vm567_vm4, %v560_v44  ;;  %569 = vst.msk [vmem:[%s1675_s2 + $0x4] sm:$0xf] %vm567_vm4, %v558_v45 }
 0x8f1   :  { %v1379_v47 = vpop.eup %1378 }
 0x8f2   :  { %v988_v49 = vmul.f32 %v1379_v47, %v1371_v26  ;;  %v827_v50 = vpop.permute.xlu0 %826  ;;  %v562_v51 = vpop.permute.xlu1 %561 }
 0x8f3   :  { %839 = vst.msk [vmem:[%s1675_s2] sm:$0xf] %vm838_vm5, %v827_v50 }
 0x8f4   :  { %571 = vst.msk [vmem:[%s1675_s2 + $0xc] sm:$0xf] %vm567_vm4, %v562_v51  ;;  %v990_v2 = vpack.c.bf16 %v988_v49, %v987_v48 }
 0x8f6   :  { %v831_v52 = vpop.permute.xlu0 %830  ;;  %1293 = vmatmul.mubr.msk.bf16.vlgmr.msra.gmra.mrb[28].mxu1 %vm137_vm2, %v990_v2  ;;  %v829_v53 = vpop.permute.xlu1 %828 }
 0x8f7   :  { %841 = vst.msk [vmem:[%s1675_s2 + $0x8] sm:$0xf] %vm838_vm5, %v831_v52  ;;  %840 = vst.msk [vmem:[%s1675_s2 + $0x4] sm:$0xf] %vm838_vm5, %v829_v53 }
 0x8fa   :  { %v833_v54 = vpop.permute.xlu1 %832 }
 0x8fb   :  { %842 = vst.msk [vmem:[%s1675_s2 + $0xc] sm:$0xf] %vm838_vm5, %v833_v54 }
 0x9bf   :  { %v1031_v55 = vpop.f32.mrb[28].mxu0 }
 0x9c0   :  { %v1164_v56 = vpack.c.bf16 %v1031_v55, %v1031_v55  ;;  %v1288_v57 = vpop.f32.mrb[29].mxu0 }
 0x9c1   :  { %v1034_v58 = vpop.f32.mrb[30].mxu0 }
 0x9c2   :  { %v1165_v59 = vpack.c.bf16 %v1034_v58, %v1034_v58  ;;  %1097 = vrot.lane.b32.xlu0 %v1164_v56, %s1395_s7  ;;  %v1289_v60 = vpop.f32.mrb[31].mxu0 }
 0x9c4   :  { %1099 = vrot.lane.b32.xlu1 %v1165_v59, %s1395_s7 }
 0x9c9   :  { %v1078_v61 = vpop.f32.mrb[28].mxu1 }
 0x9ca   :  { %v1166_v62 = vpack.c.bf16 %v1078_v61, %v1078_v61  ;;  %v1294_v63 = vpop.f32.mrb[29].mxu1 }
 0x9cb   :  { %v1081_v3 = vpop.f32.mrb[30].mxu1 }
 0x9cc   :  { %v1167_v4 = vpack.c.bf16 %v1081_v3, %v1081_v3  ;;  %v1295_v5 = vpop.f32.mrb[31].mxu1  ;;  %1101 = vrot.lane.b32.xlu0 %v1166_v62, %s1395_s7 }
 0x9ce   :  { %1103 = vrot.lane.b32.xlu1 %v1167_v4, %s1395_s7 }
 0xa34   :  { %v1098_v6 = vpop.permute.xlu0 %1097 }
 0xa35   :  { %1110 = vst.msk [vmem:[%s1675_s2] sm:$0xf] %vm1109_vm6, %v1098_v6 }
 0xa36   :  { %v1100_v7 = vpop.permute.xlu1 %1099 }
 0xa37   :  { %1111 = vst.msk [vmem:[%s1675_s2 + $0x4] sm:$0xf] %vm1109_vm6, %v1100_v7 }
 0xa3e   :  { %v1102_v8 = vpop.permute.xlu0 %1101 }
 0xa3f   :  { %1112 = vst.msk [vmem:[%s1675_s2 + $0x8] sm:$0xf] %vm1109_vm6, %v1102_v8 }
 0xa40   :  { %v1104_v9 = vpop.permute.xlu1 %1103 }
 0xa41   :  { %1113 = vst.msk [vmem:[%s1675_s2 + $0xc] sm:$0xf] %vm1109_vm6, %v1104_v9 }

// kernel: _lambda_.39
= control target key start
LH: loop header
LB: loop body
LE: loop exit
PB: predicated region body
PF: predicated region fallthrough
CT: control target
= control target key end

     0   :  { %vm182_vm0 = vcmask 257024   ;;  %s335_s1 = inlined_call_operand.vmem [shape: bf16[128,32], index: 1, kind: input, shape index: {}]   ;;  %s336_s0 = inlined_call_operand.vmem [shape: bf16[32,128], index: 0, kind: input, shape index: {}]   ;;  %s337_s3 = inlined_call_operand.vmem [shape: bf16[32,32], index: 3, kind: input, shape index: {}]   ;;  %s338_s2 = inlined_call_operand.vmem [shape: f32[1,32], index: 2, kind: input, shape index: {}]   ;;  %s339_s4 = inlined_call_operand.vmem [shape: bf16[32,32], index: 4, kind: output, shape index: {}]  }
   0x1   :  { %v249_v0 = vld [vmem:[%s335_s1] sm:$0xff]   ;;  %v250_v1 = vld [vmem:[%s335_s1 + $0x8] sm:$0xff]   ;;  %v251_v2 = vld [vmem:[%s335_s1 + $0x10] sm:$0xff]  }
   0x2   :  { %229 = vmatprep.subr.bf16.mxu0 %v249_v0  ;;  %v252_v3 = vld [vmem:[%s335_s1 + $0x18] sm:$0xff]   ;;  %v257_v4 = vld [vmem:[%s336_s0] sm:$0xff]   ;;  %v254_v6 = vld [vmem:[%s335_s1 + $0x28] sm:$0xff]  }
   0x3   :  { %230 = vmatpush3.bf16.msra.mxu0 %v249_v0  ;;  %245 = vmatprep.mubr.bf16.mxu0 %v257_v4  ;;  %v253_v5 = vld [vmem:[%s335_s1 + $0x20] sm:$0xff]   ;;  %v255_v7 = vld [vmem:[%s335_s1 + $0x30] sm:$0xff]   ;;  %v256_v8 = vld [vmem:[%s335_s1 + $0x38] sm:$0xff]  }
   0x4   :  { %231 = vmatprep.subr.bf16.mxu0 %v250_v1  ;;  %v258_v9 = vld [vmem:[%s336_s0 + $0x8] sm:$0xff]   ;;  %v211_v11 = vld [vmem:[%s337_s3] sm:$0xff]  }
   0x5   :  { %v218_v10 = vld [vmem:[%s337_s3 + $0x8] sm:$0xff]   ;;  %v191_v12 = vld [vmem:[%s338_s2] ss:$0 sm:$0xff]  ;;  %v212_v15 = vunpack.c.l.bf16 %v211_v11  ;;  %v213_v21 = vunpack.c.h.bf16 %v211_v11 }
   0x6   :  { %v216_v13 = vunpack.c.l.bf16 %v218_v10  ;;  %v217_v18 = vunpack.c.h.bf16 %v218_v10 }
   0x7   :  { %232 = vmatpush3.bf16.msra.mxu0 %v250_v1 }
   0x8   :  { %233 = vmatprep.subr.bf16.mxu0 %v251_v2 }
   0xb   :  { %234 = vmatpush3.bf16.msra.mxu0 %v251_v2 }
   0xc   :  { %235 = vmatprep.subr.bf16.mxu0 %v252_v3 }
   0xf   :  { %236 = vmatpush3.bf16.msra.mxu0 %v252_v3 }
  0x10   :  { %237 = vmatprep.subr.bf16.mxu0 %v253_v5 }
  0x13   :  { %238 = vmatpush3.bf16.msra.mxu0 %v253_v5 }
  0x14   :  { %239 = vmatprep.subr.bf16.mxu0 %v254_v6 }
  0x17   :  { %240 = vmatpush3.bf16.msra.mxu0 %v254_v6 }
  0x18   :  { %241 = vmatprep.subr.bf16.mxu0 %v255_v7 }
  0x1b   :  { %242 = vmatpush3.bf16.msra.mxu0 %v255_v7 }
  0x1c   :  { %243 = vmatprep.subr.bf16.mxu0 %v256_v8 }
  0x1f   :  { %244 = vmatpush3.bf16.msra.mxu0 %v256_v8 }
  0x22   :  { %246 = vmatmul.mubr.bf16.vlgmr.msra.gmra.mrb[0].mxu0 %v258_v9 }
  0xf5   :  { %v247_v14 = vpop.f32.mrb[0].mxu0 }
  0xf6   :  { %v148_v16 = vadd.f32 %v247_v14, %v191_v12  ;;  %v139_v17 = vpop.f32.mrb[1].mxu0 }
  0xf7   :  { %v140_v19 = vadd.f32 %v191_v12, %v139_v17  ;;  %v248_v20 = vpop.f32.mrb[2].mxu0 }
  0xf8   :  { %v164_v22 = vadd.f32 %v216_v13, %v148_v16  ;;  %v151_v23 = vadd.f32 %v248_v20, %v191_v12  ;;  %v142_v24 = vpop.f32.mrb[3].mxu0 }
  0xf9   :  { %v162_v25 = vadd.f32 %v212_v15, %v140_v19  ;;  %v143_v26 = vadd.f32 %v191_v12, %v142_v24 }
  0xfa   :  { %v208_v27 = vpack.c.bf16 %v164_v22, %v164_v22  ;;  %v165_v28 = vadd.f32 %v217_v18, %v151_v23 }
  0xfb   :  { %v206_v29 = vpack.c.bf16 %v162_v25, %v162_v25  ;;  %v163_v30 = vadd.f32 %v213_v21, %v143_v26 }
  0xfc   :  { %185 = vst.msk [vmem:[%s339_s4 + $0x8] sm:$0xf] %vm182_vm0, %v208_v27  ;;  %v209_v31 = vpack.c.bf16 %v165_v28, %v165_v28 }
  0xfd   :  { %183 = vst.msk [vmem:[%s339_s4] sm:$0xf] %vm182_vm0, %v206_v29  ;;  %v207_v32 = vpack.c.bf16 %v163_v30, %v163_v30 }
  0xfe   :  { %186 = vst.msk [vmem:[%s339_s4 + $0xc] sm:$0xf] %vm182_vm0, %v209_v31 }
  0xff   :  { %184 = vst.msk [vmem:[%s339_s4 + $0x4] sm:$0xf] %vm182_vm0, %v207_v32 }

// kernel: _lambda_.45
= control target key start
LH: loop header
LB: loop body
LE: loop exit
PB: predicated region body
PF: predicated region fallthrough
CT: control target
= control target key end

     0   :  { %vm30_vm0 = vcmask 261120   ;;  %s360_s0 = inlined_call_operand.vmem [shape: bf16[2,16,32], index: 0, kind: input, shape index: {}]   ;;  %s361_s1 = inlined_call_operand.vmem [shape: f32[1,32], index: 1, kind: input, shape index: {}]   ;;  %s362_s2 = inlined_call_operand.vmem [shape: f32[1,32], index: 2, kind: input, shape index: {}]   ;;  %s363_s3 = inlined_call_operand.vmem [shape: bf16[32,8], index: 3, kind: input, shape index: {}]   ;;  %s364_s4 = inlined_call_operand.vmem [shape: f32[1,8], index: 4, kind: input, shape index: {}]   ;;  %s365_s5 = inlined_call_operand.hbm [shape: f32[2,8], index: 5, kind: output, shape index: {}]  }
   0x1   :  { %v225_v0 = vld [vmem:[%s360_s0] sm:$0xff]   ;;  %v232_v1 = vld [vmem:[%s360_s0 + $0x8] sm:$0xff]  }
   0x2   :  { %v226_v2 = vunpack.c.l.bf16 %v225_v0  ;;  %v230_v3 = vunpack.c.l.bf16 %v232_v1  ;;  %v227_v4 = vunpack.c.h.bf16 %v225_v0  ;;  %v231_v5 = vunpack.c.h.bf16 %v232_v1 }
   0x3   :  { %10 = vsyncpa [#allocation3], 0  ;;  %v247_v30 = vld [vmem:[%s363_s3] sm:$0xff]   ;;  %v281_v31 = vmov 0.0   ;;  %vm282_vm1 = vmmov 0   ;;  %v248_v32 = vld [vmem:[%s363_s3 + $0x8] sm:$0xff]  }
   0x4   :  { %v31_v6 = vsel %vm30_vm0, %v226_v2, 0.0  ;;  %v37_v7 = vsel %vm30_vm0, %v230_v3, 0.0  ;;  %v34_v8 = vsel %vm30_vm0, %v227_v4, 0.0  ;;  %v40_v9 = vsel %vm30_vm0, %v231_v5, 0.0  ;;  %236 = vmatprep.subr.bf16.mxu0 %v281_v31  ;;  %240 = vmatprep.mubr.msk.bf16.mxu0 %vm282_vm1, %v281_v31  ;;  %v218_v46 = vld [vmem:[%s361_s1] ss:$0 sm:$0xff] }
   0x5   :  { %32 = vadd.xlane.f32.xlu0 %v31_v6  ;;  %38 = vadd.xlane.f32.xlu1 %v37_v7  ;;  %v219_v50 = vld [vmem:[%s362_s2] ss:$0 sm:$0xff]  ;;  %vm144_vm2 = vcmask 1041409   ;;  %s283_s28 = smov [#allocation2]   ;;  %vm202_vm3 = vcmask 58368  }
   0x6   :  { %237 = vmatpush3.bf16.msra.mxu0 %v247_v30  ;;  %s210_s29 = sshll.u32 %s283_s28, 4  ;;  %s211_s29 = int_to_ptr.vmem [resolvable:$true] %s210_s29 }
   0x7   :  { %238 = vmatprep.subr.bf16.mxu0 %v281_v31  ;;  %s257_s30 = scalar_lea.vmem %s211_s29, 32  ;;  %p262_p1 = scmp.lt.s32.totalorder %s211_s29, %s211_s29 }
   0x8   :  { %p258_p0 = scmp.ne.s32.totalorder %s211_s29, %s257_s30  ;;  %p263_p2 = scmp.lt.s32.totalorder %s257_s30, %s257_s30 }
   0x9   :  { %35 = vadd.xlane.f32.xlu0 %v34_v8  ;;  %41 = vadd.xlane.f32.xlu1 %v40_v9 }
   0xa   :  { %239 = vmatpush3.bf16.msra.mxu0 %v248_v32  ;;  %p264_p3 = por %p263_p2, %p262_p1 }
   0xc   :  { %p265_p4 = pnand %p264_p3, %p258_p0 }
  0x92   :  { %v33_v10 = vpop.xlane.xlu0 %32  ;;  %v39_v11 = vpop.xlane.xlu1 %38 }
  0x93   :  { %v44_v12 = vmul.f32 0.03125, %v33_v10  ;;  %v46_v13 = vmul.f32 0.03125, %v39_v11 }
  0x95   :  { %v48_v14 = vsub.f32 %v226_v2, %v44_v12  ;;  %v50_v15 = vsub.f32 %v230_v3, %v46_v13 }
  0x96   :  { %v36_v16 = vpop.xlane.xlu0 %35  ;;  %v42_v17 = vpop.xlane.xlu1 %41 }
  0x97   :  { %v45_v18 = vmul.f32 0.03125, %v36_v16  ;;  %v47_v19 = vmul.f32 0.03125, %v42_v17  ;;  %v52_v20 = vmul.f32 %v48_v14, %v48_v14  ;;  %v54_v21 = vmul.f32 %v50_v15, %v50_v15 }
  0x99   :  { %v49_v22 = vsub.f32 %v227_v4, %v45_v18  ;;  %v51_v23 = vsub.f32 %v231_v5, %v47_v19  ;;  %v56_v24 = vsel %vm30_vm0, %v52_v20, 0.0  ;;  %v62_v25 = vsel %vm30_vm0, %v54_v21, 0.0 }
  0x9a   :  { %57 = vadd.xlane.f32.xlu0 %v56_v24 }
  0x9b   :  { %v53_v26 = vmul.f32 %v49_v22, %v49_v22  ;;  %v55_v27 = vmul.f32 %v51_v23, %v51_v23 }
  0x9d   :  { %v59_v28 = vsel %vm30_vm0, %v53_v26, 0.0  ;;  %v65_v29 = vsel %vm30_vm0, %v55_v27, 0.0 }
  0x9e   :  { %63 = vadd.xlane.f32.xlu0 %v62_v25  ;;  %60 = vadd.xlane.f32.xlu1 %v59_v28  ;;  %v220_v25 = vld [vmem:[%s364_s4] ss:$0 sm:$0xff] }
  0xa2   :  { %66 = vadd.xlane.f32.xlu1 %v65_v29 }
 0x127   :  { %v58_v33 = vpop.xlane.xlu0 %57 }
 0x128   :  { %v68_v34 = vmul.f32 0.03125, %v58_v33 }
 0x12a   :  { %v72_v35 = vadd.f32 1e-05, %v68_v34 }
 0x12b   :  { %v61_v36 = vpop.xlane.xlu1 %60  ;;  %v64_v37 = vpop.xlane.xlu0 %63 }
 0x12c   :  { %249 = vrsqrt.f32 %v72_v35  ;;  %v69_v38 = vmul.f32 0.03125, %v61_v36  ;;  %v70_v39 = vmul.f32 0.03125, %v64_v37 }
 0x12e   :  { %v73_v40 = vadd.f32 1e-05, %v69_v38  ;;  %v74_v41 = vadd.f32 1e-05, %v70_v39 }
 0x12f   :  { %v67_v42 = vpop.xlane.xlu1 %66 }
 0x130   :  { %251 = vrsqrt.f32 %v73_v40  ;;  %v71_v43 = vmul.f32 0.03125, %v67_v42 }
 0x131   :  { %253 = vrsqrt.f32 %v74_v41 }
 0x132   :  { %v75_v44 = vadd.f32 1e-05, %v71_v43 }
 0x134   :  { %255 = vrsqrt.f32 %v75_v44 }
 0x136   :  { %v250_v45 = vpop.eup %249 }
 0x137   :  { %v80_v47 = vmul.f32 %v250_v45, %v48_v14 }
 0x139   :  { %v91_v48 = vmul.f32 %v218_v46, %v80_v47 }
 0x13a   :  { %v252_v49 = vpop.eup %251 }
 0x13b   :  { %v254_v51 = vpop.eup %253  ;;  %v81_v52 = vmul.f32 %v252_v49, %v49_v22  ;;  %v102_v54 = vadd.f32 %v219_v50, %v91_v48 }
 0x13c   :  { %v82_v53 = vmul.f32 %v254_v51, %v50_v15 }
 0x13d   :  { %v92_v55 = vmul.f32 %v218_v46, %v81_v52  ;;  %v106_v60 = vsel %vm30_vm0, %v102_v54, 0.0 }
 0x13e   :  { %v256_v56 = vpop.eup %255  ;;  %v93_v57 = vmul.f32 %v218_v46, %v82_v53 }
 0x13f   :  { %v103_v58 = vadd.f32 %v219_v50, %v92_v55  ;;  %v83_v59 = vmul.f32 %v256_v56, %v51_v23 }
 0x140   :  { %v104_v62 = vadd.f32 %v219_v50, %v93_v57 }
 0x141   :  { %v107_v61 = vsel %vm30_vm0, %v103_v58, 0.0  ;;  %v94_v63 = vmul.f32 %v218_v46, %v83_v59 }
 0x142   :  { %v108_v0 = vadd.f32 %v107_v61, %v106_v60  ;;  %v115_v3 = vsel %vm30_vm0, %v104_v62, 0.0 }
 0x143   :  { %v105_v1 = vadd.f32 %v219_v50, %v94_v63 }
 0x144   :  { %v109_v2 = vrot.slane %v108_v0, 4 }
 0x145   :  { %v116_v4 = vsel %vm30_vm0, %v105_v1, 0.0 }
 0x146   :  { %v117_v5 = vadd.f32 %v116_v4, %v115_v3  ;;  %v110_v6 = vadd.f32 %v109_v2, %v108_v0 }
 0x148   :  { %v111_v7 = vrot.slane %v110_v6, 2  ;;  %v118_v8 = vrot.slane %v117_v5, 4 }
 0x14a   :  { %v112_v9 = vadd.f32 %v111_v7, %v110_v6  ;;  %v119_v10 = vadd.f32 %v118_v8, %v117_v5 }
 0x14c   :  { %v113_v11 = vrot.slane %v112_v9, 1  ;;  %v120_v12 = vrot.slane %v119_v10, 2 }
 0x14e   :  { %v114_v13 = vadd.f32 %v113_v11, %v112_v9  ;;  %v121_v14 = vadd.f32 %v120_v12, %v119_v10 }
 0x150   :  { %v122_v15 = vrot.slane %v121_v14, 1  ;;  %v125_v16 = vmul.f32 0.0625, %v114_v13 }
 0x152   :  { %v123_v17 = vadd.f32 %v122_v15, %v121_v14  ;;  %v127_v19 = vpack.c.bf16 %v125_v16, %v125_v16 }
 0x154   :  { %v126_v18 = vmul.f32 0.0625, %v123_v17  ;;  %v142_v21 = vunpack.c.l.b16 %v127_v19 }
 0x156   :  { %v128_v20 = vpack.c.bf16 %v126_v18, %v126_v18 }
 0x158   :  { %v143_v22 = vunpack.c.l.b16 %v128_v20 }
 0x15a   :  { %v145_v23 = vsel %vm144_vm2, %v143_v22, %v142_v21 }
 0x15b   :  { %v146_v24 = vpack.c.b16 %v145_v23, %v145_v23 }
 0x15d   :  { %241 = vmatmul.mubr.msk.bf16.vlgmr.msra.gmra.mrb[0].mxu0 %vm30_vm0, %v146_v24 }
 0x230   :  { %v196_v26 = vpop.f32.mrb[0].mxu0 }
 0x231   :  { %v197_v27 = vadd.f32 %v220_v25, %v196_v26  ;;  %v242_v28 = vpop.f32.mrb[1].mxu0 }
 0x232   :  { %v199_v29 = vpop.f32.mrb[2].mxu0 }
 0x233   :  { %v243_v30 = vpop.f32.mrb[3].mxu0  ;;  %203 = vst.msk [vmem:[#allocation2] sm:$0x3] %vm202_vm3, %v197_v27 }
 0x234   :  { %268 = shalt.err (!%p265_p4)
}
 0x235   :  { %s269_s4 = scalar_lea.hbm %s365_s5, 32 }
 0x236   :  { %p270_p5 = scmp.ne.s32.totalorder %s365_s5, %s269_s4  ;;  %p273_p6 = scmp.lt.u32.totalorder %s269_s4, %s365_s5 }
 0x238   :  { %p275_p7 = pnand %p273_p6, %p270_p5 }
 0x23a   :  { %278 = shalt.err (!%p275_p7)
}
 0x23b   :  { %213 = dma.vmem_to_hbm [thread:$0]  %s211_s29, 32, %s365_s5, [#allocation3]  }
 0x23c   :  { %279 = dma.done.wait [#allocation3], 32  }
 0x23d   :  { %280 = vsyncadd [#allocation3], 4294967264 }
 0x23e   :  { %217 = vsyncpa [#allocation3], 1 }

// kernel: _lambda_.41
= control target key start
LH: loop header
LB: loop body
LE: loop exit
PB: predicated region body
PF: predicated region fallthrough
CT: control target
= control target key end

     0   :  { %v1401_v2 = vmov 0.0   ;;  %vm1402_vm0 = vmmov 0   ;;  %s1403_s16 = smov 96   ;;  %vm44_vm1 = vcmask 64512   ;;  %vm146_vm2 = vcmask 130048   ;;  %s1405_s24 = smov 88   ;;  %s1725_s0 = inlined_call_operand.vmem [shape: bf16[2,16,96], index: 0, kind: input, shape index: {}]   ;;  %s1726_s1 = inlined_call_operand.vmem [shape: f32[4,16,16], index: 1, kind: input, shape index: {}]   ;;  %s1727_s2 = inlined_call_operand.vmem [shape: f32[1,16,16], index: 2, kind: input, shape index: {}]   ;;  %s1728_s3 = inlined_call_operand.vmem [shape: bf16[2,16,32], index: 3, kind: output, shape index: {}]  }
   0x1   :  { %v1440_v0 = vld [vmem:[%s1725_s0] sm:$0xff]   ;;  %v1445_v1 = vld [vmem:[%s1725_s0 + $0x8] sm:$0xff]   ;;  %1221 = vmatprep.subr.bf16.mxu0 %v1401_v2  ;;  %1227 = vmatprep.subr.bf16.mxu1 %v1401_v2  ;;  %s1406_s25 = smov 120   ;;  %vm303_vm3 = vcmask 60416   ;;  %s1407_s11 = smov 56   ;;  %vm580_vm4 = vcmask 126016  }
   0x2   :  { %1223 = vmatprep.mubr.msk.bf16.mxu0 %vm1402_vm0, %v1401_v2  ;;  %1229 = vmatprep.mubr.msk.bf16.mxu1 %vm1402_vm0, %v1401_v2  ;;  %v19_v3 = vunpack.c.l.bf16 %v1440_v0  ;;  %v20_v4 = vunpack.c.h.bf16 %v1440_v0  ;;  %v21_v6 = vunpack.c.l.bf16 %v1445_v1  ;;  %v22_v10 = vunpack.c.h.bf16 %v1445_v1  ;;  %v23_v17 = vld [vmem:[%s1726_s1] sm:$0xff]  ;;  %v24_v19 = vld [vmem:[%s1726_s1 + $0x8] sm:$0xff]  ;;  %s1408_s12 = smov 80   ;;  %s1409_s13 = smov 112  }
   0x3   :  { %42 = vrot.lane.b32.xlu0 %v1440_v0, %s1403_s16  ;;  %v1484_v20 = vld [vmem:[%s1727_s2] sm:$0xff]  ;;  %v1489_v24 = vld [vmem:[%s1727_s2 + $0x8] sm:$0xff]  ;;  %s1404_s2 = smov 64   ;;  %s1410_s17 = smov 48   ;;  %vm855_vm5 = vcmask 191616   ;;  %vm1130_vm6 = vcmask 257216  }
   0x4   :  { %v33_v8 = vmul.f32 0.35355338, %v19_v3  ;;  %v34_v9 = vmul.f32 0.35355338, %v20_v4  ;;  %v35_v14 = vmul.f32 0.35355338, %v21_v6 }
   0x5   :  { %v36_v15 = vmul.f32 0.35355338, %v22_v10  ;;  %s1411_s18 = smov 72   ;;  %s1412_s19 = smov 104  }
   0x6   :  { %v1462_v13 = vpack.c.bf16 %v34_v9, %v33_v8  ;;  %s1416_s14 = smov 24  }
   0x7   :  { %93 = vrot.lane.b32.xlu0 %v1445_v1, %s1403_s16  ;;  %v1467_v16 = vpack.c.bf16 %v36_v15, %v35_v14 }
  0x75   :  { %v43_v5 = vpop.permute.xlu0 %42 }
  0x76   :  { %v49_v7 = vsel %vm44_vm1, %v43_v5, 0 }
  0x77   :  { %1222 = vmatpush3.bf16.xpose.msra.mxu0 %v49_v7 }
  0x78   :  { %1233 = vmatprep.subr.bf16.mxu0 %v1401_v2 }
  0x79   :  { %v94_v11 = vpop.permute.xlu0 %93 }
  0x7a   :  { %v99_v12 = vsel %vm44_vm1, %v94_v11, 0 }
  0x7b   :  { %1228 = vmatpush3.bf16.xpose.msra.mxu1 %v99_v12 }
  0x7c   :  { %1239 = vmatprep.subr.bf16.mxu1 %v1401_v2 }
  0x7e   :  { %1224 = vmatmul.mubr.msk.bf16.vlgmr.msra.gmra.mrb[0].mxu0 %vm44_vm1, %v1462_v13 }
  0x7f   :  { %1235 = vmatprep.mubr.msk.bf16.mxu0 %vm1402_vm0, %v1401_v2 }
  0x82   :  { %1230 = vmatmul.mubr.msk.bf16.vlgmr.msra.gmra.mrb[0].mxu1 %vm44_vm1, %v1467_v16 }
  0x83   :  { %1241 = vmatprep.mubr.msk.bf16.mxu1 %vm1402_vm0, %v1401_v2 }
 0x151   :  { %v85_v18 = vpop.f32.mrb[0].mxu0 }
 0x152   :  { %v86_v21 = vadd.f32 %v85_v18, %v23_v17  ;;  %v1225_v22 = vpop.f32.mrb[1].mxu0 }
 0x153   :  { %v88_v23 = vpop.f32.mrb[2].mxu0 }
 0x154   :  { %v89_v25 = vadd.f32 %v88_v23, %v24_v19  ;;  %v1226_v26 = vpop.f32.mrb[3].mxu0  ;;  %v142_v27 = vadd.f32 %v86_v21, %v1484_v20 }
 0x155   :  { %v135_v28 = vpop.f32.mrb[0].mxu1 }
 0x156   :  { %v136_v29 = vadd.f32 %v135_v28, %v23_v17  ;;  %v1231_v30 = vpop.f32.mrb[1].mxu1  ;;  %v147_v31 = vsel %vm146_vm2, %v142_v27, -inf  ;;  %v143_v32 = vadd.f32 %v89_v25, %v1489_v24 }
 0x157   :  { %v138_v33 = vpop.f32.mrb[2].mxu1  ;;  %148 = vmax.xlane.f32.xlu1 %v147_v31 }
 0x158   :  { %v139_v34 = vadd.f32 %v138_v33, %v24_v19  ;;  %v1232_v35 = vpop.f32.mrb[3].mxu1  ;;  %v144_v36 = vadd.f32 %v136_v29, %v1484_v20  ;;  %v150_v38 = vsel %vm146_vm2, %v143_v32, -inf }
 0x15a   :  { %v153_v37 = vsel %vm146_vm2, %v144_v36, -inf  ;;  %v145_v39 = vadd.f32 %v139_v34, %v1489_v24 }
 0x15b   :  { %154 = vmax.xlane.f32.xlu0 %v153_v37  ;;  %151 = vmax.xlane.f32.xlu1 %v150_v38 }
 0x15c   :  { %v156_v40 = vsel %vm146_vm2, %v145_v39, -inf }
 0x15f   :  { %157 = vmax.xlane.f32.xlu1 %v156_v40  ;;  %v26_v40 = vld [vmem:[%s1726_s1 + $0x18] sm:$0xff] }
 0x170   :  { %193 = vrot.lane.b32.xlu1 %v1440_v0, %s1404_s2 }
 0x171   :  { %240 = vrot.lane.b32.xlu0 %v1445_v1, %s1404_s2  ;;  %s1414_s2 = smov 8  }
 0x174   :  { %311 = vrot.lane.b32.xlu1 %v1440_v0, %s1405_s24 }
 0x178   :  { %363 = vrot.lane.b32.xlu1 %v1445_v1, %s1405_s24  ;;  %s1415_s24 = smov 16  }
 0x1e4   :  { %v149_v41 = vpop.xlane.xlu1 %148 }
 0x1e5   :  { %v159_v42 = vsub.f32 %v142_v27, %v149_v41 }
 0x1e7   :  { %v163_v43 = vmul.f32 1.442695, %v159_v42 }
 0x1e8   :  { %v155_v44 = vpop.xlane.xlu0 %154  ;;  %v152_v45 = vpop.xlane.xlu1 %151 }
 0x1e9   :  { %1337 = vpow2.f32 %v163_v43  ;;  %v161_v46 = vsub.f32 %v144_v36, %v155_v44  ;;  %v160_v47 = vsub.f32 %v143_v32, %v152_v45  ;;  %v25_v36 = vld [vmem:[%s1726_s1 + $0x10] sm:$0xff] }
 0x1eb   :  { %v167_v48 = vmul.f32 1.442695, %v161_v46  ;;  %v165_v49 = vmul.f32 1.442695, %v160_v47 }
 0x1ec   :  { %v158_v50 = vpop.xlane.xlu1 %157  ;;  %v241_v62 = vpop.permute.xlu0 %240 }
 0x1ed   :  { %1339 = vpow2.f32 %v167_v48  ;;  %v162_v51 = vsub.f32 %v145_v39, %v158_v50  ;;  %1240 = vmatpush3.bf16.msra.mxu1 %v241_v62 }
 0x1ee   :  { %1341 = vpow2.f32 %v165_v49  ;;  %1251 = vmatprep.subr.bf16.mxu1 %v1401_v2 }
 0x1ef   :  { %v169_v52 = vmul.f32 1.442695, %v162_v51 }
 0x1f0   :  { %v194_v53 = vpop.permute.xlu1 %193 }
 0x1f1   :  { %1234 = vmatpush3.bf16.msra.mxu0 %v194_v53  ;;  %1343 = vpow2.f32 %v169_v52 }
 0x1f2   :  { %1245 = vmatprep.subr.bf16.mxu0 %v1401_v2 }
 0x1f3   :  { %v1338_v54 = vpop.eup %1337 }
 0x1f4   :  { %v171_v55 = vsel %vm146_vm2, %v1338_v54, 0.0  ;;  %v312_v63 = vpop.permute.xlu1 %311 }
 0x1f5   :  { %172 = vadd.xlane.f32.xlu1 %v171_v55  ;;  %v317_v17 = vsel %vm44_vm1, %v312_v63, 0 }
 0x1f7   :  { %v1340_v56 = vpop.eup %1339 }
 0x1f8   :  { %v177_v57 = vsel %vm146_vm2, %v1340_v56, 0.0  ;;  %v1342_v58 = vpop.eup %1341  ;;  %v364_v3 = vpop.permute.xlu1 %363 }
 0x1f9   :  { %178 = vadd.xlane.f32.xlu1 %v177_v57  ;;  %v174_v59 = vsel %vm146_vm2, %v1342_v58, 0.0  ;;  %v369_v23 = vsel %vm44_vm1, %v364_v3, 0 }
 0x1fb   :  { %v1344_v60 = vpop.eup %1343 }
 0x1fc   :  { %v180_v61 = vsel %vm146_vm2, %v1344_v60, 0.0 }
 0x1fd   :  { %175 = vadd.xlane.f32.xlu1 %v174_v59 }
 0x201   :  { %181 = vadd.xlane.f32.xlu1 %v180_v61 }
 0x212   :  { %309 = vrot.lane.b32.xlu1 %v1462_v13, %s1406_s25 }
 0x216   :  { %361 = vrot.lane.b32.xlu1 %v1467_v16, %s1406_s25 }
 0x282   :  { %v173_v4 = vpop.xlane.xlu1 %172 }
 0x283   :  { %1345 = vrcp.f32 %v173_v4 }
 0x286   :  { %v179_v5 = vpop.xlane.xlu1 %178 }
 0x28a   :  { %v176_v6 = vpop.xlane.xlu1 %175 }
 0x28b   :  { %1347 = vrcp.f32 %v176_v6 }
 0x28c   :  { %1349 = vrcp.f32 %v179_v5 }
 0x28d   :  { %v1346_v8 = vpop.eup %1345 }
 0x28e   :  { %v182_v7 = vpop.xlane.xlu1 %181  ;;  %v187_v10 = vmul.f32 %v1346_v8, %v1338_v54 }
 0x28f   :  { %1351 = vrcp.f32 %v182_v7 }
 0x292   :  { %v310_v22 = vpop.permute.xlu1 %309 }
 0x295   :  { %v1348_v9 = vpop.eup %1347 }
 0x296   :  { %v188_v11 = vmul.f32 %v1348_v9, %v1342_v58  ;;  %v1350_v12 = vpop.eup %1349  ;;  %v362_v25 = vpop.permute.xlu1 %361 }
 0x297   :  { %v189_v18 = vmul.f32 %v1350_v12, %v1340_v56 }
 0x298   :  { %v191_v14 = vpack.c.bf16 %v188_v11, %v187_v10 }
 0x299   :  { %v1352_v15 = vpop.eup %1351 }
 0x29a   :  { %v190_v19 = vmul.f32 %v1352_v15, %v1344_v60  ;;  %1236 = vmatmul.mubr.msk.bf16.vlgmr.msra.gmra.mrb[4].mxu0 %vm146_vm2, %v191_v14 }
 0x29b   :  { %1246 = vmatpush3.bf16.xpose.msra.mxu0 %v317_v17  ;;  %1247 = vmatprep.mubr.msk.bf16.mxu0 %vm1402_vm0, %v1401_v2 }
 0x29c   :  { %v192_v21 = vpack.c.bf16 %v190_v19, %v189_v18  ;;  %1257 = vmatprep.subr.bf16.mxu0 %v1401_v2 }
 0x29e   :  { %1242 = vmatmul.mubr.msk.bf16.vlgmr.msra.gmra.mrb[4].mxu1 %vm146_vm2, %v192_v21 }
 0x29f   :  { %1252 = vmatpush3.bf16.xpose.msra.mxu1 %v369_v23  ;;  %1253 = vmatprep.mubr.msk.bf16.mxu1 %vm1402_vm0, %v1401_v2 }
 0x2a0   :  { %1263 = vmatprep.subr.bf16.mxu1 %v1401_v2 }
 0x2a2   :  { %1248 = vmatmul.mubr.msk.bf16.vlgmr.msra.gmra.mrb[8].mxu0 %vm44_vm1, %v310_v22 }
 0x2a3   :  { %1259 = vmatprep.mubr.msk.bf16.mxu0 %vm1402_vm0, %v1401_v2 }
 0x2a6   :  { %1254 = vmatmul.mubr.msk.bf16.vlgmr.msra.gmra.mrb[8].mxu1 %vm44_vm1, %v362_v25 }
 0x2a7   :  { %1265 = vmatprep.mubr.msk.bf16.mxu1 %vm1402_vm0, %v1401_v2 }
 0x36d   :  { %v233_v26 = vpop.f32.mrb[4].mxu0 }
 0x36e   :  { %v1173_v27 = vpack.c.bf16 %v233_v26, %v233_v26  ;;  %v1237_v28 = vpop.f32.mrb[5].mxu0 }
 0x36f   :  { %v236_v29 = vpop.f32.mrb[6].mxu0 }
 0x370   :  { %304 = vst.msk [vmem:[%s1728_s3] sm:$0xf] %vm303_vm3, %v1173_v27  ;;  %v1174_v30 = vpack.c.bf16 %v236_v29, %v236_v29  ;;  %v1238_v31 = vpop.f32.mrb[7].mxu0 }
 0x371   :  { %v280_v32 = vpop.f32.mrb[4].mxu1 }
 0x372   :  { %305 = vst.msk [vmem:[%s1728_s3 + $0x4] sm:$0xf] %vm303_vm3, %v1174_v30  ;;  %v1175_v33 = vpack.c.bf16 %v280_v32, %v280_v32  ;;  %v1243_v34 = vpop.f32.mrb[5].mxu1 }
 0x373   :  { %v283_v35 = vpop.f32.mrb[6].mxu1 }
 0x374   :  { %306 = vst.msk [vmem:[%s1728_s3 + $0x8] sm:$0xf] %vm303_vm3, %v1175_v33  ;;  %v1176_v37 = vpack.c.bf16 %v283_v35, %v283_v35  ;;  %v1244_v38 = vpop.f32.mrb[7].mxu1 }
 0x375   :  { %v353_v39 = vpop.f32.mrb[8].mxu0 }
 0x376   :  { %307 = vst.msk [vmem:[%s1728_s3 + $0xc] sm:$0xf] %vm303_vm3, %v1176_v37  ;;  %v354_v41 = vadd.f32 %v353_v39, %v25_v36  ;;  %v1249_v42 = vpop.f32.mrb[9].mxu0 }
 0x377   :  { %v356_v43 = vpop.f32.mrb[10].mxu0 }
 0x378   :  { %v357_v44 = vadd.f32 %v356_v43, %v26_v40  ;;  %v1250_v45 = vpop.f32.mrb[11].mxu0  ;;  %v412_v46 = vadd.f32 %v354_v41, %v1484_v20 }
 0x379   :  { %v405_v47 = vpop.f32.mrb[8].mxu1 }
 0x37a   :  { %v406_v48 = vadd.f32 %v405_v47, %v25_v36  ;;  %v1255_v49 = vpop.f32.mrb[9].mxu1  ;;  %v416_v50 = vsel %vm146_vm2, %v412_v46, -inf  ;;  %v413_v51 = vadd.f32 %v357_v44, %v1489_v24 }
 0x37b   :  { %v408_v52 = vpop.f32.mrb[10].mxu1  ;;  %417 = vmax.xlane.f32.xlu0 %v416_v50  ;;  %v27_v50 = vld [vmem:[%s1726_s1 + $0x20] sm:$0xff] }
 0x37c   :  { %v409_v53 = vadd.f32 %v408_v52, %v26_v40  ;;  %v1256_v54 = vpop.f32.mrb[11].mxu1  ;;  %v419_v55 = vsel %vm146_vm2, %v413_v51, -inf  ;;  %v414_v56 = vadd.f32 %v406_v48, %v1484_v20 }
 0x37d   :  { %420 = vmax.xlane.f32.xlu1 %v419_v55  ;;  %v28_v54 = vld [vmem:[%s1726_s1 + $0x28] sm:$0xff] }
 0x37e   :  { %v422_v57 = vsel %vm146_vm2, %v414_v56, -inf  ;;  %v415_v58 = vadd.f32 %v409_v53, %v1489_v24 }
 0x37f   :  { %423 = vmax.xlane.f32.xlu0 %v422_v57 }
 0x380   :  { %v425_v59 = vsel %vm146_vm2, %v415_v58, -inf }
 0x383   :  { %426 = vmax.xlane.f32.xlu0 %v425_v59 }
 0x38e   :  { %462 = vrot.lane.b32.xlu1 %v1440_v0, %s1407_s11 }
 0x408   :  { %v418_v60 = vpop.xlane.xlu0 %417 }
 0x409   :  { %v428_v61 = vsub.f32 %v412_v46, %v418_v60 }
 0x40a   :  { %v421_v62 = vpop.xlane.xlu1 %420 }
 0x40b   :  { %v432_v63 = vmul.f32 1.442695, %v428_v61  ;;  %v429_v3 = vsub.f32 %v413_v51, %v421_v62 }
 0x40c   :  { %v424_v4 = vpop.xlane.xlu0 %423 }
 0x40d   :  { %1353 = vpow2.f32 %v432_v63  ;;  %v434_v5 = vmul.f32 1.442695, %v429_v3  ;;  %v430_v6 = vsub.f32 %v414_v56, %v424_v4 }
 0x40e   :  { %v463_v7 = vpop.permute.xlu1 %462 }
 0x40f   :  { %1355 = vpow2.f32 %v434_v5  ;;  %v436_v8 = vmul.f32 1.442695, %v430_v6  ;;  %1258 = vmatpush3.bf16.msra.mxu0 %v463_v7 }
 0x410   :  { %v427_v9 = vpop.xlane.xlu0 %426  ;;  %1269 = vmatprep.subr.bf16.mxu0 %v1401_v2 }
 0x411   :  { %1357 = vpow2.f32 %v436_v8  ;;  %v431_v10 = vsub.f32 %v415_v58, %v427_v9 }
 0x413   :  { %v438_v11 = vmul.f32 1.442695, %v431_v10 }
 0x415   :  { %1359 = vpow2.f32 %v438_v11 }
 0x417   :  { %v1354_v12 = vpop.eup %1353 }
 0x418   :  { %v440_v14 = vsel %vm146_vm2, %v1354_v12, 0.0 }
 0x419   :  { %v1356_v15 = vpop.eup %1355  ;;  %441 = vadd.xlane.f32.xlu1 %v440_v14 }
 0x41a   :  { %v443_v17 = vsel %vm146_vm2, %v1356_v15, 0.0 }
 0x41b   :  { %v1358_v18 = vpop.eup %1357  ;;  %444 = vadd.xlane.f32.xlu0 %v443_v17 }
 0x41c   :  { %v446_v19 = vsel %vm146_vm2, %v1358_v18, 0.0 }
 0x41d   :  { %447 = vadd.xlane.f32.xlu1 %v446_v19 }
 0x41f   :  { %v1360_v21 = vpop.eup %1359 }
 0x420   :  { %v449_v22 = vsel %vm146_vm2, %v1360_v21, 0.0 }
 0x421   :  { %450 = vadd.xlane.f32.xlu0 %v449_v22 }
 0x42e   :  { %587 = vrot.lane.b32.xlu1 %v1440_v0, %s1408_s12 }
 0x432   :  { %638 = vrot.lane.b32.xlu1 %v1445_v1, %s1408_s12 }
 0x436   :  { %636 = vrot.lane.b32.xlu1 %v1467_v16, %s1409_s13 }
 0x437   :  { %509 = vrot.lane.b32.xlu0 %v1445_v1, %s1407_s11 }
 0x43b   :  { %585 = vrot.lane.b32.xlu0 %v1462_v13, %s1409_s13 }
 0x4a6   :  { %v442_v23 = vpop.xlane.xlu1 %441 }
 0x4a7   :  { %1361 = vrcp.f32 %v442_v23 }
 0x4a8   :  { %v445_v25 = vpop.xlane.xlu0 %444 }
 0x4a9   :  { %1363 = vrcp.f32 %v445_v25 }
 0x4aa   :  { %v448_v26 = vpop.xlane.xlu1 %447 }
 0x4ab   :  { %1365 = vrcp.f32 %v448_v26 }
 0x4ae   :  { %v451_v27 = vpop.xlane.xlu0 %450  ;;  %v588_v31 = vpop.permute.xlu1 %587 }
 0x4af   :  { %1367 = vrcp.f32 %v451_v27  ;;  %v593_v34 = vsel %vm44_vm1, %v588_v31, 0 }
 0x4b1   :  { %v1362_v28 = vpop.eup %1361 }
 0x4b2   :  { %v510_v29 = vpop.permute.xlu0 %509  ;;  %v456_v32 = vmul.f32 %v1362_v28, %v1354_v12  ;;  %v639_v38 = vpop.permute.xlu1 %638 }
 0x4b3   :  { %v1364_v30 = vpop.eup %1363  ;;  %1264 = vmatpush3.bf16.msra.mxu1 %v510_v29  ;;  %v644_v41 = vsel %vm44_vm1, %v639_v38, 0 }
 0x4b4   :  { %v457_v33 = vmul.f32 %v1364_v30, %v1356_v15  ;;  %1275 = vmatprep.subr.bf16.mxu1 %v1401_v2 }
 0x4b5   :  { %v1366_v36 = vpop.eup %1365 }
 0x4b6   :  { %v460_v35 = vpack.c.bf16 %v457_v33, %v456_v32  ;;  %v458_v39 = vmul.f32 %v1366_v36, %v1358_v18  ;;  %v586_v43 = vpop.permute.xlu0 %585  ;;  %v637_v44 = vpop.permute.xlu1 %636 }
 0x4b8   :  { %1260 = vmatmul.mubr.msk.bf16.vlgmr.msra.gmra.mrb[12].mxu0 %vm146_vm2, %v460_v35 }
 0x4b9   :  { %v1368_v37 = vpop.eup %1367  ;;  %1270 = vmatpush3.bf16.xpose.msra.mxu0 %v593_v34  ;;  %1271 = vmatprep.mubr.msk.bf16.mxu0 %vm1402_vm0, %v1401_v2 }
 0x4ba   :  { %v459_v40 = vmul.f32 %v1368_v37, %v1360_v21  ;;  %1281 = vmatprep.subr.bf16.mxu0 %v1401_v2 }
 0x4bc   :  { %v461_v42 = vpack.c.bf16 %v459_v40, %v458_v39 }
 0x4be   :  { %1266 = vmatmul.mubr.msk.bf16.vlgmr.msra.gmra.mrb[12].mxu1 %vm146_vm2, %v461_v42 }
 0x4bf   :  { %1276 = vmatpush3.bf16.xpose.msra.mxu1 %v644_v41  ;;  %1277 = vmatprep.mubr.msk.bf16.mxu1 %vm1402_vm0, %v1401_v2 }
 0x4c0   :  { %1272 = vmatmul.mubr.msk.bf16.vlgmr.msra.gmra.mrb[16].mxu0 %vm44_vm1, %v586_v43  ;;  %1287 = vmatprep.subr.bf16.mxu1 %v1401_v2 }
 0x4c1   :  { %1283 = vmatprep.mubr.msk.bf16.mxu0 %vm1402_vm0, %v1401_v2 }
 0x4c6   :  { %1278 = vmatmul.mubr.msk.bf16.vlgmr.msra.gmra.mrb[16].mxu1 %vm44_vm1, %v637_v44 }
 0x4c7   :  { %1289 = vmatprep.mubr.msk.bf16.mxu1 %vm1402_vm0, %v1401_v2 }
 0x58b   :  { %v1587_v45 = vpop.f32.mrb[12].mxu0 }
 0x58c   :  { %v1261_v46 = vpop.f32.mrb[13].mxu0 }
 0x58d   :  { %v1589_v47 = vpop.f32.mrb[14].mxu0 }
 0x58e   :  { %v1262_v48 = vpop.f32.mrb[15].mxu0 }
 0x591   :  { %v1591_v49 = vpop.f32.mrb[12].mxu1 }
 0x592   :  { %v1267_v51 = vpop.f32.mrb[13].mxu1 }
 0x593   :  { %v1596_v52 = vpop.f32.mrb[14].mxu1  ;;  %v629_v53 = vpop.f32.mrb[16].mxu0 }
 0x594   :  { %v630_v55 = vadd.f32 %v629_v53, %v27_v50  ;;  %v1268_v56 = vpop.f32.mrb[15].mxu1  ;;  %v1273_v57 = vpop.f32.mrb[17].mxu0 }
 0x595   :  { %v632_v58 = vpop.f32.mrb[18].mxu0 }
 0x596   :  { %v633_v59 = vadd.f32 %v632_v58, %v28_v54  ;;  %v1274_v60 = vpop.f32.mrb[19].mxu0  ;;  %v687_v61 = vadd.f32 %v630_v55, %v1484_v20 }
 0x598   :  { %v691_v62 = vsel %vm146_vm2, %v687_v61, -inf  ;;  %v688_v63 = vadd.f32 %v633_v59, %v1489_v24 }
 0x599   :  { %v680_v3 = vpop.f32.mrb[16].mxu1  ;;  %692 = vmax.xlane.f32.xlu0 %v691_v62 }
 0x59a   :  { %v681_v4 = vadd.f32 %v680_v3, %v27_v50  ;;  %v1279_v5 = vpop.f32.mrb[17].mxu1  ;;  %v694_v6 = vsel %vm146_vm2, %v688_v63, -inf }
 0x59b   :  { %v683_v7 = vpop.f32.mrb[18].mxu1  ;;  %695 = vmax.xlane.f32.xlu1 %v694_v6  ;;  %v29_v5 = vld [vmem:[%s1726_s1 + $0x30] sm:$0xff] }
 0x59c   :  { %v684_v8 = vadd.f32 %v683_v7, %v28_v54  ;;  %v1280_v9 = vpop.f32.mrb[19].mxu1  ;;  %v689_v10 = vadd.f32 %v681_v4, %v1484_v20 }
 0x59e   :  { %v697_v11 = vsel %vm146_vm2, %v689_v10, -inf  ;;  %v690_v12 = vadd.f32 %v684_v8, %v1489_v24  ;;  %v30_v8 = vld [vmem:[%s1726_s1 + $0x38] sm:$0xff]  ;;  %s1413_s1 = smov 40  }
 0x59f   :  { %698 = vmax.xlane.f32.xlu0 %v697_v11 }
 0x5a0   :  { %v700_v14 = vsel %vm146_vm2, %v690_v12, -inf }
 0x5a3   :  { %701 = vmax.xlane.f32.xlu0 %v700_v14 }
 0x5ac   :  { %737 = vrot.lane.b32.xlu1 %v1440_v0, %s1410_s17 }
 0x626   :  { %v693_v15 = vpop.xlane.xlu0 %692 }
 0x627   :  { %v703_v17 = vsub.f32 %v687_v61, %v693_v15 }
 0x628   :  { %v696_v18 = vpop.xlane.xlu1 %695 }
 0x629   :  { %v707_v19 = vmul.f32 1.442695, %v703_v17  ;;  %v704_v21 = vsub.f32 %v688_v63, %v696_v18 }
 0x62b   :  { %1369 = vpow2.f32 %v707_v19  ;;  %v709_v22 = vmul.f32 1.442695, %v704_v21 }
 0x62c   :  { %v699_v23 = vpop.xlane.xlu0 %698  ;;  %v738_v25 = vpop.permute.xlu1 %737 }
 0x62d   :  { %1371 = vpow2.f32 %v709_v22  ;;  %v705_v26 = vsub.f32 %v689_v10, %v699_v23  ;;  %1282 = vmatpush3.bf16.msra.mxu0 %v738_v25 }
 0x62e   :  { %1293 = vmatprep.subr.bf16.mxu0 %v1401_v2 }
 0x62f   :  { %v711_v27 = vmul.f32 1.442695, %v705_v26 }
 0x630   :  { %v702_v28 = vpop.xlane.xlu0 %701 }
 0x631   :  { %1373 = vpow2.f32 %v711_v27  ;;  %v706_v29 = vsub.f32 %v690_v12, %v702_v28 }
 0x633   :  { %v713_v30 = vmul.f32 1.442695, %v706_v29 }
 0x635   :  { %v1370_v31 = vpop.eup %1369  ;;  %1375 = vpow2.f32 %v713_v30 }
 0x636   :  { %v715_v32 = vsel %vm146_vm2, %v1370_v31, 0.0 }
 0x637   :  { %v1372_v33 = vpop.eup %1371  ;;  %716 = vadd.xlane.f32.xlu1 %v715_v32 }
 0x638   :  { %v718_v34 = vsel %vm146_vm2, %v1372_v33, 0.0 }
 0x639   :  { %719 = vadd.xlane.f32.xlu0 %v718_v34 }
 0x63b   :  { %v1374_v35 = vpop.eup %1373 }
 0x63c   :  { %v721_v36 = vsel %vm146_vm2, %v1374_v35, 0.0 }
 0x63d   :  { %722 = vadd.xlane.f32.xlu1 %v721_v36 }
 0x63f   :  { %v1376_v37 = vpop.eup %1375 }
 0x640   :  { %v724_v38 = vsel %vm146_vm2, %v1376_v37, 0.0 }
 0x641   :  { %725 = vadd.xlane.f32.xlu0 %v724_v38 }
 0x64e   :  { %862 = vrot.lane.b32.xlu1 %v1440_v0, %s1411_s18 }
 0x652   :  { %913 = vrot.lane.b32.xlu1 %v1445_v1, %s1411_s18 }
 0x656   :  { %911 = vrot.lane.b32.xlu1 %v1467_v16, %s1412_s19 }
 0x657   :  { %784 = vrot.lane.b32.xlu0 %v1445_v1, %s1410_s17 }
 0x65b   :  { %860 = vrot.lane.b32.xlu0 %v1462_v13, %s1412_s19 }
 0x6c4   :  { %v717_v39 = vpop.xlane.xlu1 %716 }
 0x6c5   :  { %1377 = vrcp.f32 %v717_v39 }
 0x6c6   :  { %v720_v40 = vpop.xlane.xlu0 %719 }
 0x6c7   :  { %1379 = vrcp.f32 %v720_v40 }
 0x6ca   :  { %v723_v41 = vpop.xlane.xlu1 %722 }
 0x6cb   :  { %1381 = vrcp.f32 %v723_v41 }
 0x6ce   :  { %v726_v42 = vpop.xlane.xlu0 %725  ;;  %v863_v46 = vpop.permute.xlu1 %862 }
 0x6cf   :  { %v1378_v43 = vpop.eup %1377  ;;  %1383 = vrcp.f32 %v726_v42  ;;  %v868_v16 = vsel %vm44_vm1, %v863_v46, 0 }
 0x6d0   :  { %v731_v48 = vmul.f32 %v1378_v43, %v1370_v31 }
 0x6d1   :  { %v1380_v44 = vpop.eup %1379 }
 0x6d2   :  { %v732_v50 = vmul.f32 %v1380_v44, %v1372_v33  ;;  %v785_v51 = vpop.permute.xlu0 %784  ;;  %v914_v55 = vpop.permute.xlu1 %913 }
 0x6d3   :  { %1288 = vmatpush3.bf16.msra.mxu1 %v785_v51  ;;  %v919_v59 = vsel %vm44_vm1, %v914_v55, 0  ;;  %v1178_v55 = vpack.c.bf16 %v1589_v47, %v1589_v47 }
 0x6d4   :  { %v735_v53 = vpack.c.bf16 %v732_v50, %v731_v48  ;;  %1299 = vmatprep.subr.bf16.mxu1 %v1401_v2 }
 0x6d5   :  { %v1382_v13 = vpop.eup %1381 }
 0x6d6   :  { %1284 = vmatmul.mubr.msk.bf16.vlgmr.msra.gmra.mrb[20].mxu0 %vm146_vm2, %v735_v53  ;;  %v733_v56 = vmul.f32 %v1382_v13, %v1374_v35  ;;  %v861_v58 = vpop.permute.xlu0 %860  ;;  %v912_v61 = vpop.permute.xlu1 %911 }
 0x6d7   :  { %1294 = vmatpush3.bf16.xpose.msra.mxu0 %v868_v16  ;;  %1295 = vmatprep.mubr.msk.bf16.mxu0 %vm1402_vm0, %v1401_v2 }
 0x6d8   :  { %1305 = vmatprep.subr.bf16.mxu0 %v1401_v2 }
 0x6d9   :  { %v1384_v54 = vpop.eup %1383 }
 0x6da   :  { %v734_v57 = vmul.f32 %v1384_v54, %v1376_v37  ;;  %v1177_v54 = vpack.c.bf16 %v1587_v45, %v1587_v45 }
 0x6dc   :  { %v736_v60 = vpack.c.bf16 %v734_v57, %v733_v56  ;;  %v1180_v56 = vpack.c.bf16 %v1596_v52, %v1596_v52  ;;  %v1179_v57 = vpack.c.bf16 %v1591_v49, %v1591_v49 }
 0x6de   :  { %1290 = vmatmul.mubr.msk.bf16.vlgmr.msra.gmra.mrb[20].mxu1 %vm146_vm2, %v736_v60  ;;  %1296 = vmatmul.mubr.msk.bf16.vlgmr.msra.gmra.mrb[24].mxu0 %vm44_vm1, %v861_v58 }
 0x6df   :  { %1300 = vmatpush3.bf16.xpose.msra.mxu1 %v919_v59  ;;  %1301 = vmatprep.mubr.msk.bf16.mxu1 %vm1402_vm0, %v1401_v2 }
 0x6e0   :  { %1307 = vmatprep.mubr.msk.bf16.mxu0 %vm1402_vm0, %v1401_v2  ;;  %1311 = vmatprep.subr.bf16.mxu1 %v1401_v2 }
 0x6e6   :  { %1302 = vmatmul.mubr.msk.bf16.vlgmr.msra.gmra.mrb[24].mxu1 %vm44_vm1, %v912_v61 }
 0x6e7   :  { %1313 = vmatprep.mubr.msk.bf16.mxu1 %vm1402_vm0, %v1401_v2 }
 0x7a9   :  { %v1639_v62 = vpop.f32.mrb[20].mxu0 }
 0x7aa   :  { %v1285_v63 = vpop.f32.mrb[21].mxu0  ;;  %v1181_v45 = vpack.c.bf16 %v1639_v62, %v1639_v62 }
 0x7ab   :  { %v1641_v3 = vpop.f32.mrb[22].mxu0 }
 0x7ac   :  { %v1286_v4 = vpop.f32.mrb[23].mxu0 }
 0x7b1   :  { %v1646_v6 = vpop.f32.mrb[20].mxu1  ;;  %v904_v7 = vpop.f32.mrb[24].mxu0 }
 0x7b2   :  { %v905_v9 = vadd.f32 %v904_v7, %v29_v5  ;;  %v1291_v10 = vpop.f32.mrb[21].mxu1  ;;  %v1297_v2 = vpop.f32.mrb[25].mxu0  ;;  %v1183_v47 = vpack.c.bf16 %v1646_v6, %v1646_v6 }
 0x7b3   :  { %v1651_v11 = vpop.f32.mrb[22].mxu1  ;;  %v907_v12 = vpop.f32.mrb[26].mxu0 }
 0x7b4   :  { %v908_v14 = vadd.f32 %v907_v12, %v30_v8  ;;  %v1292_v15 = vpop.f32.mrb[23].mxu1  ;;  %v1298_v17 = vpop.f32.mrb[27].mxu0  ;;  %v962_v18 = vadd.f32 %v905_v9, %v1484_v20 }
 0x7b6   :  { %v966_v19 = vsel %vm146_vm2, %v962_v18, -inf  ;;  %v963_v21 = vadd.f32 %v908_v14, %v1489_v24 }
 0x7b7   :  { %967 = vmax.xlane.f32.xlu0 %v966_v19 }
 0x7b8   :  { %v969_v22 = vsel %vm146_vm2, %v963_v21, -inf }
 0x7b9   :  { %v955_v23 = vpop.f32.mrb[24].mxu1  ;;  %970 = vmax.xlane.f32.xlu1 %v969_v22 }
 0x7ba   :  { %v956_v25 = vadd.f32 %v955_v23, %v29_v5  ;;  %v1303_v26 = vpop.f32.mrb[25].mxu1 }
 0x7bb   :  { %v958_v27 = vpop.f32.mrb[26].mxu1 }
 0x7bc   :  { %v959_v28 = vadd.f32 %v958_v27, %v30_v8  ;;  %v1304_v29 = vpop.f32.mrb[27].mxu1  ;;  %v964_v30 = vadd.f32 %v956_v25, %v1484_v20 }
 0x7be   :  { %v972_v31 = vsel %vm146_vm2, %v964_v30, -inf  ;;  %v965_v32 = vadd.f32 %v959_v28, %v1489_v24 }
 0x7bf   :  { %973 = vmax.xlane.f32.xlu0 %v972_v31 }
 0x7c0   :  { %v975_v33 = vsel %vm146_vm2, %v965_v32, -inf }
 0x7c3   :  { %976 = vmax.xlane.f32.xlu0 %v975_v33 }
 0x844   :  { %v968_v34 = vpop.xlane.xlu0 %967 }
 0x845   :  { %v978_v35 = vsub.f32 %v962_v18, %v968_v34 }
 0x846   :  { %v971_v36 = vpop.xlane.xlu1 %970 }
 0x847   :  { %v982_v37 = vmul.f32 1.442695, %v978_v35  ;;  %v979_v38 = vsub.f32 %v963_v21, %v971_v36 }
 0x849   :  { %1385 = vpow2.f32 %v982_v37  ;;  %v984_v39 = vmul.f32 1.442695, %v979_v38 }
 0x84b   :  { %1387 = vpow2.f32 %v984_v39 }
 0x84c   :  { %v974_v40 = vpop.xlane.xlu0 %973 }
 0x84d   :  { %v980_v41 = vsub.f32 %v964_v30, %v974_v40 }
 0x84f   :  { %v986_v42 = vmul.f32 1.442695, %v980_v41 }
 0x850   :  { %v977_v20 = vpop.xlane.xlu0 %976 }
 0x851   :  { %1389 = vpow2.f32 %v986_v42  ;;  %v981_v43 = vsub.f32 %v965_v32, %v977_v20 }
 0x853   :  { %v1386_v44 = vpop.eup %1385  ;;  %v988_v24 = vmul.f32 1.442695, %v981_v43 }
 0x854   :  { %v990_v46 = vsel %vm146_vm2, %v1386_v44, 0.0 }
 0x855   :  { %v1388_v48 = vpop.eup %1387  ;;  %1391 = vpow2.f32 %v988_v24  ;;  %991 = vadd.xlane.f32.xlu1 %v990_v46 }
 0x856   :  { %v993_v50 = vsel %vm146_vm2, %v1388_v48, 0.0 }
 0x857   :  { %994 = vadd.xlane.f32.xlu0 %v993_v50 }
 0x85b   :  { %v1390_v51 = vpop.eup %1389 }
 0x85c   :  { %v996_v16 = vsel %vm146_vm2, %v1390_v51, 0.0 }
 0x85d   :  { %997 = vadd.xlane.f32.xlu1 %v996_v16 }
 0x85f   :  { %v1392_v53 = vpop.eup %1391 }
 0x860   :  { %v999_v13 = vsel %vm146_vm2, %v1392_v53, 0.0 }
 0x861   :  { %1000 = vadd.xlane.f32.xlu0 %v999_v13 }
 0x86e   :  { %1012 = vrot.lane.b32.xlu1 %v1440_v0, %s1413_s1  ;;  %v1182_v0 = vpack.c.bf16 %v1641_v3, %v1641_v3 }
 0x872   :  { %568 = vrot.lane.b32.xlu1 %v1177_v54, %s1414_s2 }
 0x876   :  { %570 = vrot.lane.b32.xlu1 %v1178_v55, %s1414_s2 }
 0x877   :  { %1059 = vrot.lane.b32.xlu0 %v1445_v1, %s1413_s1  ;;  %v1184_v1 = vpack.c.bf16 %v1651_v11, %v1651_v11 }
 0x87a   :  { %574 = vrot.lane.b32.xlu1 %v1180_v56, %s1414_s2 }
 0x87b   :  { %572 = vrot.lane.b32.xlu0 %v1179_v57, %s1414_s2 }
 0x87e   :  { %845 = vrot.lane.b32.xlu1 %v1182_v0, %s1415_s24 }
 0x87f   :  { %843 = vrot.lane.b32.xlu0 %v1181_v45, %s1415_s24 }
 0x882   :  { %849 = vrot.lane.b32.xlu1 %v1184_v1, %s1415_s24 }
 0x883   :  { %847 = vrot.lane.b32.xlu0 %v1183_v47, %s1415_s24 }
 0x8e2   :  { %v992_v49 = vpop.xlane.xlu1 %991 }
 0x8e3   :  { %1393 = vrcp.f32 %v992_v49 }
 0x8e4   :  { %v995_v52 = vpop.xlane.xlu0 %994 }
 0x8e5   :  { %1395 = vrcp.f32 %v995_v52 }
 0x8ea   :  { %v998_v58 = vpop.xlane.xlu1 %997 }
 0x8eb   :  { %1397 = vrcp.f32 %v998_v58 }
 0x8ed   :  { %v1394_v59 = vpop.eup %1393 }
 0x8ee   :  { %v1001_v60 = vpop.xlane.xlu0 %1000  ;;  %v1013_v61 = vpop.permute.xlu1 %1012  ;;  %v1006_v63 = vmul.f32 %v1394_v59, %v1386_v44 }
 0x8ef   :  { %v1396_v62 = vpop.eup %1395  ;;  %1399 = vrcp.f32 %v1001_v60  ;;  %1306 = vmatpush3.bf16.msra.mxu0 %v1013_v61 }
 0x8f0   :  { %v1007_v3 = vmul.f32 %v1396_v62, %v1388_v48 }
 0x8f2   :  { %v1060_v4 = vpop.permute.xlu0 %1059  ;;  %v569_v5 = vpop.permute.xlu1 %568  ;;  %v1010_v6 = vpack.c.bf16 %v1007_v3, %v1006_v63 }
 0x8f3   :  { %581 = vst.msk [vmem:[%s1728_s3] sm:$0xf] %vm580_vm4, %v569_v5  ;;  %1312 = vmatpush3.bf16.msra.mxu1 %v1060_v4 }
 0x8f4   :  { %1308 = vmatmul.mubr.msk.bf16.vlgmr.msra.gmra.mrb[28].mxu0 %vm146_vm2, %v1010_v6 }
 0x8f5   :  { %v1398_v9 = vpop.eup %1397 }
 0x8f6   :  { %v573_v7 = vpop.permute.xlu0 %572  ;;  %v571_v8 = vpop.permute.xlu1 %570  ;;  %v1008_v2 = vmul.f32 %v1398_v9, %v1390_v51 }
 0x8f7   :  { %583 = vst.msk [vmem:[%s1728_s3 + $0x8] sm:$0xf] %vm580_vm4, %v573_v7  ;;  %582 = vst.msk [vmem:[%s1728_s3 + $0x4] sm:$0xf] %vm580_vm4, %v571_v8 }
 0x8f9   :  { %v1400_v10 = vpop.eup %1399 }
 0x8fa   :  { %v1009_v11 = vmul.f32 %v1400_v10, %v1392_v53  ;;  %v844_v12 = vpop.permute.xlu0 %843  ;;  %v575_v14 = vpop.permute.xlu1 %574 }
 0x8fb   :  { %856 = vst.msk [vmem:[%s1728_s3] sm:$0xf] %vm855_vm5, %v844_v12 }
 0x8fc   :  { %584 = vst.msk [vmem:[%s1728_s3 + $0xc] sm:$0xf] %vm580_vm4, %v575_v14  ;;  %v1011_v15 = vpack.c.bf16 %v1009_v11, %v1008_v2 }
 0x8fe   :  { %v848_v17 = vpop.permute.xlu0 %847  ;;  %1314 = vmatmul.mubr.msk.bf16.vlgmr.msra.gmra.mrb[28].mxu1 %vm146_vm2, %v1011_v15  ;;  %v846_v18 = vpop.permute.xlu1 %845 }
 0x8ff   :  { %858 = vst.msk [vmem:[%s1728_s3 + $0x8] sm:$0xf] %vm855_vm5, %v848_v17  ;;  %857 = vst.msk [vmem:[%s1728_s3 + $0x4] sm:$0xf] %vm855_vm5, %v846_v18 }
 0x902   :  { %v850_v19 = vpop.permute.xlu1 %849 }
 0x903   :  { %859 = vst.msk [vmem:[%s1728_s3 + $0xc] sm:$0xf] %vm855_vm5, %v850_v19 }
 0x9c7   :  { %v1052_v21 = vpop.f32.mrb[28].mxu0 }
 0x9c8   :  { %v1185_v22 = vpack.c.bf16 %v1052_v21, %v1052_v21  ;;  %v1309_v23 = vpop.f32.mrb[29].mxu0 }
 0x9c9   :  { %v1055_v25 = vpop.f32.mrb[30].mxu0 }
 0x9ca   :  { %v1186_v26 = vpack.c.bf16 %v1055_v25, %v1055_v25  ;;  %1118 = vrot.lane.b32.xlu0 %v1185_v22, %s1416_s14  ;;  %v1310_v27 = vpop.f32.mrb[31].mxu0 }
 0x9cc   :  { %1120 = vrot.lane.b32.xlu1 %v1186_v26, %s1416_s14 }
 0x9d1   :  { %v1099_v28 = vpop.f32.mrb[28].mxu1 }
 0x9d2   :  { %v1187_v29 = vpack.c.bf16 %v1099_v28, %v1099_v28  ;;  %v1315_v30 = vpop.f32.mrb[29].mxu1 }
 0x9d3   :  { %v1102_v31 = vpop.f32.mrb[30].mxu1 }
 0x9d4   :  { %v1188_v32 = vpack.c.bf16 %v1102_v31, %v1102_v31  ;;  %v1316_v33 = vpop.f32.mrb[31].mxu1  ;;  %1122 = vrot.lane.b32.xlu0 %v1187_v29, %s1416_s14 }
 0x9d6   :  { %1124 = vrot.lane.b32.xlu1 %v1188_v32, %s1416_s14 }
 0xa3c   :  { %v1119_v34 = vpop.permute.xlu0 %1118 }
 0xa3d   :  { %1131 = vst.msk [vmem:[%s1728_s3] sm:$0xf] %vm1130_vm6, %v1119_v34 }
 0xa3e   :  { %v1121_v35 = vpop.permute.xlu1 %1120 }
 0xa3f   :  { %1132 = vst.msk [vmem:[%s1728_s3 + $0x4] sm:$0xf] %vm1130_vm6, %v1121_v35 }
 0xa46   :  { %v1123_v36 = vpop.permute.xlu0 %1122 }
 0xa47   :  { %1133 = vst.msk [vmem:[%s1728_s3 + $0x8] sm:$0xf] %vm1130_vm6, %v1123_v36 }
 0xa48   :  { %v1125_v37 = vpop.permute.xlu1 %1124 }
 0xa49   :  { %1134 = vst.msk [vmem:[%s1728_s3 + $0xc] sm:$0xf] %vm1130_vm6, %v1125_v37 }

</bundles_post_ra>
